<compile_context>
chip_gen: v6e
topology: v6e:2x2x1
jax: 0.10.0
libtpu: 0.0.40
codegen_flags: <defaults>
</compile_context>

<pallas_src>
import functools
import math

import jax
import jax.numpy as jnp
from jax.experimental import pallas as pl
from jax.experimental.pallas import tpu as pltpu


# ----------------------------------------------------------------------------
# In-kernel helpers (all elementwise math in f32)
# ----------------------------------------------------------------------------
def _layer_norm(x, g, b, eps):
    mu = jnp.mean(x, axis=-1, keepdims=True)
    xc = x - mu
    var = jnp.mean(xc * xc, axis=-1, keepdims=True)
    return xc * jax.lax.rsqrt(var + eps) * g + b


def _erf_poly(x):
    # Abramowitz & Stegun 7.1.26 polynomial erf (|err| < 1.5e-7 ~ f32 eps).
    a1, a2, a3, a4, a5 = 0.254829592, -0.284496736, 1.421413741, -1.453152027, 1.061405429
    p = 0.3275911
    ax = jnp.abs(x)
    t = 1.0 / (1.0 + p * ax)
    poly = ((((a5 * t + a4) * t + a3) * t + a2) * t + a1) * t
    y = 1.0 - poly * jnp.exp(-ax * ax)
    return jnp.where(x >= 0, y, -y)


def _gelu_exact(x):
    # nn.GELU() default (exact, erf-based).  NOTE(v5e): if VALU becomes the
    # binding slot at full ViT-B MLP width, switch to a tanh-based GELU (EUP).
    return 0.5 * x * (1.0 + _erf_poly(x * 0.7071067811865476))


# ----------------------------------------------------------------------------
# Kernel 1: patch embedding (Conv2d with kernel==stride) as a row-tiled matmul
# ----------------------------------------------------------------------------
def _patch_embed_kernel(p_ref, w_ref, b_ref, o_ref):
    # p_ref: (tm, K) bf16   w_ref: (K, D) bf16   b_ref: (1, D) f32   o_ref: (tm, D) bf16
    acc = jnp.dot(p_ref[...], w_ref[...], preferred_element_type=jnp.float32)
    o_ref[...] = (acc + b_ref[...]).astype(o_ref.dtype)


def _pick_row_tile(R):
    # Prefer MXU-filling row tiles (256 feeds the v6e/v7x 256x256 MXU exactly,
    # 128 the v5e MXU).  Do NOT force >=2 grid steps when the whole problem is
    # one good tile.
    for cand in (256, 512, 128, 64, 32, 16, 8):
        if R % cand == 0:
            return cand
    return R


def patch_embed(patches, w_t, bias):
    R, K = patches.shape
    D = w_t.shape[1]
    tm = _pick_row_tile(R)
    return pl.pallas_call(
        _patch_embed_kernel,
        out_shape=jax.ShapeDtypeStruct((R, D), jnp.bfloat16),
        grid=(R // tm,),
        in_specs=[
            pl.BlockSpec((tm, K), lambda i: (i, 0)),
            pl.BlockSpec((K, D), lambda i: (0, 0)),   # weight resident (constant index)
            pl.BlockSpec((1, D), lambda i: (0, 0)),
        ],
        out_specs=pl.BlockSpec((tm, D), lambda i: (i, 0)),
        compiler_params=pltpu.CompilerParams(
            dimension_semantics=("parallel",),
        ),
    )(patches, w_t, bias)


# ----------------------------------------------------------------------------
# Kernel 2: one full transformer encoder block, Nb images per grid step.
#   LN1 -> fused QKV matmul on (Nb*S, D) rows -> per-head batched softmax(QK^T)V
#   written into a lane-dense VMEM scratch -> single Wo matmul -> residual
#   -> LN2 -> MLP (Linear, GELU, Linear) -> residual.
# ----------------------------------------------------------------------------
def _encoder_block_kernel(
    x_ref, ln1_w, ln1_b,
    wqkv, bqkv, wo, bo,
    ln2_w, ln2_b, w1, b1, w2, b2,
    o_ref, attn_scratch, *, num_heads, s_valid, eps,
):
    nb, S, D = x_ref.shape
    hd = D // num_heads
    scale = 1.0 / math.sqrt(hd)

    x = x_ref[...].astype(jnp.float32)            # (nb, S, D) f32
    x2 = x.reshape(nb * S, D)                     # flatten batch*seq into matmul rows

    # Additive key-padding mask (padded sequence positions >= s_valid).
    # Scores stay f32, so -1e30 is safe (exp underflows to 0 after max-sub).
    col = jax.lax.broadcasted_iota(jnp.int32, (1, 1, S), 2)
    key_bias = jnp.where(col < s_valid, 0.0, -1e30).astype(jnp.float32)

    # --- LayerNorm 1 + fused full-width QKV projection (bf16 MXU, f32 acc) ---
    xn = _layer_norm(x2, ln1_w[...], ln1_b[...], eps)
    qkv = jnp.dot(xn.astype(jnp.bfloat16), wqkv[...],
                  preferred_element_type=jnp.float32) + bqkv[...]   # (nb*S, 3D)
    q = qkv[:, :D].reshape(nb, S, D)
    k = qkv[:, D:2 * D].reshape(nb, S, D)
    v = qkv[:, 2 * D:].reshape(nb, S, D)

    # --- per-head attention (batched over the nb images in one einsum) ------
    for h in range(num_heads):
        sl = slice(h * hd, (h + 1) * hd)
        qh = q[:, :, sl].astype(jnp.bfloat16)
        kh = k[:, :, sl].astype(jnp.bfloat16)
        vh = v[:, :, sl].astype(jnp.bfloat16)
        s = jnp.einsum("bqd,bkd->bqk", qh, kh,
                       preferred_element_type=jnp.float32) * scale + key_bias
        s = s - jnp.max(s, axis=-1, keepdims=True)
        pexp = jnp.exp(s)
        pexp = pexp * pl.reciprocal(jnp.sum(pexp, axis=-1, keepdims=True), approx=True)
        pv = jnp.einsum("bqk,bkd->bqd", pexp.astype(jnp.bfloat16), vh,
                        preferred_element_type=jnp.float32)
        # Write this head's output into the lane-dense accumulator (no concat).
        attn_scratch[:, :, sl] = pv

    attn = attn_scratch[...].reshape(nb * S, D).astype(jnp.bfloat16)

    # --- single full-width output projection + residual ----------------------
    x1 = x2 + jnp.dot(attn, wo[...], preferred_element_type=jnp.float32) + bo[...]

    # --- LayerNorm 2 + MLP (bf16 matmuls, exact GELU in f32) + residual ------
    yn = _layer_norm(x1, ln2_w[...], ln2_b[...], eps)
    hmid = jnp.dot(yn.astype(jnp.bfloat16), w1[...],
                   preferred_element_type=jnp.float32) + b1[...]
    hmid = _gelu_exact(hmid)
    y = jnp.dot(hmid.astype(jnp.bfloat16), w2[...],
                preferred_element_type=jnp.float32) + b2[...]

    o_ref[...] = (x1 + y).reshape(nb, S, D).astype(o_ref.dtype)


def _choose_batch_block(N, S):
    # Fill the matmul M dimension (nb*S rows) to >=128 while keeping >=2 grid
    # steps for DMA/compute overlap when the batch allows it.
    best = N
    for d in range(N, 0, -1):
        if N % d == 0 and d * S >= 128 and N // d >= 2:
            best = d
    return best


def encoder_block(x, blk, num_heads, s_valid, eps=1e-6):
    N, S, D = x.shape
    M = blk["w1_t"].shape[1]
    nb = _choose_batch_block(N, S)
    kernel = functools.partial(
        _encoder_block_kernel, num_heads=num_heads, s_valid=s_valid, eps=eps
    )

    def const(shape):
        # Constant block index across the batch grid -> DMA'd once.
        # (For full ViT-B on v7x: add pipeline_mode=pl.Buffered(1) here to
        #  single-buffer the ~13.6 MB of invariant per-layer weights.)
        return pl.BlockSpec(shape, lambda n: (0,) * len(shape))

    # For the real ViT-B config (D=768, M=3072) one would additionally tile the
    # MLP over an extra grid axis (768/1024-wide chunks, f32 accumulator with
    # pl.when init/finalize) to bound VMEM on v7x; at this size whole-layer
    # bf16 weights fit comfortably in the default scoped VMEM limit.
    return pl.pallas_call(
        kernel,
        out_shape=jax.ShapeDtypeStruct((N, S, D), jnp.bfloat16),
        grid=(N // nb,),
        in_specs=[
            pl.BlockSpec((nb, S, D), lambda n: (n, 0, 0)),
            const((1, D)), const((1, D)),
            const((D, 3 * D)), const((1, 3 * D)),
            const((D, D)), const((1, D)),
            const((1, D)), const((1, D)),
            const((D, M)), const((1, M)),
            const((M, D)), const((1, D)),
        ],
        out_specs=pl.BlockSpec((nb, S, D), lambda n: (n, 0, 0)),
        scratch_shapes=[pltpu.VMEM((nb, S, D), jnp.float32)],
        compiler_params=pltpu.CompilerParams(
            dimension_semantics=("parallel",),
        ),
    )(
        x,
        blk["ln1_w"], blk["ln1_b"],
        blk["wqkv"], blk["bqkv"],
        blk["wo_t"], blk["bo"],
        blk["ln2_w"], blk["ln2_b"],
        blk["w1_t"], blk["b1"],
        blk["w2_t"], blk["b2"],
    )


# ----------------------------------------------------------------------------
# Glue: patch extraction + full forward
# ----------------------------------------------------------------------------
def _extract_patches(x_img, patch):
    # (N, C, H, W) -> (N, nh*nw, C*patch*patch), flatten order (c, ph, pw),
    # matching Conv2d(kernel=stride=patch) followed by reshape+permute.
    N, C, Himg, Wimg = x_img.shape
    nh, nw = Himg // patch, Wimg // patch
    x = x_img.reshape(N, C, nh, patch, nw, patch)
    x = x.transpose(0, 2, 4, 1, 3, 5)
    return x.reshape(N, nh * nw, C * patch * patch)


def vit_forward(x_img, kp, cfg):
    N, C, Himg, Wimg = x_img.shape
    p, D = cfg["patch"], cfg["D"]
    nh, nw = Himg // p, Wimg // p
    n_patches = nh * nw
    s_valid = 1 + n_patches
    s_pad = ((s_valid + 15) // 16) * 16     # multiple of 16: clean bf16 sublane packing

    patches = _extract_patches(x_img, p).reshape(N * n_patches, C * p * p)
    emb = patch_embed(patches.astype(jnp.bfloat16), kp["conv_w_t"], kp["conv_b"])
    emb = emb.reshape(N, n_patches, D)      # bf16

    cls = jnp.broadcast_to(
        kp["class_token"][None, None, :].astype(jnp.bfloat16), (N, 1, D))
    pad = jnp.zeros((N, s_pad - s_valid, D), jnp.bfloat16)
    x = jnp.concatenate([cls, emb, pad], axis=1)   # (N, S_pad, D) bf16

    # Sequential(dropout, layers): no pos_embedding, dropouts are identity,
    # no final LayerNorm (children()[:-1] drops it).
    for blk in kp["blocks"]:
        x = encoder_block(x, blk, cfg["heads"], s_valid)

    return x[:, 0].astype(jnp.float32)             # class token -> (N, D)


# ----------------------------------------------------------------------------
# Deterministic parameter initialization (PyTorch weight conventions) + repack
# ----------------------------------------------------------------------------
def init_raw_params(key, cfg):
    C, p, D, M, L = cfg["C"], cfg["patch"], cfg["D"], cfg["mlp"], cfg["layers"]
    keys = jax.random.split(key, 2 + L)

    def nrm(k, shape, scale=0.02):
        return scale * jax.random.normal(k, shape, jnp.float32)

    raw = {
        "conv_w": nrm(keys[0], (D, C * p * p)),    # Conv2d weight, flattened (D, C*p*p)
        "conv_b": nrm(keys[1], (D,)),
        "class_token": jnp.zeros((D,), jnp.float32),   # zeros, as in __init__
        "blocks": [],
    }
    for l in range(L):
        ks = jax.random.split(keys[2 + l], 12)
        raw["blocks"].append(dict(
            ln1_g=jnp.ones((D,), jnp.float32), ln1_b=jnp.zeros((D,), jnp.float32),
            Wq=nrm(ks[0], (D, D)), Wk=nrm(ks[1], (D, D)), Wv=nrm(ks[2], (D, D)),
            bq=nrm(ks[3], (D,)), bk=nrm(ks[4], (D,)), bv=nrm(ks[5], (D,)),
            Wo=nrm(ks[6], (D, D)), bo=nrm(ks[7], (D,)),
            ln2_g=jnp.ones((D,), jnp.float32), ln2_b=jnp.zeros((D,), jnp.float32),
            W1=nrm(ks[8], (M, D)), b1=nrm(ks[9], (M,)),
            W2=nrm(ks[10], (D, M)), b2=nrm(ks[11], (D,)),
        ))
    return raw


def to_kernel_params(raw, cfg):
    # Lane-dense slabs, weights in bf16 (matmul operands), biases/LN in f32.
    # TODO(synk): on v7x one could store these in fp8 (e4m3) for 2x MXU rate.
    kp = {
        "conv_w_t": raw["conv_w"].T.astype(jnp.bfloat16),     # (C*p*p, D)
        "conv_b": raw["conv_b"][None, :],                     # (1, D) f32
        "class_token": raw["class_token"],                    # (D,) f32
        "blocks": [],
    }
    for blk in raw["blocks"]:
        wqkv = jnp.concatenate([blk["Wq"].T, blk["Wk"].T, blk["Wv"].T], axis=1)
        bqkv = jnp.concatenate([blk["bq"], blk["bk"], blk["bv"]])[None, :]
        kp["blocks"].append(dict(
            ln1_w=blk["ln1_g"][None, :], ln1_b=blk["ln1_b"][None, :],
            wqkv=wqkv.astype(jnp.bfloat16),                   # (D, 3D)
            bqkv=bqkv,                                        # (1, 3D)
            wo_t=blk["Wo"].T.astype(jnp.bfloat16),            # (D, D)
            bo=blk["bo"][None, :],
            ln2_w=blk["ln2_g"][None, :], ln2_b=blk["ln2_b"][None, :],
            w1_t=blk["W1"].T.astype(jnp.bfloat16), b1=blk["b1"][None, :],
            w2_t=blk["W2"].T.astype(jnp.bfloat16), b2=blk["b2"][None, :],
        ))
    return kp


# ----------------------------------------------------------------------------
# Pure-JAX f32 reference (same math, torch conventions) for verification
# ----------------------------------------------------------------------------
def _ln_ref(x, g, b, eps=1e-6):
    mu = jnp.mean(x, axis=-1, keepdims=True)
    var = jnp.mean((x - mu) ** 2, axis=-1, keepdims=True)
    return (x - mu) * jax.lax.rsqrt(var + eps) * g + b


def vit_forward_ref(x_img, raw, cfg):
    N = x_img.shape[0]
    p, D, H = cfg["patch"], cfg["D"], cfg["heads"]
    hd = D // H
    patches = _extract_patches(x_img, p)                    # (N, P, C*p*p)
    emb = patches @ raw["conv_w"].T + raw["conv_b"]
    cls = jnp.broadcast_to(raw["class_token"][None, None, :], (N, 1, D))
    x = jnp.concatenate([cls, emb], axis=1)
    S = x.shape[1]
    for blk in raw["blocks"]:
        xn = _ln_ref(x, blk["ln1_g"], blk["ln1_b"])
        q = (xn @ blk["Wq"].T + blk["bq"]).reshape(N, S, H, hd).transpose(0, 2, 1, 3)
        k = (xn @ blk["Wk"].T + blk["bk"]).reshape(N, S, H, hd).transpose(0, 2, 1, 3)
        v = (xn @ blk["Wv"].T + blk["bv"]).reshape(N, S, H, hd).transpose(0, 2, 1, 3)
        s = jnp.einsum("nhsd,nhtd->nhst", q, k) / math.sqrt(hd)
        a = jax.nn.softmax(s, axis=-1)
        o = jnp.einsum("nhst,nhtd->nhsd", a, v).transpose(0, 2, 1, 3).reshape(N, S, D)
        x = x + o @ blk["Wo"].T + blk["bo"]
        y = _ln_ref(x, blk["ln2_g"], blk["ln2_b"])
        y = jax.nn.gelu(y @ blk["W1"].T + blk["b1"], approximate=False)
        y = y @ blk["W2"].T + blk["b2"]
        x = x + y
    return x[:, 0]


# ----------------------------------------------------------------------------
if __name__ == "__main__":
    # Scaled-down config (real vit_b_16: D=768, 12 heads, 12 layers, mlp=3072).
    cfg = dict(C=4, patch=16, img=64, D=128, heads=4, mlp=256, layers=2)

    key = jax.random.PRNGKey(0)
    kx, kparam = jax.random.split(key)
    # N=8 -> encoder grid of 2 steps with 4 images (128 matmul rows) per step,
    # and a 128-row patch-embed tile.
    N = 8
    x = jax.random.normal(kx, (N, cfg["C"], cfg["img"], cfg["img"]), jnp.float32)

    raw = init_raw_params(kparam, cfg)
    kp = to_kernel_params(raw, cfg)

    fwd = jax.jit(lambda img, params: vit_forward(img, params, cfg))
    out = jax.block_until_ready(fwd(x, kp))
    assert out.shape == (N, cfg["D"]), out.shape

    # f32 reference; kernel uses bf16 matmul operands + bf16 inter-layer
    # activations (f32 accumulation) and an approximate softmax reciprocal,
    # so allow a bf16-appropriate tolerance.
    ref = vit_forward_ref(x, raw, cfg)
    max_err = float(jnp.max(jnp.abs(out - ref)))
    assert max_err < 5e-2, f"kernel/reference mismatch: {max_err}"

    print("KERNEL_OK")
</pallas_src>

<mosaic_0001>
module attributes {stable_mosaic.version = 11 : i64} {
  func.func @_patch_embed_kernel(%arg0: i32, %arg1: memref<128x1024xbf16, #tpu.memory_space<vmem>>, %arg2: memref<1024x128xbf16, #tpu.memory_space<vmem>>, %arg3: memref<1x128xf32, #tpu.memory_space<vmem>>, %arg4: memref<128x128xbf16, #tpu.memory_space<vmem>>) attributes {dimension_semantics = [#tpu.dimension_semantics<parallel>], iteration_bounds = array<i64: 1>, scalar_prefetch = 0 : i64, scratch_operands = 0 : i64, tpu.core_type = #tpu.core_type<tc>, window_params = [{transform_indices = @transform_0, window_bounds = array<i64: 128, 1024>}, {pipeline_mode = #tpu.pipeline_mode<synchronous>, transform_indices = @transform_1, window_bounds = array<i64: 1024, 128>}, {pipeline_mode = #tpu.pipeline_mode<synchronous>, transform_indices = @transform_2, window_bounds = array<i64: 1, 128>}, {transform_indices = @transform_3, window_bounds = array<i64: 128, 128>}]} {
    %c0 = arith.constant 0 : index
    %c0_0 = arith.constant 0 : index
    %0 = vector.load %arg1[%c0, %c0_0] : memref<128x1024xbf16, #tpu.memory_space<vmem>>, vector<128x1024xbf16>
    %c0_1 = arith.constant 0 : index
    %c0_2 = arith.constant 0 : index
    %1 = vector.load %arg2[%c0_1, %c0_2] : memref<1024x128xbf16, #tpu.memory_space<vmem>>, vector<1024x128xbf16>
    %cst = arith.constant dense<0.000000e+00> : vector<128x128xf32>
    %2 = tpu.matmul %0, %1, %cst {dimension_numbers = #tpu.dot_dimension_numbers<[1], [0], [0], [1], [0, 0, 1, 1], [], []>} : vector<128x1024xbf16>, vector<1024x128xbf16>, vector<128x128xf32> -> vector<128x128xf32>
    %c0_3 = arith.constant 0 : index
    %c0_4 = arith.constant 0 : index
    %3 = vector.load %arg3[%c0_3, %c0_4] : memref<1x128xf32, #tpu.memory_space<vmem>>, vector<1x128xf32>
    %4 = vector.broadcast %3 : vector<1x128xf32> to vector<128x128xf32>
    %5 = arith.addf %2, %4 : vector<128x128xf32>
    %6 = arith.truncf %5 : vector<128x128xf32> to vector<128x128xbf16>
    %c0_5 = arith.constant 0 : index
    %c0_6 = arith.constant 0 : index
    %7 = vector.load %arg4[%c0_5, %c0_6] : memref<128x128xbf16, #tpu.memory_space<vmem>>, vector<128x128xbf16>
    tpu.vector_store %arg4[%c0_5, %c0_6], %6 {strides = array<i32>} : memref<128x128xbf16, #tpu.memory_space<vmem>>, vector<128x128xbf16>,
    return
  }
  func.func @transform_0(%arg0: i32) -> (i32, i32) {
    %c0_i32 = arith.constant 0 : i32
    %c0_i32_0 = arith.constant 0 : i32
    return %arg0, %c0_i32 : i32, i32
  }
  func.func @transform_1(%arg0: i32) -> (i32, i32) {
    %c0_i32 = arith.constant 0 : i32
    %c0_i32_0 = arith.constant 0 : i32
    %c0_i32_1 = arith.constant 0 : i32
    return %c0_i32, %c0_i32_0 : i32, i32
  }
  func.func @transform_2(%arg0: i32) -> (i32, i32) {
    %c0_i32 = arith.constant 0 : i32
    %c0_i32_0 = arith.constant 0 : i32
    %c0_i32_1 = arith.constant 0 : i32
    return %c0_i32, %c0_i32_0 : i32, i32
  }
  func.func @transform_3(%arg0: i32) -> (i32, i32) {
    %c0_i32 = arith.constant 0 : i32
    %c0_i32_0 = arith.constant 0 : i32
    return %arg0, %c0_i32 : i32, i32
  }
}

module attributes {stable_mosaic.version = 11 : i64} {
  func.func @_encoder_block_kernel(%arg0: i32, %arg1: memref<4x32x128xbf16, #tpu.memory_space<vmem>>, %arg2: memref<1x128xf32, #tpu.memory_space<vmem>>, %arg3: memref<1x128xf32, #tpu.memory_space<vmem>>, %arg4: memref<128x384xbf16, #tpu.memory_space<vmem>>, %arg5: memref<1x384xf32, #tpu.memory_space<vmem>>, %arg6: memref<128x128xbf16, #tpu.memory_space<vmem>>, %arg7: memref<1x128xf32, #tpu.memory_space<vmem>>, %arg8: memref<1x128xf32, #tpu.memory_space<vmem>>, %arg9: memref<1x128xf32, #tpu.memory_space<vmem>>, %arg10: memref<128x256xbf16, #tpu.memory_space<vmem>>, %arg11: memref<1x256xf32, #tpu.memory_space<vmem>>, %arg12: memref<256x128xbf16, #tpu.memory_space<vmem>>, %arg13: memref<1x128xf32, #tpu.memory_space<vmem>>, %arg14: memref<4x32x128xbf16, #tpu.memory_space<vmem>>, %arg15: memref<4x32x128xf32, #tpu.memory_space<vmem>>) attributes {dimension_semantics = [#tpu.dimension_semantics<parallel>], iteration_bounds = array<i64: 2>, scalar_prefetch = 0 : i64, scratch_operands = 1 : i64, tpu.core_type = #tpu.core_type<tc>, window_params = [{transform_indices = @transform_0, window_bounds = array<i64: 4, 32, 128>}, {pipeline_mode = #tpu.pipeline_mode<synchronous>, transform_indices = @transform_1, window_bounds = array<i64: 1, 128>}, {pipeline_mode = #tpu.pipeline_mode<synchronous>, transform_indices = @transform_2, window_bounds = array<i64: 1, 128>}, {pipeline_mode = #tpu.pipeline_mode<synchronous>, transform_indices = @transform_3, window_bounds = array<i64: 128, 384>}, {pipeline_mode = #tpu.pipeline_mode<synchronous>, transform_indices = @transform_4, window_bounds = array<i64: 1, 384>}, {pipeline_mode = #tpu.pipeline_mode<synchronous>, transform_indices = @transform_5, window_bounds = array<i64: 128, 128>}, {pipeline_mode = #tpu.pipeline_mode<synchronous>, transform_indices = @transform_6, window_bounds = array<i64: 1, 128>}, {pipeline_mode = #tpu.pipeline_mode<synchronous>, transform_indices = @transform_7, window_bounds = array<i64: 1, 128>}, {pipeline_mode = #tpu.pipeline_mode<synchronous>, transform_indices = @transform_8, window_bounds = array<i64: 1, 128>}, {pipeline_mode = #tpu.pipeline_mode<synchronous>, transform_indices = @transform_9, window_bounds = array<i64: 128, 256>}, {pipeline_mode = #tpu.pipeline_mode<synchronous>, transform_indices = @transform_10, window_bounds = array<i64: 1, 256>}, {pipeline_mode = #tpu.pipeline_mode<synchronous>, transform_indices = @transform_11, window_bounds = array<i64: 256, 128>}, {pipeline_mode = #tpu.pipeline_mode<synchronous>, transform_indices = @transform_12, window_bounds = array<i64: 1, 128>}, {transform_indices = @transform_13, window_bounds = array<i64: 4, 32, 128>}]} {
    %c0 = arith.constant 0 : index
    %c0_0 = arith.constant 0 : index
    %c0_1 = arith.constant 0 : index
    %0 = vector.load %arg1[%c0, %c0_0, %c0_1] : memref<4x32x128xbf16, #tpu.memory_space<vmem>>, vector<4x32x128xbf16>
    %1 = arith.extf %0 : vector<4x32x128xbf16> to vector<4x32x128xf32>
    %2 = vector.shape_cast %1 : vector<4x32x128xf32> to vector<128x128xf32>
    %3 = tpu.iota {dimensions = array<i32: 2>} : vector<1x1x32xi32>
    %c17_i32 = arith.constant 17 : i32
    %4 = vector.broadcast %c17_i32 : i32 to vector<1x1x32xi32>
    %5 = arith.cmpi slt, %3, %4 : vector<1x1x32xi32>
    %cst = arith.constant 0.000000e+00 : f32
    %cst_2 = arith.constant -1.000000e+30 : f32
    %6 = vector.broadcast %cst : f32 to vector<1x1x32xf32>
    %7 = vector.broadcast %cst_2 : f32 to vector<1x1x32xf32>
    %8 = arith.select %5, %6, %7 : vector<1x1x32xi1>, vector<1x1x32xf32>
    %c0_3 = arith.constant 0 : index
    %c0_4 = arith.constant 0 : index
    %9 = vector.load %arg2[%c0_3, %c0_4] : memref<1x128xf32, #tpu.memory_space<vmem>>, vector<1x128xf32>
    %c0_5 = arith.constant 0 : index
    %c0_6 = arith.constant 0 : index
    %10 = vector.load %arg3[%c0_5, %c0_6] : memref<1x128xf32, #tpu.memory_space<vmem>>, vector<1x128xf32>
    %cst_7 = arith.constant dense<0.000000e+00> : vector<128xf32>
    %11 = vector.multi_reduction <add>, %2, %cst_7 [1] : vector<128x128xf32> to vector<128xf32>
    %12 = vector.shape_cast %11 : vector<128xf32> to vector<128x1xf32>
    %cst_8 = arith.constant 1.280000e+02 : f32
    %13 = vector.broadcast %cst_8 : f32 to vector<128x1xf32>
    %14 = arith.divf %12, %13 : vector<128x1xf32>
    %15 = vector.broadcast %14 : vector<128x1xf32> to vector<128x128xf32>
    %16 = arith.subf %2, %15 : vector<128x128xf32>
    %17 = arith.mulf %16, %16 : vector<128x128xf32>
    %cst_9 = arith.constant dense<0.000000e+00> : vector<128xf32>
    %18 = vector.multi_reduction <add>, %17, %cst_9 [1] : vector<128x128xf32> to vector<128xf32>
    %19 = vector.shape_cast %18 : vector<128xf32> to vector<128x1xf32>
    %cst_10 = arith.constant 1.280000e+02 : f32
    %20 = vector.broadcast %cst_10 : f32 to vector<128x1xf32>
    %21 = arith.divf %19, %20 : vector<128x1xf32>
    %cst_11 = arith.constant 9.99999997E-7 : f32
    %22 = vector.broadcast %cst_11 : f32 to vector<128x1xf32>
    %23 = arith.addf %21, %22 : vector<128x1xf32>
    %24 = math.rsqrt %23 : vector<128x1xf32>
    %25 = vector.broadcast %24 : vector<128x1xf32> to vector<128x128xf32>
    %26 = arith.mulf %16, %25 : vector<128x128xf32>
    %27 = vector.broadcast %9 : vector<1x128xf32> to vector<128x128xf32>
    %28 = arith.mulf %26, %27 : vector<128x128xf32>
    %29 = vector.broadcast %10 : vector<1x128xf32> to vector<128x128xf32>
    %30 = arith.addf %28, %29 : vector<128x128xf32>
    %31 = arith.truncf %30 : vector<128x128xf32> to vector<128x128xbf16>
    %c0_12 = arith.constant 0 : index
    %c0_13 = arith.constant 0 : index
    %32 = vector.load %arg4[%c0_12, %c0_13] : memref<128x384xbf16, #tpu.memory_space<vmem>>, vector<128x384xbf16>
    %cst_14 = arith.constant dense<0.000000e+00> : vector<128x384xf32>
    %33 = tpu.matmul %31, %32, %cst_14 {dimension_numbers = #tpu.dot_dimension_numbers<[1], [0], [0], [1], [0, 0, 1, 1], [], []>} : vector<128x128xbf16>, vector<128x384xbf16>, vector<128x384xf32> -> vector<128x384xf32>
    %c0_15 = arith.constant 0 : index
    %c0_16 = arith.constant 0 : index
    %34 = vector.load %arg5[%c0_15, %c0_16] : memref<1x384xf32, #tpu.memory_space<vmem>>, vector<1x384xf32>
    %35 = vector.broadcast %34 : vector<1x384xf32> to vector<128x384xf32>
    %36 = arith.addf %33, %35 : vector<128x384xf32>
    %37 = vector.extract_strided_slice %36 {offsets = [0, 0], sizes = [128, 128], strides = [1, 1]} : vector<128x384xf32> to vector<128x128xf32>
    %38 = vector.shape_cast %37 : vector<128x128xf32> to vector<4x32x128xf32>
    %39 = vector.extract_strided_slice %36 {offsets = [0, 128], sizes = [128, 128], strides = [1, 1]} : vector<128x384xf32> to vector<128x128xf32>
    %40 = vector.shape_cast %39 : vector<128x128xf32> to vector<4x32x128xf32>
    %41 = vector.extract_strided_slice %36 {offsets = [0, 256], sizes = [128, 128], strides = [1, 1]} : vector<128x384xf32> to vector<128x128xf32>
    %42 = vector.shape_cast %41 : vector<128x128xf32> to vector<4x32x128xf32>
    %43 = vector.extract_strided_slice %38 {offsets = [0, 0, 0], sizes = [4, 32, 32], strides = [1, 1, 1]} : vector<4x32x128xf32> to vector<4x32x32xf32>
    %44 = arith.truncf %43 : vector<4x32x32xf32> to vector<4x32x32xbf16>
    %45 = vector.extract_strided_slice %40 {offsets = [0, 0, 0], sizes = [4, 32, 32], strides = [1, 1, 1]} : vector<4x32x128xf32> to vector<4x32x32xf32>
    %46 = arith.truncf %45 : vector<4x32x32xf32> to vector<4x32x32xbf16>
    %47 = vector.extract_strided_slice %42 {offsets = [0, 0, 0], sizes = [4, 32, 32], strides = [1, 1, 1]} : vector<4x32x128xf32> to vector<4x32x32xf32>
    %48 = arith.truncf %47 : vector<4x32x32xf32> to vector<4x32x32xbf16>
    "tpu.trace_start"() <{level = 10 : i32, message = "bqd,bkd->bqk"}> : () -> ()
    %cst_17 = arith.constant dense<0.000000e+00> : vector<4x32x32xf32>
    %49 = tpu.matmul %44, %46, %cst_17 {dimension_numbers = #tpu.dot_dimension_numbers<[2], [2], [1], [1], [0, 0, 0, 1, 1, 1], [0], [0]>} : vector<4x32x32xbf16>, vector<4x32x32xbf16>, vector<4x32x32xf32> -> vector<4x32x32xf32>
    "tpu.trace_stop"() : () -> ()
    %cst_18 = arith.constant 0.176776692 : f32
    %50 = vector.broadcast %cst_18 : f32 to vector<4x32x32xf32>
    %51 = arith.mulf %49, %50 : vector<4x32x32xf32>
    %52 = vector.broadcast %8 : vector<1x1x32xf32> to vector<4x32x32xf32>
    %53 = arith.addf %51, %52 : vector<4x32x32xf32>
    %cst_19 = arith.constant dense<0xFF800000> : vector<4x32xf32>
    %54 = vector.multi_reduction <maximumf>, %53, %cst_19 [2] : vector<4x32x32xf32> to vector<4x32xf32>
    %55 = vector.shape_cast %54 : vector<4x32xf32> to vector<4x32x1xf32>
    %56 = vector.broadcast %55 : vector<4x32x1xf32> to vector<4x32x32xf32>
    %57 = arith.subf %53, %56 : vector<4x32x32xf32>
    %58 = math.exp %57 : vector<4x32x32xf32>
    %cst_20 = arith.constant dense<0.000000e+00> : vector<4x32xf32>
    %59 = vector.multi_reduction <add>, %58, %cst_20 [2] : vector<4x32x32xf32> to vector<4x32xf32>
    %60 = vector.shape_cast %59 : vector<4x32xf32> to vector<4x32x1xf32>
    %61 = tpu.reciprocal %60 {approx = true} : vector<4x32x1xf32> -> vector<4x32x1xf32>
    %62 = vector.broadcast %61 : vector<4x32x1xf32> to vector<4x32x32xf32>
    %63 = arith.mulf %58, %62 : vector<4x32x32xf32>
    %64 = arith.truncf %63 : vector<4x32x32xf32> to vector<4x32x32xbf16>
    "tpu.trace_start"() <{level = 10 : i32, message = "bqk,bkd->bqd"}> : () -> ()
    %cst_21 = arith.constant dense<0.000000e+00> : vector<4x32x32xf32>
    %65 = tpu.matmul %64, %48, %cst_21 {dimension_numbers = #tpu.dot_dimension_numbers<[2], [1], [1], [2], [0, 0, 0, 1, 1, 2], [0], [0]>} : vector<4x32x32xbf16>, vector<4x32x32xbf16>, vector<4x32x32xf32> -> vector<4x32x32xf32>
    "tpu.trace_stop"() : () -> ()
    %c0_22 = arith.constant 0 : index
    %c0_23 = arith.constant 0 : index
    %c0_24 = arith.constant 0 : index
    %66 = vector.load %arg15[%c0_22, %c0_23, %c0_24] : memref<4x32x128xf32, #tpu.memory_space<vmem>>, vector<4x32x32xf32>
    tpu.vector_store %arg15[%c0_22, %c0_23, %c0_24], %65 {strides = array<i32>} : memref<4x32x128xf32, #tpu.memory_space<vmem>>, vector<4x32x32xf32>,
    %67 = vector.extract_strided_slice %38 {offsets = [0, 0, 32], sizes = [4, 32, 32], strides = [1, 1, 1]} : vector<4x32x128xf32> to vector<4x32x32xf32>
    %68 = arith.truncf %67 : vector<4x32x32xf32> to vector<4x32x32xbf16>
    %69 = vector.extract_strided_slice %40 {offsets = [0, 0, 32], sizes = [4, 32, 32], strides = [1, 1, 1]} : vector<4x32x128xf32> to vector<4x32x32xf32>
    %70 = arith.truncf %69 : vector<4x32x32xf32> to vector<4x32x32xbf16>
    %71 = vector.extract_strided_slice %42 {offsets = [0, 0, 32], sizes = [4, 32, 32], strides = [1, 1, 1]} : vector<4x32x128xf32> to vector<4x32x32xf32>
    %72 = arith.truncf %71 : vector<4x32x32xf32> to vector<4x32x32xbf16>
    "tpu.trace_start"() <{level = 10 : i32, message = "bqd,bkd->bqk"}> : () -> ()
    %cst_25 = arith.constant dense<0.000000e+00> : vector<4x32x32xf32>
    %73 = tpu.matmul %68, %70, %cst_25 {dimension_numbers = #tpu.dot_dimension_numbers<[2], [2], [1], [1], [0, 0, 0, 1, 1, 1], [0], [0]>} : vector<4x32x32xbf16>, vector<4x32x32xbf16>, vector<4x32x32xf32> -> vector<4x32x32xf32>
    "tpu.trace_stop"() : () -> ()
    %cst_26 = arith.constant 0.176776692 : f32
    %74 = vector.broadcast %cst_26 : f32 to vector<4x32x32xf32>
    %75 = arith.mulf %73, %74 : vector<4x32x32xf32>
    %76 = vector.broadcast %8 : vector<1x1x32xf32> to vector<4x32x32xf32>
    %77 = arith.addf %75, %76 : vector<4x32x32xf32>
    %cst_27 = arith.constant dense<0xFF800000> : vector<4x32xf32>
    %78 = vector.multi_reduction <maximumf>, %77, %cst_27 [2] : vector<4x32x32xf32> to vector<4x32xf32>
    %79 = vector.shape_cast %78 : vector<4x32xf32> to vector<4x32x1xf32>
    %80 = vector.broadcast %79 : vector<4x32x1xf32> to vector<4x32x32xf32>
    %81 = arith.subf %77, %80 : vector<4x32x32xf32>
    %82 = math.exp %81 : vector<4x32x32xf32>
    %cst_28 = arith.constant dense<0.000000e+00> : vector<4x32xf32>
    %83 = vector.multi_reduction <add>, %82, %cst_28 [2] : vector<4x32x32xf32> to vector<4x32xf32>
    %84 = vector.shape_cast %83 : vector<4x32xf32> to vector<4x32x1xf32>
    %85 = tpu.reciprocal %84 {approx = true} : vector<4x32x1xf32> -> vector<4x32x1xf32>
    %86 = vector.broadcast %85 : vector<4x32x1xf32> to vector<4x32x32xf32>
    %87 = arith.mulf %82, %86 : vector<4x32x32xf32>
    %88 = arith.truncf %87 : vector<4x32x32xf32> to vector<4x32x32xbf16>
    "tpu.trace_start"() <{level = 10 : i32, message = "bqk,bkd->bqd"}> : () -> ()
    %cst_29 = arith.constant dense<0.000000e+00> : vector<4x32x32xf32>
    %89 = tpu.matmul %88, %72, %cst_29 {dimension_numbers = #tpu.dot_dimension_numbers<[2], [1], [1], [2], [0, 0, 0, 1, 1, 2], [0], [0]>} : vector<4x32x32xbf16>, vector<4x32x32xbf16>, vector<4x32x32xf32> -> vector<4x32x32xf32>
    "tpu.trace_stop"() : () -> ()
    %c0_30 = arith.constant 0 : index
    %c0_31 = arith.constant 0 : index
    %c32 = arith.constant 32 : index
    %90 = vector.load %arg15[%c0_30, %c0_31, %c32] : memref<4x32x128xf32, #tpu.memory_space<vmem>>, vector<4x32x32xf32>
    tpu.vector_store %arg15[%c0_30, %c0_31, %c32], %89 {strides = array<i32>} : memref<4x32x128xf32, #tpu.memory_space<vmem>>, vector<4x32x32xf32>,
    %91 = vector.extract_strided_slice %38 {offsets = [0, 0, 64], sizes = [4, 32, 32], strides = [1, 1, 1]} : vector<4x32x128xf32> to vector<4x32x32xf32>
    %92 = arith.truncf %91 : vector<4x32x32xf32> to vector<4x32x32xbf16>
    %93 = vector.extract_strided_slice %40 {offsets = [0, 0, 64], sizes = [4, 32, 32], strides = [1, 1, 1]} : vector<4x32x128xf32> to vector<4x32x32xf32>
    %94 = arith.truncf %93 : vector<4x32x32xf32> to vector<4x32x32xbf16>
    %95 = vector.extract_strided_slice %42 {offsets = [0, 0, 64], sizes = [4, 32, 32], strides = [1, 1, 1]} : vector<4x32x128xf32> to vector<4x32x32xf32>
    %96 = arith.truncf %95 : vector<4x32x32xf32> to vector<4x32x32xbf16>
    "tpu.trace_start"() <{level = 10 : i32, message = "bqd,bkd->bqk"}> : () -> ()
    %cst_32 = arith.constant dense<0.000000e+00> : vector<4x32x32xf32>
    %97 = tpu.matmul %92, %94, %cst_32 {dimension_numbers = #tpu.dot_dimension_numbers<[2], [2], [1], [1], [0, 0, 0, 1, 1, 1], [0], [0]>} : vector<4x32x32xbf16>, vector<4x32x32xbf16>, vector<4x32x32xf32> -> vector<4x32x32xf32>
    "tpu.trace_stop"() : () -> ()
    %cst_33 = arith.constant 0.176776692 : f32
    %98 = vector.broadcast %cst_33 : f32 to vector<4x32x32xf32>
    %99 = arith.mulf %97, %98 : vector<4x32x32xf32>
    %100 = vector.broadcast %8 : vector<1x1x32xf32> to vector<4x32x32xf32>
    %101 = arith.addf %99, %100 : vector<4x32x32xf32>
    %cst_34 = arith.constant dense<0xFF800000> : vector<4x32xf32>
    %102 = vector.multi_reduction <maximumf>, %101, %cst_34 [2] : vector<4x32x32xf32> to vector<4x32xf32>
    %103 = vector.shape_cast %102 : vector<4x32xf32> to vector<4x32x1xf32>
    %104 = vector.broadcast %103 : vector<4x32x1xf32> to vector<4x32x32xf32>
    %105 = arith.subf %101, %104 : vector<4x32x32xf32>
    %106 = math.exp %105 : vector<4x32x32xf32>
    %cst_35 = arith.constant dense<0.000000e+00> : vector<4x32xf32>
    %107 = vector.multi_reduction <add>, %106, %cst_35 [2] : vector<4x32x32xf32> to vector<4x32xf32>
    %108 = vector.shape_cast %107 : vector<4x32xf32> to vector<4x32x1xf32>
    %109 = tpu.reciprocal %108 {approx = true} : vector<4x32x1xf32> -> vector<4x32x1xf32>
    %110 = vector.broadcast %109 : vector<4x32x1xf32> to vector<4x32x32xf32>
    %111 = arith.mulf %106, %110 : vector<4x32x32xf32>
    %112 = arith.truncf %111 : vector<4x32x32xf32> to vector<4x32x32xbf16>
    "tpu.trace_start"() <{level = 10 : i32, message = "bqk,bkd->bqd"}> : () -> ()
    %cst_36 = arith.constant dense<0.000000e+00> : vector<4x32x32xf32>
    %113 = tpu.matmul %112, %96, %cst_36 {dimension_numbers = #tpu.dot_dimension_numbers<[2], [1], [1], [2], [0, 0, 0, 1, 1, 2], [0], [0]>} : vector<4x32x32xbf16>, vector<4x32x32xbf16>, vector<4x32x32xf32> -> vector<4x32x32xf32>
    "tpu.trace_stop"() : () -> ()
    %c0_37 = arith.constant 0 : index
    %c0_38 = arith.constant 0 : index
    %c64 = arith.constant 64 : index
    %114 = vector.load %arg15[%c0_37, %c0_38, %c64] : memref<4x32x128xf32, #tpu.memory_space<vmem>>, vector<4x32x32xf32>
    tpu.vector_store %arg15[%c0_37, %c0_38, %c64], %113 {strides = array<i32>} : memref<4x32x128xf32, #tpu.memory_space<vmem>>, vector<4x32x32xf32>,
    %115 = vector.extract_strided_slice %38 {offsets = [0, 0, 96], sizes = [4, 32, 32], strides = [1, 1, 1]} : vector<4x32x128xf32> to vector<4x32x32xf32>
    %116 = arith.truncf %115 : vector<4x32x32xf32> to vector<4x32x32xbf16>
    %117 = vector.extract_strided_slice %40 {offsets = [0, 0, 96], sizes = [4, 32, 32], strides = [1, 1, 1]} : vector<4x32x128xf32> to vector<4x32x32xf32>
    %118 = arith.truncf %117 : vector<4x32x32xf32> to vector<4x32x32xbf16>
    %119 = vector.extract_strided_slice %42 {offsets = [0, 0, 96], sizes = [4, 32, 32], strides = [1, 1, 1]} : vector<4x32x128xf32> to vector<4x32x32xf32>
    %120 = arith.truncf %119 : vector<4x32x32xf32> to vector<4x32x32xbf16>
    "tpu.trace_start"() <{level = 10 : i32, message = "bqd,bkd->bqk"}> : () -> ()
    %cst_39 = arith.constant dense<0.000000e+00> : vector<4x32x32xf32>
    %121 = tpu.matmul %116, %118, %cst_39 {dimension_numbers = #tpu.dot_dimension_numbers<[2], [2], [1], [1], [0, 0, 0, 1, 1, 1], [0], [0]>} : vector<4x32x32xbf16>, vector<4x32x32xbf16>, vector<4x32x32xf32> -> vector<4x32x32xf32>
    "tpu.trace_stop"() : () -> ()
    %cst_40 = arith.constant 0.176776692 : f32
    %122 = vector.broadcast %cst_40 : f32 to vector<4x32x32xf32>
    %123 = arith.mulf %121, %122 : vector<4x32x32xf32>
    %124 = vector.broadcast %8 : vector<1x1x32xf32> to vector<4x32x32xf32>
    %125 = arith.addf %123, %124 : vector<4x32x32xf32>
    %cst_41 = arith.constant dense<0xFF800000> : vector<4x32xf32>
    %126 = vector.multi_reduction <maximumf>, %125, %cst_41 [2] : vector<4x32x32xf32> to vector<4x32xf32>
    %127 = vector.shape_cast %126 : vector<4x32xf32> to vector<4x32x1xf32>
    %128 = vector.broadcast %127 : vector<4x32x1xf32> to vector<4x32x32xf32>
    %129 = arith.subf %125, %128 : vector<4x32x32xf32>
    %130 = math.exp %129 : vector<4x32x32xf32>
    %cst_42 = arith.constant dense<0.000000e+00> : vector<4x32xf32>
    %131 = vector.multi_reduction <add>, %130, %cst_42 [2] : vector<4x32x32xf32> to vector<4x32xf32>
    %132 = vector.shape_cast %131 : vector<4x32xf32> to vector<4x32x1xf32>
    %133 = tpu.reciprocal %132 {approx = true} : vector<4x32x1xf32> -> vector<4x32x1xf32>
    %134 = vector.broadcast %133 : vector<4x32x1xf32> to vector<4x32x32xf32>
    %135 = arith.mulf %130, %134 : vector<4x32x32xf32>
    %136 = arith.truncf %135 : vector<4x32x32xf32> to vector<4x32x32xbf16>
    "tpu.trace_start"() <{level = 10 : i32, message = "bqk,bkd->bqd"}> : () -> ()
    %cst_43 = arith.constant dense<0.000000e+00> : vector<4x32x32xf32>
    %137 = tpu.matmul %136, %120, %cst_43 {dimension_numbers = #tpu.dot_dimension_numbers<[2], [1], [1], [2], [0, 0, 0, 1, 1, 2], [0], [0]>} : vector<4x32x32xbf16>, vector<4x32x32xbf16>, vector<4x32x32xf32> -> vector<4x32x32xf32>
    "tpu.trace_stop"() : () -> ()
    %c0_44 = arith.constant 0 : index
    %c0_45 = arith.constant 0 : index
    %c96 = arith.constant 96 : index
    %138 = vector.load %arg15[%c0_44, %c0_45, %c96] : memref<4x32x128xf32, #tpu.memory_space<vmem>>, vector<4x32x32xf32>
    tpu.vector_store %arg15[%c0_44, %c0_45, %c96], %137 {strides = array<i32>} : memref<4x32x128xf32, #tpu.memory_space<vmem>>, vector<4x32x32xf32>,
    %c0_46 = arith.constant 0 : index
    %c0_47 = arith.constant 0 : index
    %c0_48 = arith.constant 0 : index
    %139 = vector.load %arg15[%c0_46, %c0_47, %c0_48] : memref<4x32x128xf32, #tpu.memory_space<vmem>>, vector<4x32x128xf32>
    %140 = vector.shape_cast %139 : vector<4x32x128xf32> to vector<128x128xf32>
    %141 = arith.truncf %140 : vector<128x128xf32> to vector<128x128xbf16>
    %c0_49 = arith.constant 0 : index
    %c0_50 = arith.constant 0 : index
    %142 = vector.load %arg6[%c0_49, %c0_50] : memref<128x128xbf16, #tpu.memory_space<vmem>>, vector<128x128xbf16>
    %cst_51 = arith.constant dense<0.000000e+00> : vector<128x128xf32>
    %143 = tpu.matmul %141, %142, %cst_51 {dimension_numbers = #tpu.dot_dimension_numbers<[1], [0], [0], [1], [0, 0, 1, 1], [], []>} : vector<128x128xbf16>, vector<128x128xbf16>, vector<128x128xf32> -> vector<128x128xf32>
    %144 = arith.addf %2, %143 : vector<128x128xf32>
    %c0_52 = arith.constant 0 : index
    %c0_53 = arith.constant 0 : index
    %145 = vector.load %arg7[%c0_52, %c0_53] : memref<1x128xf32, #tpu.memory_space<vmem>>, vector<1x128xf32>
    %146 = vector.broadcast %145 : vector<1x128xf32> to vector<128x128xf32>
    %147 = arith.addf %144, %146 : vector<128x128xf32>
    %c0_54 = arith.constant 0 : index
    %c0_55 = arith.constant 0 : index
    %148 = vector.load %arg8[%c0_54, %c0_55] : memref<1x128xf32, #tpu.memory_space<vmem>>, vector<1x128xf32>
    %c0_56 = arith.constant 0 : index
    %c0_57 = arith.constant 0 : index
    %149 = vector.load %arg9[%c0_56, %c0_57] : memref<1x128xf32, #tpu.memory_space<vmem>>, vector<1x128xf32>
    %cst_58 = arith.constant dense<0.000000e+00> : vector<128xf32>
    %150 = vector.multi_reduction <add>, %147, %cst_58 [1] : vector<128x128xf32> to vector<128xf32>
    %151 = vector.shape_cast %150 : vector<128xf32> to vector<128x1xf32>
    %cst_59 = arith.constant 1.280000e+02 : f32
    %152 = vector.broadcast %cst_59 : f32 to vector<128x1xf32>
    %153 = arith.divf %151, %152 : vector<128x1xf32>
    %154 = vector.broadcast %153 : vector<128x1xf32> to vector<128x128xf32>
    %155 = arith.subf %147, %154 : vector<128x128xf32>
    %156 = arith.mulf %155, %155 : vector<128x128xf32>
    %cst_60 = arith.constant dense<0.000000e+00> : vector<128xf32>
    %157 = vector.multi_reduction <add>, %156, %cst_60 [1] : vector<128x128xf32> to vector<128xf32>
    %158 = vector.shape_cast %157 : vector<128xf32> to vector<128x1xf32>
    %cst_61 = arith.constant 1.280000e+02 : f32
    %159 = vector.broadcast %cst_61 : f32 to vector<128x1xf32>
    %160 = arith.divf %158, %159 : vector<128x1xf32>
    %cst_62 = arith.constant 9.99999997E-7 : f32
    %161 = vector.broadcast %cst_62 : f32 to vector<128x1xf32>
    %162 = arith.addf %160, %161 : vector<128x1xf32>
    %163 = math.rsqrt %162 : vector<128x1xf32>
    %164 = vector.broadcast %163 : vector<128x1xf32> to vector<128x128xf32>
    %165 = arith.mulf %155, %164 : vector<128x128xf32>
    %166 = vector.broadcast %148 : vector<1x128xf32> to vector<128x128xf32>
    %167 = arith.mulf %165, %166 : vector<128x128xf32>
    %168 = vector.broadcast %149 : vector<1x128xf32> to vector<128x128xf32>
    %169 = arith.addf %167, %168 : vector<128x128xf32>
    %170 = arith.truncf %169 : vector<128x128xf32> to vector<128x128xbf16>
    %c0_63 = arith.constant 0 : index
    %c0_64 = arith.constant 0 : index
    %171 = vector.load %arg10[%c0_63, %c0_64] : memref<128x256xbf16, #tpu.memory_space<vmem>>, vector<128x256xbf16>
    %cst_65 = arith.constant dense<0.000000e+00> : vector<128x256xf32>
    %172 = tpu.matmul %170, %171, %cst_65 {dimension_numbers = #tpu.dot_dimension_numbers<[1], [0], [0], [1], [0, 0, 1, 1], [], []>} : vector<128x128xbf16>, vector<128x256xbf16>, vector<128x256xf32> -> vector<128x256xf32>
    %c0_66 = arith.constant 0 : index
    %c0_67 = arith.constant 0 : index
    %173 = vector.load %arg11[%c0_66, %c0_67] : memref<1x256xf32, #tpu.memory_space<vmem>>, vector<1x256xf32>
    %174 = vector.broadcast %173 : vector<1x256xf32> to vector<128x256xf32>
    %175 = arith.addf %172, %174 : vector<128x256xf32>
    %cst_68 = arith.constant 5.000000e-01 : f32
    %176 = vector.broadcast %cst_68 : f32 to vector<128x256xf32>
    %177 = arith.mulf %176, %175 : vector<128x256xf32>
    %cst_69 = arith.constant 0.707106769 : f32
    %178 = vector.broadcast %cst_69 : f32 to vector<128x256xf32>
    %179 = arith.mulf %175, %178 : vector<128x256xf32>
    %180 = math.absf %179 : vector<128x256xf32>
    %cst_70 = arith.constant 0.327591091 : f32
    %181 = vector.broadcast %cst_70 : f32 to vector<128x256xf32>
    %182 = arith.mulf %181, %180 : vector<128x256xf32>
    %cst_71 = arith.constant 1.000000e+00 : f32
    %183 = vector.broadcast %cst_71 : f32 to vector<128x256xf32>
    %184 = arith.addf %183, %182 : vector<128x256xf32>
    %cst_72 = arith.constant 1.000000e+00 : f32
    %185 = vector.broadcast %cst_72 : f32 to vector<128x256xf32>
    %186 = arith.divf %185, %184 : vector<128x256xf32>
    %cst_73 = arith.constant 1.06140542 : f32
    %187 = vector.broadcast %cst_73 : f32 to vector<128x256xf32>
    %188 = arith.mulf %187, %186 : vector<128x256xf32>
    %cst_74 = arith.constant -1.45315206 : f32
    %189 = vector.broadcast %cst_74 : f32 to vector<128x256xf32>
    %190 = arith.addf %188, %189 : vector<128x256xf32>
    %191 = arith.mulf %190, %186 : vector<128x256xf32>
    %cst_75 = arith.constant 1.42141378 : f32
    %192 = vector.broadcast %cst_75 : f32 to vector<128x256xf32>
    %193 = arith.addf %191, %192 : vector<128x256xf32>
    %194 = arith.mulf %193, %186 : vector<128x256xf32>
    %cst_76 = arith.constant -0.284496725 : f32
    %195 = vector.broadcast %cst_76 : f32 to vector<128x256xf32>
    %196 = arith.addf %194, %195 : vector<128x256xf32>
    %197 = arith.mulf %196, %186 : vector<128x256xf32>
    %cst_77 = arith.constant 0.254829586 : f32
    %198 = vector.broadcast %cst_77 : f32 to vector<128x256xf32>
    %199 = arith.addf %197, %198 : vector<128x256xf32>
    %200 = arith.mulf %199, %186 : vector<128x256xf32>
    %cst_78 = arith.constant 0.000000e+00 : f32
    %201 = vector.broadcast %cst_78 : f32 to vector<128x256xf32>
    %202 = arith.subf %201, %180 : vector<128x256xf32>
    %203 = arith.mulf %202, %180 : vector<128x256xf32>
    %204 = math.exp %203 : vector<128x256xf32>
    %205 = arith.mulf %200, %204 : vector<128x256xf32>
    %cst_79 = arith.constant 1.000000e+00 : f32
    %206 = vector.broadcast %cst_79 : f32 to vector<128x256xf32>
    %207 = arith.subf %206, %205 : vector<128x256xf32>
    %cst_80 = arith.constant 0.000000e+00 : f32
    %208 = vector.broadcast %cst_80 : f32 to vector<128x256xf32>
    %209 = arith.cmpf oge, %179, %208 : vector<128x256xf32>
    %cst_81 = arith.constant 0.000000e+00 : f32
    %210 = vector.broadcast %cst_81 : f32 to vector<128x256xf32>
    %211 = arith.subf %210, %207 : vector<128x256xf32>
    %212 = arith.select %209, %207, %211 : vector<128x256xi1>, vector<128x256xf32>
    %cst_82 = arith.constant 1.000000e+00 : f32
    %213 = vector.broadcast %cst_82 : f32 to vector<128x256xf32>
    %214 = arith.addf %213, %212 : vector<128x256xf32>
    %215 = arith.mulf %177, %214 : vector<128x256xf32>
    %216 = arith.truncf %215 : vector<128x256xf32> to vector<128x256xbf16>
    %c0_83 = arith.constant 0 : index
    %c0_84 = arith.constant 0 : index
    %217 = vector.load %arg12[%c0_83, %c0_84] : memref<256x128xbf16, #tpu.memory_space<vmem>>, vector<256x128xbf16>
    %cst_85 = arith.constant dense<0.000000e+00> : vector<128x128xf32>
    %218 = tpu.matmul %216, %217, %cst_85 {dimension_numbers = #tpu.dot_dimension_numbers<[1], [0], [0], [1], [0, 0, 1, 1], [], []>} : vector<128x256xbf16>, vector<256x128xbf16>, vector<128x128xf32> -> vector<128x128xf32>
    %c0_86 = arith.constant 0 : index
    %c0_87 = arith.constant 0 : index
    %219 = vector.load %arg13[%c0_86, %c0_87] : memref<1x128xf32, #tpu.memory_space<vmem>>, vector<1x128xf32>
    %220 = vector.broadcast %219 : vector<1x128xf32> to vector<128x128xf32>
    %221 = arith.addf %218, %220 : vector<128x128xf32>
    %222 = arith.addf %147, %221 : vector<128x128xf32>
    %223 = vector.shape_cast %222 : vector<128x128xf32> to vector<4x32x128xf32>
    %224 = arith.truncf %223 : vector<4x32x128xf32> to vector<4x32x128xbf16>
    %c0_88 = arith.constant 0 : index
    %c0_89 = arith.constant 0 : index
    %c0_90 = arith.constant 0 : index
    %225 = vector.load %arg14[%c0_88, %c0_89, %c0_90] : memref<4x32x128xbf16, #tpu.memory_space<vmem>>, vector<4x32x128xbf16>
    tpu.vector_store %arg14[%c0_88, %c0_89, %c0_90], %224 {strides = array<i32>} : memref<4x32x128xbf16, #tpu.memory_space<vmem>>, vector<4x32x128xbf16>,
    return
  }
  func.func @transform_0(%arg0: i32) -> (i32, i32, i32) {
    %c0_i32 = arith.constant 0 : i32
    %c0_i32_0 = arith.constant 0 : i32
    %c0_i32_1 = arith.constant 0 : i32
    return %arg0, %c0_i32, %c0_i32_0 : i32, i32, i32
  }
  func.func @transform_1(%arg0: i32) -> (i32, i32) {
    %c0_i32 = arith.constant 0 : i32
    %c0_i32_0 = arith.constant 0 : i32
    %c0_i32_1 = arith.constant 0 : i32
    return %c0_i32, %c0_i32_0 : i32, i32
  }
  func.func @transform_2(%arg0: i32) -> (i32, i32) {
    %c0_i32 = arith.constant 0 : i32
    %c0_i32_0 = arith.constant 0 : i32
    %c0_i32_1 = arith.constant 0 : i32
    return %c0_i32, %c0_i32_0 : i32, i32
  }
  func.func @transform_3(%arg0: i32) -> (i32, i32) {
    %c0_i32 = arith.constant 0 : i32
    %c0_i32_0 = arith.constant 0 : i32
    %c0_i32_1 = arith.constant 0 : i32
    return %c0_i32, %c0_i32_0 : i32, i32
  }
  func.func @transform_4(%arg0: i32) -> (i32, i32) {
    %c0_i32 = arith.constant 0 : i32
    %c0_i32_0 = arith.constant 0 : i32
    %c0_i32_1 = arith.constant 0 : i32
    return %c0_i32, %c0_i32_0 : i32, i32
  }
  func.func @transform_5(%arg0: i32) -> (i32, i32) {
    %c0_i32 = arith.constant 0 : i32
    %c0_i32_0 = arith.constant 0 : i32
    %c0_i32_1 = arith.constant 0 : i32
    return %c0_i32, %c0_i32_0 : i32, i32
  }
  func.func @transform_6(%arg0: i32) -> (i32, i32) {
    %c0_i32 = arith.constant 0 : i32
    %c0_i32_0 = arith.constant 0 : i32
    %c0_i32_1 = arith.constant 0 : i32
    return %c0_i32, %c0_i32_0 : i32, i32
  }
  func.func @transform_7(%arg0: i32) -> (i32, i32) {
    %c0_i32 = arith.constant 0 : i32
    %c0_i32_0 = arith.constant 0 : i32
    %c0_i32_1 = arith.constant 0 : i32
    return %c0_i32, %c0_i32_0 : i32, i32
  }
  func.func @transform_8(%arg0: i32) -> (i32, i32) {
    %c0_i32 = arith.constant 0 : i32
    %c0_i32_0 = arith.constant 0 : i32
    %c0_i32_1 = arith.constant 0 : i32
    return %c0_i32, %c0_i32_0 : i32, i32
  }
  func.func @transform_9(%arg0: i32) -> (i32, i32) {
    %c0_i32 = arith.constant 0 : i32
    %c0_i32_0 = arith.constant 0 : i32
    %c0_i32_1 = arith.constant 0 : i32
    return %c0_i32, %c0_i32_0 : i32, i32
  }
  func.func @transform_10(%arg0: i32) -> (i32, i32) {
    %c0_i32 = arith.constant 0 : i32
    %c0_i32_0 = arith.constant 0 : i32
    %c0_i32_1 = arith.constant 0 : i32
    return %c0_i32, %c0_i32_0 : i32, i32
  }
  func.func @transform_11(%arg0: i32) -> (i32, i32) {
    %c0_i32 = arith.constant 0 : i32
    %c0_i32_0 = arith.constant 0 : i32
    %c0_i32_1 = arith.constant 0 : i32
    return %c0_i32, %c0_i32_0 : i32, i32
  }
  func.func @transform_12(%arg0: i32) -> (i32, i32) {
    %c0_i32 = arith.constant 0 : i32
    %c0_i32_0 = arith.constant 0 : i32
    %c0_i32_1 = arith.constant 0 : i32
    return %c0_i32, %c0_i32_0 : i32, i32
  }
  func.func @transform_13(%arg0: i32) -> (i32, i32, i32) {
    %c0_i32 = arith.constant 0 : i32
    %c0_i32_0 = arith.constant 0 : i32
    %c0_i32_1 = arith.constant 0 : i32
    return %arg0, %c0_i32, %c0_i32_0 : i32, i32, i32
  }
}

</mosaic_0001>

<bundles_post_ra>
// kernel: _lambda_.3
= control target key start
LH: loop header
LB: loop body
LE: loop exit
PB: predicated region body
PF: predicated region fallthrough
CT: control target
= control target key end

     0   :  { %s2487_s1 = inlined_call_operand.vmem [shape: bf16[1024,128], index: 1, kind: input, shape index: {}]   ;;  %s2488_s0 = inlined_call_operand.vmem [shape: bf16[128,1024], index: 0, kind: input, shape index: {}]   ;;  %s2489_s2 = inlined_call_operand.vmem [shape: f32[1,128], index: 2, kind: input, shape index: {}]   ;;  %s2490_s3 = inlined_call_operand.vmem [shape: bf16[128,128], index: 3, kind: output, shape index: {}]  }
   0x1   :  { %v1854_v0 = vld [vmem:[%s2487_s1 + $0x78] sm:$0xff]   ;;  %v1858_v4 = vld [vmem:[%s2487_s1 + $0x70] sm:$0xff]   ;;  %v1862_v8 = vld [vmem:[%s2487_s1 + $0x68] sm:$0xff]  }
   0x2   :  { %v1855_v1 = vld [vmem:[%s2487_s1 + $0xf8] sm:$0xff]   ;;  %1598 = vmatprep.subr.bf16.mxu0 %v1854_v0  ;;  %v1859_v5 = vld [vmem:[%s2487_s1 + $0xf0] sm:$0xff]   ;;  %v1863_v9 = vld [vmem:[%s2487_s1 + $0xe8] sm:$0xff]  }
   0x3   :  { %v1856_v2 = vld [vmem:[%s2487_s1 + $0x38] sm:$0xff]   ;;  %1662 = vmatprep.subr.bf16.mxu1 %v1855_v1  ;;  %v1860_v6 = vld [vmem:[%s2487_s1 + $0x30] sm:$0xff]   ;;  %v1864_v10 = vld [vmem:[%s2487_s1 + $0x28] sm:$0xff]  }
   0x4   :  { %v1857_v3 = vld [vmem:[%s2487_s1 + $0xb8] sm:$0xff]   ;;  %1599 = vmatpush3.bf16.msra.mxu0 %v1856_v2  ;;  %v1861_v7 = vld [vmem:[%s2487_s1 + $0xb0] sm:$0xff]   ;;  %v1865_v11 = vld [vmem:[%s2487_s1 + $0xa8] sm:$0xff]  }
   0x5   :  { %1663 = vmatpush3.bf16.msra.mxu1 %v1857_v3  ;;  %1600 = vmatprep.subr.bf16.mxu0 %v1858_v4  ;;  %v1866_v12 = vld [vmem:[%s2487_s1 + $0x60] sm:$0xff]   ;;  %v1870_v16 = vld [vmem:[%s2487_s1 + $0x58] sm:$0xff]   ;;  %v1874_v20 = vld [vmem:[%s2487_s1 + $0x50] sm:$0xff]  }
   0x6   :  { %1664 = vmatprep.subr.bf16.mxu1 %v1859_v5  ;;  %v1867_v13 = vld [vmem:[%s2487_s1 + $0xe0] sm:$0xff]   ;;  %v1871_v17 = vld [vmem:[%s2487_s1 + $0xd8] sm:$0xff]   ;;  %v1875_v21 = vld [vmem:[%s2487_s1 + $0xd0] sm:$0xff]  }
   0x7   :  { %v1868_v14 = vld [vmem:[%s2487_s1 + $0x20] sm:$0xff]   ;;  %v1872_v18 = vld [vmem:[%s2487_s1 + $0x18] sm:$0xff]   ;;  %v1876_v22 = vld [vmem:[%s2487_s1 + $0x10] sm:$0xff]  }
   0x8   :  { %1601 = vmatpush3.bf16.msra.mxu0 %v1860_v6  ;;  %v1869_v15 = vld [vmem:[%s2487_s1 + $0xa0] sm:$0xff]   ;;  %v1873_v19 = vld [vmem:[%s2487_s1 + $0x98] sm:$0xff]   ;;  %v1877_v23 = vld [vmem:[%s2487_s1 + $0x90] sm:$0xff]  }
   0x9   :  { %1665 = vmatpush3.bf16.msra.mxu1 %v1861_v7  ;;  %1602 = vmatprep.subr.bf16.mxu0 %v1862_v8  ;;  %v1878_v24 = vld [vmem:[%s2487_s1 + $0x48] sm:$0xff]   ;;  %v1882_v28 = vld [vmem:[%s2487_s1 + $0x40] sm:$0xff]   ;;  %v1886_v40 = vld [vmem:[%s2487_s1 + $0x178] sm:$0xff]  }
   0xa   :  { %1666 = vmatprep.subr.bf16.mxu1 %v1863_v9  ;;  %v1879_v25 = vld [vmem:[%s2487_s1 + $0xc8] sm:$0xff]   ;;  %v1883_v29 = vld [vmem:[%s2487_s1 + $0xc0] sm:$0xff]   ;;  %v1887_v41 = vld [vmem:[%s2487_s1 + $0x138] sm:$0xff]  }
   0xb   :  { %v1880_v26 = vld [vmem:[%s2487_s1 + $0x8] sm:$0xff]   ;;  %v1884_v30 = vld [vmem:[%s2487_s1] sm:$0xff]   ;;  %v1888_v42 = vld [vmem:[%s2487_s1 + $0x1f8] sm:$0xff]  }
   0xc   :  { %1603 = vmatpush3.bf16.msra.mxu0 %v1864_v10  ;;  %v1881_v27 = vld [vmem:[%s2487_s1 + $0x88] sm:$0xff]   ;;  %v1885_v31 = vld [vmem:[%s2487_s1 + $0x80] sm:$0xff]   ;;  %v1889_v43 = vld [vmem:[%s2487_s1 + $0x1b8] sm:$0xff]  }
   0xd   :  { %1667 = vmatpush3.bf16.msra.mxu1 %v1865_v11  ;;  %1604 = vmatprep.subr.bf16.mxu0 %v1866_v12  ;;  %v15_v32 = vld [vmem:[%s2488_s0] sm:$0xff]  ;;  %v16_v34 = vld [vmem:[%s2488_s0 + $0x8] sm:$0xff]  ;;  %v1890_v50 = vld [vmem:[%s2487_s1 + $0x170] sm:$0xff]  }
   0xe   :  { %1668 = vmatprep.subr.bf16.mxu1 %v1867_v13  ;;  %v19_v33 = vld [vmem:[%s2488_s0 + $0x20] sm:$0xff]  ;;  %v20_v37 = vld [vmem:[%s2488_s0 + $0x28] sm:$0xff]  ;;  %v1891_v52 = vld [vmem:[%s2487_s1 + $0x130] sm:$0xff]  }
   0xf   :  { %v1391_v35 = vcombine.low %v15_v32, %v19_v33  ;;  %v1392_v36 = vcombine.high %v15_v32, %v19_v33  ;;  %v1393_v38 = vcombine.low %v16_v34, %v20_v37  ;;  %v1394_v39 = vcombine.high %v16_v34, %v20_v37  ;;  %v23_v44 = vld [vmem:[%s2488_s0 + $0x40] sm:$0xff]  ;;  %v24_v47 = vld [vmem:[%s2488_s0 + $0x48] sm:$0xff]  ;;  %v1892_v54 = vld [vmem:[%s2487_s1 + $0x1f0] sm:$0xff]  }
  0x10   :  { %1605 = vmatpush3.bf16.msra.mxu0 %v1868_v14  ;;  %v27_v45 = vld [vmem:[%s2488_s0 + $0x60] sm:$0xff]  ;;  %v28_v48 = vld [vmem:[%s2488_s0 + $0x68] sm:$0xff]  ;;  %v1893_v55 = vld [vmem:[%s2487_s1 + $0x1b0] sm:$0xff]  }
  0x11   :  { %1669 = vmatpush3.bf16.msra.mxu1 %v1869_v15  ;;  %1606 = vmatprep.subr.bf16.mxu0 %v1870_v16  ;;  %v1400_v46 = vcombine.high %v23_v44, %v27_v45  ;;  %v1402_v49 = vcombine.high %v24_v47, %v28_v48  ;;  %v1399_v51 = vcombine.low %v23_v44, %v27_v45  ;;  %v31_v56 = vld [vmem:[%s2488_s0 + $0x80] sm:$0xff]  ;;  %v32_v58 = vld [vmem:[%s2488_s0 + $0x88] sm:$0xff]  ;;  %v1908_v32 = vld [vmem:[%s2487_s1 + $0x1d0] sm:$0xff]  }
  0x12   :  { %1670 = vmatprep.subr.bf16.mxu1 %v1871_v17  ;;  %950 = vmatprep.mubr.bf16.mxu0 %v1392_v36  ;;  %v1401_v53 = vcombine.low %v24_v47, %v28_v48  ;;  %v35_v57 = vld [vmem:[%s2488_s0 + $0xa0] sm:$0xff]  ;;  %v36_v59 = vld [vmem:[%s2488_s0 + $0xa8] sm:$0xff]  ;;  %v1909_v33 = vld [vmem:[%s2487_s1 + $0x190] sm:$0xff]  }
  0x13   :  { %1047 = vmatprep.mubr.bf16.mxu1 %v1394_v39  ;;  %v1408_v60 = vcombine.high %v31_v56, %v35_v57  ;;  %v1410_v61 = vcombine.high %v32_v58, %v36_v59  ;;  %v1894_v62 = vld [vmem:[%s2487_s1 + $0x168] sm:$0xff]   ;;  %v1407_v2 = vcombine.low %v31_v56, %v35_v57  ;;  %v39_v3 = vld [vmem:[%s2488_s0 + $0xc0] sm:$0xff]  ;;  %v1409_v6 = vcombine.low %v32_v58, %v36_v59 }
  0x14   :  { %1607 = vmatpush3.bf16.msra.mxu0 %v1872_v18  ;;  %v1895_v63 = vld [vmem:[%s2487_s1 + $0x128] sm:$0xff]   ;;  %v43_v4 = vld [vmem:[%s2488_s0 + $0xe0] sm:$0xff]  ;;  %v1902_v18 = vld [vmem:[%s2487_s1 + $0x158] sm:$0xff]  }
  0x15   :  { %1671 = vmatpush3.bf16.msra.mxu1 %v1873_v19  ;;  %1608 = vmatprep.subr.bf16.mxu0 %v1874_v20  ;;  %v1896_v0 = vld [vmem:[%s2487_s1 + $0x1e8] sm:$0xff]   ;;  %v1416_v7 = vcombine.high %v39_v3, %v43_v4  ;;  %v1898_v10 = vld [vmem:[%s2487_s1 + $0x160] sm:$0xff]   ;;  %v1415_v19 = vcombine.low %v39_v3, %v43_v4  ;;  %v1903_v20 = vld [vmem:[%s2487_s1 + $0x118] sm:$0xff]  }
  0x16   :  { %1672 = vmatprep.subr.bf16.mxu1 %v1875_v21  ;;  %v1897_v1 = vld [vmem:[%s2487_s1 + $0x1a8] sm:$0xff]   ;;  %v1899_v11 = vld [vmem:[%s2487_s1 + $0x120] sm:$0xff]  }
  0x17   :  { %v40_v5 = vld [vmem:[%s2488_s0 + $0xc8] sm:$0xff]  ;;  %v1900_v12 = vld [vmem:[%s2487_s1 + $0x1e0] sm:$0xff]  }
  0x18   :  { %1609 = vmatpush3.bf16.msra.mxu0 %v1876_v22  ;;  %v44_v8 = vld [vmem:[%s2488_s0 + $0xe8] sm:$0xff]  ;;  %v1901_v13 = vld [vmem:[%s2487_s1 + $0x1a0] sm:$0xff]  }
  0x19   :  { %1673 = vmatpush3.bf16.msra.mxu1 %v1877_v23  ;;  %1610 = vmatprep.subr.bf16.mxu0 %v1878_v24  ;;  %v1418_v9 = vcombine.high %v40_v5, %v44_v8  ;;  %v47_v14 = vld [vmem:[%s2488_s0 + $0x100] sm:$0xff]  ;;  %v48_v16 = vld [vmem:[%s2488_s0 + $0x108] sm:$0xff]  ;;  %v1417_v21 = vcombine.low %v40_v5, %v44_v8  ;;  %v1904_v23 = vld [vmem:[%s2487_s1 + $0x1d8] sm:$0xff]  }
  0x1a   :  { %1674 = vmatprep.subr.bf16.mxu1 %v1879_v25  ;;  %v51_v15 = vld [vmem:[%s2488_s0 + $0x120] sm:$0xff]  ;;  %v52_v17 = vld [vmem:[%s2488_s0 + $0x128] sm:$0xff]  ;;  %v1905_v25 = vld [vmem:[%s2487_s1 + $0x198] sm:$0xff]  }
  0x1b   :  { %v1424_v22 = vcombine.high %v47_v14, %v51_v15  ;;  %v1426_v24 = vcombine.high %v48_v16, %v52_v17  ;;  %v1423_v34 = vcombine.low %v47_v14, %v51_v15  ;;  %v1911_v39 = vld [vmem:[%s2487_s1 + $0x108] sm:$0xff]   ;;  %v1915_v48 = vld [vmem:[%s2487_s1 + $0x100] sm:$0xff]   ;;  %v26_v8 = vld [vmem:[%s2488_s0 + $0x58] sm:$0xff] }
  0x1c   :  { %1611 = vmatpush3.bf16.msra.mxu0 %v1880_v26  ;;  %v55_v26 = vld [vmem:[%s2488_s0 + $0x140] sm:$0xff]  ;;  %v64_v44 = vld [vmem:[%s2488_s0 + $0x188] sm:$0xff]  ;;  %v33_v14 = vld [vmem:[%s2488_s0 + $0x90] sm:$0xff] }
  0x1d   :  { %1675 = vmatpush3.bf16.msra.mxu1 %v1881_v27  ;;  %1612 = vmatprep.subr.bf16.mxu0 %v1882_v28  ;;  %v59_v27 = vld [vmem:[%s2488_s0 + $0x160] sm:$0xff]  ;;  %v1906_v28 = vld [vmem:[%s2487_s1 + $0x150] sm:$0xff]   ;;  %v68_v45 = vld [vmem:[%s2488_s0 + $0x1a8] sm:$0xff] }
  0x1e   :  { %1676 = vmatprep.subr.bf16.mxu1 %v1883_v29  ;;  %v56_v29 = vld [vmem:[%s2488_s0 + $0x148] sm:$0xff]  ;;  %v1432_v36 = vcombine.high %v55_v26, %v59_v27  ;;  %v1431_v47 = vcombine.low %v55_v26, %v59_v27  ;;  %v1441_v59 = vcombine.low %v64_v44, %v68_v45  ;;  %v37_v15 = vld [vmem:[%s2488_s0 + $0xb0] sm:$0xff] }
  0x1f   :  { %v72_v56 = vld [vmem:[%s2488_s0 + $0x1c8] sm:$0xff]  ;;  %v1411_v26 = vcombine.low %v33_v14, %v37_v15 }
  0x20   :  { %1613 = vmatpush3.bf16.msra.mxu0 %v1884_v30  ;;  %v60_v30 = vld [vmem:[%s2488_s0 + $0x168] sm:$0xff] }
  0x21   :  { %1677 = vmatpush3.bf16.msra.mxu1 %v1885_v31  ;;  %1726 = vmatprep.subr.bf16.mxu0 %v1886_v40  ;;  %v1907_v31 = vld [vmem:[%s2487_s1 + $0x110] sm:$0xff]   ;;  %v1434_v37 = vcombine.high %v56_v29, %v60_v30  ;;  %v1912_v40 = vld [vmem:[%s2487_s1 + $0x1c8] sm:$0xff]  }
  0x22   :  { %1790 = vmatprep.subr.bf16.mxu1 %v1888_v42  ;;  %v67_v42 = vld [vmem:[%s2488_s0 + $0x1a0] sm:$0xff]  ;;  %v76_v57 = vld [vmem:[%s2488_s0 + $0x1e8] sm:$0xff] }
  0x23   :  { %951 = vmatmul.mubr.bf16.vlgmr.msra.gmra.mxu0 %v1391_v35  ;;  %v1425_v35 = vcombine.low %v48_v16, %v52_v17  ;;  %v1449_v3 = vcombine.low %v72_v56, %v76_v57  ;;  %v34_v16 = vld [vmem:[%s2488_s0 + $0x98] sm:$0xff] }
  0x24   :  { %1048 = vmatmul.mubr.bf16.vlgmr.msra.gmra.mxu1 %v1393_v38  ;;  %1727 = vmatpush3.bf16.msra.mxu0 %v1887_v41  ;;  %v1910_v38 = vld [vmem:[%s2487_s1 + $0x148] sm:$0xff]   ;;  %v63_v41 = vld [vmem:[%s2488_s0 + $0x180] sm:$0xff]  ;;  %v38_v17 = vld [vmem:[%s2488_s0 + $0xb8] sm:$0xff] }
  0x25   :  { %1791 = vmatpush3.bf16.msra.mxu1 %v1889_v43  ;;  %958 = vmatprep.mubr.bf16.mxu0 %v1400_v46  ;;  %v1913_v43 = vld [vmem:[%s2487_s1 + $0x188] sm:$0xff]   ;;  %v1914_v46 = vld [vmem:[%s2487_s1 + $0x140] sm:$0xff]   ;;  %v1439_v58 = vcombine.low %v63_v41, %v67_v42  ;;  %v1413_v27 = vcombine.low %v34_v16, %v38_v17 }
  0x26   :  { %1055 = vmatprep.mubr.bf16.mxu1 %v1402_v49  ;;  %1728 = vmatprep.subr.bf16.mxu0 %v1890_v50  ;;  %v1433_v49 = vcombine.low %v56_v29, %v60_v30  ;;  %v1440_v50 = vcombine.high %v63_v41, %v67_v42  ;;  %v49_v30 = vld [vmem:[%s2488_s0 + $0x110] sm:$0xff]  ;;  %v62_v41 = vld [vmem:[%s2488_s0 + $0x178] sm:$0xff] }
  0x27   :  { %1792 = vmatprep.subr.bf16.mxu1 %v1892_v54  ;;  %v71_v54 = vld [vmem:[%s2488_s0 + $0x1c0] sm:$0xff] }
  0x28   :  { %1729 = vmatpush3.bf16.msra.mxu0 %v1891_v52  ;;  %v1442_v52 = vcombine.high %v64_v44, %v68_v45 }
  0x29   :  { %1793 = vmatpush3.bf16.msra.mxu1 %v1893_v55  ;;  %1730 = vmatprep.subr.bf16.mxu0 %v1894_v62  ;;  %v75_v55 = vld [vmem:[%s2488_s0 + $0x1e0] sm:$0xff]  ;;  %v17_v62 = vld [vmem:[%s2488_s0 + $0x10] sm:$0xff] }
  0x2a   :  { %1794 = vmatprep.subr.bf16.mxu1 %v1896_v0  ;;  %v18_v0 = vld [vmem:[%s2488_s0 + $0x18] sm:$0xff] }
  0x2b   :  { %959 = vmatmul.mubr.bf16.gmra.mxu0 %v1399_v51  ;;  %v1916_v51 = vld [vmem:[%s2487_s1 + $0x1c0] sm:$0xff]  }
  0x2c   :  { %1056 = vmatmul.mubr.bf16.gmra.mxu1 %v1401_v53  ;;  %966 = vmatprep.mubr.bf16.mxu0 %v1408_v60  ;;  %v1917_v53 = vld [vmem:[%s2487_s1 + $0x180] sm:$0xff]   ;;  %v1448_v60 = vcombine.high %v71_v54, %v75_v55 }
  0x2d   :  { %1063 = vmatprep.mubr.bf16.mxu1 %v1410_v61  ;;  %1731 = vmatpush3.bf16.msra.mxu0 %v1895_v63  ;;  %v1450_v61 = vcombine.high %v72_v56, %v76_v57  ;;  %v21_v63 = vld [vmem:[%s2488_s0 + $0x30] sm:$0xff]  ;;  %v74_v56 = vld [vmem:[%s2488_s0 + $0x1d8] sm:$0xff] }
  0x2e   :  { %1795 = vmatpush3.bf16.msra.mxu1 %v1897_v1  ;;  %1732 = vmatprep.subr.bf16.mxu0 %v1898_v10  ;;  %v22_v1 = vld [vmem:[%s2488_s0 + $0x38] sm:$0xff]  ;;  %v1396_v4 = vcombine.high %v17_v62, %v21_v63  ;;  %v1395_v10 = vcombine.low %v17_v62, %v21_v63 }
  0x2f   :  { %1796 = vmatprep.subr.bf16.mxu1 %v1900_v12  ;;  %v1398_v5 = vcombine.high %v18_v0, %v22_v1  ;;  %v78_v57 = vld [vmem:[%s2488_s0 + $0x1f8] sm:$0xff] }
  0x30   :  { %v1453_v63 = vcombine.low %v74_v56, %v78_v57 }
  0x31   :  { %1733 = vmatpush3.bf16.msra.mxu0 %v1899_v11  ;;  %v1397_v11 = vcombine.low %v18_v0, %v22_v1 }
  0x32   :  { %1797 = vmatpush3.bf16.msra.mxu1 %v1901_v13  ;;  %1734 = vmatprep.subr.bf16.mxu0 %v1902_v18 }
  0x33   :  { %967 = vmatmul.mubr.bf16.gmra.mxu0 %v1407_v2  ;;  %1798 = vmatprep.subr.bf16.mxu1 %v1904_v23  ;;  %v1447_v2 = vcombine.low %v71_v54, %v75_v55  ;;  %v45_v23 = vld [vmem:[%s2488_s0 + $0xf0] sm:$0xff] }
  0x34   :  { %1064 = vmatmul.mubr.bf16.gmra.mxu1 %v1409_v6  ;;  %974 = vmatprep.mubr.bf16.mxu0 %v1416_v7  ;;  %v25_v6 = vld [vmem:[%s2488_s0 + $0x50] sm:$0xff] }
  0x35   :  { %1071 = vmatprep.mubr.bf16.mxu1 %v1418_v9  ;;  %1735 = vmatpush3.bf16.msra.mxu0 %v1903_v20  ;;  %v29_v7 = vld [vmem:[%s2488_s0 + $0x70] sm:$0xff]  ;;  %v30_v9 = vld [vmem:[%s2488_s0 + $0x78] sm:$0xff]  ;;  %v1412_v20 = vcombine.high %v33_v14, %v37_v15 }
  0x36   :  { %1799 = vmatpush3.bf16.msra.mxu1 %v1905_v25  ;;  %1736 = vmatprep.subr.bf16.mxu0 %v1906_v28  ;;  %v1404_v12 = vcombine.high %v25_v6, %v29_v7  ;;  %v1406_v13 = vcombine.high %v26_v8, %v30_v9  ;;  %v1403_v18 = vcombine.low %v25_v6, %v29_v7  ;;  %v46_v25 = vld [vmem:[%s2488_s0 + $0xf8] sm:$0xff]  ;;  %v73_v54 = vld [vmem:[%s2488_s0 + $0x1d0] sm:$0xff] }
  0x37   :  { %1800 = vmatprep.subr.bf16.mxu1 %v1908_v32  ;;  %v50_v32 = vld [vmem:[%s2488_s0 + $0x118] sm:$0xff]  ;;  %v77_v55 = vld [vmem:[%s2488_s0 + $0x1f0] sm:$0xff] }
  0x38   :  { %v1451_v62 = vcombine.low %v73_v54, %v77_v55 }
  0x39   :  { %1737 = vmatpush3.bf16.msra.mxu0 %v1907_v31  ;;  %v53_v31 = vld [vmem:[%s2488_s0 + $0x130] sm:$0xff] }
  0x3a   :  { %1801 = vmatpush3.bf16.msra.mxu1 %v1909_v33  ;;  %1738 = vmatprep.subr.bf16.mxu0 %v1910_v38  ;;  %v54_v33 = vld [vmem:[%s2488_s0 + $0x138] sm:$0xff]  ;;  %v57_v38 = vld [vmem:[%s2488_s0 + $0x150] sm:$0xff]  ;;  %v1427_v42 = vcombine.low %v49_v30, %v53_v31 }
  0x3b   :  { %975 = vmatmul.mubr.bf16.gmra.mxu0 %v1415_v19  ;;  %1802 = vmatprep.subr.bf16.mxu1 %v1912_v40  ;;  %v1405_v19 = vcombine.low %v26_v8, %v30_v9  ;;  %v58_v40 = vld [vmem:[%s2488_s0 + $0x158] sm:$0xff] }
  0x3c   :  { %1072 = vmatmul.mubr.bf16.gmra.mxu1 %v1417_v21  ;;  %982 = vmatprep.mubr.bf16.mxu0 %v1424_v22  ;;  %v1414_v21 = vcombine.high %v34_v16, %v38_v17  ;;  %v41_v22 = vld [vmem:[%s2488_s0 + $0xd0] sm:$0xff]  ;;  %v1438_v45 = vcombine.high %v58_v40, %v62_v41 }
  0x3d   :  { %1079 = vmatprep.mubr.bf16.mxu1 %v1426_v24  ;;  %1739 = vmatpush3.bf16.msra.mxu0 %v1911_v39  ;;  %v42_v24 = vld [vmem:[%s2488_s0 + $0xd8] sm:$0xff]  ;;  %v1420_v28 = vcombine.high %v41_v22, %v45_v23  ;;  %v61_v39 = vld [vmem:[%s2488_s0 + $0x170] sm:$0xff] }
  0x3e   :  { %1803 = vmatpush3.bf16.msra.mxu1 %v1913_v43  ;;  %1740 = vmatprep.subr.bf16.mxu0 %v1914_v46  ;;  %v1422_v29 = vcombine.high %v42_v24, %v46_v25  ;;  %v1429_v43 = vcombine.low %v50_v32, %v54_v33  ;;  %v1436_v44 = vcombine.high %v57_v38, %v61_v39  ;;  %v65_v46 = vld [vmem:[%s2488_s0 + $0x190] sm:$0xff] }
  0x3f   :  { %1804 = vmatprep.subr.bf16.mxu1 %v1916_v51  ;;  %v1437_v51 = vcombine.low %v58_v40, %v62_v41 }
  0x41   :  { %1741 = vmatpush3.bf16.msra.mxu0 %v1915_v48  ;;  %v66_v48 = vld [vmem:[%s2488_s0 + $0x198] sm:$0xff] }
  0x42   :  { %1805 = vmatpush3.bf16.msra.mxu1 %v1917_v53 }
  0x43   :  { %983 = vmatmul.mubr.bf16.gmra.mxu0 %v1423_v34  ;;  %v1419_v34 = vcombine.low %v41_v22, %v45_v23 }
  0x44   :  { %1080 = vmatmul.mubr.bf16.gmra.mxu1 %v1425_v35  ;;  %990 = vmatprep.mubr.bf16.mxu0 %v1432_v36  ;;  %v1421_v35 = vcombine.low %v42_v24, %v46_v25  ;;  %v1428_v36 = vcombine.high %v49_v30, %v53_v31 }
  0x45   :  { %1087 = vmatprep.mubr.bf16.mxu1 %v1434_v37  ;;  %v1430_v37 = vcombine.high %v50_v32, %v54_v33 }
  0x4b   :  { %991 = vmatmul.mubr.bf16.gmra.mxu0 %v1431_v47  ;;  %v69_v47 = vld [vmem:[%s2488_s0 + $0x1b0] sm:$0xff] }
  0x4c   :  { %1088 = vmatmul.mubr.bf16.gmra.mxu1 %v1433_v49  ;;  %998 = vmatprep.mubr.bf16.mxu0 %v1440_v50  ;;  %v70_v49 = vld [vmem:[%s2488_s0 + $0x1b8] sm:$0xff]  ;;  %v1435_v50 = vcombine.low %v57_v38, %v61_v39 }
  0x4d   :  { %1095 = vmatprep.mubr.bf16.mxu1 %v1442_v52  ;;  %v1444_v52 = vcombine.high %v65_v46, %v69_v47  ;;  %v1446_v53 = vcombine.high %v66_v48, %v70_v49 }
  0x53   :  { %999 = vmatmul.mubr.bf16.gmra.mxu0 %v1439_v58  ;;  %v1443_v58 = vcombine.low %v65_v46, %v69_v47 }
  0x54   :  { %1096 = vmatmul.mubr.bf16.gmra.mxu1 %v1441_v59  ;;  %1006 = vmatprep.mubr.bf16.mxu0 %v1448_v60  ;;  %v1445_v59 = vcombine.low %v66_v48, %v70_v49  ;;  %v1452_v60 = vcombine.high %v73_v54, %v77_v55 }
  0x55   :  { %1103 = vmatprep.mubr.bf16.mxu1 %v1450_v61  ;;  %v1454_v61 = vcombine.high %v74_v56, %v78_v57 }
  0x5b   :  { %1007 = vmatmul.mubr.bf16.gmra.mxu0 %v1447_v2  ;;  %v2325_v2 = vld [vmem:[%s2489_s2] ss:$0 sm:$0xff] }
  0x5c   :  { %1104 = vmatmul.mubr.bf16.gmra.mxu1 %v1449_v3  ;;  %1144 = vmatprep.mubr.bf16.mxu0 %v1396_v4 }
  0x5d   :  { %1241 = vmatprep.mubr.bf16.mxu1 %v1398_v5 }
  0x63   :  { %1145 = vmatmul.mubr.bf16.vlgmr.msra.gmra.mxu0 %v1395_v10 }
  0x64   :  { %1242 = vmatmul.mubr.bf16.vlgmr.msra.gmra.mxu1 %v1397_v11  ;;  %1152 = vmatprep.mubr.bf16.mxu0 %v1404_v12 }
  0x65   :  { %1249 = vmatprep.mubr.bf16.mxu1 %v1406_v13 }
  0x6b   :  { %1153 = vmatmul.mubr.bf16.gmra.mxu0 %v1403_v18 }
  0x6c   :  { %1250 = vmatmul.mubr.bf16.gmra.mxu1 %v1405_v19  ;;  %1160 = vmatprep.mubr.bf16.mxu0 %v1412_v20 }
  0x6d   :  { %1257 = vmatprep.mubr.bf16.mxu1 %v1414_v21 }
  0x73   :  { %1161 = vmatmul.mubr.bf16.gmra.mxu0 %v1411_v26 }
  0x74   :  { %1258 = vmatmul.mubr.bf16.gmra.mxu1 %v1413_v27  ;;  %1168 = vmatprep.mubr.bf16.mxu0 %v1420_v28 }
  0x75   :  { %1265 = vmatprep.mubr.bf16.mxu1 %v1422_v29 }
  0x7b   :  { %1169 = vmatmul.mubr.bf16.gmra.mxu0 %v1419_v34 }
  0x7c   :  { %1266 = vmatmul.mubr.bf16.gmra.mxu1 %v1421_v35  ;;  %1176 = vmatprep.mubr.bf16.mxu0 %v1428_v36 }
  0x7d   :  { %1273 = vmatprep.mubr.bf16.mxu1 %v1430_v37 }
  0x83   :  { %1177 = vmatmul.mubr.bf16.gmra.mxu0 %v1427_v42 }
  0x84   :  { %1274 = vmatmul.mubr.bf16.gmra.mxu1 %v1429_v43  ;;  %1184 = vmatprep.mubr.bf16.mxu0 %v1436_v44 }
  0x85   :  { %1281 = vmatprep.mubr.bf16.mxu1 %v1438_v45 }
  0x8b   :  { %1185 = vmatmul.mubr.bf16.gmra.mxu0 %v1435_v50 }
  0x8c   :  { %1282 = vmatmul.mubr.bf16.gmra.mxu1 %v1437_v51  ;;  %1192 = vmatprep.mubr.bf16.mxu0 %v1444_v52 }
  0x8d   :  { %1289 = vmatprep.mubr.bf16.mxu1 %v1446_v53 }
  0x93   :  { %1193 = vmatmul.mubr.bf16.gmra.mxu0 %v1443_v58 }
  0x94   :  { %1290 = vmatmul.mubr.bf16.gmra.mxu1 %v1445_v59  ;;  %1200 = vmatprep.mubr.bf16.mxu0 %v1452_v60 }
  0x95   :  { %1297 = vmatprep.mubr.bf16.mxu1 %v1454_v61 }
  0x9b   :  { %1201 = vmatmul.mubr.bf16.gmra.mxu0 %v1451_v62 }
  0x9c   :  { %1298 = vmatmul.mubr.bf16.gmra.mxu1 %v1453_v63 }
  0xe3   :  { %v1614_v0 = vpop.f32.mrf.mxu0 }
  0xe4   :  { %v1678_v1 = vpop.f32.mrf.mxu1 }
  0xe5   :  { %v1615_v3 = vpop.f32.mrf.mxu0 }
  0xe6   :  { %v1616_v4 = vadd.f32 %v1615_v3, %v1614_v0  ;;  %v1679_v5 = vpop.f32.mrf.mxu1 }
  0xe7   :  { %v1680_v6 = vadd.f32 %v1679_v5, %v1678_v1  ;;  %v2327_v7 = vpop.f32.mrf.mxu0 }
  0xe8   :  { %v953_v8 = vadd.f32 %v1616_v4, %v2325_v2  ;;  %v2330_v9 = vpop.f32.mrf.mxu1 }
  0xe9   :  { %v2332_v10 = vpop.f32.mrf.mxu0 }
  0xea   :  { %v2334_v11 = vadd.f32 %v1680_v6, %v953_v8  ;;  %v2336_v12 = vpop.f32.mrf.mxu1 }
  0xeb   :  { %v1620_v13 = vpop.f32.mrf.mxu0 }
  0xec   :  { %v1684_v14 = vpop.f32.mrf.mxu1 }
  0xed   :  { %v1621_v15 = vpop.f32.mrf.mxu0 }
  0xee   :  { %v1622_v16 = vadd.f32 %v1621_v15, %v1620_v13  ;;  %v1685_v17 = vpop.f32.mrf.mxu1 }
  0xef   :  { %v1686_v18 = vadd.f32 %v1685_v17, %v1684_v14  ;;  %v2338_v19 = vpop.f32.mrf.mxu0 }
  0xf0   :  { %v961_v20 = vadd.f32 %v1622_v16, %v2325_v2  ;;  %v2341_v21 = vpop.f32.mrf.mxu1 }
  0xf1   :  { %v2343_v22 = vpop.f32.mrf.mxu0 }
  0xf2   :  { %v2345_v23 = vadd.f32 %v1686_v18, %v961_v20  ;;  %v2347_v24 = vpop.f32.mrf.mxu1 }
  0xf3   :  { %v1626_v25 = vpop.f32.mrf.mxu0 }
  0xf4   :  { %v1690_v26 = vpop.f32.mrf.mxu1 }
  0xf5   :  { %v1627_v27 = vpop.f32.mrf.mxu0 }
  0xf6   :  { %v1628_v28 = vadd.f32 %v1627_v27, %v1626_v25  ;;  %v1691_v29 = vpop.f32.mrf.mxu1 }
  0xf7   :  { %v1692_v30 = vadd.f32 %v1691_v29, %v1690_v26  ;;  %v2349_v31 = vpop.f32.mrf.mxu0 }
  0xf8   :  { %v969_v32 = vadd.f32 %v1628_v28, %v2325_v2  ;;  %v2352_v33 = vpop.f32.mrf.mxu1 }
  0xf9   :  { %v2354_v34 = vpop.f32.mrf.mxu0 }
  0xfa   :  { %v2356_v35 = vadd.f32 %v1692_v30, %v969_v32  ;;  %v2358_v36 = vpop.f32.mrf.mxu1 }
  0xfb   :  { %v1632_v37 = vpop.f32.mrf.mxu0 }
  0xfc   :  { %v1696_v38 = vpop.f32.mrf.mxu1 }
  0xfd   :  { %v1633_v39 = vpop.f32.mrf.mxu0 }
  0xfe   :  { %v1634_v40 = vadd.f32 %v1633_v39, %v1632_v37  ;;  %v1697_v41 = vpop.f32.mrf.mxu1 }
  0xff   :  { %v1698_v42 = vadd.f32 %v1697_v41, %v1696_v38  ;;  %v2360_v43 = vpop.f32.mrf.mxu0 }
 0x100   :  { %v977_v44 = vadd.f32 %v1634_v40, %v2325_v2  ;;  %v2363_v45 = vpop.f32.mrf.mxu1 }
 0x101   :  { %v2365_v46 = vpop.f32.mrf.mxu0 }
 0x102   :  { %v2367_v47 = vadd.f32 %v1698_v42, %v977_v44  ;;  %v2369_v48 = vpop.f32.mrf.mxu1 }
 0x103   :  { %v1638_v49 = vpop.f32.mrf.mxu0 }
 0x104   :  { %v1702_v50 = vpop.f32.mrf.mxu1 }
 0x105   :  { %v1639_v51 = vpop.f32.mrf.mxu0 }
 0x106   :  { %v1640_v52 = vadd.f32 %v1639_v51, %v1638_v49  ;;  %v1703_v53 = vpop.f32.mrf.mxu1 }
 0x107   :  { %v1704_v54 = vadd.f32 %v1703_v53, %v1702_v50  ;;  %v2371_v55 = vpop.f32.mrf.mxu0 }
 0x108   :  { %v985_v56 = vadd.f32 %v1640_v52, %v2325_v2  ;;  %v2374_v57 = vpop.f32.mrf.mxu1  ;;  %v1619_v52 = vadd.f32 %v2332_v10, %v2327_v7  ;;  %v1625_v7 = vadd.f32 %v2343_v22, %v2338_v19  ;;  %v1689_v19 = vadd.f32 %v2347_v24, %v2341_v21 }
 0x109   :  { %v2376_v58 = vpop.f32.mrf.mxu0 }
 0x10a   :  { %v2378_v59 = vadd.f32 %v1704_v54, %v985_v56  ;;  %v2380_v60 = vpop.f32.mrf.mxu1 }
 0x10b   :  { %v1644_v61 = vpop.f32.mrf.mxu0 }
 0x10c   :  { %v1708_v62 = vpop.f32.mrf.mxu1 }
 0x10d   :  { %v1645_v63 = vpop.f32.mrf.mxu0 }
 0x10e   :  { %v1646_v0 = vadd.f32 %v1645_v63, %v1644_v61  ;;  %v1709_v1 = vpop.f32.mrf.mxu1  ;;  %v956_v63 = vadd.f32 %v1619_v52, %v2325_v2 }
 0x10f   :  { %v1710_v3 = vadd.f32 %v1709_v1, %v1708_v62  ;;  %v2382_v4 = vpop.f32.mrf.mxu0 }
 0x110   :  { %v993_v5 = vadd.f32 %v1646_v0, %v2325_v2  ;;  %v2385_v6 = vpop.f32.mrf.mxu1 }
 0x111   :  { %v2387_v8 = vpop.f32.mrf.mxu0 }
 0x112   :  { %v2389_v13 = vadd.f32 %v1710_v3, %v993_v5  ;;  %v2391_v14 = vpop.f32.mrf.mxu1  ;;  %v1683_v5 = vadd.f32 %v2336_v12, %v2330_v9 }
 0x113   :  { %v1650_v15 = vpop.f32.mrf.mxu0 }
 0x114   :  { %v1714_v16 = vpop.f32.mrf.mxu1 }
 0x115   :  { %v1651_v17 = vpop.f32.mrf.mxu0 }
 0x116   :  { %v1652_v18 = vadd.f32 %v1651_v17, %v1650_v15  ;;  %v1715_v20 = vpop.f32.mrf.mxu1  ;;  %v1053_v17 = vadd.f32 %v1683_v5, %v956_v63 }
 0x117   :  { %v1716_v25 = vadd.f32 %v1715_v20, %v1714_v16  ;;  %v2393_v26 = vpop.f32.mrf.mxu0 }
 0x118   :  { %v1001_v27 = vadd.f32 %v1652_v18, %v2325_v2  ;;  %v2396_v28 = vpop.f32.mrf.mxu1 }
 0x119   :  { %v2398_v29 = vpop.f32.mrf.mxu0 }
 0x11a   :  { %v2400_v30 = vadd.f32 %v1716_v25, %v1001_v27  ;;  %v2402_v32 = vpop.f32.mrf.mxu1 }
 0x11b   :  { %v1656_v37 = vpop.f32.mrf.mxu0 }
 0x11c   :  { %v1720_v38 = vpop.f32.mrf.mxu1 }
 0x11d   :  { %v1657_v39 = vpop.f32.mrf.mxu0 }
 0x11e   :  { %v1658_v40 = vadd.f32 %v1657_v39, %v1656_v37  ;;  %v1721_v41 = vpop.f32.mrf.mxu1 }
 0x11f   :  { %v1722_v42 = vadd.f32 %v1721_v41, %v1720_v38  ;;  %v2404_v44 = vpop.f32.mrf.mxu0  ;;  %v964_v41 = vadd.f32 %v1625_v7, %v2325_v2 }
 0x120   :  { %v1009_v49 = vadd.f32 %v1658_v40, %v2325_v2  ;;  %v2407_v50 = vpop.f32.mrf.mxu1 }
 0x121   :  { %v2409_v51 = vpop.f32.mrf.mxu0 }
 0x122   :  { %v2413_v53 = vadd.f32 %v1722_v42, %v1009_v49  ;;  %v2415_v54 = vpop.f32.mrf.mxu1 }
 0x123   :  { %v1742_v56 = vpop.f32.mrf.mxu0 }
 0x124   :  { %v1806_v61 = vpop.f32.mrf.mxu1 }
 0x125   :  { %v1743_v62 = vpop.f32.mrf.mxu0 }
 0x126   :  { %v1744_v0 = vadd.f32 %v1743_v62, %v1742_v56  ;;  %v1807_v1 = vpop.f32.mrf.mxu1  ;;  %v1061_v62 = vadd.f32 %v1689_v19, %v964_v41 }
 0x127   :  { %v1745_v3 = vpop.f32.mrf.mxu0  ;;  %v1808_v27 = vadd.f32 %v1807_v1, %v1806_v61  ;;  %v1631_v61 = vadd.f32 %v2354_v34, %v2349_v31 }
 0x128   :  { %v1809_v15 = vpop.f32.mrf.mxu1  ;;  %v1147_v10 = vadd.f32 %v1744_v0, %v2334_v11 }
 0x129   :  { %v1746_v16 = vpop.f32.mrf.mxu0 }
 0x12a   :  { %v1747_v18 = vadd.f32 %v1746_v16, %v1745_v3  ;;  %v1810_v20 = vpop.f32.mrf.mxu1  ;;  %v1244_v42 = vadd.f32 %v1808_v27, %v1147_v10 }
 0x12b   :  { %v1748_v25 = vpop.f32.mrf.mxu0  ;;  %v1811_v38 = vadd.f32 %v1810_v20, %v1809_v15  ;;  %v1695_v20 = vadd.f32 %v2358_v36, %v2352_v33 }
 0x12c   :  { %v1150_v37 = vadd.f32 %v1747_v18, %v1053_v17  ;;  %v1812_v39 = vpop.f32.mrf.mxu1  ;;  %v972_v17 = vadd.f32 %v1631_v61, %v2325_v2 }
 0x12d   :  { %v1749_v40 = vpop.f32.mrf.mxu0 }
 0x12e   :  { %v1247_v9 = vadd.f32 %v1811_v38, %v1150_v37  ;;  %v1750_v12 = vadd.f32 %v1749_v40, %v1748_v25  ;;  %v1813_v49 = vpop.f32.mrf.mxu1  ;;  %v1069_v37 = vadd.f32 %v1695_v20, %v972_v17  ;;  %v1637_v38 = vadd.f32 %v2365_v46, %v2360_v43 }
 0x12f   :  { %v1751_v52 = vpop.f32.mrf.mxu0  ;;  %v1814_v5 = vadd.f32 %v1813_v49, %v1812_v39 }
 0x130   :  { %v1554_v22 = vpack.c.bf16 %v1247_v9, %v1244_v42  ;;  %v1815_v11 = vpop.f32.mrf.mxu1  ;;  %v1155_v63 = vadd.f32 %v1750_v12, %v2345_v23 }
 0x131   :  { %v1752_v56 = vpop.f32.mrf.mxu0 }
 0x132   :  { %1555 = vst [vmem:[%s2490_s3] sm:$0xff] %v1554_v22   ;;  %v1753_v0 = vadd.f32 %v1752_v56, %v1751_v52  ;;  %v1816_v1 = vpop.f32.mrf.mxu1  ;;  %v1252_v7 = vadd.f32 %v1814_v5, %v1155_v63  ;;  %v980_v52 = vadd.f32 %v1637_v38, %v2325_v2  ;;  %v1701_v56 = vadd.f32 %v2369_v48, %v2363_v45 }
 0x133   :  { %v1754_v3 = vpop.f32.mrf.mxu0  ;;  %v1817_v16 = vadd.f32 %v1816_v1, %v1815_v11 }
 0x134   :  { %v1158_v15 = vadd.f32 %v1753_v0, %v1061_v62  ;;  %v1818_v21 = vpop.f32.mrf.mxu1  ;;  %v1077_v63 = vadd.f32 %v1701_v56, %v980_v52  ;;  %v1643_v0 = vadd.f32 %v2376_v58, %v2371_v55 }
 0x135   :  { %v1755_v24 = vpop.f32.mrf.mxu0 }
 0x136   :  { %v1255_v10 = vadd.f32 %v1817_v16, %v1158_v15  ;;  %v1756_v18 = vadd.f32 %v1755_v24, %v1754_v3  ;;  %v1819_v31 = vpop.f32.mrf.mxu1  ;;  %v988_v17 = vadd.f32 %v1643_v0, %v2325_v2 }
 0x137   :  { %v1757_v34 = vpop.f32.mrf.mxu0  ;;  %v1820_v9 = vadd.f32 %v1819_v31, %v1818_v21  ;;  %v1707_v31 = vadd.f32 %v2380_v60, %v2374_v57 }
 0x138   :  { %v1559_v25 = vpack.c.bf16 %v1255_v10, %v1252_v7  ;;  %v1821_v23 = vpop.f32.mrf.mxu1  ;;  %v1163_v39 = vadd.f32 %v1756_v18, %v2356_v35 }
 0x139   :  { %v1758_v27 = vpop.f32.mrf.mxu0 }
 0x13a   :  { %1591 = vst [vmem:[%s2490_s3 + $0x8] sm:$0xff] %v1559_v25   ;;  %v1759_v40 = vadd.f32 %v1758_v27, %v1757_v34  ;;  %v1822_v41 = vpop.f32.mrf.mxu1  ;;  %v1260_v19 = vadd.f32 %v1820_v9, %v1163_v39  ;;  %v1085_v25 = vadd.f32 %v1707_v31, %v988_v17 }
 0x13b   :  { %v1760_v42 = vpop.f32.mrf.mxu0  ;;  %v1823_v49 = vadd.f32 %v1822_v41, %v1821_v23  ;;  %v1649_v23 = vadd.f32 %v2387_v8, %v2382_v4 }
 0x13c   :  { %v1166_v12 = vadd.f32 %v1759_v40, %v1069_v37  ;;  %v1824_v33 = vpop.f32.mrf.mxu1 }
 0x13d   :  { %v1761_v36 = vpop.f32.mrf.mxu0  ;;  %v996_v9 = vadd.f32 %v1649_v23, %v2325_v2 }
 0x13e   :  { %v1263_v22 = vadd.f32 %v1823_v49, %v1166_v12  ;;  %v1762_v11 = vadd.f32 %v1761_v36, %v1760_v42  ;;  %v1825_v43 = vpop.f32.mrf.mxu1  ;;  %v1713_v36 = vadd.f32 %v2391_v14, %v2385_v6 }
 0x13f   :  { %v1763_v46 = vpop.f32.mrf.mxu0  ;;  %v1826_v16 = vadd.f32 %v1825_v43, %v1824_v33 }
 0x140   :  { %v1564_v62 = vpack.c.bf16 %v1263_v22, %v1260_v19  ;;  %v1827_v35 = vpop.f32.mrf.mxu1  ;;  %v1171_v1 = vadd.f32 %v1762_v11, %v2367_v47  ;;  %v1093_v22 = vadd.f32 %v1713_v36, %v996_v9  ;;  %v1655_v11 = vadd.f32 %v2398_v29, %v2393_v26 }
 0x141   :  { %v1764_v61 = vpop.f32.mrf.mxu0 }
 0x142   :  { %1592 = vst [vmem:[%s2490_s3 + $0x10] sm:$0xff] %v1564_v62   ;;  %v1765_v3 = vadd.f32 %v1764_v61, %v1763_v46  ;;  %v1828_v5 = vpop.f32.mrf.mxu1  ;;  %v1268_v7 = vadd.f32 %v1826_v16, %v1171_v1  ;;  %v1004_v0 = vadd.f32 %v1655_v11, %v2325_v2 }
 0x143   :  { %v1766_v15 = vpop.f32.mrf.mxu0  ;;  %v1829_v24 = vadd.f32 %v1828_v5, %v1827_v35 }
 0x144   :  { %v1174_v21 = vadd.f32 %v1765_v3, %v1077_v63  ;;  %v1830_v45 = vpop.f32.mrf.mxu1 }
 0x145   :  { %v1767_v48 = vpop.f32.mrf.mxu0 }
 0x146   :  { %v1271_v10 = vadd.f32 %v1829_v24, %v1174_v21  ;;  %v1768_v18 = vadd.f32 %v1767_v48, %v1766_v15  ;;  %v1831_v55 = vpop.f32.mrf.mxu1  ;;  %v1719_v15 = vadd.f32 %v2402_v32, %v2396_v28 }
 0x147   :  { %v1769_v58 = vpop.f32.mrf.mxu0  ;;  %v1832_v40 = vadd.f32 %v1831_v55, %v1830_v45  ;;  %v1661_v45 = vadd.f32 %v2409_v51, %v2404_v44 }
 0x148   :  { %v1569_v34 = vpack.c.bf16 %v1271_v10, %v1268_v7  ;;  %v1833_v47 = vpop.f32.mrf.mxu1  ;;  %v1179_v27 = vadd.f32 %v1768_v18, %v2378_v59  ;;  %v1101_v24 = vadd.f32 %v1719_v15, %v1004_v0 }
 0x149   :  { %v1770_v20 = vpop.f32.mrf.mxu0  ;;  %v1012_v31 = vadd.f32 %v1661_v45, %v2325_v2 }
 0x14a   :  { %1593 = vst [vmem:[%s2490_s3 + $0x18] sm:$0xff] %v1569_v34   ;;  %v1771_v37 = vadd.f32 %v1770_v20, %v1769_v58  ;;  %v1834_v38 = vpop.f32.mrf.mxu1  ;;  %v1276_v12 = vadd.f32 %v1832_v40, %v1179_v27 }
 0x14b   :  { %v1772_v39 = vpop.f32.mrf.mxu0  ;;  %v1835_v42 = vadd.f32 %v1834_v38, %v1833_v47 }
 0x14c   :  { %v1182_v41 = vadd.f32 %v1771_v37, %v1085_v25  ;;  %v1836_v57 = vpop.f32.mrf.mxu1  ;;  %v1725_v25 = vadd.f32 %v2415_v54, %v2407_v50 }
 0x14d   :  { %v1773_v60 = vpop.f32.mrf.mxu0 }
 0x14e   :  { %v1279_v49 = vadd.f32 %v1835_v42, %v1182_v41  ;;  %v1774_v33 = vadd.f32 %v1773_v60, %v1772_v39  ;;  %v1837_v4 = vpop.f32.mrf.mxu1  ;;  %v1109_v37 = vadd.f32 %v1725_v25, %v1012_v31 }
 0x14f   :  { %v1775_v8 = vpop.f32.mrf.mxu0  ;;  %v1838_v35 = vadd.f32 %v1837_v4, %v1836_v57 }
 0x150   :  { %v1574_v52 = vpack.c.bf16 %v1279_v49, %v1276_v12  ;;  %v1839_v59 = vpop.f32.mrf.mxu1  ;;  %v1187_v43 = vadd.f32 %v1774_v33, %v2389_v13 }
 0x151   :  { %v1776_v19 = vpop.f32.mrf.mxu0 }
 0x152   :  { %1594 = vst [vmem:[%s2490_s3 + $0x20] sm:$0xff] %v1574_v52   ;;  %v1777_v46 = vadd.f32 %v1776_v19, %v1775_v8  ;;  %v1840_v56 = vpop.f32.mrf.mxu1  ;;  %v1284_v1 = vadd.f32 %v1838_v35, %v1187_v43 }
 0x153   :  { %v1778_v62 = vpop.f32.mrf.mxu0  ;;  %v1841_v63 = vadd.f32 %v1840_v56, %v1839_v59 }
 0x154   :  { %v1190_v61 = vadd.f32 %v1777_v46, %v1093_v22  ;;  %v1842_v6 = vpop.f32.mrf.mxu1 }
 0x155   :  { %v1779_v14 = vpop.f32.mrf.mxu0 }
 0x156   :  { %v1287_v3 = vadd.f32 %v1841_v63, %v1190_v61  ;;  %v1780_v5 = vadd.f32 %v1779_v14, %v1778_v62  ;;  %v1843_v26 = vpop.f32.mrf.mxu1 }
 0x157   :  { %v1781_v29 = vpop.f32.mrf.mxu0  ;;  %v1844_v18 = vadd.f32 %v1843_v26, %v1842_v6 }
 0x158   :  { %v1579_v16 = vpack.c.bf16 %v1287_v3, %v1284_v1  ;;  %v1845_v13 = vpop.f32.mrf.mxu1  ;;  %v1195_v48 = vadd.f32 %v1780_v5, %v2400_v30 }
 0x159   :  { %v1782_v21 = vpop.f32.mrf.mxu0 }
 0x15a   :  { %1595 = vst [vmem:[%s2490_s3 + $0x28] sm:$0xff] %v1579_v16   ;;  %v1783_v17 = vadd.f32 %v1782_v21, %v1781_v29  ;;  %v1846_v7 = vpop.f32.mrf.mxu1  ;;  %v1292_v34 = vadd.f32 %v1844_v18, %v1195_v48 }
 0x15b   :  { %v1784_v10 = vpop.f32.mrf.mxu0  ;;  %v1847_v58 = vadd.f32 %v1846_v7, %v1845_v13 }
 0x15c   :  { %v1198_v55 = vadd.f32 %v1783_v17, %v1101_v24  ;;  %v1848_v28 = vpop.f32.mrf.mxu1 }
 0x15d   :  { %v1785_v32 = vpop.f32.mrf.mxu0 }
 0x15e   :  { %v1295_v47 = vadd.f32 %v1847_v58, %v1198_v55  ;;  %v1786_v20 = vadd.f32 %v1785_v32, %v1784_v10  ;;  %v1849_v44 = vpop.f32.mrf.mxu1 }
 0x15f   :  { %v1787_v51 = vpop.f32.mrf.mxu0  ;;  %v1850_v40 = vadd.f32 %v1849_v44, %v1848_v28 }
 0x160   :  { %v1584_v23 = vpack.c.bf16 %v1295_v47, %v1292_v34  ;;  %v1851_v30 = vpop.f32.mrf.mxu1  ;;  %v1203_v38 = vadd.f32 %v1786_v20, %v2413_v53 }
 0x161   :  { %v1788_v27 = vpop.f32.mrf.mxu0 }
 0x162   :  { %1596 = vst [vmem:[%s2490_s3 + $0x30] sm:$0xff] %v1584_v23   ;;  %v1789_v39 = vadd.f32 %v1788_v27, %v1787_v51  ;;  %v1852_v2 = vpop.f32.mrf.mxu1  ;;  %v1300_v57 = vadd.f32 %v1850_v40, %v1203_v38 }
 0x163   :  { %v1853_v42 = vadd.f32 %v1852_v2, %v1851_v30 }
 0x164   :  { %v1206_v41 = vadd.f32 %v1789_v39, %v1109_v37 }
 0x166   :  { %v1303_v60 = vadd.f32 %v1853_v42, %v1206_v41 }
 0x168   :  { %v1589_v9 = vpack.c.bf16 %v1303_v60, %v1300_v57 }
 0x16a   :  { %1597 = vst [vmem:[%s2490_s3 + $0x38] sm:$0xff] %v1589_v9  }

// kernel: _lambda_.4
= control target key start
LH: loop header
LB: loop body
LE: loop exit
PB: predicated region body
PF: predicated region fallthrough
CT: control target
= control target key end

     0   :  { %s7708_s25 = smov 0   ;;  %s10536_s0 = inlined_call_operand.vmem [shape: bf16[8,32,128], index: 0, kind: input, shape index: {}]   ;;  %s10537_s1 = inlined_call_operand.vmem [shape: f32[1,128], index: 1, kind: input, shape index: {}]   ;;  %s10538_s2 = inlined_call_operand.vmem [shape: f32[1,128], index: 2, kind: input, shape index: {}]   ;;  %s10539_s3 = inlined_call_operand.vmem [shape: bf16[128,384], index: 3, kind: input, shape index: {}]   ;;  %s10540_s4 = inlined_call_operand.vmem [shape: f32[1,384], index: 4, kind: input, shape index: {}]   ;;  %s10541_s5 = inlined_call_operand.vmem [shape: bf16[128,128], index: 5, kind: input, shape index: {}]   ;;  %s10542_s6 = inlined_call_operand.vmem [shape: f32[1,128], index: 6, kind: input, shape index: {}]   ;;  %s10543_s7 = inlined_call_operand.vmem [shape: f32[1,128], index: 7, kind: input, shape index: {}]   ;;  %s10544_s8 = inlined_call_operand.vmem [shape: f32[1,128], index: 8, kind: input, shape index: {}]   ;;  %s10545_s9 = inlined_call_operand.vmem [shape: bf16[128,256], index: 9, kind: input, shape index: {}]   ;;  %s10546_s10 = inlined_call_operand.vmem [shape: f32[1,256], index: 10, kind: input, shape index: {}]   ;;  %s10547_s11 = inlined_call_operand.vmem [shape: bf16[256,128], index: 11, kind: input, shape index: {}]   ;;  %s10548_s12 = inlined_call_operand.vmem [shape: f32[1,128], index: 12, kind: input, shape index: {}]   ;;  %s10549_s13 = inlined_call_operand.vmem [shape: bf16[8,32,128], index: 13, kind: output, shape index: {}]  }
   0x1 LB: > { %s6241_s26 = sadd.s32 4294967295, %s7631_s25   ;;  %p6245_p0 = scmp.ge.s32.totalorder %s7631_s25, 1  ;;  %s7631_s25 = sphi %s7708_s25, %s23_s25  }
   0x2   : > { %p389_p1 = scmp.lt.s32.totalorder %s7631_s25, 3 }
   0x4   : > { %p390_p2 = pnand %p6245_p0, %p389_p1 }
   0x6   : > { %393 = sbr.rel (%p390_p2) target bundleno = 4427 (0x114b), region = 72 }
   0xb   : > { %s6246_s27 = sshll.u32 %s6241_s26, 2  ;;  %v7097_v24 = vld [vmem:[%s10539_s3 + $0xac] ss:$12 sps:$4 sm:$0xff]   ;;  %v7099_v25 = vld [vmem:[%s10539_s3 + $0xa8] ss:$12 sps:$4 sm:$0xff]   ;;  %vm1128_vm0 = vcmask 261120  }
   0xc   : > { %p436_p3 = scmp.lt.s32.totalorder %s6246_s27, 7  ;;  %894 = vmatprep.subr.bf16.mxu0 %v7097_v24  ;;  %v7100_v61 = vld [vmem:[%s10539_s3 + $0x94] ss:$12 sps:$4 sm:$0xff]   ;;  %v7102_v62 = vld [vmem:[%s10539_s3 + $0xb0] ss:$12 sps:$4 sm:$0xff]   ;;  %s7635_s30 = smov 96  }
   0xd   : > { %895 = vmatpush1.bf16.msra.mxu0 %v7099_v25  ;;  %v7103_v63 = vld [vmem:[%s10539_s3 + $0x90] ss:$12 sps:$4 sm:$0xff]   ;;  %6732 = vmatprep.subr.bf16.mxu1 %v7102_v62  ;;  %v7106_v25 = vld [vmem:[%s10539_s3 + $0x98] ss:$12 sps:$4 sm:$0xff]   ;;  %s7637_s15 = smov 32   ;;  %vm2649_vm2 = vcmask 523520  }
   0xe   : > { %s10673_s27 = smov (!%p436_p3, %s6246_s27), 7  ;;  %896 = vmatprep.subr.bf16.mxu0 %v7100_v61  ;;  %6733 = vmatpush3.bf16.msra.mxu1 %v7102_v62  ;;  %v7104_v24 = vld [vmem:[%s10539_s3 + $0x7c] ss:$12 sps:$4 sm:$0xff]   ;;  %v7116_v61 = vld [vmem:[%s10539_s3 + $0x34] ss:$12 sps:$4 sm:$0xff]   ;;  %vm3466_vm3 = vcmask 785920  }
   0xf   : > { %s6404_s28 = sshll.u32 %s10673_s27, 4  ;;  %6734 = vmatprep.subr.bf16.mxu1 %v7106_v25  ;;  %v7118_v62 = vld [vmem:[%s10539_s3 + $0x50] ss:$12 sps:$4 sm:$0xff]   ;;  %vm4283_vm4 = vcmask 1048320  }
  0x10   : > { %s440_s14 = scalar_lea.vmem %s10536_s0, %s6404_s28  ;;  %s10495_s24 = scalar_lea.vmem %s10549_s13, %s6404_s28 }
  0x11   : > { %v6423_v0 = vld [vmem:[%s440_s14] sm:$0xff]   ;;  %v6494_v1 = vld [vmem:[%s440_s14 + $0x8] sm:$0xff]   ;;  %v6495_v4 = vld [vmem:[%s440_s14 + $0x10] sm:$0xff]   ;;  %897 = vmatpush1.bf16.msra.mxu0 %v7103_v63 }
  0x12   : > { %v7724_v2 = vunpack.c.l.bf16 %v6423_v0  ;;  %v7726_v3 = vunpack.c.l.bf16 %v6494_v1  ;;  %v7730_v5 = vunpack.c.h.bf16 %v6423_v0  ;;  %v7732_v6 = vunpack.c.h.bf16 %v6494_v1  ;;  %v6496_v7 = vld [vmem:[%s440_s14 + $0x18] sm:$0xff]   ;;  %v6497_v10 = vld [vmem:[%s440_s14 + $0x20] sm:$0xff]   ;;  %v6498_v13 = vld [vmem:[%s440_s14 + $0x28] sm:$0xff]   ;;  %898 = vmatprep.subr.bf16.mxu0 %v7104_v24  ;;  %6735 = vmatpush3.bf16.msra.mxu1 %v7106_v25 }
  0x13   : > { %v7736_v8 = vunpack.c.l.bf16 %v6495_v4  ;;  %v7738_v9 = vunpack.c.h.bf16 %v6495_v4  ;;  %v7742_v11 = vunpack.c.l.bf16 %v6496_v7  ;;  %v7744_v12 = vunpack.c.h.bf16 %v6496_v7  ;;  %v6499_v16 = vld [vmem:[%s440_s14 + $0x30] sm:$0xff]   ;;  %v6500_v19 = vld [vmem:[%s440_s14 + $0x38] sm:$0xff]   ;;  %v7127_v24 = vld [vmem:[%s10539_s3] ss:$12 sps:$4 sm:$0xff]   ;;  %s7636_s14 = smov 64  }
  0x14   : > { %10589 = vst [vmem:[#allocation3_spill] sm:$0xff] %v7724_v2  ;;  %10590 = vst [vmem:[#allocation4_spill] sm:$0xff] %v7726_v3  ;;  %488 = vadd.xlane.f32.xlu0 %v7724_v2  ;;  %492 = vadd.xlane.f32.xlu1 %v7726_v3  ;;  %v7748_v14 = vunpack.c.l.bf16 %v6497_v10  ;;  %v7750_v15 = vunpack.c.h.bf16 %v6497_v10  ;;  %v7754_v17 = vunpack.c.l.bf16 %v6498_v13  ;;  %v7756_v18 = vunpack.c.h.bf16 %v6498_v13  ;;  %v7128_v25 = vld [vmem:[%s10539_s3 + $0x8] ss:$12 sps:$4 sm:$0xff]  }
  0x15   : > { %10591 = vst [vmem:[#allocation5_spill] sm:$0xff] %v7730_v5  ;;  %10592 = vst [vmem:[#allocation6_spill] sm:$0xff] %v7732_v6  ;;  %v7760_v20 = vunpack.c.l.bf16 %v6499_v16  ;;  %v7762_v21 = vunpack.c.h.bf16 %v6499_v16  ;;  %v7766_v22 = vunpack.c.l.bf16 %v6500_v19  ;;  %v7768_v23 = vunpack.c.h.bf16 %v6500_v19 }
  0x16   : > { %10593 = vst [vmem:[#allocation7_spill] sm:$0xff] %v7736_v8  ;;  %10594 = vst [vmem:[#allocation8_spill] sm:$0xff] %v7738_v9 }
  0x17   : > { %10595 = vst [vmem:[#allocation9_spill] sm:$0xff] %v7742_v11  ;;  %10596 = vst [vmem:[#allocation10_spill] sm:$0xff] %v7744_v12 }
  0x18   : > { %490 = vadd.xlane.f32.xlu0 %v7730_v5  ;;  %494 = vadd.xlane.f32.xlu1 %v7732_v6  ;;  %10597 = vst [vmem:[#allocation11_spill] sm:$0xff] %v7748_v14  ;;  %10598 = vst [vmem:[#allocation12_spill] sm:$0xff] %v7750_v15 }
  0x19   : > { %10599 = vst [vmem:[#allocation13_spill] sm:$0xff] %v7754_v17  ;;  %10600 = vst [vmem:[#allocation14_spill] sm:$0xff] %v7756_v18 }
  0x1a   : > { %10601 = vst [vmem:[#allocation15_spill] sm:$0xff] %v7760_v20  ;;  %10602 = vst [vmem:[#allocation16_spill] sm:$0xff] %v7762_v21 }
  0x1b   : > { %10603 = vst [vmem:[#allocation17_spill] sm:$0xff] %v7766_v22  ;;  %10604 = vst [vmem:[#allocation18_spill] sm:$0xff] %v7768_v23 }
  0x1c   : > { %496 = vadd.xlane.f32.xlu0 %v7736_v8  ;;  %498 = vadd.xlane.f32.xlu1 %v7738_v9 }
  0x20   : > { %500 = vadd.xlane.f32.xlu0 %v7742_v11  ;;  %502 = vadd.xlane.f32.xlu1 %v7744_v12 }
  0x24   : > { %504 = vadd.xlane.f32.xlu0 %v7748_v14  ;;  %506 = vadd.xlane.f32.xlu1 %v7750_v15 }
  0x28   : > { %508 = vadd.xlane.f32.xlu0 %v7754_v17  ;;  %510 = vadd.xlane.f32.xlu1 %v7756_v18 }
  0x2c   : > { %512 = vadd.xlane.f32.xlu0 %v7760_v20  ;;  %514 = vadd.xlane.f32.xlu1 %v7762_v21 }
  0x30   : > { %516 = vadd.xlane.f32.xlu0 %v7766_v22  ;;  %518 = vadd.xlane.f32.xlu1 %v7768_v23 }
  0x9d   : > { %v489_v26 = vpop.xlane.xlu0 %488  ;;  %v493_v27 = vpop.xlane.xlu1 %492 }
  0x9e   : > { %v521_v28 = vmul.f32 0.0078125, %v489_v26  ;;  %v523_v29 = vmul.f32 0.0078125, %v493_v27 }
  0xa0   : > { %v7779_v30 = vsub.f32 %v7724_v2, %v521_v28  ;;  %v7782_v31 = vsub.f32 %v7726_v3, %v523_v29  ;;  %v7107_v29 = vld [vmem:[%s10539_s3 + $0x78] ss:$12 sps:$4 sm:$0xff]  }
  0xa1   : > { %v491_v32 = vpop.xlane.xlu0 %490  ;;  %v495_v33 = vpop.xlane.xlu1 %494  ;;  %899 = vmatpush1.bf16.msra.mxu0 %v7107_v29 }
  0xa2   : > { %v522_v34 = vmul.f32 0.0078125, %v491_v32  ;;  %v553_v35 = vmul.f32 %v7779_v30, %v7779_v30  ;;  %v524_v36 = vmul.f32 0.0078125, %v495_v33  ;;  %v555_v37 = vmul.f32 %v7782_v31, %v7782_v31 }
  0xa4   : > { %569 = vadd.xlane.f32.xlu0 %v553_v35  ;;  %v7789_v38 = vsub.f32 %v7730_v5, %v522_v34  ;;  %v7792_v39 = vsub.f32 %v7732_v6, %v524_v36 }
  0xa5   : > { %v497_v40 = vpop.xlane.xlu0 %496  ;;  %v499_v41 = vpop.xlane.xlu1 %498 }
  0xa6   : > { %v525_v42 = vmul.f32 0.0078125, %v497_v40  ;;  %v554_v43 = vmul.f32 %v7789_v38, %v7789_v38  ;;  %v526_v44 = vmul.f32 0.0078125, %v499_v41  ;;  %v556_v45 = vmul.f32 %v7792_v39, %v7792_v39  ;;  %v7110_v40 = vld [vmem:[%s10539_s3 + $0x80] ss:$12 sps:$4 sm:$0xff]  }
  0xa7   : > { %6736 = vmatprep.subr.bf16.mxu1 %v7110_v40 }
  0xa8   : > { %573 = vadd.xlane.f32.xlu0 %v555_v37  ;;  %571 = vadd.xlane.f32.xlu1 %v554_v43  ;;  %v7799_v46 = vsub.f32 %v7736_v8, %v525_v42  ;;  %v7802_v47 = vsub.f32 %v7738_v9, %v526_v44  ;;  %v7108_v37 = vld [vmem:[%s10539_s3 + $0x64] ss:$12 sps:$4 sm:$0xff]   ;;  %v7111_v44 = vld [vmem:[%s10539_s3 + $0x60] ss:$12 sps:$4 sm:$0xff]  }
  0xa9   : > { %v501_v48 = vpop.xlane.xlu0 %500  ;;  %v503_v49 = vpop.xlane.xlu1 %502  ;;  %900 = vmatprep.subr.bf16.mxu0 %v7108_v37  ;;  %6737 = vmatpush3.bf16.msra.mxu1 %v7110_v40 }
  0xaa   : > { %v527_v50 = vmul.f32 0.0078125, %v501_v48  ;;  %v557_v51 = vmul.f32 %v7799_v46, %v7799_v46  ;;  %v528_v52 = vmul.f32 0.0078125, %v503_v49  ;;  %v558_v53 = vmul.f32 %v7802_v47, %v7802_v47  ;;  %901 = vmatpush1.bf16.msra.mxu0 %v7111_v44 }
  0xac   : > { %575 = vadd.xlane.f32.xlu1 %v556_v45  ;;  %577 = vadd.xlane.f32.xlu0 %v557_v51  ;;  %v7809_v54 = vsub.f32 %v7742_v11, %v527_v50  ;;  %v7812_v55 = vsub.f32 %v7744_v12, %v528_v52  ;;  %v7112_v52 = vld [vmem:[%s10539_s3 + $0x4c] ss:$12 sps:$4 sm:$0xff]  }
  0xad   : > { %v505_v56 = vpop.xlane.xlu0 %504  ;;  %v507_v57 = vpop.xlane.xlu1 %506  ;;  %902 = vmatprep.subr.bf16.mxu0 %v7112_v52 }
  0xae   : > { %v529_v58 = vmul.f32 0.0078125, %v505_v56  ;;  %v559_v59 = vmul.f32 %v7809_v54, %v7809_v54  ;;  %v530_v60 = vmul.f32 0.0078125, %v507_v57  ;;  %v560_v0 = vmul.f32 %v7812_v55, %v7812_v55 }
  0xb0   : > { %579 = vadd.xlane.f32.xlu1 %v558_v53  ;;  %581 = vadd.xlane.f32.xlu0 %v559_v59  ;;  %v7828_v1 = vsub.f32 %v7748_v14, %v529_v58  ;;  %v7831_v4 = vsub.f32 %v7750_v15, %v530_v60  ;;  %v7114_v53 = vld [vmem:[%s10539_s3 + $0x68] ss:$12 sps:$4 sm:$0xff]  }
  0xb1   : > { %v509_v7 = vpop.xlane.xlu0 %508  ;;  %v511_v10 = vpop.xlane.xlu1 %510  ;;  %v7115_v59 = vld [vmem:[%s10539_s3 + $0x48] ss:$12 sps:$4 sm:$0xff]   ;;  %6738 = vmatprep.subr.bf16.mxu1 %v7114_v53 }
  0xb2   : > { %v531_v13 = vmul.f32 0.0078125, %v509_v7  ;;  %v561_v16 = vmul.f32 %v7828_v1, %v7828_v1  ;;  %v532_v19 = vmul.f32 0.0078125, %v511_v10  ;;  %v562_v26 = vmul.f32 %v7831_v4, %v7831_v4  ;;  %903 = vmatpush1.bf16.msra.mxu0 %v7115_v59  ;;  %6739 = vmatpush3.bf16.msra.mxu1 %v7114_v53  ;;  %v7120_v7 = vld [vmem:[%s10539_s3 + $0x1c] ss:$12 sps:$4 sm:$0xff]   ;;  %v7122_v10 = vld [vmem:[%s10539_s3 + $0x38] ss:$12 sps:$4 sm:$0xff]  }
  0xb3   : > { %904 = vmatprep.subr.bf16.mxu0 %v7116_v61  ;;  %6740 = vmatprep.subr.bf16.mxu1 %v7118_v62 }
  0xb4   : > { %583 = vadd.xlane.f32.xlu1 %v560_v0  ;;  %585 = vadd.xlane.f32.xlu0 %v561_v16  ;;  %v7844_v27 = vsub.f32 %v7754_v17, %v531_v13  ;;  %v7847_v28 = vsub.f32 %v7756_v18, %v532_v19  ;;  %v7119_v0 = vld [vmem:[%s10539_s3 + $0x30] ss:$12 sps:$4 sm:$0xff]   ;;  %v7123_v13 = vld [vmem:[%s10539_s3 + $0x18] ss:$12 sps:$4 sm:$0xff]   ;;  %v7126_v19 = vld [vmem:[%s10539_s3 + $0x20] ss:$12 sps:$4 sm:$0xff]  }
  0xb5   : > { %v513_v32 = vpop.xlane.xlu0 %512  ;;  %v515_v33 = vpop.xlane.xlu1 %514  ;;  %v7124_v16 = vld [vmem:[%s10539_s3 + $0x4] ss:$12 sps:$4 sm:$0xff]  }
  0xb6   : > { %v533_v34 = vmul.f32 0.0078125, %v513_v32  ;;  %v563_v35 = vmul.f32 %v7844_v27, %v7844_v27  ;;  %v534_v36 = vmul.f32 0.0078125, %v515_v33  ;;  %v564_v41 = vmul.f32 %v7847_v28, %v7847_v28  ;;  %905 = vmatpush1.bf16.msra.mxu0 %v7119_v0  ;;  %6741 = vmatpush3.bf16.msra.mxu1 %v7118_v62 }
  0xb7   : > { %906 = vmatprep.subr.bf16.mxu0 %v7120_v7  ;;  %6742 = vmatprep.subr.bf16.mxu1 %v7122_v10 }
  0xb8   : > { %587 = vadd.xlane.f32.xlu1 %v562_v26  ;;  %589 = vadd.xlane.f32.xlu0 %v563_v35  ;;  %v7863_v42 = vsub.f32 %v7760_v20, %v533_v34  ;;  %v7866_v43 = vsub.f32 %v7762_v21, %v534_v36  ;;  %v10552_v26 = vmov 0  }
  0xb9   : > { %v517_v45 = vpop.xlane.xlu0 %516  ;;  %v519_v48 = vpop.xlane.xlu1 %518  ;;  %926 = vmatprep.mubr.bf16.mxu0 %v10552_v26 }
  0xba   : > { %v535_v49 = vmul.f32 0.0078125, %v517_v45  ;;  %v565_v50 = vmul.f32 %v7863_v42, %v7863_v42  ;;  %v536_v51 = vmul.f32 0.0078125, %v519_v48  ;;  %v566_v56 = vmul.f32 %v7866_v43, %v7866_v43  ;;  %907 = vmatpush1.bf16.msra.mxu0 %v7123_v13  ;;  %6743 = vmatpush3.bf16.msra.mxu1 %v7122_v10 }
  0xbb   : > { %908 = vmatprep.subr.bf16.mxu0 %v7124_v16  ;;  %6744 = vmatprep.subr.bf16.mxu1 %v7126_v19 }
  0xbc   : > { %591 = vadd.xlane.f32.xlu1 %v564_v41  ;;  %593 = vadd.xlane.f32.xlu0 %v565_v50  ;;  %v7882_v57 = vsub.f32 %v7766_v22, %v535_v49  ;;  %v7885_v58 = vsub.f32 %v7768_v23, %v536_v51 }
  0xbe   : > { %v567_v60 = vmul.f32 %v7882_v57, %v7882_v57  ;;  %v568_v63 = vmul.f32 %v7885_v58, %v7885_v58  ;;  %909 = vmatpush1.bf16.msra.mxu0 %v7127_v24  ;;  %6745 = vmatpush3.bf16.msra.mxu1 %v7126_v19  ;;  %v7928_v19 = vld [vmem:[%s10537_s1] ss:$0 sm:$0xff] }
  0xbf   : > { %6746 = vmatprep.subr.bf16.mxu1 %v7128_v25 }
  0xc0   : > { %595 = vadd.xlane.f32.xlu1 %v566_v56  ;;  %597 = vadd.xlane.f32.xlu0 %v567_v60 }
  0xc2   : > { %6747 = vmatpush3.bf16.msra.mxu1 %v7128_v25 }
  0xc4   : > { %599 = vadd.xlane.f32.xlu1 %v568_v63 }
 0x12d   : > { %v570_v29 = vpop.xlane.xlu0 %569 }
 0x12e   : > { %v601_v32 = vmul.f32 0.0078125, %v570_v29 }
 0x130   : > { %v617_v33 = vadd.f32 1e-06, %v601_v32 }
 0x131   : > { %v572_v34 = vpop.xlane.xlu1 %571  ;;  %v574_v35 = vpop.xlane.xlu0 %573 }
 0x132   : > { %7177 = vrsqrt.f32 %v617_v33  ;;  %v602_v36 = vmul.f32 0.0078125, %v572_v34  ;;  %v603_v37 = vmul.f32 0.0078125, %v574_v35 }
 0x134   : > { %v618_v40 = vadd.f32 1e-06, %v602_v36  ;;  %v619_v41 = vadd.f32 1e-06, %v603_v37 }
 0x135   : > { %v576_v44 = vpop.xlane.xlu1 %575  ;;  %v578_v45 = vpop.xlane.xlu0 %577 }
 0x136   : > { %7179 = vrsqrt.f32 %v618_v40  ;;  %v604_v48 = vmul.f32 0.0078125, %v576_v44  ;;  %v605_v49 = vmul.f32 0.0078125, %v578_v45 }
 0x137   : > { %7181 = vrsqrt.f32 %v619_v41  ;;  %v7935_v41 = vld [vmem:[%s10538_s2] ss:$0 sm:$0xff] }
 0x138   : > { %v620_v50 = vadd.f32 1e-06, %v604_v48  ;;  %v621_v51 = vadd.f32 1e-06, %v605_v49 }
 0x139   : > { %v580_v52 = vpop.xlane.xlu1 %579  ;;  %v582_v53 = vpop.xlane.xlu0 %581 }
 0x13a   : > { %7183 = vrsqrt.f32 %v620_v50  ;;  %v606_v56 = vmul.f32 0.0078125, %v580_v52  ;;  %v607_v59 = vmul.f32 0.0078125, %v582_v53 }
 0x13b   : > { %7185 = vrsqrt.f32 %v621_v51 }
 0x13c   : > { %v622_v60 = vadd.f32 1e-06, %v606_v56  ;;  %v623_v61 = vadd.f32 1e-06, %v607_v59 }
 0x13d   : > { %v584_v62 = vpop.xlane.xlu1 %583  ;;  %v586_v63 = vpop.xlane.xlu0 %585 }
 0x13e   : > { %7187 = vrsqrt.f32 %v622_v60  ;;  %v608_v0 = vmul.f32 0.0078125, %v584_v62  ;;  %v609_v7 = vmul.f32 0.0078125, %v586_v63 }
 0x13f   : > { %v7178_v10 = vpop.eup %7177  ;;  %7189 = vrsqrt.f32 %v623_v61 }
 0x140   : > { %v624_v13 = vadd.f32 1e-06, %v608_v0  ;;  %v625_v16 = vadd.f32 1e-06, %v609_v7  ;;  %v649_v24 = vmul.f32 %v7178_v10, %v7779_v30 }
 0x141   : > { %v588_v25 = vpop.xlane.xlu1 %587  ;;  %v590_v29 = vpop.xlane.xlu0 %589 }
 0x142   : > { %7191 = vrsqrt.f32 %v624_v13  ;;  %v610_v32 = vmul.f32 0.0078125, %v588_v25  ;;  %v611_v33 = vmul.f32 0.0078125, %v590_v29  ;;  %v671_v35 = vmul.f32 %v7928_v19, %v649_v24 }
 0x143   : > { %v7180_v34 = vpop.eup %7179  ;;  %7193 = vrsqrt.f32 %v625_v16 }
 0x144   : > { %v7182_v36 = vpop.eup %7181  ;;  %v626_v37 = vadd.f32 1e-06, %v610_v32  ;;  %v627_v40 = vadd.f32 1e-06, %v611_v33  ;;  %v650_v44 = vmul.f32 %v7180_v34, %v7789_v38  ;;  %v693_v53 = vadd.f32 %v7935_v41, %v671_v35 }
 0x145   : > { %v592_v30 = vpop.xlane.xlu1 %591  ;;  %v594_v45 = vpop.xlane.xlu0 %593  ;;  %v651_v48 = vmul.f32 %v7182_v36, %v7782_v31 }
 0x146   : > { %7195 = vrsqrt.f32 %v626_v37  ;;  %v612_v49 = vmul.f32 0.0078125, %v592_v30  ;;  %v613_v50 = vmul.f32 0.0078125, %v594_v45  ;;  %v672_v51 = vmul.f32 %v7928_v19, %v650_v44 }
 0x147   : > { %v7184_v52 = vpop.eup %7183  ;;  %7197 = vrsqrt.f32 %v627_v40  ;;  %v673_v31 = vmul.f32 %v7928_v19, %v651_v48 }
 0x148   : > { %v7186_v56 = vpop.eup %7185  ;;  %v628_v59 = vadd.f32 1e-06, %v612_v49  ;;  %v629_v60 = vadd.f32 1e-06, %v613_v50  ;;  %v694_v61 = vadd.f32 %v7935_v41, %v672_v51  ;;  %v652_v38 = vmul.f32 %v7184_v52, %v7792_v39 }
 0x149   : > { %v596_v62 = vpop.xlane.xlu1 %595  ;;  %v598_v63 = vpop.xlane.xlu0 %597  ;;  %v653_v0 = vmul.f32 %v7186_v56, %v7799_v46  ;;  %v695_v46 = vadd.f32 %v7935_v41, %v673_v31 }
 0x14a   : > { %7199 = vrsqrt.f32 %v628_v59  ;;  %v614_v7 = vmul.f32 0.0078125, %v596_v62  ;;  %v615_v10 = vmul.f32 0.0078125, %v598_v63  ;;  %v709_v13 = vpack.c.bf16 %v694_v61, %v693_v53 }
 0x14b   : > { %v7188_v16 = vpop.eup %7187  ;;  %7201 = vrsqrt.f32 %v629_v60  ;;  %v674_v24 = vmul.f32 %v7928_v19, %v652_v38  ;;  %v675_v33 = vmul.f32 %v7928_v19, %v653_v0 }
 0x14c   : > { %v7190_v25 = vpop.eup %7189  ;;  %v630_v29 = vadd.f32 1e-06, %v614_v7  ;;  %v631_v32 = vadd.f32 1e-06, %v615_v10  ;;  %927 = vmatmul.mubr.bf16.vlgmr.msra.gmra.mxu0 %v709_v13  ;;  %6748 = vmatprep.mubr.bf16.mxu1 %v709_v13  ;;  %v654_v39 = vmul.f32 %v7188_v16, %v7802_v47 }
 0x14d   : > { %v600_v34 = vpop.xlane.xlu1 %599  ;;  %v696_v35 = vadd.f32 %v7935_v41, %v674_v24  ;;  %936 = vmatprep.mubr.bf16.mxu0 %v10552_v26  ;;  %v655_v36 = vmul.f32 %v7190_v25, %v7809_v54  ;;  %v697_v49 = vadd.f32 %v7935_v41, %v675_v33 }
 0x14e   : > { %7203 = vrsqrt.f32 %v630_v29  ;;  %v616_v37 = vmul.f32 0.0078125, %v600_v34  ;;  %v676_v40 = vmul.f32 %v7928_v19, %v654_v39 }
 0x14f   : > { %v7192_v44 = vpop.eup %7191  ;;  %7205 = vrsqrt.f32 %v631_v32  ;;  %v710_v30 = vpack.c.bf16 %v696_v35, %v695_v46  ;;  %v677_v47 = vmul.f32 %v7928_v19, %v655_v36 }
 0x150   : > { %v7194_v45 = vpop.eup %7193  ;;  %v632_v48 = vadd.f32 1e-06, %v616_v37  ;;  %v698_v50 = vadd.f32 %v7935_v41, %v676_v40  ;;  %v656_v51 = vmul.f32 %v7192_v44, %v7812_v55 }
 0x151   : > { %6749 = vmatmul.mubr.bf16.vlgmr.msra.gmra.mxu1 %v710_v30  ;;  %v657_v54 = vmul.f32 %v7194_v45, %v7828_v1  ;;  %v699_v59 = vadd.f32 %v7935_v41, %v677_v47 }
 0x152   : > { %7207 = vrsqrt.f32 %v632_v48  ;;  %v711_v52 = vpack.c.bf16 %v698_v50, %v697_v49  ;;  %v678_v53 = vmul.f32 %v7928_v19, %v656_v51  ;;  %v749_v48 = vld [vmem:[%s10540_s4] sm:$0x7] }
 0x153   : > { %v7196_v56 = vpop.eup %7195  ;;  %v679_v62 = vmul.f32 %v7928_v19, %v657_v54 }
 0x154   : > { %v7198_v60 = vpop.eup %7197  ;;  %937 = vmatmul.mubr.bf16.gmra.mxu0 %v710_v30  ;;  %6752 = vmatprep.mubr.bf16.mxu1 %v711_v52  ;;  %v700_v61 = vadd.f32 %v7935_v41, %v678_v53  ;;  %v658_v38 = vmul.f32 %v7196_v56, %v7831_v4 }
 0x155   : > { %946 = vmatprep.mubr.bf16.mxu0 %v10552_v26  ;;  %v659_v55 = vmul.f32 %v7198_v60, %v7844_v27  ;;  %v701_v10 = vadd.f32 %v7935_v41, %v679_v62 }
 0x156   : > { %v712_v1 = vpack.c.bf16 %v700_v61, %v699_v59  ;;  %v680_v63 = vmul.f32 %v7928_v19, %v658_v38 }
 0x157   : > { %v7200_v31 = vpop.eup %7199  ;;  %v681_v0 = vmul.f32 %v7928_v19, %v659_v55 }
 0x158   : > { %v7202_v7 = vpop.eup %7201  ;;  %v702_v13 = vadd.f32 %v7935_v41, %v680_v63  ;;  %v660_v16 = vmul.f32 %v7200_v31, %v7847_v28 }
 0x159   : > { %6753 = vmatmul.mubr.bf16.gmra.mxu1 %v712_v1  ;;  %v661_v4 = vmul.f32 %v7202_v7, %v7863_v42  ;;  %v703_v29 = vadd.f32 %v7935_v41, %v681_v0 }
 0x15a   : > { %v713_v24 = vpack.c.bf16 %v702_v13, %v701_v10  ;;  %v682_v25 = vmul.f32 %v7928_v19, %v660_v16 }
 0x15b   : > { %v7204_v27 = vpop.eup %7203  ;;  %v683_v34 = vmul.f32 %v7928_v19, %v661_v4 }
 0x15c   : > { %v7206_v32 = vpop.eup %7205  ;;  %947 = vmatmul.mubr.bf16.gmra.mxu0 %v711_v52  ;;  %6756 = vmatprep.mubr.bf16.mxu1 %v713_v24  ;;  %v704_v39 = vadd.f32 %v7935_v41, %v682_v25  ;;  %v662_v33 = vmul.f32 %v7204_v27, %v7866_v43 }
 0x15d   : > { %956 = vmatprep.mubr.bf16.mxu0 %v10552_v26  ;;  %v663_v28 = vmul.f32 %v7206_v32, %v7882_v57  ;;  %v705_v36 = vadd.f32 %v7935_v41, %v683_v34 }
 0x15e   : > { %v714_v42 = vpack.c.bf16 %v704_v39, %v703_v29  ;;  %v684_v46 = vmul.f32 %v7928_v19, %v662_v33 }
 0x15f   : > { %v7208_v35 = vpop.eup %7207  ;;  %v685_v44 = vmul.f32 %v7928_v19, %v663_v28 }
 0x160   : > { %v706_v37 = vadd.f32 %v7935_v41, %v684_v46  ;;  %v664_v40 = vmul.f32 %v7208_v35, %v7885_v58  ;;  %v482_v58 = vlaneseq }
 0x161   : > { %6757 = vmatmul.mubr.bf16.gmra.mxu1 %v714_v42  ;;  %v707_v57 = vadd.f32 %v7935_v41, %v685_v44 }
 0x162   : > { %v715_v43 = vpack.c.bf16 %v706_v37, %v705_v36  ;;  %v686_v30 = vmul.f32 %v7928_v19, %v664_v40  ;;  %v7991_v19 = vshrl.u32 %v482_v58, 7 }
 0x164   : > { %957 = vmatmul.mubr.bf16.gmra.mxu0 %v712_v1  ;;  %6760 = vmatprep.mubr.bf16.mxu1 %v715_v43  ;;  %v708_v47 = vadd.f32 %v7935_v41, %v686_v30  ;;  %10605 = vst [vmem:[#allocation19_spill] sm:$0xff] %v7991_v19  ;;  %v10551_v41 = vsub.s32 0, %v7991_v19  ;;  %v10550_v62 = vsub.s32 1, %v7991_v19  ;;  %v761_v39 = vsub.s32 2, %v7991_v19 }
 0x165   : > { %966 = vmatprep.mubr.bf16.mxu0 %v10552_v26 }
 0x166   : > { %v716_v45 = vpack.c.bf16 %v708_v47, %v707_v57  ;;  %v7999_v50 = vrot.slane %v749_v48, %v10551_v41  ;;  %v8018_v0 = vrot.slane %v749_v48, %v10550_v62  ;;  %v8045_v36 = vrot.slane %v749_v48, %v761_v39 }
 0x169   : > { %6761 = vmatmul.mubr.bf16.gmra.mxu1 %v716_v45 }
 0x16c   : > { %967 = vmatmul.mubr.bf16.gmra.mxu0 %v713_v24 }
 0x16d   : > { %976 = vmatprep.mubr.bf16.mxu0 %v10552_v26 }
 0x174   : > { %977 = vmatmul.mubr.bf16.gmra.mxu0 %v714_v42 }
 0x175   : > { %986 = vmatprep.mubr.bf16.mxu0 %v10552_v26 }
 0x17c   : > { %987 = vmatmul.mubr.bf16.gmra.mxu0 %v715_v43 }
 0x17d   : > { %996 = vmatprep.mubr.bf16.mxu0 %v10552_v26 }
 0x184   : > { %997 = vmatmul.mubr.bf16.gmra.mxu0 %v716_v45 }
 0x20c   : > { %v928_v49 = vpop.f32.mrf.mxu0 }
 0x20d   : > { %v929_v52 = vadd.f32 %v928_v49, %v7999_v50 }
 0x20e   : > { %v930_v51 = vpop.f32.mrf.mxu0 }
 0x20f   : > { %v931_v27 = vadd.f32 %v930_v51, %v8018_v0 }
 0x210   : > { %v932_v54 = vpop.f32.mrf.mxu0 }
 0x211   : > { %v933_v53 = vadd.f32 %v932_v54, %v7999_v50  ;;  %v8003_v56 = vpop.f32.mrf.mxu1 }
 0x212   : > { %v934_v59 = vpop.f32.mrf.mxu0 }
 0x213   : > { %v8005_v60 = vpack.c.bf16 %v933_v53, %v929_v52  ;;  %v8007_v61 = vpop.f32.mrf.mxu1  ;;  %v935_v13 = vadd.f32 %v934_v59, %v8018_v0 }
 0x214   : > { %v938_v38 = vpop.f32.mrf.mxu0 }
 0x215   : > { %v8010_v55 = vpop.f32.mrf.mxu1  ;;  %6768 = vmatprep.mubr.msk.bf16.mxu1 %vm1128_vm0, %v8005_v60  ;;  %v8033_v34 = vpack.c.bf16 %v935_v13, %v931_v27 }
 0x216   : > { %v940_v1 = vpop.f32.mrf.mxu0 }
 0x217   : > { %v8014_v63 = vpop.f32.mrf.mxu1  ;;  %v941_v16 = vadd.f32 %v940_v1, %v8018_v0  ;;  %v1136_v45 = vsel %vm1128_vm0, %v8033_v34, 0  ;;  %v939_v1 = vadd.f32 %v938_v38, %v7999_v50 }
 0x218   : > { %v942_v31 = vpop.f32.mrf.mxu0 }
 0x219   : > { %v8020_v7 = vpop.f32.mrf.mxu1  ;;  %v943_v54 = vadd.f32 %v942_v31, %v7999_v50 }
 0x21a   : > { %v944_v10 = vpop.f32.mrf.mxu0 }
 0x21b   : > { %v945_v4 = vadd.f32 %v944_v10, %v8018_v0  ;;  %v8025_v24 = vpop.f32.mrf.mxu1 }
 0x21c   : > { %v948_v25 = vpop.f32.mrf.mxu0 }
 0x21d   : > { %v8028_v29 = vpack.c.bf16 %v945_v4, %v941_v16  ;;  %v8030_v32 = vpop.f32.mrf.mxu1  ;;  %v949_v27 = vadd.f32 %v948_v25, %v7999_v50 }
 0x21e   : > { %v950_v33 = vpop.f32.mrf.mxu0 }
 0x21f   : > { %v8035_v28 = vpop.f32.mrf.mxu1  ;;  %7052 = vmatprep.subr.msk.bf16.mxu1 %vm1128_vm0, %v8028_v29  ;;  %v1139_v42 = vsel %vm1128_vm0, %v8028_v29, 0 }
 0x220   : > { %v952_v46 = vpop.f32.mrf.mxu0  ;;  %6765 = vmatpush3.bf16.xpose.msra.mxu1 %v1139_v42  ;;  %v8065_v42 = vpack.c.bf16 %v943_v54, %v939_v1 }
 0x221   : > { %v8041_v35 = vpop.f32.mrf.mxu1  ;;  %7053 = vmatprep.subr.msk.bf16.mxu1 %vm1128_vm0, %v8033_v34  ;;  %v953_v52 = vadd.f32 %v952_v46, %v7999_v50  ;;  %v951_v46 = vadd.f32 %v950_v33, %v8018_v0 }
 0x222   : > { %v954_v37 = vpop.f32.mrf.mxu0 }
 0x223   : > { %v1073_v40 = vpop.f32.mrf.mxu1  ;;  %v955_v10 = vadd.f32 %v954_v37, %v8018_v0  ;;  %v8072_v38 = vpack.c.bf16 %v953_v52, %v949_v27 }
 0x224   : > { %v1074_v44 = vadd.f32 %v1073_v40, %v8045_v36  ;;  %v958_v43 = vpop.f32.mrf.mxu0 }
 0x225   : > { %v8048_v30 = vpop.f32.mrf.mxu1 }
 0x226   : > { %v960_v57 = vpop.f32.mrf.mxu0 }
 0x227   : > { %v1076_v47 = vpop.f32.mrf.mxu1  ;;  %v961_v13 = vadd.f32 %v960_v57, %v8018_v0  ;;  %v8074_v57 = vpack.c.bf16 %v955_v10, %v951_v46  ;;  %v959_v46 = vadd.f32 %v958_v43, %v7999_v50 }
 0x228   : > { %v1077_v49 = vadd.f32 %v1076_v47, %v8045_v36  ;;  %v962_v51 = vpop.f32.mrf.mxu0  ;;  %6767 = vmatpush3.bf16.xpose.msra.mxu1 %v1136_v45 }
 0x229   : > { %v8054_v48 = vpop.f32.mrf.mxu1  ;;  %v963_v27 = vadd.f32 %v962_v51, %v7999_v50 }
 0x22a   : > { %v8057_v53 = vpack.c.bf16 %v1077_v49, %v1074_v44  ;;  %v964_v59 = vpop.f32.mrf.mxu0 }
 0x22b   : > { %v965_v16 = vadd.f32 %v964_v59, %v8018_v0  ;;  %v1089_v4 = vpop.f32.mrf.mxu1 }
 0x22c   : > { %v1090_v31 = vadd.f32 %v1089_v4, %v8045_v36  ;;  %v968_v39 = vpop.f32.mrf.mxu0 }
 0x22d   : > { %v8068_v40 = vpack.c.bf16 %v965_v16, %v961_v13  ;;  %v8070_v44 = vpop.f32.mrf.mxu1  ;;  %v969_v49 = vadd.f32 %v968_v39, %v7999_v50  ;;  %v1197_v16 = vsel %vm1128_vm0, %v8074_v57, 0 }
 0x22e   : > { %v970_v37 = vpop.f32.mrf.mxu0 }
 0x22f   : > { %v1092_v47 = vpop.f32.mrf.mxu1  ;;  %6769 = vmatmul.mubr.msk.bf16.vlgmr.msra.gmra.mxu1 %vm1128_vm0, %v8065_v42  ;;  %7054 = vmatprep.subr.msk.bf16.mxu1 %vm1128_vm0, %v8068_v40  ;;  %v1200_v25 = vsel %vm1128_vm0, %v8068_v40, 0 }
 0x230   : > { %v1093_v33 = vadd.f32 %v1092_v47, %v8045_v36  ;;  %v972_v45 = vpop.f32.mrf.mxu0  ;;  %6773 = vmatpush3.bf16.xpose.msra.mxu1 %v1200_v25  ;;  %6776 = vmatprep.mubr.msk.bf16.mxu1 %vm1128_vm0, %v8072_v38 }
 0x231   : > { %v973_v54 = vadd.f32 %v972_v45, %v7999_v50  ;;  %7055 = vmatprep.subr.msk.bf16.mxu1 %vm1128_vm0, %v8074_v57  ;;  %v8102_v45 = vpack.c.bf16 %v963_v27, %v959_v46  ;;  %v1053_v27 = vadd.f32 %v8010_v55, %v8045_v36  ;;  %v1045_v55 = vadd.f32 %v8014_v63, %v8045_v36 }
 0x232   : > { %v8089_v52 = vpack.c.bf16 %v1093_v33, %v1090_v31  ;;  %v974_v59 = vpop.f32.mrf.mxu0  ;;  %v1085_v63 = vadd.f32 %v8048_v30, %v8045_v36 }
 0x233   : > { %v8091_v1 = vpack.c.bf16 %v973_v54, %v969_v49  ;;  %v975_v31 = vadd.f32 %v974_v59, %v8018_v0  ;;  %v971_v49 = vadd.f32 %v970_v37, %v8018_v0 }
 0x234   : > { %v978_v10 = vpop.f32.mrf.mxu0 }
 0x235   : > { %6784 = vmatprep.mubr.msk.bf16.mxu0 %vm1128_vm0, %v8091_v1 }
 0x236   : > { %v980_v13 = vpop.f32.mrf.mxu0 }
 0x237   : > { %v981_v47 = vadd.f32 %v980_v13, %v8018_v0 }
 0x238   : > { %v982_v4 = vpop.f32.mrf.mxu0  ;;  %6775 = vmatpush3.bf16.xpose.msra.mxu1 %v1197_v16  ;;  %v8107_v16 = vpack.c.bf16 %v975_v31, %v971_v49  ;;  %v1050_v31 = vadd.f32 %v8003_v56, %v8045_v36  ;;  %v979_v56 = vadd.f32 %v978_v10, %v7999_v50 }
 0x23a   : > { %v984_v39 = vpop.f32.mrf.mxu0 }
 0x23b   : > { %v985_v25 = vadd.f32 %v984_v39, %v8018_v0 }
 0x23c   : > { %v988_v33 = vpop.f32.mrf.mxu0 }
 0x23d   : > { %v8105_v54 = vpack.c.bf16 %v985_v25, %v981_v47  ;;  %v989_v59 = vadd.f32 %v988_v33, %v7999_v50  ;;  %v8127_v25 = vpack.c.bf16 %v1053_v27, %v1050_v31  ;;  %v1258_v33 = vsel %vm1128_vm0, %v8107_v16, 0 }
 0x23e   : > { %v990_v62 = vpop.f32.mrf.mxu0  ;;  %v1042_v31 = vadd.f32 %v8007_v61, %v8045_v36 }
 0x23f   : > { %6777 = vmatmul.mubr.msk.bf16.vlgmr.msra.gmra.mxu1 %vm1128_vm0, %v8102_v45  ;;  %7056 = vmatprep.subr.msk.bf16.mxu0 %vm1128_vm0, %v8105_v54  ;;  %v1261_v43 = vsel %vm1128_vm0, %v8105_v54, 0 }
 0x240   : > { %v992_v51 = vpop.f32.mrf.mxu0  ;;  %6781 = vmatpush3.bf16.xpose.msra.mxu0 %v1261_v43  ;;  %v983_v43 = vadd.f32 %v982_v4, %v7999_v50  ;;  %v991_v4 = vadd.f32 %v990_v62, %v8018_v0  ;;  %v8146_v26 = vpack.c.bf16 %v1045_v55, %v1042_v31  ;;  %v1082_v62 = vadd.f32 %v8041_v35, %v8045_v36 }
 0x241   : > { %v993_v37 = vadd.f32 %v992_v51, %v7999_v50  ;;  %7057 = vmatprep.subr.msk.bf16.mxu0 %vm1128_vm0, %v8107_v16 }
 0x242   : > { %v994_v13 = vpop.f32.mrf.mxu0  ;;  %v8166_v30 = vpack.c.bf16 %v1085_v63, %v1082_v62 }
 0x243   : > { %v8121_v39 = vpack.c.bf16 %v993_v37, %v989_v59  ;;  %v995_v59 = vadd.f32 %v994_v13, %v8018_v0  ;;  %v1066_v13 = vadd.f32 %v8020_v7, %v8045_v36  ;;  %v1058_v7 = vadd.f32 %v8025_v24, %v8045_v36 }
 0x244   : > { %v998_v46 = vpop.f32.mrf.mxu0 }
 0x245   : > { %6792 = vmatprep.mubr.msk.bf16.mxu1 %vm1128_vm0, %v8121_v39  ;;  %v8150_v10 = vpack.c.bf16 %v995_v59, %v991_v4  ;;  %v999_v55 = vadd.f32 %v998_v46, %v7999_v50  ;;  %v1101_v59 = vadd.f32 %v8070_v44, %v8045_v36  ;;  %v483_v44 = vand.u32 127, %v482_v58 }
 0x246   : > { %v1000_v47 = vpop.f32.mrf.mxu0 }
 0x247   : > { %v1001_v37 = vadd.f32 %v1000_v47, %v8018_v0  ;;  %v1319_v35 = vsel %vm1128_vm0, %v8150_v10, 0  ;;  %vm484_vm1 = vcmp.lt.s32.totalorder %v483_v44, 17 }
 0x248   : > { %v1002_v49 = vpop.f32.mrf.mxu0  ;;  %6783 = vmatpush3.bf16.xpose.msra.mxu0 %v1258_v33  ;;  %v8141_v33 = vpack.c.bf16 %v983_v43, %v979_v56 }
 0x249   : > { %6796 = vmatprep.subr.bf16.mxu0 %v8127_v25  ;;  %v1003_v43 = vadd.f32 %v1002_v49, %v7999_v50 }
 0x24a   : > { %v1004_v51 = vpop.f32.mrf.mxu0 }
 0x24b   : > { %v1005_v27 = vadd.f32 %v1004_v51, %v8018_v0  ;;  %v1069_v0 = vadd.f32 %v8030_v32, %v8045_v36  ;;  %v1061_v32 = vadd.f32 %v8035_v28, %v8045_v36  ;;  %v8183_v51 = vpack.c.bf16 %v1003_v43, %v999_v55 }
 0x24c   : > { %v1098_v28 = vadd.f32 %v8054_v48, %v8045_v36  ;;  %v7634_v36 = vmov -1e+30  }
 0x24d   : > { %v8144_v41 = vpack.c.bf16 %v1005_v27, %v1001_v37  ;;  %v8172_v47 = vpack.c.bf16 %v1069_v0, %v1066_v13  ;;  %v8185_v56 = vpack.c.bf16 %v1061_v32, %v1058_v7  ;;  %v8200_v48 = vsel %vm484_vm1, 0.0, %v7634_v36 }
 0x24e   : > { %v8195_v50 = vpack.c.bf16 %v1101_v59, %v1098_v28 }
 0x24f   : > { %6785 = vmatmul.mubr.msk.bf16.vlgmr.msra.gmra.mxu0 %vm1128_vm0, %v8141_v33  ;;  %7058 = vmatprep.subr.msk.bf16.mxu1 %vm1128_vm0, %v8144_v41  ;;  %v1322_v61 = vsel %vm1128_vm0, %v8144_v41, 0  ;;  %10606 = vst [vmem:[#allocation20_spill] sm:$0xff] %v8172_v47  ;;  %10607 = vst [vmem:[#allocation21_spill] sm:$0xff] %v8185_v56 }
 0x250   : > { %6789 = vmatpush3.bf16.xpose.msra.mxu1 %v1322_v61  ;;  %6797 = vmatpush3.bf16.msra.mxu0 %v8127_v25 }
 0x251   : > { %7059 = vmatprep.subr.msk.bf16.mxu1 %vm1128_vm0, %v8150_v10  ;;  %6798 = vmatprep.subr.bf16.mxu0 %v8146_v26 }
 0x254   : > { %6799 = vmatpush3.bf16.msra.mxu0 %v8146_v26 }
 0x255   : > { %6812 = vmatprep.subr.bf16.mxu0 %v8166_v30 }
 0x258   : > { %6791 = vmatpush3.bf16.xpose.msra.mxu1 %v1319_v35 }
 0x259   : > { %6804 = vmatprep.subr.bf16.mxu1 %v8172_v47 }
 0x25f   : > { %6793 = vmatmul.mubr.msk.bf16.vlgmr.msra.gmra.mxu1 %vm1128_vm0, %v8183_v51 }
 0x260   : > { %6805 = vmatpush3.bf16.msra.mxu1 %v8172_v47 }
 0x261   : > { %6806 = vmatprep.subr.bf16.mxu1 %v8185_v56 }
 0x264   : > { %6807 = vmatpush3.bf16.msra.mxu1 %v8185_v56 }
 0x265   : > { %6820 = vmatprep.subr.bf16.mxu1 %v8195_v50 }
 0x2ef   : > { %v6770_v24 = vpop.f32.mrf.mxu1 }
 0x2f1   : > { %v1175_v46 = vpop.f32.mrf.mxu1 }
 0x2f3   : > { %v6771_v49 = vpop.f32.mrf.mxu1 }
 0x2f5   : > { %v1178_v37 = vpop.f32.mrf.mxu1 }
 0x2ff   : > { %v6778_v27 = vpop.f32.mrf.mxu1 }
 0x300   : > { %v1379_v4 = vmul.f32 0.17677669, %v6778_v27 }
 0x301   : > { %v1236_v31 = vpop.f32.mrf.mxu1 }
 0x302   : > { %v1377_v63 = vmul.f32 0.17677669, %v1236_v31  ;;  %v8208_v58 = vadd.f32 %v1379_v4, %v8200_v48 }
 0x303   : > { %v6779_v61 = vpop.f32.mrf.mxu1 }
 0x304   : > { %v8203_v62 = vadd.f32 %v1377_v63, %v8200_v48  ;;  %v1380_v13 = vmul.f32 0.17677669, %v6779_v61  ;;  %v1423_v55 = vsel %vm1128_vm0, %v8208_v58, -inf }
 0x305   : > { %v1239_v0 = vpop.f32.mrf.mxu1 }
 0x306   : > { %v1378_v35 = vmul.f32 0.17677669, %v1239_v0  ;;  %v1417_v43 = vsel %vm1128_vm0, %v8203_v62, -inf  ;;  %v8218_v59 = vadd.f32 %v1380_v13, %v8200_v48  ;;  %v1373_v0 = vmul.f32 0.17677669, %v1175_v46 }
 0x307   : > { %1418 = vmax.xlane.f32.xlu0 %v1417_v43 }
 0x308   : > { %v8211_v32 = vadd.f32 %v1378_v35, %v8200_v48  ;;  %v1426_v28 = vsel %vm1128_vm0, %v8218_v59, -inf  ;;  %v1389_v19 = vadd.f32 %v1373_v0, %v8200_v48 }
 0x30a   : > { %v1420_v7 = vsel %vm1128_vm0, %v8211_v32, -inf }
 0x30b   : > { %1424 = vmax.xlane.f32.xlu0 %v1423_v55  ;;  %1421 = vmax.xlane.f32.xlu1 %v1420_v7 }
 0x30f   : > { %1427 = vmax.xlane.f32.xlu1 %v1426_v28  ;;  %v6786_v63 = vpop.f32.mrf.mxu0 }
 0x311   : > { %v1297_v28 = vpop.f32.mrf.mxu0 }
 0x312   : > { %v1381_v23 = vmul.f32 0.17677669, %v1297_v28 }
 0x314   : > { %v1397_v28 = vadd.f32 %v1381_v23, %v8200_v48 }
 0x31f   : > { %v6794_v44 = vpop.f32.mrf.mxu1 }
 0x320   : > { %v1387_v31 = vmul.f32 0.17677669, %v6794_v44 }
 0x321   : > { %v1358_v27 = vpop.f32.mrf.mxu1 }
 0x322   : > { %v1385_v4 = vmul.f32 0.17677669, %v1358_v27  ;;  %v8228_v7 = vadd.f32 %v1387_v31, %v8200_v48  ;;  %v1375_v27 = vmul.f32 0.17677669, %v6770_v24  ;;  %v6787_v31 = vpop.f32.mrf.mxu0  ;;  %v1405_v24 = vsel %vm1128_vm0, %v1389_v19, -inf }
 0x323   : > { %v6795_v36 = vpop.f32.mrf.mxu1  ;;  %v1384_v20 = vmul.f32 0.17677669, %v6787_v31 }
 0x324   : > { %v8223_v61 = vadd.f32 %v1385_v4, %v8200_v48  ;;  %v1388_v43 = vmul.f32 0.17677669, %v6795_v36  ;;  %v1374_v4 = vmul.f32 0.17677669, %v1178_v37  ;;  %v1447_v46 = vsel %vm1128_vm0, %v8228_v7, -inf  ;;  %v1300_v21 = vpop.f32.mrf.mxu0 }
 0x325   : > { %v1361_v35 = vpop.f32.mrf.mxu1  ;;  %v1400_v23 = vadd.f32 %v1384_v20, %v8200_v48 }
 0x326   : > { %v1386_v13 = vmul.f32 0.17677669, %v1361_v35  ;;  %v1441_v55 = vsel %vm1128_vm0, %v8223_v61, -inf  ;;  %v8239_v35 = vadd.f32 %v1388_v43, %v8200_v48  ;;  %v1390_v0 = vadd.f32 %v1374_v4, %v8200_v48 }
 0x327   : > { %1442 = vmax.xlane.f32.xlu0 %v1441_v55  ;;  %v1376_v55 = vmul.f32 0.17677669, %v6771_v49  ;;  %v1429_v4 = vsel %vm1128_vm0, %v1397_v28, -inf  ;;  %v1438_v31 = vsel %vm1128_vm0, %v1400_v23, -inf }
 0x328   : > { %v8231_v44 = vadd.f32 %v1386_v13, %v8200_v48  ;;  %v1391_v13 = vadd.f32 %v1375_v27, %v8200_v48  ;;  %v1450_v37 = vsel %vm1128_vm0, %v8239_v35, -inf  ;;  %v1408_v49 = vsel %vm1128_vm0, %v1390_v0, -inf }
 0x329   : > { %v1392_v22 = vadd.f32 %v1376_v55, %v8200_v48 }
 0x32a   : > { %v1444_v36 = vsel %vm1128_vm0, %v8231_v44, -inf  ;;  %v1411_v43 = vsel %vm1128_vm0, %v1391_v13, -inf }
 0x32b   : > { %1448 = vmax.xlane.f32.xlu0 %v1447_v46  ;;  %1445 = vmax.xlane.f32.xlu1 %v1444_v36  ;;  %v1383_v46 = vmul.f32 0.17677669, %v6786_v63  ;;  %v1382_v36 = vmul.f32 0.17677669, %v1300_v21  ;;  %v1414_v27 = vsel %vm1128_vm0, %v1392_v22, -inf }
 0x32f   : > { %1406 = vmax.xlane.f32.xlu0 %v1405_v24  ;;  %1451 = vmax.xlane.f32.xlu1 %v1450_v37  ;;  %v1399_v24 = vadd.f32 %v1383_v46, %v8200_v48  ;;  %v8254_v37 = vadd.f32 %v1382_v36, %v8200_v48 }
 0x331   : > { %v1435_v21 = vsel %vm1128_vm0, %v1399_v24, -inf  ;;  %v1432_v63 = vsel %vm1128_vm0, %v8254_v37, -inf }
 0x333   : > { %1412 = vmax.xlane.f32.xlu0 %v1411_v43  ;;  %1409 = vmax.xlane.f32.xlu1 %v1408_v49 }
 0x337   : > { %1430 = vmax.xlane.f32.xlu0 %v1429_v4  ;;  %1415 = vmax.xlane.f32.xlu1 %v1414_v27 }
 0x33b   : > { %1436 = vmax.xlane.f32.xlu0 %v1435_v21  ;;  %1433 = vmax.xlane.f32.xlu1 %v1432_v63 }
 0x33f   : > { %1439 = vmax.xlane.f32.xlu1 %v1438_v31 }
 0x390   : > { %v1419_v55 = vpop.xlane.xlu0 %1418 }
 0x391   : > { %v1457_v5 = vsub.f32 %v8203_v62, %v1419_v55 }
 0x394   : > { %v1422_v43 = vpop.xlane.xlu1 %1421  ;;  %v1425_v46 = vpop.xlane.xlu0 %1424 }
 0x395   : > { %v1459_v21 = vsub.f32 %v8208_v58, %v1425_v46 }
 0x397   : > { %v1481_v3 = vmul.f32 1.442695, %v1459_v21 }
 0x398   : > { %v1428_v49 = vpop.xlane.xlu1 %1427 }
 0x399   : > { %v1460_v56 = vsub.f32 %v8218_v59, %v1428_v49 }
 0x39b   : > { %v1483_v58 = vmul.f32 1.442695, %v1460_v56 }
 0x3b0   : > { %v1443_v36 = vpop.xlane.xlu0 %1442 }
 0x3b4   : > { %v1449_v18 = vpop.xlane.xlu0 %1448  ;;  %v8261_v4 = vpop.xlane.xlu1 %1445 }
 0x3b5   : > { %v1467_v59 = vsub.f32 %v8228_v7, %v1449_v18  ;;  %v1466_v46 = vsub.f32 %v8231_v44, %v8261_v4 }
 0x3b7   : > { %v1495_v21 = vmul.f32 1.442695, %v1466_v46 }
 0x3b8   : > { %v1407_v27 = vpop.xlane.xlu0 %1406  ;;  %v8263_v15 = vpop.xlane.xlu1 %1451 }
 0x3b9   : > { %v1453_v17 = vsub.f32 %v1389_v19, %v1407_v27 }
 0x3bb   : > { %v1469_v63 = vmul.f32 1.442695, %v1453_v17 }
 0x3bc   : > { %v1413_v14 = vpop.xlane.xlu0 %1412  ;;  %v1410_v12 = vpop.xlane.xlu1 %1409 }
 0x3bd   : > { %v1455_v20 = vsub.f32 %v1391_v13, %v1413_v14  ;;  %v1454_v31 = vsub.f32 %v1390_v0, %v1410_v12  ;;  %v1477_v14 = vmul.f32 1.442695, %v1457_v5  ;;  %v1458_v12 = vsub.f32 %v8211_v32, %v1422_v43 }
 0x3be   : > { %v1465_v32 = vsub.f32 %v8223_v61, %v1443_v36 }
 0x3bf   : > { %v1473_v9 = vmul.f32 1.442695, %v1455_v20  ;;  %v1471_v19 = vmul.f32 1.442695, %v1454_v31  ;;  %v1479_v62 = vmul.f32 1.442695, %v1458_v12 }
 0x3c0   : > { %v1431_v11 = vpop.xlane.xlu0 %1430  ;;  %v1416_v8 = vpop.xlane.xlu1 %1415  ;;  %v1493_v61 = vmul.f32 1.442695, %v1465_v32 }
 0x3c1   : > { %7209 = vpow2.f32 %v1473_v9  ;;  %v1456_v6 = vsub.f32 %v1392_v22, %v1416_v8  ;;  %v1461_v8 = vsub.f32 %v1397_v28, %v1431_v11  ;;  %v1497_v28 = vmul.f32 1.442695, %v1467_v59 }
 0x3c2   : > { %7211 = vpow2.f32 %v1469_v63 }
 0x3c3   : > { %v1475_v2 = vmul.f32 1.442695, %v1456_v6  ;;  %v1485_v0 = vmul.f32 1.442695, %v1461_v8 }
 0x3c4   : > { %v1437_v27 = vpop.xlane.xlu0 %1436  ;;  %v1434_v47 = vpop.xlane.xlu1 %1433 }
 0x3c5   : > { %7213 = vpow2.f32 %v1475_v2  ;;  %v1463_v17 = vsub.f32 %v1399_v24, %v1437_v27  ;;  %v1462_v5 = vsub.f32 %v8254_v37, %v1434_v47  ;;  %v1468_v24 = vsub.f32 %v8239_v35, %v8263_v15 }
 0x3c6   : > { %7215 = vpow2.f32 %v1481_v3 }
 0x3c7   : > { %7217 = vpow2.f32 %v1471_v19  ;;  %v1489_v22 = vmul.f32 1.442695, %v1463_v17  ;;  %v1499_v15 = vmul.f32 1.442695, %v1468_v24 }
 0x3c8   : > { %v1440_v9 = vpop.xlane.xlu1 %1439  ;;  %7219 = vpow2.f32 %v1477_v14 }
 0x3c9   : > { %7221 = vpow2.f32 %v1483_v58  ;;  %v1464_v6 = vsub.f32 %v1400_v23, %v1440_v9  ;;  %v1487_v23 = vmul.f32 1.442695, %v1462_v5 }
 0x3ca   : > { %7223 = vpow2.f32 %v1489_v22 }
 0x3cb   : > { %7225 = vpow2.f32 %v1479_v62  ;;  %v1491_v56 = vmul.f32 1.442695, %v1464_v6 }
 0x3cc   : > { %7227 = vpow2.f32 %v1485_v0 }
 0x3cd   : > { %7229 = vpow2.f32 %v1491_v56 }
 0x3ce   : > { %v8269_v13 = vpop.eup %7209  ;;  %7231 = vpow2.f32 %v1497_v28 }
 0x3cf   : > { %v1507_v2 = vsel %vm1128_vm0, %v8269_v13, 0.0  ;;  %v8274_v3 = vpop.eup %7211  ;;  %7233 = vpow2.f32 %v1487_v23 }
 0x3d0   : > { %1508 = vadd.xlane.f32.xlu0 %v1507_v2  ;;  %v1501_v18 = vsel %vm1128_vm0, %v8274_v3, 0.0  ;;  %7235 = vpow2.f32 %v1493_v61 }
 0x3d1   : > { %7237 = vpow2.f32 %v1499_v15 }
 0x3d2   : > { %v8277_v11 = vpop.eup %7213  ;;  %7239 = vpow2.f32 %v1495_v21 }
 0x3d3   : > { %v8282_v7 = vpop.eup %7215  ;;  %v1510_v47 = vsel %vm1128_vm0, %v8277_v11, 0.0 }
 0x3d4   : > { %1502 = vadd.xlane.f32.xlu0 %v1501_v18  ;;  %v8288_v37 = vpop.eup %7217  ;;  %1511 = vadd.xlane.f32.xlu1 %v1510_v47  ;;  %v1519_v55 = vsel %vm1128_vm0, %v8282_v7, 0.0 }
 0x3d5   : > { %v8292_v43 = vpop.eup %7219  ;;  %v1504_v35 = vsel %vm1128_vm0, %v8288_v37, 0.0 }
 0x3d6   : > { %v8298_v49 = vpop.eup %7221  ;;  %v1513_v36 = vsel %vm1128_vm0, %v8292_v43, 0.0 }
 0x3d7   : > { %v8302_v20 = vpop.eup %7223  ;;  %v1522_v44 = vsel %vm1128_vm0, %v8298_v49, 0.0 }
 0x3d8   : > { %1520 = vadd.xlane.f32.xlu0 %v1519_v55  ;;  %1505 = vadd.xlane.f32.xlu1 %v1504_v35  ;;  %v8306_v4 = vpop.eup %7225  ;;  %v1531_v63 = vsel %vm1128_vm0, %v8302_v20, 0.0 }
 0x3d9   : > { %v8310_v31 = vpop.eup %7227  ;;  %v1516_v19 = vsel %vm1128_vm0, %v8306_v4, 0.0 }
 0x3da   : > { %v8314_v27 = vpop.eup %7229  ;;  %v1525_v14 = vsel %vm1128_vm0, %v8310_v31, 0.0 }
 0x3db   : > { %v8318_v17 = vpop.eup %7231  ;;  %v1534_v12 = vsel %vm1128_vm0, %v8314_v27, 0.0 }
 0x3dc   : > { %1514 = vadd.xlane.f32.xlu0 %v1513_v36  ;;  %1523 = vadd.xlane.f32.xlu1 %v1522_v44  ;;  %v8322_v58 = vpop.eup %7233  ;;  %v1543_v9 = vsel %vm1128_vm0, %v8318_v17, 0.0 }
 0x3dd   : > { %v8326_v8 = vpop.eup %7235  ;;  %v1528_v22 = vsel %vm1128_vm0, %v8322_v58, 0.0 }
 0x3de   : > { %v8330_v62 = vpop.eup %7237  ;;  %v1537_v6 = vsel %vm1128_vm0, %v8326_v8, 0.0 }
 0x3df   : > { %v1546_v59 = vsel %vm1128_vm0, %v8330_v62, 0.0  ;;  %v8336_v0 = vpop.eup %7239 }
 0x3e0   : > { %1532 = vadd.xlane.f32.xlu0 %v1531_v63  ;;  %1517 = vadd.xlane.f32.xlu1 %v1516_v19  ;;  %v1540_v2 = vsel %vm1128_vm0, %v8336_v0, 0.0 }
 0x3e4   : > { %1526 = vadd.xlane.f32.xlu0 %v1525_v14  ;;  %1535 = vadd.xlane.f32.xlu1 %v1534_v12 }
 0x3e8   : > { %1544 = vadd.xlane.f32.xlu0 %v1543_v9  ;;  %1529 = vadd.xlane.f32.xlu1 %v1528_v22 }
 0x3ec   : > { %1538 = vadd.xlane.f32.xlu0 %v1537_v6  ;;  %1547 = vadd.xlane.f32.xlu1 %v1546_v59 }
 0x3f0   : > { %1541 = vadd.xlane.f32.xlu1 %v1540_v2 }
 0x401   : > { %1833 = vrot.lane.b32.xlu1 %v8033_v34, %s7635_s30 }
 0x402   : > { %1835 = vrot.lane.b32.xlu0 %v8028_v29, %s7635_s30 }
 0x405   : > { %1827 = vrot.lane.b32.xlu1 %v8005_v60, %s7635_s30 }
 0x406   : > { %1981 = vrot.lane.b32.xlu0 %v8105_v54, %s7635_s30 }
 0x409   : > { %1908 = vrot.lane.b32.xlu1 %v8068_v40, %s7635_s30 }
 0x40a   : > { %1906 = vrot.lane.b32.xlu0 %v8074_v57, %s7635_s30 }
 0x40d   : > { %1829 = vrot.lane.b32.xlu1 %v8065_v42, %s7635_s30 }
 0x40e   : > { %1973 = vrot.lane.b32.xlu0 %v8091_v1, %s7635_s30 }
 0x411   : > { %1979 = vrot.lane.b32.xlu1 %v8107_v16, %s7635_s30 }
 0x412   : > { %1975 = vrot.lane.b32.xlu0 %v8141_v33, %s7635_s30 }
 0x415   : > { %1900 = vrot.lane.b32.xlu1 %v8072_v38, %s7635_s30 }
 0x416   : > { %1902 = vrot.lane.b32.xlu0 %v8102_v45, %s7635_s30 }
 0x419   : > { %2054 = vrot.lane.b32.xlu1 %v8144_v41, %s7635_s30 }
 0x41a   : > { %2046 = vrot.lane.b32.xlu0 %v8121_v39, %s7635_s30 }
 0x41d   : > { %2052 = vrot.lane.b32.xlu1 %v8150_v10, %s7635_s30 }
 0x41e   : > { %2337 = vrot.lane.b32.xlu0 %v8127_v25, %s7635_s30 }
 0x421   : > { %2048 = vrot.lane.b32.xlu1 %v8183_v51, %s7635_s30 }
 0x422   : > { %2463 = vrot.lane.b32.xlu0 %v8166_v30, %s7635_s30 }
 0x425   : > { %2335 = vrot.lane.b32.xlu1 %v8146_v26, %s7635_s30 }
 0x426   : > { %2461 = vrot.lane.b32.xlu0 %v8057_v53, %s7635_s30 }
 0x459   : > { %v1509_v5 = vpop.xlane.xlu0 %1508 }
 0x45d   : > { %v1503_v56 = vpop.xlane.xlu0 %1502  ;;  %v1512_v32 = vpop.xlane.xlu1 %1511 }
 0x45e   : > { %7241 = vrcp.f32 %v1512_v32 }
 0x45f   : > { %7243 = vrcp.f32 %v1503_v56 }
 0x460   : > { %7245 = vrcp.f32 %v1509_v5 }
 0x461   : > { %v1521_v28 = vpop.xlane.xlu0 %1520  ;;  %v1506_v18 = vpop.xlane.xlu1 %1505 }
 0x462   : > { %7247 = vrcp.f32 %v1506_v18 }
 0x465   : > { %v1515_v24 = vpop.xlane.xlu0 %1514  ;;  %v1524_v23 = vpop.xlane.xlu1 %1523 }
 0x466   : > { %7249 = vrcp.f32 %v1524_v23 }
 0x467   : > { %7251 = vrcp.f32 %v1515_v24 }
 0x468   : > { %7253 = vrcp.f32 %v1521_v28 }
 0x469   : > { %v1533_v47 = vpop.xlane.xlu0 %1532  ;;  %v1518_v61 = vpop.xlane.xlu1 %1517 }
 0x46a   : > { %7255 = vrcp.f32 %v1518_v61 }
 0x46b   : > { %v7242_v55 = vpop.eup %7241 }
 0x46c   : > { %v7244_v15 = vpop.eup %7243  ;;  %v1568_v44 = vmul.f32 %v7242_v55, %v8277_v11 }
 0x46d   : > { %v1527_v46 = vpop.xlane.xlu0 %1526  ;;  %v1536_v35 = vpop.xlane.xlu1 %1535  ;;  %v1565_v19 = vmul.f32 %v7244_v15, %v8274_v3 }
 0x46e   : > { %v7246_v36 = vpop.eup %7245  ;;  %7257 = vrcp.f32 %v1536_v35 }
 0x46f   : > { %v7248_v21 = vpop.eup %7247  ;;  %7259 = vrcp.f32 %v1527_v46  ;;  %v1567_v9 = vmul.f32 %v7246_v36, %v8269_v13 }
 0x470   : > { %v1566_v14 = vmul.f32 %v7248_v21, %v8288_v37  ;;  %7261 = vrcp.f32 %v1533_v47 }
 0x471   : > { %v1545_v63 = vpop.xlane.xlu0 %1544  ;;  %v1530_v12 = vpop.xlane.xlu1 %1529  ;;  %v1582_v6 = vpack.c.bf16 %v1568_v44, %v1567_v9 }
 0x472   : > { %7263 = vrcp.f32 %v1530_v12  ;;  %v1581_v22 = vpack.c.bf16 %v1566_v14, %v1565_v19 }
 0x473   : > { %v7250_v59 = vpop.eup %7249 }
 0x474   : > { %6800 = vmatprep.mubr.msk.bf16.mxu0 %vm1128_vm0, %v1581_v22  ;;  %v7252_v5 = vpop.eup %7251  ;;  %v1572_v13 = vmul.f32 %v7250_v59, %v8298_v49 }
 0x475   : > { %v1539_v2 = vpop.xlane.xlu0 %1538  ;;  %6801 = vmatmul.mubr.msk.bf16.vlgmr.msra.gmra.mxu0 %vm1128_vm0, %v1582_v6  ;;  %v1548_v11 = vpop.xlane.xlu1 %1547  ;;  %v1569_v32 = vmul.f32 %v7252_v5, %v8292_v43 }
 0x476   : > { %v7254_v56 = vpop.eup %7253  ;;  %6813 = vmatpush3.bf16.msra.mxu0 %v8166_v30  ;;  %7265 = vrcp.f32 %v1548_v11 }
 0x477   : > { %v7256_v3 = vpop.eup %7255  ;;  %6814 = vmatprep.subr.bf16.mxu0 %v8057_v53  ;;  %7267 = vrcp.f32 %v1539_v2  ;;  %v1571_v24 = vmul.f32 %v7254_v56, %v8282_v7 }
 0x478   : > { %v1570_v28 = vmul.f32 %v7256_v3, %v8306_v4  ;;  %7269 = vrcp.f32 %v1545_v63 }
 0x479   : > { %v1836_v37 = vpop.permute.xlu0 %1835  ;;  %v1542_v18 = vpop.xlane.xlu1 %1541  ;;  %v1584_v47 = vpack.c.bf16 %v1572_v13, %v1571_v24 }
 0x47a   : > { %6815 = vmatpush3.bf16.msra.mxu0 %v8057_v53  ;;  %7271 = vrcp.f32 %v1542_v18  ;;  %v1583_v23 = vpack.c.bf16 %v1570_v28, %v1569_v32  ;;  %v1847_v32 = vsel %vm1128_vm0, %v1836_v37, 0 }
 0x47b   : > { %v7258_v61 = vpop.eup %7257 }
 0x47c   : > { %6808 = vmatprep.mubr.msk.bf16.mxu1 %vm1128_vm0, %v1583_v23  ;;  %v7260_v49 = vpop.eup %7259  ;;  %v1576_v7 = vmul.f32 %v7258_v61, %v8314_v27 }
 0x47d   : > { %v1982_v55 = vpop.permute.xlu0 %1981  ;;  %6809 = vmatmul.mubr.msk.bf16.vlgmr.msra.gmra.mxu1 %vm1128_vm0, %v1584_v47  ;;  %v1834_v46 = vpop.permute.xlu1 %1833  ;;  %v1573_v35 = vmul.f32 %v7260_v49, %v8310_v31 }
 0x47e   : > { %7064 = vmatprep.subr.msk.bf16.mxu0 %vm1128_vm0, %v1982_v55  ;;  %v7262_v43 = vpop.eup %7261  ;;  %6821 = vmatpush3.bf16.msra.mxu1 %v8195_v50  ;;  %v1993_v31 = vsel %vm1128_vm0, %v1982_v55, 0  ;;  %v1844_v18 = vsel %vm1128_vm0, %v1834_v46, 0 }
 0x47f   : > { %v7264_v4 = vpop.eup %7263  ;;  %6822 = vmatprep.subr.bf16.mxu1 %v8089_v52  ;;  %v1575_v44 = vmul.f32 %v7262_v43, %v8302_v20 }
 0x480   : > { %v1574_v36 = vmul.f32 %v7264_v4, %v8322_v58 }
 0x481   : > { %v1907_v15 = vpop.permute.xlu0 %1906  ;;  %v1828_v21 = vpop.permute.xlu1 %1827  ;;  %v1586_v19 = vpack.c.bf16 %v1576_v7, %v1575_v44 }
 0x482   : > { %6823 = vmatpush3.bf16.msra.mxu1 %v8089_v52  ;;  %v1585_v63 = vpack.c.bf16 %v1574_v36, %v1573_v35  ;;  %v1917_v49 = vsel %vm1128_vm0, %v1907_v15, 0 }
 0x483   : > { %7060 = vmatprep.subr.msk.bf16.mxu1 %vm1128_vm0, %v1836_v37  ;;  %v7266_v14 = vpop.eup %7265 }
 0x484   : > { %6816 = vmatprep.mubr.msk.bf16.mxu0 %vm1128_vm0, %v1585_v63  ;;  %v7268_v9 = vpop.eup %7267  ;;  %v1580_v22 = vmul.f32 %v7266_v14, %v8330_v62 }
 0x485   : > { %v1974_v12 = vpop.permute.xlu0 %1973  ;;  %6817 = vmatmul.mubr.msk.bf16.vlgmr.msra.gmra.mxu0 %vm1128_vm0, %v1586_v19  ;;  %v1909_v27 = vpop.permute.xlu1 %1908  ;;  %v1577_v59 = vmul.f32 %v7268_v9, %v8326_v8 }
 0x486   : > { %v7270_v58 = vpop.eup %7269  ;;  %6845 = vmatpush3.bf16.xpose.msra.mxu0 %v1993_v31  ;;  %6848 = vmatprep.mubr.msk.bf16.mxu0 %vm1128_vm0, %v1974_v12  ;;  %v1920_v23 = vsel %vm1128_vm0, %v1909_v27, 0 }
 0x487   : > { %v7272_v20 = vpop.eup %7271  ;;  %v1579_v11 = vmul.f32 %v7270_v58, %v8318_v17 }
 0x488   : > { %v1578_v2 = vmul.f32 %v7272_v20, %v8336_v0 }
 0x489   : > { %v1976_v6 = vpop.permute.xlu0 %1975  ;;  %v1830_v5 = vpop.permute.xlu1 %1829  ;;  %v1588_v3 = vpack.c.bf16 %v1580_v22, %v1579_v11 }
 0x48a   : > { %v1587_v56 = vpack.c.bf16 %v1578_v2, %v1577_v59 }
 0x48c   : > { %6824 = vmatprep.mubr.msk.bf16.mxu1 %vm1128_vm0, %v1587_v56 }
 0x48d   : > { %v1903_v13 = vpop.permute.xlu0 %1902  ;;  %6825 = vmatmul.mubr.msk.bf16.vlgmr.msra.gmra.mxu1 %vm1128_vm0, %v1588_v3  ;;  %v1980_v28 = vpop.permute.xlu1 %1979 }
 0x48e   : > { %6829 = vmatpush3.bf16.xpose.msra.mxu1 %v1847_v32  ;;  %6832 = vmatprep.mubr.msk.bf16.mxu1 %vm1128_vm0, %v1828_v21  ;;  %v1990_v8 = vsel %vm1128_vm0, %v1980_v28, 0 }
 0x48f   : > { %7061 = vmatprep.subr.msk.bf16.mxu1 %vm1128_vm0, %v1834_v46  ;;  %7065 = vmatprep.subr.msk.bf16.mxu0 %vm1128_vm0, %v1980_v28 }
 0x490   : > { %6847 = vmatpush3.bf16.xpose.msra.mxu0 %v1990_v8 }
 0x491   : > { %v2047_v17 = vpop.permute.xlu0 %2046  ;;  %v1901_v62 = vpop.permute.xlu1 %1900 }
 0x495   : > { %v2338_v0 = vpop.permute.xlu0 %2337  ;;  %v2055_v24 = vpop.permute.xlu1 %2054 }
 0x496   : > { %6860 = vmatprep.subr.bf16.mxu0 %v2338_v0  ;;  %6831 = vmatpush3.bf16.xpose.msra.mxu1 %v1844_v18  ;;  %v2066_v46 = vsel %vm1128_vm0, %v2055_v24, 0 }
 0x497   : > { %7062 = vmatprep.subr.msk.bf16.mxu1 %vm1128_vm0, %v1909_v27  ;;  %6849 = vmatmul.mubr.msk.bf16.vlgmr.msra.gmra.mxu0 %vm1128_vm0, %v1976_v6 }
 0x498   : > { %6861 = vmatpush3.bf16.msra.mxu0 %v2338_v0 }
 0x499   : > { %v2053_v37 = vpop.permute.xlu1 %2052  ;;  %v8426_v55 = vpop.permute.xlu0 %2463 }
 0x49a   : > { %v2063_v43 = vsel %vm1128_vm0, %v2053_v37, 0 }
 0x49d   : > { %6833 = vmatmul.mubr.msk.bf16.vlgmr.msra.gmra.mxu1 %vm1128_vm0, %v1830_v5  ;;  %v2049_v47 = vpop.permute.xlu1 %2048 }
 0x49e   : > { %6837 = vmatpush3.bf16.xpose.msra.mxu1 %v1920_v23  ;;  %6840 = vmatprep.mubr.msk.bf16.mxu1 %vm1128_vm0, %v1901_v62 }
 0x49f   : > { %7063 = vmatprep.subr.msk.bf16.mxu1 %vm1128_vm0, %v1907_v15 }
 0x4a1   : > { %v2336_v61 = vpop.permute.xlu1 %2335 }
 0x4a2   : > { %6862 = vmatprep.subr.bf16.mxu0 %v2336_v61 }
 0x4a3   : > { %6863 = vmatpush3.bf16.msra.mxu0 %v2336_v61 }
 0x4a4   : > { %6876 = vmatprep.subr.bf16.mxu0 %v8426_v55 }
 0x4a6   : > { %6839 = vmatpush3.bf16.xpose.msra.mxu1 %v1917_v49 }
 0x4a7   : > { %7066 = vmatprep.subr.msk.bf16.mxu1 %vm1128_vm0, %v2055_v24 }
 0x4ad   : > { %6841 = vmatmul.mubr.msk.bf16.vlgmr.msra.gmra.mxu1 %vm1128_vm0, %v1903_v13 }
 0x4ae   : > { %6853 = vmatpush3.bf16.xpose.msra.mxu1 %v2066_v46  ;;  %6856 = vmatprep.mubr.msk.bf16.mxu1 %vm1128_vm0, %v2047_v17 }
 0x4af   : > { %7067 = vmatprep.subr.msk.bf16.mxu1 %vm1128_vm0, %v2053_v37 }
 0x4b6   : > { %6855 = vmatpush3.bf16.xpose.msra.mxu1 %v2063_v43 }
 0x4bd   : > { %6857 = vmatmul.mubr.msk.bf16.vlgmr.msra.gmra.mxu1 %vm1128_vm0, %v2049_v47 }
 0x535   : > { %v6802_v4 = vpop.f32.mrf.mxu0 }
 0x536   : > { %1811 = vst.msk [vmem:[#allocation2 + $0x10] sm:$0xff] %vm1128_vm0, %v6802_v4 }
 0x537   : > { %v1629_v7 = vpop.f32.mrf.mxu0 }
 0x538   : > { %1809 = vst.msk [vmem:[#allocation2] sm:$0xff] %vm1128_vm0, %v1629_v7 }
 0x539   : > { %v6803_v15 = vpop.f32.mrf.mxu0 }
 0x53a   : > { %1812 = vst.msk [vmem:[#allocation2 + $0x18] sm:$0xff] %vm1128_vm0, %v6803_v15 }
 0x53b   : > { %v1632_v35 = vpop.f32.mrf.mxu0 }
 0x53c   : > { %1810 = vst.msk [vmem:[#allocation2 + $0x8] sm:$0xff] %vm1128_vm0, %v1632_v35 }
 0x53d   : > { %v6810_v36 = vpop.f32.mrf.mxu1 }
 0x53e   : > { %1815 = vst.msk [vmem:[#allocation2 + $0x30] sm:$0xff] %vm1128_vm0, %v6810_v36 }
 0x53f   : > { %v1684_v21 = vpop.f32.mrf.mxu1 }
 0x540   : > { %1813 = vst.msk [vmem:[#allocation2 + $0x20] sm:$0xff] %vm1128_vm0, %v1684_v21 }
 0x541   : > { %v6811_v44 = vpop.f32.mrf.mxu1 }
 0x542   : > { %1816 = vst.msk [vmem:[#allocation2 + $0x38] sm:$0xff] %vm1128_vm0, %v6811_v44 }
 0x543   : > { %v1687_v63 = vpop.f32.mrf.mxu1 }
 0x544   : > { %1814 = vst.msk [vmem:[#allocation2 + $0x28] sm:$0xff] %vm1128_vm0, %v1687_v63 }
 0x545   : > { %v6818_v19 = vpop.f32.mrf.mxu0 }
 0x546   : > { %1819 = vst.msk [vmem:[#allocation2 + $0x50] sm:$0xff] %vm1128_vm0, %v6818_v19 }
 0x547   : > { %v1739_v14 = vpop.f32.mrf.mxu0 }
 0x548   : > { %1817 = vst.msk [vmem:[#allocation2 + $0x40] sm:$0xff] %vm1128_vm0, %v1739_v14 }
 0x549   : > { %v6819_v12 = vpop.f32.mrf.mxu0 }
 0x54a   : > { %1820 = vst.msk [vmem:[#allocation2 + $0x58] sm:$0xff] %vm1128_vm0, %v6819_v12 }
 0x54b   : > { %v1742_v9 = vpop.f32.mrf.mxu0 }
 0x54c   : > { %1818 = vst.msk [vmem:[#allocation2 + $0x48] sm:$0xff] %vm1128_vm0, %v1742_v9 }
 0x54d   : > { %v6826_v31 = vpop.f32.mrf.mxu1 }
 0x54e   : > { %1823 = vst.msk [vmem:[#allocation2 + $0x70] sm:$0xff] %vm1128_vm0, %v6826_v31 }
 0x54f   : > { %v1794_v27 = vpop.f32.mrf.mxu1 }
 0x550   : > { %1821 = vst.msk [vmem:[#allocation2 + $0x60] sm:$0xff] %vm1128_vm0, %v1794_v27 }
 0x551   : > { %v6827_v58 = vpop.f32.mrf.mxu1 }
 0x552   : > { %1824 = vst.msk [vmem:[#allocation2 + $0x78] sm:$0xff] %vm1128_vm0, %v6827_v58 }
 0x553   : > { %v1797_v20 = vpop.f32.mrf.mxu1 }
 0x554   : > { %1822 = vst.msk [vmem:[#allocation2 + $0x68] sm:$0xff] %vm1128_vm0, %v1797_v20 }
 0x557   : > { %v6850_v22 = vpop.f32.mrf.mxu0 }
 0x558   : > { %v2127_v6 = vmul.f32 0.17677669, %v6850_v22 }
 0x559   : > { %v2029_v59 = vpop.f32.mrf.mxu0 }
 0x55a   : > { %v2125_v2 = vmul.f32 0.17677669, %v2029_v59  ;;  %v8454_v5 = vadd.f32 %v2127_v6, %v8200_v48 }
 0x55b   : > { %v6851_v11 = vpop.f32.mrf.mxu0 }
 0x55c   : > { %v2128_v56 = vmul.f32 0.17677669, %v6851_v11  ;;  %v2179_v3 = vsel %vm1128_vm0, %v8454_v5, -inf  ;;  %v8459_v13 = vadd.f32 %v2125_v2, %v8200_v48 }
 0x55d   : > { %v6834_v32 = vpop.f32.mrf.mxu1  ;;  %2180 = vmax.xlane.f32.xlu0 %v2179_v3  ;;  %v2032_v28 = vpop.f32.mrf.mxu0 }
 0x55e   : > { %v2119_v8 = vmul.f32 0.17677669, %v6834_v32  ;;  %v2126_v17 = vmul.f32 0.17677669, %v2032_v28  ;;  %v8462_v62 = vadd.f32 %v2128_v56, %v8200_v48  ;;  %v2173_v18 = vsel %vm1128_vm0, %v8459_v13, -inf }
 0x55f   : > { %v1883_v0 = vpop.f32.mrf.mxu1 }
 0x560   : > { %v2117_v24 = vmul.f32 0.17677669, %v1883_v0  ;;  %v2182_v37 = vsel %vm1128_vm0, %v8462_v62, -inf  ;;  %v8469_v23 = vadd.f32 %v2119_v8, %v8200_v48  ;;  %v8472_v47 = vadd.f32 %v2126_v17, %v8200_v48 }
 0x561   : > { %v6835_v61 = vpop.f32.mrf.mxu1  ;;  %2174 = vmax.xlane.f32.xlu0 %v2173_v18  ;;  %2183 = vmax.xlane.f32.xlu1 %v2182_v37 }
 0x562   : > { %v2120_v49 = vmul.f32 0.17677669, %v6835_v61  ;;  %v2155_v4 = vsel %vm1128_vm0, %v8469_v23, -inf  ;;  %v2176_v7 = vsel %vm1128_vm0, %v8472_v47, -inf  ;;  %v8479_v15 = vadd.f32 %v2117_v24, %v8200_v48 }
 0x563   : > { %v1886_v46 = vpop.f32.mrf.mxu1 }
 0x564   : > { %v2118_v43 = vmul.f32 0.17677669, %v1886_v46  ;;  %v2149_v36 = vsel %vm1128_vm0, %v8479_v15, -inf  ;;  %v8489_v44 = vadd.f32 %v2120_v49, %v8200_v48  ;;  %v10608_v49 = vld [vmem:[#allocation20_spill] sm:$0xff] }
 0x565   : > { %2156 = vmax.xlane.f32.xlu0 %v2155_v4  ;;  %2177 = vmax.xlane.f32.xlu1 %v2176_v7 }
 0x566   : > { %v8482_v35 = vadd.f32 %v2118_v43, %v8200_v48  ;;  %v2158_v63 = vsel %vm1128_vm0, %v8489_v44, -inf }
 0x568   : > { %v2152_v21 = vsel %vm1128_vm0, %v8482_v35, -inf }
 0x569   : > { %2150 = vmax.xlane.f32.xlu0 %v2149_v36  ;;  %2153 = vmax.xlane.f32.xlu1 %v2152_v21 }
 0x56d   : > { %2159 = vmax.xlane.f32.xlu0 %v2158_v63  ;;  %v6842_v19 = vpop.f32.mrf.mxu1 }
 0x56e   : > { %v2123_v14 = vmul.f32 0.17677669, %v6842_v19 }
 0x56f   : > { %v1956_v12 = vpop.f32.mrf.mxu1 }
 0x570   : > { %v2121_v9 = vmul.f32 0.17677669, %v1956_v12  ;;  %v8494_v31 = vadd.f32 %v2123_v14, %v8200_v48  ;;  %v8537_v14 = vpop.permute.xlu0 %2461 }
 0x571   : > { %v6843_v27 = vpop.f32.mrf.mxu1 }
 0x572   : > { %v2124_v58 = vmul.f32 0.17677669, %v6843_v27  ;;  %v2167_v20 = vsel %vm1128_vm0, %v8494_v31, -inf  ;;  %v8499_v22 = vadd.f32 %v2121_v9, %v8200_v48 }
 0x573   : > { %2168 = vmax.xlane.f32.xlu0 %v2167_v20  ;;  %v1959_v6 = vpop.f32.mrf.mxu1 }
 0x574   : > { %v2122_v59 = vmul.f32 0.17677669, %v1959_v6  ;;  %v8502_v2 = vadd.f32 %v2124_v58, %v8200_v48  ;;  %v2161_v11 = vsel %vm1128_vm0, %v8499_v22, -inf }
 0x576   : > { %v2170_v56 = vsel %vm1128_vm0, %v8502_v2, -inf  ;;  %v8509_v3 = vadd.f32 %v2122_v59, %v8200_v48 }
 0x577   : > { %2162 = vmax.xlane.f32.xlu0 %v2161_v11  ;;  %2171 = vmax.xlane.f32.xlu1 %v2170_v56 }
 0x578   : > { %v2164_v32 = vsel %vm1128_vm0, %v8509_v3, -inf }
 0x57b   : > { %2165 = vmax.xlane.f32.xlu1 %v2164_v32 }
 0x57d   : > { %v6858_v28 = vpop.f32.mrf.mxu1 }
 0x57e   : > { %v2131_v8 = vmul.f32 0.17677669, %v6858_v28 }
 0x57f   : > { %v2102_v17 = vpop.f32.mrf.mxu1 }
 0x580   : > { %v8514_v0 = vadd.f32 %v2131_v8, %v8200_v48  ;;  %v2129_v18 = vmul.f32 0.17677669, %v2102_v17 }
 0x581   : > { %v6859_v46 = vpop.f32.mrf.mxu1 }
 0x582   : > { %v8517_v24 = vadd.f32 %v2129_v18, %v8200_v48  ;;  %v2191_v37 = vsel %vm1128_vm0, %v8514_v0, -inf  ;;  %v2132_v43 = vmul.f32 0.17677669, %v6859_v46 }
 0x583   : > { %2192 = vmax.xlane.f32.xlu0 %v2191_v37  ;;  %v2105_v4 = vpop.f32.mrf.mxu1 }
 0x584   : > { %v2185_v61 = vsel %vm1128_vm0, %v8517_v24, -inf  ;;  %v2130_v7 = vmul.f32 0.17677669, %v2105_v4  ;;  %v8528_v36 = vadd.f32 %v2132_v43, %v8200_v48 }
 0x586   : > { %v8531_v21 = vadd.f32 %v2130_v7, %v8200_v48  ;;  %v2194_v63 = vsel %vm1128_vm0, %v8528_v36, -inf }
 0x587   : > { %2186 = vmax.xlane.f32.xlu0 %v2185_v61 }
 0x588   : > { %v2188_v19 = vsel %vm1128_vm0, %v8531_v21, -inf }
 0x58c   : > { %2672 = vrot.lane.b32.xlu1 %v8028_v29, %s7636_s14 }
 0x59d   : > { %2400 = vrot.lane.b32.xlu0 %v10608_v49, %s7635_s30 }
 0x5b0   : > { %2195 = vmax.xlane.f32.xlu1 %v2194_v63 }
 0x5b4   : > { %2189 = vmax.xlane.f32.xlu1 %v2188_v19 }
 0x5e6   : > { %v2181_v12 = vpop.xlane.xlu0 %2180 }
 0x5e7   : > { %v2207_v9 = vsub.f32 %v8454_v5, %v2181_v12 }
 0x5e9   : > { %v2233_v27 = vmul.f32 1.442695, %v2207_v9 }
 0x5ea   : > { %v2175_v58 = vpop.xlane.xlu0 %2174  ;;  %v2184_v20 = vpop.xlane.xlu1 %2183 }
 0x5eb   : > { %7273 = vpow2.f32 %v2233_v27  ;;  %v2205_v6 = vsub.f32 %v8459_v13, %v2175_v58  ;;  %v2208_v59 = vsub.f32 %v8462_v62, %v2184_v20 }
 0x5ed   : > { %v2229_v11 = vmul.f32 1.442695, %v2205_v6  ;;  %v2235_v56 = vmul.f32 1.442695, %v2208_v59 }
 0x5ee   : > { %v2157_v32 = vpop.xlane.xlu0 %2156  ;;  %v2178_v28 = vpop.xlane.xlu1 %2177 }
 0x5ef   : > { %7275 = vpow2.f32 %v2229_v11  ;;  %v2199_v8 = vsub.f32 %v8469_v23, %v2157_v32  ;;  %v2206_v17 = vsub.f32 %v8472_v47, %v2178_v28 }
 0x5f0   : > { %7277 = vpow2.f32 %v2235_v56  ;;  %v10609_v56 = vld [vmem:[#allocation21_spill] sm:$0xff] }
 0x5f1   : > { %v2217_v18 = vmul.f32 1.442695, %v2199_v8  ;;  %v2231_v5 = vmul.f32 1.442695, %v2206_v17 }
 0x5f2   : > { %v2151_v37 = vpop.xlane.xlu0 %2150  ;;  %v2154_v28 = vpop.xlane.xlu1 %2153 }
 0x5f3   : > { %7279 = vpow2.f32 %v2217_v18  ;;  %v2197_v61 = vsub.f32 %v8479_v15, %v2151_v37  ;;  %v2198_v17 = vsub.f32 %v8482_v35, %v2154_v28 }
 0x5f4   : > { %7281 = vpow2.f32 %v2231_v5 }
 0x5f5   : > { %v2213_v13 = vmul.f32 1.442695, %v2197_v61  ;;  %v2215_v61 = vmul.f32 1.442695, %v2198_v17 }
 0x5f6   : > { %v2160_v4 = vpop.xlane.xlu0 %2159 }
 0x5f7   : > { %7283 = vpow2.f32 %v2213_v13  ;;  %v2200_v32 = vsub.f32 %v8489_v44, %v2160_v4 }
 0x5f8   : > { %v8545_v62 = vpop.eup %7273 }
 0x5f9   : > { %v2275_v46 = vsel %vm1128_vm0, %v8545_v62, 0.0  ;;  %v2219_v18 = vmul.f32 1.442695, %v2200_v32 }
 0x5fa   : > { %2276 = vadd.xlane.f32.xlu0 %v2275_v46 }
 0x5fb   : > { %7285 = vpow2.f32 %v2219_v18 }
 0x5fc   : > { %v8549_v43 = vpop.eup %7275  ;;  %v2169_v12 = vpop.xlane.xlu0 %2168 }
 0x5fd   : > { %v8551_v23 = vpop.eup %7277  ;;  %v2269_v47 = vsel %vm1128_vm0, %v8549_v43, 0.0  ;;  %v2203_v8 = vsub.f32 %v8494_v31, %v2169_v12 }
 0x5fe   : > { %2270 = vadd.xlane.f32.xlu0 %v2269_v47  ;;  %v2278_v15 = vsel %vm1128_vm0, %v8551_v23, 0.0 }
 0x5ff   : > { %2279 = vadd.xlane.f32.xlu1 %v2278_v15  ;;  %v2225_v5 = vmul.f32 1.442695, %v2203_v8 }
 0x600   : > { %v8557_v7 = vpop.eup %7279  ;;  %v2163_v20 = vpop.xlane.xlu0 %2162 }
 0x601   : > { %v8559_v63 = vpop.eup %7281  ;;  %v2251_v19 = vsel %vm1128_vm0, %v8557_v7, 0.0  ;;  %v2201_v37 = vsub.f32 %v8499_v22, %v2163_v20  ;;  %7287 = vpow2.f32 %v2225_v5 }
 0x602   : > { %2252 = vadd.xlane.f32.xlu0 %v2251_v19  ;;  %v2272_v9 = vsel %vm1128_vm0, %v8559_v63, 0.0  ;;  %7289 = vpow2.f32 %v2215_v61  ;;  %v2172_v19 = vpop.xlane.xlu1 %2171 }
 0x603   : > { %2273 = vadd.xlane.f32.xlu1 %v2272_v9  ;;  %v2221_v13 = vmul.f32 1.442695, %v2201_v37  ;;  %v2204_v12 = vsub.f32 %v8502_v2, %v2172_v19 }
 0x604   : > { %v8565_v27 = vpop.eup %7283 }
 0x605   : > { %v2245_v58 = vsel %vm1128_vm0, %v8565_v27, 0.0  ;;  %7291 = vpow2.f32 %v2221_v13 }
 0x606   : > { %2246 = vadd.xlane.f32.xlu0 %v2245_v58  ;;  %v2166_v9 = vpop.xlane.xlu1 %2165  ;;  %v2227_v58 = vmul.f32 1.442695, %v2204_v12 }
 0x607   : > { %v2202_v20 = vsub.f32 %v8509_v3, %v2166_v9 }
 0x608   : > { %v8577_v46 = vpop.eup %7285  ;;  %7293 = vpow2.f32 %v2227_v58 }
 0x609   : > { %v2254_v44 = vsel %vm1128_vm0, %v8577_v46, 0.0  ;;  %v2223_v32 = vmul.f32 1.442695, %v2202_v20 }
 0x60b   : > { %7295 = vpow2.f32 %v2223_v32 }
 0x60c   : > { %v2193_v6 = vpop.xlane.xlu0 %2192 }
 0x60d   : > { %v2211_v28 = vsub.f32 %v8514_v0, %v2193_v6 }
 0x60e   : > { %v8579_v47 = vpop.eup %7287 }
 0x60f   : > { %v8583_v31 = vpop.eup %7289  ;;  %v2263_v35 = vsel %vm1128_vm0, %v8579_v47, 0.0  ;;  %v2241_v8 = vmul.f32 1.442695, %v2211_v28 }
 0x610   : > { %v2187_v59 = vpop.xlane.xlu0 %2186  ;;  %v2248_v4 = vsel %vm1128_vm0, %v8583_v31, 0.0 }
 0x611   : > { %v2209_v17 = vsub.f32 %v8517_v24, %v2187_v59  ;;  %7297 = vpow2.f32 %v2241_v8 }
 0x612   : > { %v8587_v22 = vpop.eup %7291 }
 0x613   : > { %v2257_v15 = vsel %vm1128_vm0, %v8587_v22, 0.0  ;;  %v2237_v3 = vmul.f32 1.442695, %v2209_v17 }
 0x614   : > { %2526 = vrot.lane.b32.xlu1 %v8195_v50, %s7635_s30  ;;  %v2401_v11 = vpop.permute.xlu0 %2400 }
 0x615   : > { %6868 = vmatprep.subr.bf16.mxu1 %v2401_v11  ;;  %7299 = vpow2.f32 %v2237_v3  ;;  %v8619_v37 = vpop.eup %7293 }
 0x616   : > { %6869 = vmatpush3.bf16.msra.mxu1 %v2401_v11  ;;  %v8607_v11 = vpop.permute.xlu1 %2672  ;;  %v2266_v59 = vsel %vm1128_vm0, %v8619_v37, 0.0 }
 0x618   : > { %v8625_v61 = vpop.eup %7295 }
 0x61c   : > { %2398 = vrot.lane.b32.xlu0 %v10609_v56, %s7635_s30 }
 0x638   : > { %2255 = vadd.xlane.f32.xlu1 %v2254_v44 }
 0x639   : > { %v2196_v2 = vpop.xlane.xlu1 %2195 }
 0x63a   : > { %v2212_v18 = vsub.f32 %v8528_v36, %v2196_v2  ;;  %v2260_v36 = vsel %vm1128_vm0, %v8625_v61, 0.0 }
 0x63b   : > { %2264 = vadd.xlane.f32.xlu0 %v2263_v35 }
 0x63c   : > { %2249 = vadd.xlane.f32.xlu1 %v2248_v4  ;;  %v2243_v0 = vmul.f32 1.442695, %v2212_v18 }
 0x63d   : > { %v2190_v5 = vpop.xlane.xlu1 %2189 }
 0x63e   : > { %v2210_v6 = vsub.f32 %v8531_v21, %v2190_v5  ;;  %7301 = vpow2.f32 %v2243_v0  ;;  %v8631_v21 = vpop.eup %7297 }
 0x63f   : > { %2258 = vadd.xlane.f32.xlu0 %v2257_v15  ;;  %v2287_v13 = vsel %vm1128_vm0, %v8631_v21, 0.0  ;;  %v8637_v44 = vpop.eup %7299 }
 0x640   : > { %v2239_v24 = vmul.f32 1.442695, %v2210_v6  ;;  %v2281_v35 = vsel %vm1128_vm0, %v8637_v44, 0.0 }
 0x642   : > { %7303 = vpow2.f32 %v2239_v24 }
 0x64b   : > { %v8641_v4 = vpop.eup %7301 }
 0x64c   : > { %v2290_v19 = vsel %vm1128_vm0, %v8641_v4, 0.0 }
 0x64d   : > { %2524 = vrot.lane.b32.xlu1 %v8089_v52, %s7635_s30 }
 0x64f   : > { %v8645_v12 = vpop.eup %7303 }
 0x650   : > { %v2284_v58 = vsel %vm1128_vm0, %v8645_v12, 0.0 }
 0x651   : > { %2741 = vrot.lane.b32.xlu1 %v8068_v40, %s7636_s14 }
 0x655   : > { %2670 = vrot.lane.b32.xlu0 %v8033_v34, %s7636_s14 }
 0x659   : > { %2666 = vrot.lane.b32.xlu0 %v8005_v60, %s7636_s14 }
 0x65d   : > { %2810 = vrot.lane.b32.xlu0 %v8105_v54, %s7636_s14 }
 0x661   : > { %2739 = vrot.lane.b32.xlu0 %v8074_v57, %s7636_s14 }
 0x665   : > { %2804 = vrot.lane.b32.xlu0 %v8091_v1, %s7636_s14 }
 0x669   : > { %2806 = vrot.lane.b32.xlu0 %v8141_v33, %s7636_s14 }
 0x66d   : > { %2737 = vrot.lane.b32.xlu0 %v8102_v45, %s7636_s14 }
 0x671   : > { %2873 = vrot.lane.b32.xlu0 %v8121_v39, %s7636_s14 }
 0x675   : > { %2267 = vadd.xlane.f32.xlu1 %v2266_v59  ;;  %3160 = vrot.lane.b32.xlu0 %v8127_v25, %s7636_s14 }
 0x679   : > { %2261 = vadd.xlane.f32.xlu1 %v2260_v36  ;;  %3282 = vrot.lane.b32.xlu0 %v8166_v30, %s7636_s14 }
 0x67d   : > { %2288 = vadd.xlane.f32.xlu1 %v2287_v13 }
 0x681   : > { %2282 = vadd.xlane.f32.xlu1 %v2281_v35 }
 0x683   : > { %v2277_v15 = vpop.xlane.xlu0 %2276 }
 0x685   : > { %2291 = vadd.xlane.f32.xlu1 %v2290_v19 }
 0x687   : > { %v2271_v9 = vpop.xlane.xlu0 %2270 }
 0x688   : > { %v2280_v20 = vpop.xlane.xlu1 %2279  ;;  %7305 = vrcp.f32 %v2271_v9 }
 0x689   : > { %2285 = vadd.xlane.f32.xlu1 %v2284_v58 }
 0x68b   : > { %v2253_v32 = vpop.xlane.xlu0 %2252 }
 0x68c   : > { %v2274_v28 = vpop.xlane.xlu1 %2273 }
 0x68d   : > { %7307 = vrcp.f32 %v2274_v28 }
 0x68f   : > { %v2247_v2 = vpop.xlane.xlu0 %2246 }
 0x690   : > { %v8649_v17 = vpop.permute.xlu1 %2526 }
 0x693   : > { %v2399_v8 = vpop.permute.xlu0 %2398 }
 0x694   : > { %6870 = vmatprep.subr.bf16.mxu1 %v2399_v8 }
 0x695   : > { %6871 = vmatpush3.bf16.msra.mxu1 %v2399_v8  ;;  %v7306_v5 = vpop.eup %7305 }
 0x696   : > { %6884 = vmatprep.subr.bf16.mxu1 %v8649_v17 }
 0x69a   : > { %2668 = vrot.lane.b32.xlu1 %v8065_v42, %s7636_s14  ;;  %v7308_v0 = vpop.eup %7307 }
 0x69b   : > { %v2318_v58 = vmul.f32 %v7308_v0, %v8559_v63 }
 0x69e   : > { %2808 = vrot.lane.b32.xlu1 %v8107_v16, %s7636_s14 }
 0x6a2   : > { %2735 = vrot.lane.b32.xlu1 %v8072_v38, %s7636_s14 }
 0x6a6   : > { %2879 = vrot.lane.b32.xlu1 %v8144_v41, %s7636_s14 }
 0x6aa   : > { %2877 = vrot.lane.b32.xlu1 %v8150_v10, %s7636_s14 }
 0x6ae   : > { %2875 = vrot.lane.b32.xlu1 %v8183_v51, %s7636_s14 }
 0x6b2   : > { %3158 = vrot.lane.b32.xlu1 %v8146_v26, %s7636_s14 }
 0x6c1   : > { %v2256_v3 = vpop.xlane.xlu1 %2255 }
 0x6c2   : > { %7309 = vrcp.f32 %v2256_v3 }
 0x6c3   : > { %7311 = vrcp.f32 %v2247_v2 }
 0x6c4   : > { %7313 = vrcp.f32 %v2253_v32  ;;  %v2265_v6 = vpop.xlane.xlu0 %2264 }
 0x6c5   : > { %v2250_v18 = vpop.xlane.xlu1 %2249 }
 0x6c6   : > { %7315 = vrcp.f32 %v2250_v18 }
 0x6c7   : > { %7317 = vrcp.f32 %v2280_v20 }
 0x6c8   : > { %7319 = vrcp.f32 %v2277_v15  ;;  %v2259_v32 = vpop.xlane.xlu0 %2258  ;;  %v2317_v15 = vmul.f32 %v7306_v5, %v8549_v43 }
 0x6ca   : > { %v2329_v3 = vpack.c.bf16 %v2318_v58, %v2317_v15 }
 0x6cf   : > { %v7310_v24 = vpop.eup %7309 }
 0x6d0   : > { %v7312_v59 = vpop.eup %7311  ;;  %v2312_v35 = vmul.f32 %v7310_v24, %v8577_v46 }
 0x6d1   : > { %v7314_v36 = vpop.eup %7313  ;;  %v2309_v19 = vmul.f32 %v7312_v59, %v8565_v27  ;;  %v2671_v27 = vpop.permute.xlu0 %2670 }
 0x6d2   : > { %v2311_v28 = vmul.f32 %v7314_v36, %v8557_v7 }
 0x6d3   : > { %v7316_v13 = vpop.eup %7315 }
 0x6d4   : > { %v2310_v9 = vmul.f32 %v7316_v13, %v8583_v31  ;;  %v2326_v2 = vpack.c.bf16 %v2312_v35, %v2311_v28  ;;  %v7318_v8 = vpop.eup %7317 }
 0x6d5   : > { %v7320_v46 = vpop.eup %7319  ;;  %v2320_v7 = vmul.f32 %v7318_v8, %v8551_v23  ;;  %v2667_v31 = vpop.permute.xlu0 %2666  ;;  %v2681_v23 = vsel %vm1128_vm0, %v2671_v27, 0 }
 0x6d6   : > { %v2325_v20 = vpack.c.bf16 %v2310_v9, %v2309_v19  ;;  %v2319_v63 = vmul.f32 %v7320_v46, %v8545_v62 }
 0x6d8   : > { %6864 = vmatprep.mubr.msk.bf16.mxu0 %vm1128_vm0, %v2325_v20  ;;  %v2330_v43 = vpack.c.bf16 %v2320_v7, %v2319_v63 }
 0x6d9   : > { %6865 = vmatmul.mubr.msk.bf16.vlgmr.msra.gmra.mxu0 %vm1128_vm0, %v2326_v2  ;;  %v2811_v62 = vpop.permute.xlu0 %2810 }
 0x6da   : > { %6877 = vmatpush3.bf16.msra.mxu0 %v8426_v55  ;;  %6880 = vmatprep.mubr.msk.bf16.mxu0 %vm1128_vm0, %v2329_v3  ;;  %v2684_v55 = vsel %vm1128_vm0, %v8607_v11, 0 }
 0x6db   : > { %6878 = vmatprep.subr.bf16.mxu0 %v8537_v14 }
 0x6dd   : > { %v8689_v0 = vpop.permute.xlu0 %2739 }
 0x6de   : > { %6879 = vmatpush3.bf16.msra.mxu0 %v8537_v14  ;;  %v2525_v14 = vpop.permute.xlu1 %2524 }
 0x6df   : > { %7068 = vmatprep.subr.msk.bf16.mxu0 %vm1128_vm0, %v8607_v11 }
 0x6e1   : > { %6881 = vmatmul.mubr.msk.bf16.vlgmr.msra.gmra.mxu0 %vm1128_vm0, %v2330_v43  ;;  %v2805_v59 = vpop.permute.xlu0 %2804 }
 0x6e2   : > { %6893 = vmatpush3.bf16.xpose.msra.mxu0 %v2684_v55  ;;  %6896 = vmatprep.mubr.msk.bf16.mxu0 %vm1128_vm0, %v2667_v31  ;;  %v2742_v18 = vpop.permute.xlu1 %2741 }
 0x6e3   : > { %7069 = vmatprep.subr.msk.bf16.mxu0 %vm1128_vm0, %v2671_v27 }
 0x6e5   : > { %v2807_v19 = vpop.permute.xlu0 %2806 }
 0x6e9   : > { %v2738_v3 = vpop.permute.xlu0 %2737 }
 0x6ea   : > { %6895 = vmatpush3.bf16.xpose.msra.mxu0 %v2681_v23 }
 0x6eb   : > { %7072 = vmatprep.subr.msk.bf16.mxu0 %vm1128_vm0, %v2811_v62 }
 0x6fe   : > { %v2268_v5 = vpop.xlane.xlu1 %2267 }
 0x6ff   : > { %7321 = vrcp.f32 %v2268_v5 }
 0x700   : > { %7323 = vrcp.f32 %v2259_v32 }
 0x701   : > { %7325 = vrcp.f32 %v2265_v6 }
 0x702   : > { %v2262_v11 = vpop.xlane.xlu1 %2261 }
 0x703   : > { %7327 = vrcp.f32 %v2262_v11 }
 0x706   : > { %v2289_v24 = vpop.xlane.xlu1 %2288 }
 0x70a   : > { %v2283_v36 = vpop.xlane.xlu1 %2282 }
 0x70c   : > { %v7322_v13 = vpop.eup %7321 }
 0x70d   : > { %v7324_v35 = vpop.eup %7323  ;;  %v2316_v20 = vmul.f32 %v7322_v13, %v8619_v37 }
 0x70e   : > { %v2292_v9 = vpop.xlane.xlu1 %2291  ;;  %v7326_v58 = vpop.eup %7325  ;;  %v2313_v32 = vmul.f32 %v7324_v35, %v8587_v22  ;;  %v2822_v22 = vsel %vm1128_vm0, %v2811_v62, 0 }
 0x70f   : > { %7329 = vrcp.f32 %v2292_v9  ;;  %v2315_v2 = vmul.f32 %v7326_v58, %v8579_v47  ;;  %v2874_v47 = vpop.permute.xlu0 %2873 }
 0x710   : > { %v7328_v28 = vpop.eup %7327  ;;  %7331 = vrcp.f32 %v2283_v36  ;;  %v2753_v36 = vsel %vm1128_vm0, %v2742_v18, 0 }
 0x711   : > { %v2314_v6 = vmul.f32 %v7328_v28, %v8625_v61  ;;  %7333 = vrcp.f32 %v2289_v24  ;;  %v2328_v46 = vpack.c.bf16 %v2316_v20, %v2315_v2 }
 0x712   : > { %v2286_v15 = vpop.xlane.xlu1 %2285 }
 0x713   : > { %7335 = vrcp.f32 %v2286_v15  ;;  %v2327_v8 = vpack.c.bf16 %v2314_v6, %v2313_v32  ;;  %v3161_v55 = vpop.permute.xlu0 %3160 }
 0x715   : > { %6872 = vmatprep.mubr.msk.bf16.mxu1 %vm1128_vm0, %v2327_v8 }
 0x716   : > { %6873 = vmatmul.mubr.msk.bf16.vlgmr.msra.gmra.mxu1 %vm1128_vm0, %v2328_v46  ;;  %v2669_v27 = vpop.permute.xlu1 %2668 }
 0x717   : > { %6885 = vmatpush3.bf16.msra.mxu1 %v8649_v17  ;;  %6897 = vmatmul.mubr.msk.bf16.vlgmr.msra.gmra.mxu0 %vm1128_vm0, %v2669_v27 }
 0x718   : > { %6886 = vmatprep.subr.bf16.mxu1 %v2525_v14  ;;  %6909 = vmatpush3.bf16.xpose.msra.mxu0 %v2822_v22 }
 0x719   : > { %6912 = vmatprep.mubr.msk.bf16.mxu0 %vm1128_vm0, %v2805_v59 }
 0x71a   : > { %v2809_v37 = vpop.permute.xlu1 %2808 }
 0x71b   : > { %6887 = vmatpush3.bf16.msra.mxu1 %v2525_v14  ;;  %7073 = vmatprep.subr.msk.bf16.mxu0 %vm1128_vm0, %v2809_v37  ;;  %v2819_v17 = vsel %vm1128_vm0, %v2809_v37, 0 }
 0x71c   : > { %7070 = vmatprep.subr.msk.bf16.mxu1 %vm1128_vm0, %v2742_v18  ;;  %v7330_v61 = vpop.eup %7329 }
 0x71d   : > { %v7332_v7 = vpop.eup %7331  ;;  %v2324_v23 = vmul.f32 %v7330_v61, %v8641_v4 }
 0x71e   : > { %v2736_v63 = vpop.permute.xlu1 %2735  ;;  %v7334_v43 = vpop.eup %7333  ;;  %v2321_v62 = vmul.f32 %v7332_v7, %v8637_v44 }
 0x71f   : > { %v2323_v11 = vmul.f32 %v7334_v43, %v8631_v21  ;;  %v2750_v21 = vsel %vm1128_vm0, %v8689_v0, 0 }
 0x720   : > { %v7336_v31 = vpop.eup %7335  ;;  %6911 = vmatpush3.bf16.xpose.msra.mxu0 %v2819_v17 }
 0x721   : > { %6924 = vmatprep.subr.bf16.mxu0 %v3161_v55  ;;  %v2322_v14 = vmul.f32 %v7336_v31, %v8645_v12  ;;  %v2332_v59 = vpack.c.bf16 %v2324_v23, %v2323_v11  ;;  %v8717_v12 = vpop.permute.xlu0 %3282 }
 0x722   : > { %v2880_v5 = vpop.permute.xlu1 %2879 }
 0x723   : > { %v2331_v24 = vpack.c.bf16 %v2322_v14, %v2321_v62  ;;  %v2891_v18 = vsel %vm1128_vm0, %v2880_v5, 0 }
 0x725   : > { %6888 = vmatprep.mubr.msk.bf16.mxu1 %vm1128_vm0, %v2331_v24 }
 0x726   : > { %6889 = vmatmul.mubr.msk.bf16.vlgmr.msra.gmra.mxu1 %vm1128_vm0, %v2332_v59  ;;  %v2878_v13 = vpop.permute.xlu1 %2877 }
 0x727   : > { %6901 = vmatpush3.bf16.xpose.msra.mxu1 %v2753_v36  ;;  %6913 = vmatmul.mubr.msk.bf16.vlgmr.msra.gmra.mxu0 %vm1128_vm0, %v2807_v19 }
 0x728   : > { %7071 = vmatprep.subr.msk.bf16.mxu1 %vm1128_vm0, %v8689_v0  ;;  %6904 = vmatprep.mubr.msk.bf16.mxu1 %vm1128_vm0, %v2736_v63  ;;  %v2888_v0 = vsel %vm1128_vm0, %v2878_v13, 0 }
 0x729   : > { %6925 = vmatpush3.bf16.msra.mxu0 %v3161_v55 }
 0x72a   : > { %v2876_v44 = vpop.permute.xlu1 %2875 }
 0x72e   : > { %v3159_v4 = vpop.permute.xlu1 %3158 }
 0x72f   : > { %6903 = vmatpush3.bf16.xpose.msra.mxu1 %v2750_v21  ;;  %6926 = vmatprep.subr.bf16.mxu0 %v3159_v4 }
 0x730   : > { %7074 = vmatprep.subr.msk.bf16.mxu1 %vm1128_vm0, %v2880_v5  ;;  %6927 = vmatpush3.bf16.msra.mxu0 %v3159_v4 }
 0x731   : > { %6940 = vmatprep.subr.bf16.mxu0 %v8717_v12 }
 0x736   : > { %6905 = vmatmul.mubr.msk.bf16.vlgmr.msra.gmra.mxu1 %vm1128_vm0, %v2738_v3 }
 0x737   : > { %6917 = vmatpush3.bf16.xpose.msra.mxu1 %v2891_v18  ;;  %6920 = vmatprep.mubr.msk.bf16.mxu1 %vm1128_vm0, %v2874_v47 }
 0x738   : > { %7075 = vmatprep.subr.msk.bf16.mxu1 %vm1128_vm0, %v2878_v13 }
 0x73f   : > { %6919 = vmatpush3.bf16.xpose.msra.mxu1 %v2888_v0 }
 0x746   : > { %6921 = vmatmul.mubr.msk.bf16.vlgmr.msra.gmra.mxu1 %vm1128_vm0, %v2876_v44 }
 0x799   : > { %v8727_v35 = vpop.f32.mrf.mxu0 }
 0x79b   : > { %v8729_v19 = vpop.f32.mrf.mxu0 }
 0x79d   : > { %v8731_v9 = vpop.f32.mrf.mxu0 }
 0x79f   : > { %v8733_v58 = vpop.f32.mrf.mxu0 }
 0x7a1   : > { %v8735_v28 = vpop.f32.mrf.mxu0 }
 0x7a2   : > { %10610 = vst [vmem:[#allocation20_spill] sm:$0xff] %v8735_v28 }
 0x7a3   : > { %v8737_v20 = vpop.f32.mrf.mxu0 }
 0x7a5   : > { %v8739_v32 = vpop.f32.mrf.mxu0 }
 0x7a6   : > { %10611 = vst [vmem:[#allocation21_spill] sm:$0xff] %v8739_v32 }
 0x7a7   : > { %v8741_v6 = vpop.f32.mrf.mxu0 }
 0x7a8   : > { %10612 = vst [vmem:[#allocation22_spill] sm:$0xff] %v8741_v6 }
 0x7d6   : > { %v8743_v3 = vpop.f32.mrf.mxu1 }
 0x7d7   : > { %v6898_v15 = vpop.f32.mrf.mxu0 }
 0x7d8   : > { %v2944_v2 = vmul.f32 0.17677669, %v6898_v15  ;;  %v8753_v63 = vpop.f32.mrf.mxu1 }
 0x7d9   : > { %v2720_v8 = vpop.f32.mrf.mxu0 }
 0x7da   : > { %v8746_v46 = vadd.f32 %v2944_v2, %v8200_v48  ;;  %v2942_v27 = vmul.f32 0.17677669, %v2720_v8  ;;  %v8763_v23 = vpop.f32.mrf.mxu1 }
 0x7db   : > { %v6899_v22 = vpop.f32.mrf.mxu0 }
 0x7dc   : > { %v8749_v47 = vadd.f32 %v2942_v27, %v8200_v48  ;;  %v2945_v37 = vmul.f32 0.17677669, %v6899_v22  ;;  %v2980_v61 = vsel %vm1128_vm0, %v8746_v46, -inf  ;;  %v8769_v5 = vpop.f32.mrf.mxu1 }
 0x7dd   : > { %2981 = vmax.xlane.f32.xlu0 %v2980_v61  ;;  %v2723_v7 = vpop.f32.mrf.mxu0 }
 0x7de   : > { %v2943_v43 = vmul.f32 0.17677669, %v2723_v7  ;;  %v8756_v17 = vadd.f32 %v2945_v37, %v8200_v48  ;;  %v2974_v55 = vsel %vm1128_vm0, %v8749_v47, -inf }
 0x7e0   : > { %v8759_v31 = vadd.f32 %v2943_v43, %v8200_v48  ;;  %v2983_v14 = vsel %vm1128_vm0, %v8756_v17, -inf }
 0x7e1   : > { %2975 = vmax.xlane.f32.xlu0 %v2974_v55 }
 0x7e2   : > { %v2977_v62 = vsel %vm1128_vm0, %v8759_v31, -inf }
 0x7e3   : > { %2978 = vmax.xlane.f32.xlu1 %v2977_v62 }
 0x7e5   : > { %2984 = vmax.xlane.f32.xlu0 %v2983_v14 }
 0x7e6   : > { %v8771_v24 = vpop.f32.mrf.mxu1 }
 0x7e7   : > { %v6914_v11 = vpop.f32.mrf.mxu0  ;;  %10613 = vst [vmem:[#allocation23_spill] sm:$0xff] %v8771_v24 }
 0x7e8   : > { %v2952_v59 = vmul.f32 0.17677669, %v6914_v11  ;;  %v8776_v4 = vpop.f32.mrf.mxu1 }
 0x7e9   : > { %v2858_v36 = vpop.f32.mrf.mxu0  ;;  %10614 = vst [vmem:[#allocation24_spill] sm:$0xff] %v8776_v4 }
 0x7ea   : > { %v8774_v13 = vadd.f32 %v2952_v59, %v8200_v48  ;;  %v2950_v44 = vmul.f32 0.17677669, %v2858_v36  ;;  %v8786_v22 = vpop.f32.mrf.mxu1 }
 0x7eb   : > { %v6915_v21 = vpop.f32.mrf.mxu0  ;;  %10615 = vst [vmem:[#allocation25_spill] sm:$0xff] %v8786_v22 }
 0x7ec   : > { %v8779_v18 = vadd.f32 %v2950_v44, %v8200_v48  ;;  %v2953_v0 = vmul.f32 0.17677669, %v6915_v21  ;;  %v3004_v15 = vsel %vm1128_vm0, %v8774_v13, -inf  ;;  %v8795_v43 = vpop.f32.mrf.mxu1 }
 0x7ed   : > { %3005 = vmax.xlane.f32.xlu0 %v3004_v15  ;;  %v2861_v2 = vpop.f32.mrf.mxu0  ;;  %10616 = vst [vmem:[#allocation26_spill] sm:$0xff] %v8795_v43 }
 0x7ee   : > { %v8784_v8 = vadd.f32 %v2953_v0, %v8200_v48  ;;  %v2951_v27 = vmul.f32 0.17677669, %v2861_v2  ;;  %v2998_v61 = vsel %vm1128_vm0, %v8779_v18, -inf }
 0x7f0   : > { %v8789_v37 = vadd.f32 %v2951_v27, %v8200_v48  ;;  %v3007_v7 = vsel %vm1128_vm0, %v8784_v8, -inf }
 0x7f1   : > { %2999 = vmax.xlane.f32.xlu0 %v2998_v61  ;;  %3008 = vmax.xlane.f32.xlu1 %v3007_v7 }
 0x7f2   : > { %v3001_v55 = vsel %vm1128_vm0, %v8789_v37, -inf }
 0x7f5   : > { %3002 = vmax.xlane.f32.xlu1 %v3001_v55 }
 0x7f6   : > { %v6906_v62 = vpop.f32.mrf.mxu1 }
 0x7f7   : > { %v2948_v14 = vmul.f32 0.17677669, %v6906_v62 }
 0x7f8   : > { %v2789_v11 = vpop.f32.mrf.mxu1 }
 0x7f9   : > { %v8800_v59 = vadd.f32 %v2948_v14, %v8200_v48  ;;  %v2946_v36 = vmul.f32 0.17677669, %v2789_v11 }
 0x7fa   : > { %v6907_v44 = vpop.f32.mrf.mxu1 }
 0x7fb   : > { %v8803_v21 = vadd.f32 %v2946_v36, %v8200_v48  ;;  %v2949_v0 = vmul.f32 0.17677669, %v6907_v44  ;;  %v2992_v15 = vsel %vm1128_vm0, %v8800_v59, -inf }
 0x7fc   : > { %2993 = vmax.xlane.f32.xlu0 %v2992_v15  ;;  %v2792_v2 = vpop.f32.mrf.mxu1 }
 0x7fd   : > { %v8808_v27 = vadd.f32 %v2949_v0, %v8200_v48  ;;  %v2947_v61 = vmul.f32 0.17677669, %v2792_v2  ;;  %v2986_v55 = vsel %vm1128_vm0, %v8803_v21, -inf }
 0x7ff   : > { %v8811_v7 = vadd.f32 %v2947_v61, %v8200_v48  ;;  %v2995_v62 = vsel %vm1128_vm0, %v8808_v27, -inf }
 0x800   : > { %2987 = vmax.xlane.f32.xlu0 %v2986_v55  ;;  %2996 = vmax.xlane.f32.xlu1 %v2995_v62 }
 0x801   : > { %v2989_v14 = vsel %vm1128_vm0, %v8811_v7, -inf }
 0x804   : > { %2990 = vmax.xlane.f32.xlu1 %v2989_v14 }
 0x806   : > { %v6922_v11 = vpop.f32.mrf.mxu1 }
 0x807   : > { %v2956_v36 = vmul.f32 0.17677669, %v6922_v11 }
 0x808   : > { %v2927_v44 = vpop.f32.mrf.mxu1 }
 0x809   : > { %v8820_v0 = vadd.f32 %v2956_v36, %v8200_v48  ;;  %v2954_v15 = vmul.f32 0.17677669, %v2927_v44 }
 0x80a   : > { %v6923_v62 = vpop.f32.mrf.mxu1 }
 0x80b   : > { %v8823_v2 = vadd.f32 %v2954_v15, %v8200_v48  ;;  %v3016_v61 = vsel %vm1128_vm0, %v8820_v0, -inf  ;;  %v2957_v14 = vmul.f32 0.17677669, %v6923_v62 }
 0x80c   : > { %3017 = vmax.xlane.f32.xlu0 %v3016_v61  ;;  %v2930_v11 = vpop.f32.mrf.mxu1 }
 0x80d   : > { %v3010_v55 = vsel %vm1128_vm0, %v8823_v2, -inf  ;;  %v8840_v36 = vadd.f32 %v2957_v14, %v8200_v48  ;;  %v2955_v44 = vmul.f32 0.17677669, %v2930_v11 }
 0x80f   : > { %v3019_v15 = vsel %vm1128_vm0, %v8840_v36, -inf }
 0x810   : > { %3011 = vmax.xlane.f32.xlu0 %v3010_v55 }
 0x815   : > { %3489 = vrot.lane.b32.xlu1 %v8028_v29, %s7637_s15  ;;  %v8843_v29 = vadd.f32 %v2955_v44, %v8200_v48 }
 0x817   : > { %v3013_v61 = vsel %vm1128_vm0, %v8843_v29, -inf }
 0x819   : > { %3343 = vrot.lane.b32.xlu1 %v8195_v50, %s7636_s14 }
 0x826   : > { %3280 = vrot.lane.b32.xlu0 %v8057_v53, %s7636_s14 }
 0x82a   : > { %3221 = vrot.lane.b32.xlu0 %v10608_v49, %s7636_s14 }
 0x82e   : > { %3219 = vrot.lane.b32.xlu0 %v10609_v56, %s7636_s14 }
 0x83d   : > { %3020 = vmax.xlane.f32.xlu1 %v3019_v15 }
 0x841   : > { %3014 = vmax.xlane.f32.xlu1 %v3013_v61 }
 0x866   : > { %v2982_v55 = vpop.xlane.xlu0 %2981 }
 0x867   : > { %v3024_v22 = vsub.f32 %v8746_v46, %v2982_v55 }
 0x869   : > { %v3042_v62 = vmul.f32 1.442695, %v3024_v22 }
 0x86a   : > { %v2976_v43 = vpop.xlane.xlu0 %2975 }
 0x86b   : > { %7337 = vpow2.f32 %v3042_v62  ;;  %v3022_v14 = vsub.f32 %v8749_v47, %v2976_v43 }
 0x86c   : > { %v2979_v11 = vpop.xlane.xlu1 %2978 }
 0x86d   : > { %v3038_v24 = vmul.f32 1.442695, %v3022_v14  ;;  %v3023_v44 = vsub.f32 %v8759_v31, %v2979_v11 }
 0x86e   : > { %v2985_v4 = vpop.xlane.xlu0 %2984 }
 0x86f   : > { %7339 = vpow2.f32 %v3038_v24  ;;  %v3025_v15 = vsub.f32 %v8756_v17, %v2985_v4  ;;  %v3040_v32 = vmul.f32 1.442695, %v3023_v44 }
 0x871   : > { %v3044_v28 = vmul.f32 1.442695, %v3025_v15 }
 0x873   : > { %7341 = vpow2.f32 %v3044_v28 }
 0x874   : > { %7343 = vpow2.f32 %v3040_v32 }
 0x876   : > { %v3006_v61 = vpop.xlane.xlu0 %3005 }
 0x877   : > { %v3032_v46 = vsub.f32 %v8774_v13, %v3006_v61 }
 0x878   : > { %v8854_v22 = vpop.eup %7337 }
 0x879   : > { %v3058_v55 = vmul.f32 1.442695, %v3032_v46  ;;  %v3076_v47 = vsel %vm1128_vm0, %v8854_v22, 0.0 }
 0x87a   : > { %v3000_v43 = vpop.xlane.xlu0 %2999  ;;  %v3009_v62 = vpop.xlane.xlu1 %3008  ;;  %3077 = vadd.xlane.f32.xlu0 %v3076_v47 }
 0x87b   : > { %7345 = vpow2.f32 %v3058_v55  ;;  %v3030_v31 = vsub.f32 %v8779_v18, %v3000_v43  ;;  %v3033_v17 = vsub.f32 %v8784_v8, %v3009_v62 }
 0x87c   : > { %v8860_v24 = vpop.eup %7339 }
 0x87d   : > { %v3054_v28 = vmul.f32 1.442695, %v3030_v31  ;;  %v3060_v32 = vmul.f32 1.442695, %v3033_v17  ;;  %v3070_v13 = vsel %vm1128_vm0, %v8860_v24, 0.0 }
 0x87e   : > { %v3003_v4 = vpop.xlane.xlu1 %3002  ;;  %3071 = vadd.xlane.f32.xlu0 %v3070_v13 }
 0x87f   : > { %7347 = vpow2.f32 %v3054_v28  ;;  %v3031_v14 = vsub.f32 %v8789_v37, %v3003_v4 }
 0x880   : > { %v8865_v11 = vpop.eup %7341  ;;  %7349 = vpow2.f32 %v3060_v32 }
 0x881   : > { %v3056_v44 = vmul.f32 1.442695, %v3031_v14  ;;  %v3079_v18 = vsel %vm1128_vm0, %v8865_v11, 0.0  ;;  %v8869_v8 = vpop.eup %7343 }
 0x882   : > { %3080 = vadd.xlane.f32.xlu1 %v3079_v18  ;;  %v3073_v61 = vsel %vm1128_vm0, %v8869_v8, 0.0 }
 0x883   : > { %7351 = vpow2.f32 %v3056_v44 }
 0x885   : > { %v2994_v15 = vpop.xlane.xlu0 %2993 }
 0x886   : > { %v3028_v46 = vsub.f32 %v8800_v59, %v2994_v15  ;;  %3074 = vadd.xlane.f32.xlu1 %v3073_v61 }
 0x888   : > { %v8874_v55 = vpop.eup %7345  ;;  %v3050_v37 = vmul.f32 1.442695, %v3028_v46 }
 0x889   : > { %v2988_v47 = vpop.xlane.xlu0 %2987  ;;  %v3100_v43 = vsel %vm1128_vm0, %v8874_v55, 0.0  ;;  %v2997_v4 = vpop.xlane.xlu1 %2996 }
 0x88a   : > { %7353 = vpow2.f32 %v3050_v37  ;;  %v3026_v62 = vsub.f32 %v8803_v21, %v2988_v47  ;;  %3101 = vadd.xlane.f32.xlu0 %v3100_v43 }
 0x88c   : > { %v8879_v31 = vpop.eup %7347  ;;  %v3046_v17 = vmul.f32 1.442695, %v3026_v62 }
 0x88d   : > { %v8881_v28 = vpop.eup %7349  ;;  %v3094_v59 = vsel %vm1128_vm0, %v8879_v31, 0.0  ;;  %v2991_v46 = vpop.xlane.xlu1 %2990 }
 0x88e   : > { %7355 = vpow2.f32 %v3046_v17  ;;  %3095 = vadd.xlane.f32.xlu0 %v3094_v59  ;;  %v3103_v32 = vsel %vm1128_vm0, %v8881_v28, 0.0 }
 0x88f   : > { %3104 = vadd.xlane.f32.xlu1 %v3103_v32  ;;  %v3029_v32 = vsub.f32 %v8808_v27, %v2997_v4 }
 0x890   : > { %v8887_v13 = vpop.eup %7351 }
 0x891   : > { %v3097_v21 = vsel %vm1128_vm0, %v8887_v13, 0.0  ;;  %v8901_v43 = vpop.permute.xlu1 %3489 }
 0x893   : > { %3098 = vadd.xlane.f32.xlu1 %v3097_v21  ;;  %v3052_v21 = vmul.f32 1.442695, %v3029_v32 }
 0x895   : > { %v3018_v14 = vpop.xlane.xlu0 %3017  ;;  %v8905_v59 = vpop.permute.xlu1 %3343  ;;  %7357 = vpow2.f32 %v3052_v21 }
 0x897   : > { %v8891_v44 = vpop.eup %7353 }
 0x898   : > { %v3088_v18 = vsel %vm1128_vm0, %v8891_v44, 0.0 }
 0x899   : > { %3089 = vadd.xlane.f32.xlu0 %v3088_v18  ;;  %v3012_v15 = vpop.xlane.xlu0 %3011  ;;  %v3027_v18 = vsub.f32 %v8811_v7, %v2991_v46 }
 0x89b   : > { %v8895_v61 = vpop.eup %7355 }
 0x89c   : > { %v3082_v37 = vsel %vm1128_vm0, %v8895_v61, 0.0 }
 0x89d   : > { %3083 = vadd.xlane.f32.xlu0 %v3082_v37  ;;  %v8899_v47 = vpop.permute.xlu0 %3280  ;;  %v3048_v37 = vmul.f32 1.442695, %v3027_v18 }
 0x89f   : > { %7359 = vpow2.f32 %v3048_v37 }
 0x8a1   : > { %v3222_v62 = vpop.permute.xlu0 %3221 }
 0x8a2   : > { %6932 = vmatprep.subr.bf16.mxu1 %v3222_v62 }
 0x8a3   : > { %6933 = vmatpush3.bf16.msra.mxu1 %v3222_v62  ;;  %v3036_v62 = vsub.f32 %v8820_v0, %v3018_v14 }
 0x8a4   : > { %3341 = vrot.lane.b32.xlu1 %v8089_v52, %s7636_s14 }
 0x8a5   : > { %v3220_v17 = vpop.permute.xlu0 %3219  ;;  %v3066_v6 = vmul.f32 1.442695, %v3036_v62 }
 0x8a6   : > { %6934 = vmatprep.subr.bf16.mxu1 %v3220_v17 }
 0x8a7   : > { %6935 = vmatpush3.bf16.msra.mxu1 %v3220_v17  ;;  %v3034_v17 = vsub.f32 %v8823_v2, %v3012_v15  ;;  %7361 = vpow2.f32 %v3066_v6 }
 0x8a8   : > { %6948 = vmatprep.subr.bf16.mxu1 %v8905_v59 }
 0x8a9   : > { %v3062_v27 = vmul.f32 1.442695, %v3034_v17 }
 0x8ab   : > { %7363 = vpow2.f32 %v3062_v27 }
 0x8b3   : > { %3487 = vrot.lane.b32.xlu0 %v8033_v34, %s7637_s15  ;;  %v8922_v34 = vpop.eup %7357 }
 0x8b4   : > { %v8929_v6 = vpop.eup %7359 }
 0x8b7   : > { %3483 = vrot.lane.b32.xlu0 %v8005_v60, %s7637_s15 }
 0x8bb   : > { %3558 = vrot.lane.b32.xlu0 %v8068_v40, %s7637_s15  ;;  %v3091_v40 = vsel %vm1128_vm0, %v8922_v34, 0.0 }
 0x8bf   : > { %3552 = vrot.lane.b32.xlu0 %v8072_v38, %s7637_s15 }
 0x8c3   : > { %3627 = vrot.lane.b32.xlu0 %v8105_v54, %s7637_s15  ;;  %v3085_v54 = vsel %vm1128_vm0, %v8929_v6, 0.0 }
 0x8c6   : > { %v3021_v7 = vpop.xlane.xlu1 %3020 }
 0x8c7   : > { %v3037_v60 = vsub.f32 %v8840_v36, %v3021_v7  ;;  %3621 = vrot.lane.b32.xlu0 %v8091_v1, %s7637_s15  ;;  %v8936_v36 = vpop.eup %7361 }
 0x8c8   : > { %3092 = vadd.xlane.f32.xlu1 %v3091_v40  ;;  %v3112_v4 = vsel %vm1128_vm0, %v8936_v36, 0.0  ;;  %v8942_v14 = vpop.eup %7363 }
 0x8c9   : > { %v3068_v0 = vmul.f32 1.442695, %v3037_v60 }
 0x8ca   : > { %v3015_v38 = vpop.xlane.xlu1 %3014 }
 0x8cb   : > { %7365 = vpow2.f32 %v3068_v0  ;;  %v3035_v2 = vsub.f32 %v8843_v29, %v3015_v38  ;;  %3696 = vrot.lane.b32.xlu0 %v8144_v41, %s7637_s15  ;;  %v3106_v41 = vsel %vm1128_vm0, %v8942_v14, 0.0 }
 0x8cc   : > { %3086 = vadd.xlane.f32.xlu1 %v3085_v54 }
 0x8cd   : > { %v3064_v1 = vmul.f32 1.442695, %v3035_v2 }
 0x8cf   : > { %7367 = vpow2.f32 %v3064_v1  ;;  %3690 = vrot.lane.b32.xlu0 %v8121_v39, %s7637_s15 }
 0x8d0   : > { %3113 = vadd.xlane.f32.xlu1 %v3112_v4 }
 0x8d4   : > { %3107 = vadd.xlane.f32.xlu1 %v3106_v41 }
 0x8d8   : > { %v8946_v29 = vpop.eup %7365 }
 0x8d9   : > { %v3115_v15 = vsel %vm1128_vm0, %v8946_v29, 0.0 }
 0x8da   : > { %3116 = vadd.xlane.f32.xlu1 %v3115_v15 }
 0x8dc   : > { %v8950_v46 = vpop.eup %7367 }
 0x8dd   : > { %v3109_v39 = vsel %vm1128_vm0, %v8950_v46, 0.0 }
 0x8de   : > { %3110 = vadd.xlane.f32.xlu1 %v3109_v39 }
 0x8ef   : > { %3485 = vrot.lane.b32.xlu1 %v8065_v42, %s7637_s15 }
 0x8f3   : > { %3556 = vrot.lane.b32.xlu1 %v8074_v57, %s7637_s15 }
 0x8f7   : > { %3554 = vrot.lane.b32.xlu1 %v8102_v45, %s7637_s15 }
 0x8fb   : > { %3625 = vrot.lane.b32.xlu1 %v8107_v16, %s7637_s15 }
 0x8ff   : > { %3623 = vrot.lane.b32.xlu1 %v8141_v33, %s7637_s15 }
 0x903   : > { %3694 = vrot.lane.b32.xlu1 %v8150_v10, %s7637_s15  ;;  %v3078_v32 = vpop.xlane.xlu0 %3077 }
 0x907   : > { %3692 = vrot.lane.b32.xlu1 %v8183_v51, %s7637_s15  ;;  %v3072_v42 = vpop.xlane.xlu0 %3071 }
 0x90b   : > { %v3081_v21 = vpop.xlane.xlu1 %3080 }
 0x90c   : > { %7369 = vrcp.f32 %v3081_v21 }
 0x90d   : > { %7371 = vrcp.f32 %v3072_v42 }
 0x90e   : > { %7373 = vrcp.f32 %v3078_v32 }
 0x90f   : > { %v3075_v57 = vpop.xlane.xlu1 %3074 }
 0x910   : > { %7375 = vrcp.f32 %v3075_v57 }
 0x913   : > { %v3102_v45 = vpop.xlane.xlu0 %3101 }
 0x917   : > { %v3096_v18 = vpop.xlane.xlu0 %3095 }
 0x918   : > { %v3105_v16 = vpop.xlane.xlu1 %3104 }
 0x919   : > { %v7370_v37 = vpop.eup %7369  ;;  %7377 = vrcp.f32 %v3105_v16 }
 0x91a   : > { %v7372_v33 = vpop.eup %7371  ;;  %7379 = vrcp.f32 %v3096_v18  ;;  %v3137_v51 = vmul.f32 %v7370_v37, %v8865_v11 }
 0x91b   : > { %v7374_v62 = vpop.eup %7373  ;;  %7381 = vrcp.f32 %v3102_v45  ;;  %v3134_v27 = vmul.f32 %v7372_v33, %v8860_v24 }
 0x91c   : > { %v3099_v10 = vpop.xlane.xlu1 %3098  ;;  %v3136_v60 = vmul.f32 %v7374_v62, %v8854_v22 }
 0x91d   : > { %v7376_v17 = vpop.eup %7375  ;;  %7383 = vrcp.f32 %v3099_v10 }
 0x91e   : > { %v3135_v7 = vmul.f32 %v7376_v17, %v8869_v8  ;;  %v3151_v0 = vpack.c.bf16 %v3137_v51, %v3136_v60 }
 0x920   : > { %v3150_v40 = vpack.c.bf16 %v3135_v7, %v3134_v27  ;;  %v3342_v42 = vpop.permute.xlu1 %3341 }
 0x922   : > { %v3090_v38 = vpop.xlane.xlu0 %3089  ;;  %6928 = vmatprep.mubr.msk.bf16.mxu0 %vm1128_vm0, %v3150_v40 }
 0x923   : > { %6929 = vmatmul.mubr.msk.bf16.vlgmr.msra.gmra.mxu0 %vm1128_vm0, %v3151_v0 }
 0x924   : > { %6941 = vmatpush3.bf16.msra.mxu0 %v8717_v12 }
 0x925   : > { %6942 = vmatprep.subr.bf16.mxu0 %v8899_v47 }
 0x926   : > { %v3084_v2 = vpop.xlane.xlu0 %3083  ;;  %v7378_v54 = vpop.eup %7377 }
 0x927   : > { %v7380_v11 = vpop.eup %7379  ;;  %v3145_v1 = vmul.f32 %v7378_v54, %v8881_v28 }
 0x928   : > { %6943 = vmatpush3.bf16.msra.mxu0 %v8899_v47  ;;  %v7382_v24 = vpop.eup %7381  ;;  %v3142_v4 = vmul.f32 %v7380_v11, %v8879_v31  ;;  %v3501_v47 = vsel %vm1128_vm0, %v8901_v43, 0 }
 0x929   : > { %7076 = vmatprep.subr.msk.bf16.mxu0 %vm1128_vm0, %v8901_v43  ;;  %v3144_v12 = vmul.f32 %v7382_v24, %v8874_v55 }
 0x92a   : > { %v7384_v22 = vpop.eup %7383  ;;  %v3488_v8 = vpop.permute.xlu0 %3487 }
 0x92b   : > { %v3143_v41 = vmul.f32 %v7384_v22, %v8887_v13  ;;  %v3155_v32 = vpack.c.bf16 %v3145_v1, %v3144_v12  ;;  %v3498_v13 = vsel %vm1128_vm0, %v3488_v8, 0 }
 0x92d   : > { %v3154_v15 = vpack.c.bf16 %v3143_v41, %v3142_v4 }
 0x92e   : > { %v3484_v39 = vpop.permute.xlu0 %3483 }
 0x92f   : > { %6944 = vmatprep.mubr.msk.bf16.mxu0 %vm1128_vm0, %v3154_v15 }
 0x930   : > { %6945 = vmatmul.mubr.msk.bf16.vlgmr.msra.gmra.mxu0 %vm1128_vm0, %v3155_v32 }
 0x931   : > { %6957 = vmatpush3.bf16.xpose.msra.mxu0 %v3501_v47  ;;  %6960 = vmatprep.mubr.msk.bf16.mxu0 %vm1128_vm0, %v3484_v39 }
 0x932   : > { %7077 = vmatprep.subr.msk.bf16.mxu0 %vm1128_vm0, %v3488_v8  ;;  %v3559_v31 = vpop.permute.xlu0 %3558 }
 0x936   : > { %v3553_v28 = vpop.permute.xlu0 %3552 }
 0x939   : > { %6959 = vmatpush3.bf16.xpose.msra.mxu0 %v3498_v13 }
 0x93a   : > { %v3628_v55 = vpop.permute.xlu0 %3627 }
 0x93b   : > { %7080 = vmatprep.subr.msk.bf16.mxu0 %vm1128_vm0, %v3628_v55 }
 0x951   : > { %v3093_v21 = vpop.xlane.xlu1 %3092 }
 0x952   : > { %7385 = vrcp.f32 %v3093_v21 }
 0x953   : > { %7387 = vrcp.f32 %v3084_v2 }
 0x954   : > { %7389 = vrcp.f32 %v3090_v38 }
 0x955   : > { %v3087_v57 = vpop.xlane.xlu1 %3086 }
 0x956   : > { %7391 = vrcp.f32 %v3087_v57 }
 0x959   : > { %v3114_v43 = vpop.xlane.xlu1 %3113 }
 0x95d   : > { %v3108_v45 = vpop.xlane.xlu1 %3107 }
 0x95f   : > { %v7386_v18 = vpop.eup %7385 }
 0x960   : > { %v7388_v16 = vpop.eup %7387  ;;  %v3141_v10 = vmul.f32 %v7386_v18, %v8922_v34 }
 0x961   : > { %v7390_v37 = vpop.eup %7389  ;;  %v3138_v17 = vmul.f32 %v7388_v16, %v8895_v61  ;;  %v3622_v61 = vpop.permute.xlu0 %3621 }
 0x962   : > { %v3140_v27 = vmul.f32 %v7390_v37, %v8891_v44 }
 0x963   : > { %v7392_v33 = vpop.eup %7391  ;;  %v3117_v62 = vpop.xlane.xlu1 %3116 }
 0x964   : > { %v3139_v51 = vmul.f32 %v7392_v33, %v8929_v6  ;;  %7393 = vrcp.f32 %v3117_v62  ;;  %v3153_v40 = vpack.c.bf16 %v3141_v10, %v3140_v27  ;;  %v3639_v6 = vsel %vm1128_vm0, %v3628_v55, 0 }
 0x965   : > { %7395 = vrcp.f32 %v3108_v45 }
 0x966   : > { %v3152_v7 = vpack.c.bf16 %v3139_v51, %v3138_v17  ;;  %7397 = vrcp.f32 %v3114_v43 }
 0x967   : > { %v3111_v60 = vpop.xlane.xlu1 %3110 }
 0x968   : > { %6936 = vmatprep.mubr.msk.bf16.mxu1 %vm1128_vm0, %v3152_v7  ;;  %7399 = vrcp.f32 %v3111_v60 }
 0x969   : > { %6937 = vmatmul.mubr.msk.bf16.vlgmr.msra.gmra.mxu1 %vm1128_vm0, %v3153_v40 }
 0x96a   : > { %6949 = vmatpush3.bf16.msra.mxu1 %v8905_v59 }
 0x96b   : > { %6950 = vmatprep.subr.bf16.mxu1 %v3342_v42  ;;  %v3486_v34 = vpop.permute.xlu1 %3485 }
 0x96c   : > { %6961 = vmatmul.mubr.msk.bf16.vlgmr.msra.gmra.mxu0 %vm1128_vm0, %v3486_v34 }
 0x96d   : > { %6973 = vmatpush3.bf16.xpose.msra.mxu0 %v3639_v6  ;;  %6976 = vmatprep.mubr.msk.bf16.mxu0 %vm1128_vm0, %v3622_v61 }
 0x96e   : > { %6951 = vmatpush3.bf16.msra.mxu1 %v3342_v42 }
 0x96f   : > { %7078 = vmatprep.subr.msk.bf16.mxu1 %vm1128_vm0, %v3559_v31  ;;  %v3557_v44 = vpop.permute.xlu1 %3556 }
 0x971   : > { %v7394_v0 = vpop.eup %7393 }
 0x972   : > { %v7396_v38 = vpop.eup %7395  ;;  %v3149_v59 = vmul.f32 %v7394_v0, %v8946_v29  ;;  %v3570_v29 = vsel %vm1128_vm0, %v3559_v31, 0 }
 0x973   : > { %v3555_v2 = vpop.permute.xlu1 %3554  ;;  %v7398_v54 = vpop.eup %7397  ;;  %v3146_v24 = vmul.f32 %v7396_v38, %v8942_v14 }
 0x974   : > { %v3148_v1 = vmul.f32 %v7398_v54, %v8936_v36  ;;  %v3567_v36 = vsel %vm1128_vm0, %v3557_v44, 0 }
 0x975   : > { %v7400_v11 = vpop.eup %7399 }
 0x976   : > { %v3147_v22 = vmul.f32 %v7400_v11, %v8950_v46  ;;  %v3157_v12 = vpack.c.bf16 %v3149_v59, %v3148_v1  ;;  %v3697_v46 = vpop.permute.xlu0 %3696 }
 0x977   : > { %v3626_v8 = vpop.permute.xlu1 %3625  ;;  %v3708_v39 = vsel %vm1128_vm0, %v3697_v46, 0 }
 0x978   : > { %7081 = vmatprep.subr.msk.bf16.mxu0 %vm1128_vm0, %v3626_v8  ;;  %v3636_v4 = vsel %vm1128_vm0, %v3626_v8, 0  ;;  %v3156_v41 = vpack.c.bf16 %v3147_v22, %v3146_v24 }
 0x979   : > { %6975 = vmatpush3.bf16.xpose.msra.mxu0 %v3636_v4 }
 0x97a   : > { %6952 = vmatprep.mubr.msk.bf16.mxu1 %vm1128_vm0, %v3156_v41  ;;  %v3691_v15 = vpop.permute.xlu0 %3690 }
 0x97b   : > { %6953 = vmatmul.mubr.msk.bf16.vlgmr.msra.gmra.mxu1 %vm1128_vm0, %v3157_v12  ;;  %v3624_v14 = vpop.permute.xlu1 %3623 }
 0x97c   : > { %6965 = vmatpush3.bf16.xpose.msra.mxu1 %v3570_v29  ;;  %6968 = vmatprep.mubr.msk.bf16.mxu1 %vm1128_vm0, %v3553_v28 }
 0x97d   : > { %7079 = vmatprep.subr.msk.bf16.mxu1 %vm1128_vm0, %v3557_v44 }
 0x97f   : > { %v3695_v32 = vpop.permute.xlu1 %3694 }
 0x980   : > { %6977 = vmatmul.mubr.msk.bf16.vlgmr.msra.gmra.mxu0 %vm1128_vm0, %v3624_v14  ;;  %v3705_v47 = vsel %vm1128_vm0, %v3695_v32, 0 }
 0x983   : > { %v3693_v31 = vpop.permute.xlu1 %3692 }
 0x984   : > { %6967 = vmatpush3.bf16.xpose.msra.mxu1 %v3567_v36 }
 0x985   : > { %7082 = vmatprep.subr.msk.bf16.mxu1 %vm1128_vm0, %v3697_v46 }
 0x98b   : > { %6969 = vmatmul.mubr.msk.bf16.vlgmr.msra.gmra.mxu1 %vm1128_vm0, %v3555_v2 }
 0x98c   : > { %6981 = vmatpush3.bf16.xpose.msra.mxu1 %v3708_v39  ;;  %6984 = vmatprep.mubr.msk.bf16.mxu1 %vm1128_vm0, %v3691_v15 }
 0x98d   : > { %7083 = vmatprep.subr.msk.bf16.mxu1 %vm1128_vm0, %v3695_v32 }
 0x994   : > { %6983 = vmatpush3.bf16.xpose.msra.mxu1 %v3705_v47 }
 0x99b   : > { %6985 = vmatmul.mubr.msk.bf16.vlgmr.msra.gmra.mxu1 %vm1128_vm0, %v3693_v31 }
 0x9e3   : > { %v9022_v28 = vpop.f32.mrf.mxu0 }
 0x9e5   : > { %v9024_v13 = vpop.f32.mrf.mxu0 }
 0x9e7   : > { %v9026_v55 = vpop.f32.mrf.mxu0 }
 0x9e9   : > { %v9028_v42 = vpop.f32.mrf.mxu0 }
 0x9f0   : > { %v9030_v21 = vpop.f32.mrf.mxu0 }
 0x9f2   : > { %v9032_v57 = vpop.f32.mrf.mxu0 }
 0x9f4   : > { %v9034_v43 = vpop.f32.mrf.mxu0 }
 0x9f6   : > { %v9036_v45 = vpop.f32.mrf.mxu0 }
 0xa29   : > { %v9038_v33 = vpop.f32.mrf.mxu1 }
 0xa2b   : > { %v9048_v40 = vpop.f32.mrf.mxu1 }
 0xa2c   : > { %v6962_v18 = vpop.f32.mrf.mxu0 }
 0xa2d   : > { %v3761_v16 = vmul.f32 0.17677669, %v6962_v18  ;;  %v9058_v0 = vpop.f32.mrf.mxu1 }
 0xa2e   : > { %v3537_v37 = vpop.f32.mrf.mxu0 }
 0xa2f   : > { %v9041_v62 = vadd.f32 %v3761_v16, %v8200_v48  ;;  %v3759_v10 = vmul.f32 0.17677669, %v3537_v37  ;;  %v9064_v54 = vpop.f32.mrf.mxu1 }
 0xa30   : > { %v6963_v17 = vpop.f32.mrf.mxu0 }
 0xa31   : > { %v9044_v51 = vadd.f32 %v3759_v10, %v8200_v48  ;;  %v3762_v27 = vmul.f32 0.17677669, %v6963_v17  ;;  %v3797_v7 = vsel %vm1128_vm0, %v9041_v62, -inf }
 0xa32   : > { %3798 = vmax.xlane.f32.xlu0 %v3797_v7  ;;  %v3540_v60 = vpop.f32.mrf.mxu0 }
 0xa33   : > { %v3760_v34 = vmul.f32 0.17677669, %v3540_v60  ;;  %v9051_v61 = vadd.f32 %v3762_v27, %v8200_v48  ;;  %v3791_v44 = vsel %vm1128_vm0, %v9044_v51, -inf }
 0xa35   : > { %v9054_v6 = vadd.f32 %v3760_v34, %v8200_v48  ;;  %v3800_v2 = vsel %vm1128_vm0, %v9051_v61, -inf }
 0xa36   : > { %3792 = vmax.xlane.f32.xlu0 %v3791_v44 }
 0xa37   : > { %v3794_v38 = vsel %vm1128_vm0, %v9054_v6, -inf }
 0xa38   : > { %3795 = vmax.xlane.f32.xlu1 %v3794_v38 }
 0xa3a   : > { %3801 = vmax.xlane.f32.xlu0 %v3800_v2 }
 0xa3b   : > { %v9066_v11 = vpop.f32.mrf.mxu1 }
 0xa3d   : > { %v9068_v24 = vpop.f32.mrf.mxu1 }
 0xa3f   : > { %v9073_v12 = vpop.f32.mrf.mxu1 }
 0xa40   : > { %v6978_v59 = vpop.f32.mrf.mxu0 }
 0xa41   : > { %v3769_v22 = vmul.f32 0.17677669, %v6978_v59  ;;  %v9083_v32 = vpop.f32.mrf.mxu1 }
 0xa42   : > { %v3675_v8 = vpop.f32.mrf.mxu0 }
 0xa43   : > { %v9071_v1 = vadd.f32 %v3769_v22, %v8200_v48  ;;  %v3767_v4 = vmul.f32 0.17677669, %v3675_v8 }
 0xa44   : > { %v6979_v41 = vpop.f32.mrf.mxu0 }
 0xa45   : > { %v9076_v29 = vadd.f32 %v3767_v4, %v8200_v48  ;;  %v3770_v14 = vmul.f32 0.17677669, %v6979_v41  ;;  %v3821_v36 = vsel %vm1128_vm0, %v9071_v1, -inf }
 0xa46   : > { %3822 = vmax.xlane.f32.xlu0 %v3821_v36  ;;  %v3678_v46 = vpop.f32.mrf.mxu0 }
 0xa47   : > { %v9081_v15 = vadd.f32 %v3770_v14, %v8200_v48  ;;  %v3768_v39 = vmul.f32 0.17677669, %v3678_v46  ;;  %v3815_v31 = vsel %vm1128_vm0, %v9076_v29, -inf }
 0xa49   : > { %v9086_v47 = vadd.f32 %v3768_v39, %v8200_v48  ;;  %v3824_v18 = vsel %vm1128_vm0, %v9081_v15, -inf }
 0xa4a   : > { %3816 = vmax.xlane.f32.xlu0 %v3815_v31  ;;  %3825 = vmax.xlane.f32.xlu1 %v3824_v18 }
 0xa4b   : > { %v6970_v16 = vpop.f32.mrf.mxu1  ;;  %v3818_v17 = vsel %vm1128_vm0, %v9086_v47, -inf }
 0xa4c   : > { %v3765_v37 = vmul.f32 0.17677669, %v6970_v16 }
 0xa4d   : > { %v3606_v10 = vpop.f32.mrf.mxu1 }
 0xa4e   : > { %v9095_v27 = vadd.f32 %v3765_v37, %v8200_v48  ;;  %v3763_v7 = vmul.f32 0.17677669, %v3606_v10  ;;  %3819 = vmax.xlane.f32.xlu1 %v3818_v17 }
 0xa4f   : > { %v6971_v60 = vpop.f32.mrf.mxu1 }
 0xa50   : > { %v9098_v34 = vadd.f32 %v3763_v7, %v8200_v48  ;;  %v3766_v44 = vmul.f32 0.17677669, %v6971_v60  ;;  %v3809_v38 = vsel %vm1128_vm0, %v9095_v27, -inf }
 0xa51   : > { %v3609_v2 = vpop.f32.mrf.mxu1  ;;  %3810 = vmax.xlane.f32.xlu0 %v3809_v38 }
 0xa52   : > { %v9103_v59 = vadd.f32 %v3766_v44, %v8200_v48  ;;  %v3764_v22 = vmul.f32 0.17677669, %v3609_v2  ;;  %v3803_v4 = vsel %vm1128_vm0, %v9098_v34, -inf }
 0xa54   : > { %v9106_v8 = vadd.f32 %v3764_v22, %v8200_v48  ;;  %v3812_v41 = vsel %vm1128_vm0, %v9103_v59, -inf }
 0xa55   : > { %3804 = vmax.xlane.f32.xlu0 %v3803_v4  ;;  %3813 = vmax.xlane.f32.xlu1 %v3812_v41 }
 0xa56   : > { %v3806_v14 = vsel %vm1128_vm0, %v9106_v8, -inf }
 0xa59   : > { %3807 = vmax.xlane.f32.xlu1 %v3806_v14 }
 0xa5b   : > { %v6986_v36 = vpop.f32.mrf.mxu1 }
 0xa5c   : > { %v3773_v39 = vmul.f32 0.17677669, %v6986_v36 }
 0xa5d   : > { %v3744_v46 = vpop.f32.mrf.mxu1 }
 0xa5e   : > { %v9119_v18 = vadd.f32 %v3773_v39, %v8200_v48  ;;  %v3771_v16 = vmul.f32 0.17677669, %v3744_v46 }
 0xa5f   : > { %v6987_v31 = vpop.f32.mrf.mxu1 }
 0xa60   : > { %v3774_v37 = vmul.f32 0.17677669, %v6987_v31  ;;  %v9122_v17 = vadd.f32 %v3771_v16, %v8200_v48 }
 0xa61   : > { %v3747_v10 = vpop.f32.mrf.mxu1 }
 0xa62   : > { %v9125_v7 = vadd.f32 %v3774_v37, %v8200_v48  ;;  %v3827_v44 = vsel %vm1128_vm0, %v9122_v17, -inf }
 0xa64   : > { %v3836_v38 = vsel %vm1128_vm0, %v9125_v7, -inf }
 0xa6a   : > { %3975 = vrot.lane.b32.xlu1 %v8146_v26, %s7637_s15  ;;  %v3772_v26 = vmul.f32 0.17677669, %v3747_v10 }
 0xa6b   : > { %3977 = vrot.lane.b32.xlu0 %v8127_v25, %s7637_s15  ;;  %v3833_v25 = vsel %vm1128_vm0, %v9119_v18, -inf }
 0xa6c   : > { %v9130_v60 = vadd.f32 %v3772_v26, %v8200_v48 }
 0xa6e   : > { %v3830_v2 = vsel %vm1128_vm0, %v9130_v60, -inf }
 0xa8a   : > { %3834 = vmax.xlane.f32.xlu0 %v3833_v25 }
 0xa8e   : > { %3828 = vmax.xlane.f32.xlu0 %v3827_v44  ;;  %3837 = vmax.xlane.f32.xlu1 %v3836_v38 }
 0xa92   : > { %3831 = vmax.xlane.f32.xlu1 %v3830_v2 }
 0xaa3   : > { %4036 = vrot.lane.b32.xlu1 %v10609_v56, %s7637_s15 }
 0xaa4   : > { %4038 = vrot.lane.b32.xlu0 %v10608_v49, %s7637_s15 }
 0xabb   : > { %v3799_v48 = vpop.xlane.xlu0 %3798 }
 0xabc   : > { %v3841_v22 = vsub.f32 %v9041_v62, %v3799_v48 }
 0xabe   : > { %v3859_v4 = vmul.f32 1.442695, %v3841_v22 }
 0xabf   : > { %v3793_v41 = vpop.xlane.xlu0 %3792 }
 0xac0   : > { %7401 = vpow2.f32 %v3859_v4  ;;  %v3839_v14 = vsub.f32 %v9044_v51, %v3793_v41 }
 0xac1   : > { %v3796_v36 = vpop.xlane.xlu1 %3795 }
 0xac2   : > { %v3855_v46 = vmul.f32 1.442695, %v3839_v14  ;;  %v3840_v39 = vsub.f32 %v9054_v6, %v3796_v36 }
 0xac3   : > { %v3802_v31 = vpop.xlane.xlu0 %3801 }
 0xac4   : > { %7403 = vpow2.f32 %v3855_v46  ;;  %v3842_v16 = vsub.f32 %v9051_v61, %v3802_v31  ;;  %v3857_v56 = vmul.f32 1.442695, %v3840_v39 }
 0xac6   : > { %v3861_v37 = vmul.f32 1.442695, %v3842_v16 }
 0xac8   : > { %7405 = vpow2.f32 %v3861_v37 }
 0xac9   : > { %7407 = vpow2.f32 %v3857_v56 }
 0xacd   : > { %v9146_v49 = vpop.eup %7401 }
 0xace   : > { %v3893_v62 = vsel %vm1128_vm0, %v9146_v49, 0.0 }
 0xacf   : > { %v3823_v10 = vpop.xlane.xlu0 %3822  ;;  %3894 = vadd.xlane.f32.xlu0 %v3893_v62 }
 0xad0   : > { %v3849_v51 = vsub.f32 %v9071_v1, %v3823_v10 }
 0xad1   : > { %v9151_v26 = vpop.eup %7403 }
 0xad2   : > { %v3875_v6 = vmul.f32 1.442695, %v3849_v51  ;;  %v3887_v25 = vsel %vm1128_vm0, %v9151_v26, 0.0 }
 0xad3   : > { %v3817_v61 = vpop.xlane.xlu0 %3816  ;;  %3888 = vadd.xlane.f32.xlu0 %v3887_v25  ;;  %v3826_v44 = vpop.xlane.xlu1 %3825 }
 0xad4   : > { %7409 = vpow2.f32 %v3875_v6  ;;  %v3847_v38 = vsub.f32 %v9076_v29, %v3817_v61  ;;  %v3850_v2 = vsub.f32 %v9081_v15, %v3826_v44 }
 0xad5   : > { %v9157_v48 = vpop.eup %7405 }
 0xad6   : > { %v3871_v22 = vmul.f32 1.442695, %v3847_v38  ;;  %v3877_v4 = vmul.f32 1.442695, %v3850_v2  ;;  %v3896_v1 = vsel %vm1128_vm0, %v9157_v48, 0.0  ;;  %v9161_v41 = vpop.eup %7407 }
 0xad7   : > { %3897 = vadd.xlane.f32.xlu1 %v3896_v1  ;;  %v3820_v14 = vpop.xlane.xlu1 %3819  ;;  %v3890_v29 = vsel %vm1128_vm0, %v9161_v41, 0.0 }
 0xad8   : > { %7411 = vpow2.f32 %v3871_v22  ;;  %v3848_v36 = vsub.f32 %v9086_v47, %v3820_v14 }
 0xad9   : > { %7413 = vpow2.f32 %v3877_v4 }
 0xada   : > { %v3873_v46 = vmul.f32 1.442695, %v3848_v36  ;;  %v3811_v39 = vpop.xlane.xlu0 %3810 }
 0xadb   : > { %v3845_v15 = vsub.f32 %v9095_v27, %v3811_v39  ;;  %3891 = vadd.xlane.f32.xlu1 %v3890_v29 }
 0xadc   : > { %7415 = vpow2.f32 %v3873_v46 }
 0xadd   : > { %v3867_v31 = vmul.f32 1.442695, %v3845_v15 }
 0xade   : > { %v3805_v16 = vpop.xlane.xlu0 %3804  ;;  %v3814_v56 = vpop.xlane.xlu1 %3813 }
 0xadf   : > { %7417 = vpow2.f32 %v3867_v31  ;;  %v3843_v37 = vsub.f32 %v9098_v34, %v3805_v16  ;;  %v3846_v62 = vsub.f32 %v9103_v59, %v3814_v56 }
 0xae1   : > { %v9169_v10 = vpop.eup %7409  ;;  %v3863_v47 = vmul.f32 1.442695, %v3843_v37  ;;  %v3869_v51 = vmul.f32 1.442695, %v3846_v62 }
 0xae2   : > { %v3978_v6 = vpop.permute.xlu0 %3977  ;;  %v3808_v25 = vpop.xlane.xlu1 %3807  ;;  %v3917_v61 = vsel %vm1128_vm0, %v9169_v10, 0.0 }
 0xae3   : > { %7419 = vpow2.f32 %v3863_v47  ;;  %v3844_v27 = vsub.f32 %v9106_v8, %v3808_v25  ;;  %6988 = vmatprep.subr.bf16.mxu0 %v3978_v6  ;;  %3918 = vadd.xlane.f32.xlu0 %v3917_v61 }
 0xae4   : > { %7421 = vpow2.f32 %v3869_v51  ;;  %6989 = vmatpush3.bf16.msra.mxu0 %v3978_v6 }
 0xae5   : > { %v9174_v44 = vpop.eup %7411  ;;  %v3865_v34 = vmul.f32 1.442695, %v3844_v27 }
 0xae6   : > { %v3976_v59 = vpop.permute.xlu1 %3975  ;;  %v3911_v38 = vsel %vm1128_vm0, %v9174_v44, 0.0  ;;  %v9178_v2 = vpop.eup %7413 }
 0xae7   : > { %7423 = vpow2.f32 %v3865_v34  ;;  %6990 = vmatprep.subr.bf16.mxu0 %v3976_v59  ;;  %3912 = vadd.xlane.f32.xlu1 %v3911_v38  ;;  %v3920_v8 = vsel %vm1128_vm0, %v9178_v2, 0.0 }
 0xae8   : > { %6991 = vmatpush3.bf16.msra.mxu0 %v3976_v59 }
 0xae9   : > { %v9180_v22 = vpop.eup %7415 }
 0xaea   : > { %v3914_v4 = vsel %vm1128_vm0, %v9180_v22, 0.0 }
 0xaeb   : > { %3921 = vadd.xlane.f32.xlu1 %v3920_v8  ;;  %3915 = vadd.xlane.f32.xlu0 %v3914_v4 }
 0xaec   : > { %v9186_v1 = vpop.eup %7417 }
 0xaed   : > { %v3905_v14 = vsel %vm1128_vm0, %v9186_v1, 0.0 }
 0xaef   : > { %3906 = vadd.xlane.f32.xlu0 %v3905_v14 }
 0xaf0   : > { %v9190_v36 = vpop.eup %7419 }
 0xaf1   : > { %v9192_v46 = vpop.eup %7421  ;;  %v3899_v29 = vsel %vm1128_vm0, %v9190_v36, 0.0 }
 0xaf2   : > { %v3908_v39 = vsel %vm1128_vm0, %v9192_v46, 0.0 }
 0xaf3   : > { %3909 = vadd.xlane.f32.xlu1 %v3908_v39  ;;  %3900 = vadd.xlane.f32.xlu0 %v3899_v29 }
 0xaf4   : > { %v9198_v15 = vpop.eup %7423 }
 0xaf5   : > { %v3902_v31 = vsel %vm1128_vm0, %v9198_v15, 0.0 }
 0xaf7   : > { %3903 = vadd.xlane.f32.xlu1 %v3902_v31 }
 0xb13   : > { %v3835_v16 = vpop.xlane.xlu0 %3834 }
 0xb14   : > { %v3853_v56 = vsub.f32 %v9119_v18, %v3835_v16 }
 0xb16   : > { %v3883_v37 = vmul.f32 1.442695, %v3853_v56 }
 0xb17   : > { %v3829_v62 = vpop.xlane.xlu0 %3828  ;;  %v3838_v47 = vpop.xlane.xlu1 %3837 }
 0xb18   : > { %7425 = vpow2.f32 %v3883_v37  ;;  %v3851_v51 = vsub.f32 %v9122_v17, %v3829_v62  ;;  %v3854_v6 = vsub.f32 %v9125_v7, %v3838_v47 }
 0xb1a   : > { %v3879_v25 = vmul.f32 1.442695, %v3851_v51  ;;  %v3885_v61 = vmul.f32 1.442695, %v3854_v6 }
 0xb1b   : > { %v4039_v27 = vpop.permute.xlu0 %4038  ;;  %v3832_v34 = vpop.xlane.xlu1 %3831 }
 0xb1c   : > { %7427 = vpow2.f32 %v3879_v25  ;;  %v3852_v59 = vsub.f32 %v9130_v60, %v3832_v34  ;;  %6996 = vmatprep.subr.bf16.mxu1 %v4039_v27 }
 0xb1d   : > { %6997 = vmatpush3.bf16.msra.mxu1 %v4039_v27  ;;  %7429 = vpow2.f32 %v3885_v61 }
 0xb1e   : > { %v3881_v38 = vmul.f32 1.442695, %v3852_v59 }
 0xb1f   : > { %v4037_v18 = vpop.permute.xlu1 %4036 }
 0xb20   : > { %7431 = vpow2.f32 %v3881_v38  ;;  %6998 = vmatprep.subr.bf16.mxu1 %v4037_v18 }
 0xb21   : > { %6999 = vmatpush3.bf16.msra.mxu1 %v4037_v18 }
 0xb25   : > { %v9206_v8 = vpop.eup %7425 }
 0xb26   : > { %v3929_v17 = vsel %vm1128_vm0, %v9206_v8, 0.0 }
 0xb27   : > { %3930 = vadd.xlane.f32.xlu0 %v3929_v17 }
 0xb29   : > { %v9210_v7 = vpop.eup %7427 }
 0xb2a   : > { %v3923_v4 = vsel %vm1128_vm0, %v9210_v7, 0.0  ;;  %v9214_v60 = vpop.eup %7429 }
 0xb2b   : > { %3924 = vadd.xlane.f32.xlu1 %v3923_v4  ;;  %v3932_v39 = vsel %vm1128_vm0, %v9214_v60, 0.0 }
 0xb2d   : > { %v9216_v14 = vpop.eup %7431 }
 0xb2e   : > { %v3926_v29 = vsel %vm1128_vm0, %v9216_v14, 0.0 }
 0xb2f   : > { %3933 = vadd.xlane.f32.xlu1 %v3932_v39  ;;  %3927 = vadd.xlane.f32.xlu0 %v3926_v29 }
 0xb40   : > { %4097 = vrot.lane.b32.xlu1 %v8057_v53, %s7637_s15 }
 0xb44   : > { %4160 = vrot.lane.b32.xlu1 %v8195_v50, %s7637_s15 }
 0xb45   : > { %4099 = vrot.lane.b32.xlu0 %v8166_v30, %s7637_s15 }
 0xb48   : > { %4158 = vrot.lane.b32.xlu1 %v8089_v52, %s7637_s15 }
 0xb49   : > { %2601 = vrot.lane.b32.xlu0 %v8729_v19, %s7637_s15 }
 0xb4c   : > { %2603 = vrot.lane.b32.xlu1 %v8733_v58, %s7637_s15 }
 0xb4d   : > { %2605 = vrot.lane.b32.xlu0 %v8727_v35, %s7637_s15  ;;  %v10617_v35 = vld [vmem:[#allocation22_spill] sm:$0xff] }
 0xb50   : > { %2607 = vrot.lane.b32.xlu1 %v8731_v9, %s7637_s15 }
 0xb51   : > { %3418 = vrot.lane.b32.xlu0 %v9024_v13, %s7636_s14 }
 0xb54   : > { %3420 = vrot.lane.b32.xlu1 %v9028_v42, %s7636_s14 }
 0xb55   : > { %3422 = vrot.lane.b32.xlu0 %v9022_v28, %s7636_s14 }
 0xb58   : > { %3424 = vrot.lane.b32.xlu1 %v9026_v55, %s7636_s14  ;;  %v3895_v53 = vpop.xlane.xlu0 %3894 }
 0xb59   : > { %2609 = vrot.lane.b32.xlu0 %v8753_v63, %s7637_s15 }
 0xb5c   : > { %2611 = vrot.lane.b32.xlu1 %v8769_v5, %s7637_s15  ;;  %v3889_v52 = vpop.xlane.xlu0 %3888 }
 0xb5d   : > { %2613 = vrot.lane.b32.xlu0 %v8743_v3, %s7637_s15 }
 0xb60   : > { %2615 = vrot.lane.b32.xlu1 %v8763_v23, %s7637_s15  ;;  %v3898_v30 = vpop.xlane.xlu1 %3897 }
 0xb61   : > { %3426 = vrot.lane.b32.xlu0 %v9048_v40, %s7636_s14  ;;  %7433 = vrcp.f32 %v3898_v30 }
 0xb62   : > { %7435 = vrcp.f32 %v3889_v52 }
 0xb63   : > { %7437 = vrcp.f32 %v3895_v53 }
 0xb64   : > { %3428 = vrot.lane.b32.xlu1 %v9064_v54, %s7636_s14  ;;  %v3892_v50 = vpop.xlane.xlu1 %3891 }
 0xb65   : > { %3430 = vrot.lane.b32.xlu0 %v9038_v33, %s7636_s14  ;;  %7439 = vrcp.f32 %v3892_v50 }
 0xb68   : > { %3432 = vrot.lane.b32.xlu1 %v9058_v0, %s7636_s14 }
 0xb69   : > { %2617 = vrot.lane.b32.xlu0 %v8737_v20, %s7637_s15 }
 0xb6c   : > { %2619 = vrot.lane.b32.xlu1 %v10617_v35, %s7637_s15  ;;  %v3919_v58 = vpop.xlane.xlu0 %3918 }
 0xb6e   : > { %v7434_v19 = vpop.eup %7433 }
 0xb6f   : > { %v7436_v9 = vpop.eup %7435  ;;  %v3954_v5 = vmul.f32 %v7434_v19, %v9157_v48 }
 0xb70   : > { %v3913_v3 = vpop.xlane.xlu1 %3912  ;;  %v7438_v63 = vpop.eup %7437  ;;  %v3951_v28 = vmul.f32 %v7436_v9, %v9151_v26 }
 0xb71   : > { %7441 = vrcp.f32 %v3913_v3  ;;  %v3953_v42 = vmul.f32 %v7438_v63, %v9146_v49 }
 0xb72   : > { %v7440_v23 = vpop.eup %7439 }
 0xb73   : > { %v3952_v13 = vmul.f32 %v7440_v23, %v9161_v41  ;;  %v3968_v33 = vpack.c.bf16 %v3954_v5, %v3953_v42 }
 0xb74   : > { %v3916_v55 = vpop.xlane.xlu0 %3915  ;;  %v3922_v40 = vpop.xlane.xlu1 %3921 }
 0xb75   : > { %7443 = vrcp.f32 %v3916_v55  ;;  %v3967_v20 = vpack.c.bf16 %v3952_v13, %v3951_v28 }
 0xb77   : > { %6992 = vmatprep.mubr.msk.bf16.mxu0 %vm1128_vm0, %v3967_v20 }
 0xb78   : > { %v3907_v0 = vpop.xlane.xlu0 %3906  ;;  %6993 = vmatmul.mubr.msk.bf16.vlgmr.msra.gmra.mxu0 %vm1128_vm0, %v3968_v33 }
 0xb7c   : > { %v3910_v54 = vpop.xlane.xlu1 %3909  ;;  %v3901_v31 = vpop.xlane.xlu0 %3900 }
 0xb7d   : > { %7445 = vrcp.f32 %v3910_v54 }
 0xb7e   : > { %7447 = vrcp.f32 %v3901_v31  ;;  %v7442_v48 = vpop.eup %7441 }
 0xb7f   : > { %7449 = vrcp.f32 %v3907_v0  ;;  %v3959_v49 = vmul.f32 %v7442_v48, %v9174_v44 }
 0xb80   : > { %v3904_v26 = vpop.xlane.xlu1 %3903 }
 0xb81   : > { %7451 = vrcp.f32 %v3904_v26 }
 0xb82   : > { %v7444_v41 = vpop.eup %7443  ;;  %7453 = vrcp.f32 %v3922_v40 }
 0xb83   : > { %v3960_v16 = vmul.f32 %v7444_v41, %v9180_v22  ;;  %7455 = vrcp.f32 %v3919_v58  ;;  %v7129_v41 = vld [vmem:[%s10541_s5 + $0x38] sm:$0xff]  }
 0xb85   : > { %v3971_v56 = vpack.c.bf16 %v3960_v16, %v3959_v49  ;;  %v7130_v49 = vld [vmem:[%s10541_s5 + $0x30] sm:$0xff]   ;;  %v7131_v16 = vld [vmem:[%s10541_s5 + $0x28] sm:$0xff]  }
 0xb87   : > { %7008 = vmatprep.mubr.msk.bf16.mxu0 %vm1128_vm0, %v3971_v56  ;;  %v7132_v56 = vld [vmem:[%s10541_s5 + $0x20] sm:$0xff]  }
 0xb8a   : > { %v7446_v37 = vpop.eup %7445 }
 0xb8b   : > { %v7448_v62 = vpop.eup %7447  ;;  %v3958_v6 = vmul.f32 %v7446_v37, %v9192_v46  ;;  %v7133_v37 = vld [vmem:[%s10541_s5 + $0x18] sm:$0xff]  }
 0xb8c   : > { %v7450_v47 = vpop.eup %7449  ;;  %v3955_v25 = vmul.f32 %v7448_v62, %v9190_v36  ;;  %v7134_v62 = vld [vmem:[%s10541_s5 + $0x10] sm:$0xff]  }
 0xb8d   : > { %v3957_v27 = vmul.f32 %v7450_v47, %v9186_v1  ;;  %v7135_v47 = vld [vmem:[%s10541_s5 + $0x8] sm:$0xff]  }
 0xb8e   : > { %v7452_v51 = vpop.eup %7451 }
 0xb8f   : > { %v3956_v61 = vmul.f32 %v7452_v51, %v9198_v15  ;;  %v3970_v59 = vpack.c.bf16 %v3958_v6, %v3957_v27  ;;  %v7454_v36 = vpop.eup %7453  ;;  %v7136_v6 = vld [vmem:[%s10541_s5] sm:$0xff]  }
 0xb90   : > { %v7456_v1 = vpop.eup %7455  ;;  %v3962_v17 = vmul.f32 %v7454_v36, %v9178_v2 }
 0xb91   : > { %v3969_v34 = vpack.c.bf16 %v3956_v61, %v3955_v25  ;;  %v3961_v29 = vmul.f32 %v7456_v1, %v9169_v10 }
 0xb93   : > { %7000 = vmatprep.mubr.msk.bf16.mxu1 %vm1128_vm0, %v3969_v34  ;;  %v3972_v53 = vpack.c.bf16 %v3962_v17, %v3961_v29  ;;  %v10619_v34 = vld [vmem:[#allocation20_spill] sm:$0xff]  ;;  %v10624_v17 = vld [vmem:[#allocation25_spill] sm:$0xff] }
 0xb94   : > { %7001 = vmatmul.mubr.msk.bf16.vlgmr.msra.gmra.mxu1 %vm1128_vm0, %v3970_v59  ;;  %v10620_v59 = vld [vmem:[#allocation21_spill] sm:$0xff] }
 0xbb0   : > { %v3931_v44 = vpop.xlane.xlu0 %3930 }
 0xbb4   : > { %v3925_v22 = vpop.xlane.xlu1 %3924 }
 0xbb5   : > { %7457 = vrcp.f32 %v3925_v22 }
 0xbb6   : > { %7459 = vrcp.f32 %v3931_v44 }
 0xbb8   : > { %v3928_v38 = vpop.xlane.xlu0 %3927  ;;  %v3934_v46 = vpop.xlane.xlu1 %3933 }
 0xbb9   : > { %7461 = vrcp.f32 %v3928_v38 }
 0xbba   : > { %7463 = vrcp.f32 %v3934_v46 }
 0xbbc   : > { %v4100_v15 = vpop.permute.xlu0 %4099  ;;  %v4098_v18 = vpop.permute.xlu1 %4097 }
 0xbbd   : > { %7004 = vmatprep.subr.bf16.mxu0 %v4100_v15 }
 0xbbe   : > { %7005 = vmatpush3.bf16.msra.mxu0 %v4100_v15 }
 0xbbf   : > { %7006 = vmatprep.subr.bf16.mxu0 %v4098_v18 }
 0xbc0   : > { %v2602_v4 = vpop.permute.xlu0 %2601  ;;  %v4161_v39 = vpop.permute.xlu1 %4160 }
 0xbc1   : > { %2650 = vst.msk [vmem:[#allocation2] sm:$0xff] %vm2649_vm2, %v2602_v4  ;;  %7012 = vmatprep.subr.bf16.mxu1 %v4161_v39 }
 0xbc2   : > { %7007 = vmatpush3.bf16.msra.mxu0 %v4098_v18  ;;  %7013 = vmatpush3.bf16.msra.mxu1 %v4161_v39  ;;  %v7458_v52 = vpop.eup %7457  ;;  %v10621_v18 = vld [vmem:[#allocation24_spill] sm:$0xff] }
 0xbc3   : > { %v7460_v35 = vpop.eup %7459  ;;  %v3963_v9 = vmul.f32 %v7458_v52, %v9210_v7  ;;  %7020 = vmatprep.subr.bf16.mxu0 %v7129_v41 }
 0xbc4   : > { %v2606_v30 = vpop.permute.xlu0 %2605  ;;  %v4159_v50 = vpop.permute.xlu1 %4158  ;;  %v3965_v63 = vmul.f32 %v7460_v35, %v9206_v8 }
 0xbc5   : > { %2652 = vst.msk [vmem:[#allocation2 + $0x10] sm:$0xff] %vm2649_vm2, %v2606_v30  ;;  %7009 = vmatmul.mubr.msk.bf16.vlgmr.msra.gmra.mxu0 %vm1128_vm0, %v3972_v53  ;;  %7014 = vmatprep.subr.bf16.mxu1 %v4159_v50 }
 0xbc6   : > { %v7462_v2 = vpop.eup %7461  ;;  %7015 = vmatpush3.bf16.msra.mxu1 %v4159_v50  ;;  %7021 = vmatpush3.bf16.msra.mxu0 %v7129_v41 }
 0xbc7   : > { %v7464_v19 = vpop.eup %7463  ;;  %v3964_v10 = vmul.f32 %v7462_v2, %v9216_v14  ;;  %v10618_v14 = vmov 0   ;;  %7022 = vmatprep.subr.bf16.mxu0 %v7130_v49 }
 0xbc8   : > { %v3419_v58 = vpop.permute.xlu0 %3418  ;;  %v2604_v3 = vpop.permute.xlu1 %2603  ;;  %v3966_v23 = vmul.f32 %v7464_v19, %v9214_v60 }
 0xbc9   : > { %3467 = vst.msk [vmem:[#allocation2] sm:$0xff] %vm3466_vm3, %v3419_v58  ;;  %v3973_v5 = vpack.c.bf16 %v3964_v10, %v3963_v9 }
 0xbca   : > { %2651 = vst.msk [vmem:[#allocation2 + $0x8] sm:$0xff] %vm2649_vm2, %v2604_v3  ;;  %v3974_v28 = vpack.c.bf16 %v3966_v23, %v3965_v63  ;;  %7023 = vmatpush3.bf16.msra.mxu0 %v7130_v49 }
 0xbcb   : > { %7016 = vmatprep.mubr.msk.bf16.mxu1 %vm1128_vm0, %v3973_v5  ;;  %7024 = vmatprep.subr.bf16.mxu0 %v7131_v16 }
 0xbcc   : > { %v3423_v13 = vpop.permute.xlu0 %3422  ;;  %7017 = vmatmul.mubr.msk.bf16.vlgmr.msra.gmra.mxu1 %vm1128_vm0, %v3974_v28  ;;  %v2608_v7 = vpop.permute.xlu1 %2607 }
 0xbcd   : > { %3469 = vst.msk [vmem:[#allocation2 + $0x10] sm:$0xff] %vm3466_vm3, %v3423_v13  ;;  %4894 = vmatprep.mubr.bf16.mxu1 %v10618_v14 }
 0xbce   : > { %2653 = vst.msk [vmem:[#allocation2 + $0x18] sm:$0xff] %vm2649_vm2, %v2608_v7  ;;  %7025 = vmatpush3.bf16.msra.mxu0 %v7131_v16 }
 0xbcf   : > { %7026 = vmatprep.subr.bf16.mxu0 %v7132_v56 }
 0xbd0   : > { %v2610_v8 = vpop.permute.xlu0 %2609  ;;  %v3421_v60 = vpop.permute.xlu1 %3420 }
 0xbd1   : > { %2654 = vst.msk [vmem:[#allocation2 + $0x20] sm:$0xff] %vm2649_vm2, %v2610_v8 }
 0xbd2   : > { %3468 = vst.msk [vmem:[#allocation2 + $0x8] sm:$0xff] %vm3466_vm3, %v3421_v60  ;;  %7027 = vmatpush3.bf16.msra.mxu0 %v7132_v56 }
 0xbd3   : > { %7028 = vmatprep.subr.bf16.mxu0 %v7133_v37 }
 0xbd4   : > { %v2614_v55 = vpop.permute.xlu0 %2613  ;;  %v3425_v42 = vpop.permute.xlu1 %3424 }
 0xbd5   : > { %2656 = vst.msk [vmem:[#allocation2 + $0x30] sm:$0xff] %vm2649_vm2, %v2614_v55 }
 0xbd6   : > { %3470 = vst.msk [vmem:[#allocation2 + $0x18] sm:$0xff] %vm3466_vm3, %v3425_v42  ;;  %7029 = vmatpush3.bf16.msra.mxu0 %v7133_v37 }
 0xbd7   : > { %7030 = vmatprep.subr.bf16.mxu0 %v7134_v62 }
 0xbd8   : > { %v3427_v20 = vpop.permute.xlu0 %3426  ;;  %v2612_v33 = vpop.permute.xlu1 %2611 }
 0xbd9   : > { %3471 = vst.msk [vmem:[#allocation2 + $0x20] sm:$0xff] %vm3466_vm3, %v3427_v20 }
 0xbda   : > { %2655 = vst.msk [vmem:[#allocation2 + $0x28] sm:$0xff] %vm2649_vm2, %v2612_v33  ;;  %7031 = vmatpush3.bf16.msra.mxu0 %v7134_v62 }
 0xbdb   : > { %7032 = vmatprep.subr.bf16.mxu0 %v7135_v47 }
 0xbdc   : > { %v3431_v40 = vpop.permute.xlu0 %3430  ;;  %v2616_v0 = vpop.permute.xlu1 %2615 }
 0xbdd   : > { %3473 = vst.msk [vmem:[#allocation2 + $0x30] sm:$0xff] %vm3466_vm3, %v3431_v40 }
 0xbde   : > { %2657 = vst.msk [vmem:[#allocation2 + $0x38] sm:$0xff] %vm2649_vm2, %v2616_v0  ;;  %7033 = vmatpush3.bf16.msra.mxu0 %v7135_v47 }
 0xbdf   : > { %7034 = vmatprep.subr.bf16.mxu0 %v7136_v6 }
 0xbe0   : > { %v2618_v54 = vpop.permute.xlu0 %2617  ;;  %v3429_v31 = vpop.permute.xlu1 %3428 }
 0xbe1   : > { %2658 = vst.msk [vmem:[#allocation2 + $0x40] sm:$0xff] %vm2649_vm2, %v2618_v54 }
 0xbe2   : > { %3472 = vst.msk [vmem:[#allocation2 + $0x28] sm:$0xff] %vm3466_vm3, %v3429_v31  ;;  %7035 = vmatpush3.bf16.msra.mxu0 %v7136_v6 }
 0xbe4   : > { %v3433_v48 = vpop.permute.xlu1 %3432 }
 0xbe5   : > { %3474 = vst.msk [vmem:[#allocation2 + $0x38] sm:$0xff] %vm3466_vm3, %v3433_v48 }
 0xbe8   : > { %v2620_v26 = vpop.permute.xlu1 %2619 }
 0xbe9   : > { %2659 = vst.msk [vmem:[#allocation2 + $0x48] sm:$0xff] %vm2649_vm2, %v2620_v26 }
 0xc38   : > { %v6994_v51 = vpop.f32.mrf.mxu0 }
 0xc39   : > { %4239 = vrot.lane.b32.xlu0 %v6994_v51, %s7635_s30 }
 0xc3a   : > { %v4021_v25 = vpop.f32.mrf.mxu0 }
 0xc3c   : > { %v6995_v61 = vpop.f32.mrf.mxu0 }
 0xc3d   : > { %4235 = vrot.lane.b32.xlu0 %v4021_v25, %s7635_s30  ;;  %4241 = vrot.lane.b32.xlu1 %v6995_v61, %s7635_s30 }
 0xc3e   : > { %v4024_v27 = vpop.f32.mrf.mxu0 }
 0xc41   : > { %2621 = vrot.lane.b32.xlu0 %v10619_v34, %s7637_s15  ;;  %4237 = vrot.lane.b32.xlu1 %v4024_v27, %s7635_s30 }
 0xc45   : > { %3434 = vrot.lane.b32.xlu0 %v9032_v57, %s7636_s14  ;;  %2623 = vrot.lane.b32.xlu1 %v10620_v59, %s7637_s15 }
 0xc49   : > { %3436 = vrot.lane.b32.xlu1 %v9036_v45, %s7636_s14 }
 0xc54   : > { %v7002_v44 = vpop.f32.mrf.mxu1 }
 0xc55   : > { %4247 = vrot.lane.b32.xlu0 %v7002_v44, %s7635_s30 }
 0xc56   : > { %v4082_v22 = vpop.f32.mrf.mxu1 }
 0xc58   : > { %v7003_v38 = vpop.f32.mrf.mxu1 }
 0xc59   : > { %4243 = vrot.lane.b32.xlu0 %v4082_v22, %s7635_s30  ;;  %4249 = vrot.lane.b32.xlu1 %v7003_v38, %s7635_s30 }
 0xc5a   : > { %v4085_v46 = vpop.f32.mrf.mxu1 }
 0xc5d   : > { %3438 = vrot.lane.b32.xlu0 %v9030_v21, %s7636_s14  ;;  %4245 = vrot.lane.b32.xlu1 %v4085_v46, %s7635_s30  ;;  %v10622_v21 = vld [vmem:[#allocation23_spill] sm:$0xff] }
 0xc61   : > { %3440 = vrot.lane.b32.xlu1 %v9034_v43, %s7636_s14  ;;  %v10623_v43 = vld [vmem:[#allocation26_spill] sm:$0xff] }
 0xc85   : > { %v7010_v57 = vpop.f32.mrf.mxu0 }
 0xc87   : > { %v4143_v45 = vpop.f32.mrf.mxu0 }
 0xc88   : > { %4251 = vrot.lane.b32.xlu0 %v4143_v45, %s7635_s30 }
 0xc89   : > { %v7011_v36 = vpop.f32.mrf.mxu0 }
 0xc8b   : > { %v4146_v15 = vpop.f32.mrf.mxu0 }
 0xc8c   : > { %4255 = vrot.lane.b32.xlu0 %v7010_v57, %s7635_s30  ;;  %4253 = vrot.lane.b32.xlu1 %v4146_v15, %s7635_s30  ;;  %v7018_v1 = vpop.f32.mrf.mxu1 }
 0xc8e   : > { %v4204_v4 = vpop.f32.mrf.mxu1 }
 0xc90   : > { %2625 = vrot.lane.b32.xlu0 %v10621_v18, %s7637_s15  ;;  %4257 = vrot.lane.b32.xlu1 %v7011_v36, %s7635_s30  ;;  %v7019_v39 = vpop.f32.mrf.mxu1 }
 0xc92   : > { %v4207_v29 = vpop.f32.mrf.mxu1 }
 0xc94   : > { %2629 = vrot.lane.b32.xlu0 %v10622_v21, %s7637_s15  ;;  %2627 = vrot.lane.b32.xlu1 %v10623_v43, %s7637_s15  ;;  %v10625_v21 = vld [vmem:[#allocation3_spill] sm:$0xff] }
 0xc98   : > { %3442 = vrot.lane.b32.xlu0 %v9068_v24, %s7636_s14  ;;  %2631 = vrot.lane.b32.xlu1 %v10624_v17, %s7637_s15 }
 0xc9c   : > { %3446 = vrot.lane.b32.xlu0 %v9066_v11, %s7636_s14  ;;  %3444 = vrot.lane.b32.xlu1 %v9083_v32, %s7636_s14 }
 0xca0   : > { %3448 = vrot.lane.b32.xlu1 %v9073_v12, %s7636_s14  ;;  %4259 = vrot.lane.b32.xlu0 %v4204_v4, %s7635_s30  ;;  %v10626_v4 = vld [vmem:[#allocation4_spill] sm:$0xff] }
 0xca4   : > { %4263 = vrot.lane.b32.xlu0 %v7018_v1, %s7635_s30  ;;  %4261 = vrot.lane.b32.xlu1 %v4207_v29, %s7635_s30  ;;  %v6350_v1 = vld [vmem:[%s10542_s6] ss:$0 sm:$0xff] }
 0xca8   : > { %4265 = vrot.lane.b32.xlu1 %v7019_v39, %s7635_s30 }
 0xcab   : > { %v4240_v24 = vpop.permute.xlu0 %4239 }
 0xcac   : > { %4286 = vst.msk [vmem:[#allocation2 + $0x10] sm:$0xff] %vm4283_vm4, %v4240_v24 }
 0xcaf   : > { %v4236_v11 = vpop.permute.xlu0 %4235  ;;  %v4242_v53 = vpop.permute.xlu1 %4241 }
 0xcb0   : > { %4284 = vst.msk [vmem:[#allocation2] sm:$0xff] %vm4283_vm4, %v4236_v11  ;;  %4287 = vst.msk [vmem:[#allocation2 + $0x18] sm:$0xff] %vm4283_vm4, %v4242_v53  ;;  %v10627_v11 = vld [vmem:[#allocation5_spill] sm:$0xff] }
 0xcb3   : > { %v2622_v12 = vpop.permute.xlu0 %2621  ;;  %v4238_v32 = vpop.permute.xlu1 %4237  ;;  %v4302_v10 = vld [vmem:[#allocation2 + $0x10] sm:$0xff] }
 0xcb4   : > { %2660 = vst.msk [vmem:[#allocation2 + $0x50] sm:$0xff] %vm2649_vm2, %v2622_v12 }
 0xcb5   : > { %4285 = vst.msk [vmem:[#allocation2 + $0x8] sm:$0xff] %vm4283_vm4, %v4238_v32  ;;  %v10628_v32 = vld [vmem:[#allocation6_spill] sm:$0xff] }
 0xcb7   : > { %v3435_v52 = vpop.permute.xlu0 %3434  ;;  %v2624_v30 = vpop.permute.xlu1 %2623  ;;  %v4303_v50 = vld [vmem:[#allocation2 + $0x18] sm:$0xff]  ;;  %v4300_v2 = vld [vmem:[#allocation2] sm:$0xff] }
 0xcb8   : > { %3475 = vst.msk [vmem:[#allocation2 + $0x40] sm:$0xff] %vm3466_vm3, %v3435_v52  ;;  %v4317_v58 = vpack.c.bf16 %v4303_v50, %v4302_v10 }
 0xcb9   : > { %2661 = vst.msk [vmem:[#allocation2 + $0x58] sm:$0xff] %vm2649_vm2, %v2624_v30 }
 0xcbb   : > { %v3437_v35 = vpop.permute.xlu1 %3436 }
 0xcbc   : > { %v4301_v19 = vld [vmem:[#allocation2 + $0x8] sm:$0xff]  ;;  %3476 = vst.msk [vmem:[#allocation2 + $0x48] sm:$0xff] %vm3466_vm3, %v3437_v35 }
 0xcbd   : > { %v4316_v9 = vpack.c.bf16 %v4301_v19, %v4300_v2  ;;  %v10630_v19 = vld [vmem:[#allocation7_spill] sm:$0xff] }
 0xcbf   : > { %7036 = vmatprep.mubr.bf16.mxu0 %v4316_v9 }
 0xcc0   : > { %7037 = vmatmul.mubr.bf16.vlgmr.msra.gmra.mxu0 %v4317_v58  ;;  %v10631_v58 = vld [vmem:[#allocation9_spill] sm:$0xff] }
 0xcc7   : > { %v4248_v3 = vpop.permute.xlu0 %4247 }
 0xcc8   : > { %4290 = vst.msk [vmem:[#allocation2 + $0x30] sm:$0xff] %vm4283_vm4, %v4248_v3 }
 0xccb   : > { %v4244_v63 = vpop.permute.xlu0 %4243  ;;  %v4250_v23 = vpop.permute.xlu1 %4249 }
 0xccc   : > { %4288 = vst.msk [vmem:[#allocation2 + $0x20] sm:$0xff] %vm4283_vm4, %v4244_v63  ;;  %4291 = vst.msk [vmem:[#allocation2 + $0x38] sm:$0xff] %vm4283_vm4, %v4250_v23 }
 0xccf   : > { %v3439_v5 = vpop.permute.xlu0 %3438  ;;  %v4246_v28 = vpop.permute.xlu1 %4245  ;;  %v4306_v42 = vld [vmem:[#allocation2 + $0x30] sm:$0xff] }
 0xcd0   : > { %3477 = vst.msk [vmem:[#allocation2 + $0x50] sm:$0xff] %vm3466_vm3, %v3439_v5  ;;  %v10633_v5 = vld [vmem:[#allocation8_spill] sm:$0xff] }
 0xcd1   : > { %4289 = vst.msk [vmem:[#allocation2 + $0x28] sm:$0xff] %vm4283_vm4, %v4246_v28 }
 0xcd3   : > { %v3441_v13 = vpop.permute.xlu1 %3440  ;;  %v4307_v7 = vld [vmem:[#allocation2 + $0x38] sm:$0xff]  ;;  %v4304_v8 = vld [vmem:[#allocation2 + $0x20] sm:$0xff] }
 0xcd4   : > { %3478 = vst.msk [vmem:[#allocation2 + $0x58] sm:$0xff] %vm3466_vm3, %v3441_v13  ;;  %v4319_v20 = vpack.c.bf16 %v4307_v7, %v4306_v42  ;;  %v10635_v7 = vld [vmem:[#allocation10_spill] sm:$0xff] }
 0xcd8   : > { %v4305_v60 = vld [vmem:[#allocation2 + $0x28] sm:$0xff] }
 0xcd9   : > { %v4318_v55 = vpack.c.bf16 %v4305_v60, %v4304_v8 }
 0xcdb   : > { %7040 = vmatprep.mubr.bf16.mxu0 %v4318_v55 }
 0xcdc   : > { %7041 = vmatmul.mubr.bf16.gmra.mxu0 %v4319_v20 }
 0xcfa   : > { %v4252_v33 = vpop.permute.xlu0 %4251 }
 0xcfb   : > { %4292 = vst.msk [vmem:[#allocation2 + $0x40] sm:$0xff] %vm4283_vm4, %v4252_v33  ;;  %v10638_v33 = vld [vmem:[#allocation11_spill] sm:$0xff] }
 0xcfe   : > { %v4256_v40 = vpop.permute.xlu0 %4255  ;;  %v4254_v0 = vpop.permute.xlu1 %4253 }
 0xcff   : > { %4294 = vst.msk [vmem:[#allocation2 + $0x50] sm:$0xff] %vm4283_vm4, %v4256_v40  ;;  %4293 = vst.msk [vmem:[#allocation2 + $0x48] sm:$0xff] %vm4283_vm4, %v4254_v0 }
 0xd02   : > { %v2626_v54 = vpop.permute.xlu0 %2625  ;;  %v4258_v31 = vpop.permute.xlu1 %4257  ;;  %v4308_v41 = vld [vmem:[#allocation2 + $0x40] sm:$0xff] }
 0xd03   : > { %2662 = vst.msk [vmem:[#allocation2 + $0x60] sm:$0xff] %vm2649_vm2, %v2626_v54  ;;  %v10639_v54 = vld [vmem:[#allocation13_spill] sm:$0xff] }
 0xd04   : > { %4295 = vst.msk [vmem:[#allocation2 + $0x58] sm:$0xff] %vm4283_vm4, %v4258_v31 }
 0xd06   : > { %v2630_v48 = vpop.permute.xlu0 %2629  ;;  %v2628_v26 = vpop.permute.xlu1 %2627  ;;  %v4309_v49 = vld [vmem:[#allocation2 + $0x48] sm:$0xff]  ;;  %v4310_v62 = vld [vmem:[#allocation2 + $0x50] sm:$0xff] }
 0xd07   : > { %2664 = vst.msk [vmem:[#allocation2 + $0x70] sm:$0xff] %vm2649_vm2, %v2630_v48  ;;  %2663 = vst.msk [vmem:[#allocation2 + $0x68] sm:$0xff] %vm2649_vm2, %v2628_v26  ;;  %v4320_v16 = vpack.c.bf16 %v4309_v49, %v4308_v41  ;;  %v10641_v41 = vld [vmem:[#allocation12_spill] sm:$0xff] }
 0xd09   : > { %7044 = vmatprep.mubr.bf16.mxu0 %v4320_v16 }
 0xd0a   : > { %v3443_v56 = vpop.permute.xlu0 %3442  ;;  %v2632_v37 = vpop.permute.xlu1 %2631 }
 0xd0b   : > { %v4311_v47 = vld [vmem:[#allocation2 + $0x58] sm:$0xff]  ;;  %3479 = vst.msk [vmem:[#allocation2 + $0x60] sm:$0xff] %vm3466_vm3, %v3443_v56 }
 0xd0c   : > { %2665 = vst.msk [vmem:[#allocation2 + $0x78] sm:$0xff] %vm2649_vm2, %v2632_v37  ;;  %v4321_v51 = vpack.c.bf16 %v4311_v47, %v4310_v62  ;;  %v10643_v56 = vld [vmem:[#allocation14_spill] sm:$0xff] }
 0xd0e   : > { %7045 = vmatmul.mubr.bf16.gmra.mxu0 %v4321_v51  ;;  %v3447_v6 = vpop.permute.xlu0 %3446  ;;  %v3445_v25 = vpop.permute.xlu1 %3444 }
 0xd0f   : > { %3481 = vst.msk [vmem:[#allocation2 + $0x70] sm:$0xff] %vm3466_vm3, %v3447_v6  ;;  %3480 = vst.msk [vmem:[#allocation2 + $0x68] sm:$0xff] %vm3466_vm3, %v3445_v25  ;;  %v10646_v25 = vld [vmem:[#allocation15_spill] sm:$0xff] }
 0xd12   : > { %v4260_v61 = vpop.permute.xlu0 %4259  ;;  %v3449_v27 = vpop.permute.xlu1 %3448 }
 0xd13   : > { %4296 = vst.msk [vmem:[#allocation2 + $0x60] sm:$0xff] %vm4283_vm4, %v4260_v61 }
 0xd14   : > { %3482 = vst.msk [vmem:[#allocation2 + $0x78] sm:$0xff] %vm3466_vm3, %v3449_v27 }
 0xd16   : > { %v4264_v34 = vpop.permute.xlu0 %4263  ;;  %v4262_v59 = vpop.permute.xlu1 %4261 }
 0xd17   : > { %4298 = vst.msk [vmem:[#allocation2 + $0x70] sm:$0xff] %vm4283_vm4, %v4264_v34  ;;  %4297 = vst.msk [vmem:[#allocation2 + $0x68] sm:$0xff] %vm4283_vm4, %v4262_v59  ;;  %v10647_v34 = vld [vmem:[#allocation17_spill] sm:$0xff] }
 0xd1a   : > { %v4266_v44 = vpop.permute.xlu1 %4265  ;;  %v4312_v22 = vld [vmem:[#allocation2 + $0x60] sm:$0xff] }
 0xd1b   : > { %4299 = vst.msk [vmem:[#allocation2 + $0x78] sm:$0xff] %vm4283_vm4, %v4266_v44 }
 0xd1e   : > { %v4313_v38 = vld [vmem:[#allocation2 + $0x68] sm:$0xff]  ;;  %v4314_v57 = vld [vmem:[#allocation2 + $0x70] sm:$0xff] }
 0xd1f   : > { %v4322_v46 = vpack.c.bf16 %v4313_v38, %v4312_v22  ;;  %v10649_v38 = vld [vmem:[#allocation16_spill] sm:$0xff] }
 0xd21   : > { %7048 = vmatprep.mubr.bf16.mxu0 %v4322_v46 }
 0xd22   : > { %v4315_v45 = vld [vmem:[#allocation2 + $0x78] sm:$0xff] }
 0xd23   : > { %v4323_v36 = vpack.c.bf16 %v4315_v45, %v4314_v57  ;;  %v10651_v45 = vld [vmem:[#allocation18_spill] sm:$0xff] }
 0xd25   : > { %7049 = vmatmul.mubr.bf16.gmra.mxu0 %v4323_v36 }
 0xd80   : > { %v7038_v15 = vpop.f32.mrf.mxu0 }
 0xd81   : > { %v4487_v39 = vadd.f32 %v7038_v15, %v10626_v4 }
 0xd82   : > { %v4422_v18 = vpop.f32.mrf.mxu0 }
 0xd83   : > { %v4485_v43 = vadd.f32 %v10625_v21, %v4422_v18  ;;  %v9416_v12 = vadd.f32 %v6350_v1, %v4487_v39  ;;  %v7137_v21 = vld [vmem:[%s10545_s9 + $0x70] ss:$8 sps:$4 sm:$0xff]  }
 0xd84   : > { %v7039_v17 = vpop.f32.mrf.mxu0 }
 0xd85   : > { %v9412_v29 = vadd.f32 %v6350_v1, %v4485_v43  ;;  %v4488_v52 = vadd.f32 %v7039_v17, %v10628_v32  ;;  %v7139_v43 = vld [vmem:[%s10545_s9 + $0x74] ss:$8 sps:$4 sm:$0xff]  }
 0xd86   : > { %v4425_v24 = vpop.f32.mrf.mxu0  ;;  %4862 = vmatprep.subr.bf16.mxu1 %v7139_v43 }
 0xd87   : > { %v4486_v53 = vadd.f32 %v10627_v11, %v4425_v24  ;;  %4526 = vadd.xlane.f32.xlu0 %v9412_v29  ;;  %v9423_v50 = vadd.f32 %v6350_v1, %v4488_v52  ;;  %4863 = vmatpush1.bf16.msra.mxu1 %v7137_v21  ;;  %v7158_v21 = vld [vmem:[%s10545_s9] ss:$8 sps:$4 sm:$0xff]  }
 0xd89   : > { %v9419_v30 = vadd.f32 %v6350_v1, %v4486_v53  ;;  %10629 = vst [vmem:[#allocation22_spill] sm:$0xff] %v9423_v50 }
 0xd8b   : > { %4530 = vadd.xlane.f32.xlu0 %v9416_v12  ;;  %4528 = vadd.xlane.f32.xlu1 %v9419_v30 }
 0xd8f   : > { %4532 = vadd.xlane.f32.xlu0 %v9423_v50 }
 0xd9c   : > { %v7042_v35 = vpop.f32.mrf.mxu0 }
 0xd9d   : > { %v4491_v3 = vadd.f32 %v7042_v35, %v10631_v58 }
 0xd9e   : > { %v4438_v2 = vpop.f32.mrf.mxu0 }
 0xd9f   : > { %v4489_v9 = vadd.f32 %v10630_v19, %v4438_v2  ;;  %v9432_v13 = vadd.f32 %v6350_v1, %v4491_v3 }
 0xda0   : > { %v7043_v10 = vpop.f32.mrf.mxu0 }
 0xda1   : > { %v9428_v63 = vadd.f32 %v6350_v1, %v4489_v9  ;;  %10634 = vst [vmem:[#allocation21_spill] sm:$0xff] %v9432_v13  ;;  %v4492_v8 = vadd.f32 %v7043_v10, %v10635_v7  ;;  %v7143_v7 = vld [vmem:[%s10545_s9 + $0x50] ss:$8 sps:$4 sm:$0xff]  }
 0xda2   : > { %v4441_v23 = vpop.f32.mrf.mxu0 }
 0xda3   : > { %10632 = vst [vmem:[#allocation20_spill] sm:$0xff] %v9428_v63  ;;  %v4490_v28 = vadd.f32 %v10633_v5, %v4441_v23  ;;  %4534 = vadd.xlane.f32.xlu0 %v9428_v63  ;;  %v9439_v55 = vadd.f32 %v6350_v1, %v4492_v8  ;;  %v7142_v23 = vld [vmem:[%s10545_s9 + $0x64] ss:$8 sps:$4 sm:$0xff]   ;;  %v7140_v5 = vld [vmem:[%s10545_s9 + $0x60] ss:$8 sps:$4 sm:$0xff]  }
 0xda4   : > { %4864 = vmatprep.subr.bf16.mxu1 %v7142_v23  ;;  %v7148_v8 = vld [vmem:[%s10545_s9 + $0x44] ss:$8 sps:$4 sm:$0xff]  }
 0xda5   : > { %v9435_v60 = vadd.f32 %v6350_v1, %v4490_v28  ;;  %10637 = vst [vmem:[#allocation23_spill] sm:$0xff] %v9439_v55  ;;  %4865 = vmatpush1.bf16.msra.mxu1 %v7140_v5  ;;  %v7145_v28 = vld [vmem:[%s10545_s9 + $0x54] ss:$8 sps:$4 sm:$0xff]  }
 0xda6   : > { %4866 = vmatprep.subr.bf16.mxu1 %v7145_v28 }
 0xda7   : > { %10636 = vst [vmem:[#allocation24_spill] sm:$0xff] %v9435_v60  ;;  %4538 = vadd.xlane.f32.xlu0 %v9432_v13  ;;  %4536 = vadd.xlane.f32.xlu1 %v9435_v60 }
 0xda9   : > { %4867 = vmatpush1.bf16.msra.mxu1 %v7143_v7 }
 0xdaa   : > { %4868 = vmatprep.subr.bf16.mxu1 %v7148_v8 }
 0xdab   : > { %4540 = vadd.xlane.f32.xlu1 %v9439_v55 }
 0xdce   : > { %v7046_v42 = vpop.f32.mrf.mxu0 }
 0xdcf   : > { %v4495_v31 = vadd.f32 %v7046_v42, %v10639_v54 }
 0xdd0   : > { %v4454_v20 = vpop.f32.mrf.mxu0 }
 0xdd1   : > { %v4493_v40 = vadd.f32 %v10638_v33, %v4454_v20  ;;  %v9448_v16 = vadd.f32 %v6350_v1, %v4495_v31  ;;  %v7146_v20 = vld [vmem:[%s10545_s9 + $0x40] ss:$8 sps:$4 sm:$0xff]   ;;  %v7154_v31 = vld [vmem:[%s10545_s9 + $0x24] ss:$8 sps:$4 sm:$0xff]  }
 0xdd2   : > { %v7047_v0 = vpop.f32.mrf.mxu0  ;;  %4869 = vmatpush1.bf16.msra.mxu1 %v7146_v20 }
 0xdd3   : > { %v9444_v48 = vadd.f32 %v6350_v1, %v4493_v40  ;;  %10642 = vst [vmem:[#allocation25_spill] sm:$0xff] %v9448_v16  ;;  %v4496_v37 = vadd.f32 %v7047_v0, %v10643_v56  ;;  %v7151_v40 = vld [vmem:[%s10545_s9 + $0x34] ss:$8 sps:$4 sm:$0xff]   ;;  %v7149_v0 = vld [vmem:[%s10545_s9 + $0x30] ss:$8 sps:$4 sm:$0xff]  }
 0xdd4   : > { %v4457_v26 = vpop.f32.mrf.mxu0  ;;  %4870 = vmatprep.subr.bf16.mxu1 %v7151_v40 }
 0xdd5   : > { %10640 = vst [vmem:[#allocation26_spill] sm:$0xff] %v9444_v48  ;;  %v4494_v49 = vadd.f32 %v10641_v41, %v4457_v26  ;;  %4542 = vadd.xlane.f32.xlu0 %v9444_v48  ;;  %v9455_v47 = vadd.f32 %v6350_v1, %v4496_v37 }
 0xdd6   : > { %4871 = vmatpush1.bf16.msra.mxu1 %v7149_v0 }
 0xdd7   : > { %v9451_v62 = vadd.f32 %v6350_v1, %v4494_v49  ;;  %10645 = vst [vmem:[#allocation4_spill] sm:$0xff] %v9455_v47  ;;  %4872 = vmatprep.subr.bf16.mxu1 %v7154_v31 }
 0xdd9   : > { %10644 = vst [vmem:[#allocation3_spill] sm:$0xff] %v9451_v62  ;;  %4546 = vadd.xlane.f32.xlu0 %v9448_v16  ;;  %4544 = vadd.xlane.f32.xlu1 %v9451_v62 }
 0xddd   : > { %4548 = vadd.xlane.f32.xlu1 %v9455_v47 }
 0xde5   : > { %v7050_v51 = vpop.f32.mrf.mxu0 }
 0xde6   : > { %v4499_v59 = vadd.f32 %v7050_v51, %v10647_v34  ;;  %v7152_v51 = vld [vmem:[%s10545_s9 + $0x20] ss:$8 sps:$4 sm:$0xff]  }
 0xde7   : > { %v4470_v6 = vpop.f32.mrf.mxu0  ;;  %4873 = vmatpush1.bf16.msra.mxu1 %v7152_v51 }
 0xde8   : > { %v4497_v61 = vadd.f32 %v10646_v25, %v4470_v6  ;;  %v9464_v57 = vadd.f32 %v6350_v1, %v4499_v59 }
 0xde9   : > { %v7051_v27 = vpop.f32.mrf.mxu0 }
 0xdea   : > { %v9460_v44 = vadd.f32 %v6350_v1, %v4497_v61  ;;  %10650 = vst [vmem:[#allocation6_spill] sm:$0xff] %v9464_v57  ;;  %v4500_v36 = vadd.f32 %v7051_v27, %v10651_v45  ;;  %v7157_v27 = vld [vmem:[%s10545_s9 + $0x14] ss:$8 sps:$4 sm:$0xff]  }
 0xdeb   : > { %v4473_v22 = vpop.f32.mrf.mxu0  ;;  %4874 = vmatprep.subr.bf16.mxu1 %v7157_v27 }
 0xdec   : > { %10648 = vst [vmem:[#allocation5_spill] sm:$0xff] %v9460_v44  ;;  %v4498_v46 = vadd.f32 %v10649_v38, %v4473_v22  ;;  %4550 = vadd.xlane.f32.xlu0 %v9460_v44  ;;  %v9471_v18 = vadd.f32 %v6350_v1, %v4500_v36  ;;  %v7155_v38 = vld [vmem:[%s10545_s9 + $0x10] ss:$8 sps:$4 sm:$0xff]   ;;  %v7160_v36 = vld [vmem:[%s10545_s9 + $0x4] ss:$8 sps:$4 sm:$0xff]  }
 0xded   : > { %4875 = vmatpush1.bf16.msra.mxu1 %v7155_v38 }
 0xdee   : > { %v9467_v15 = vadd.f32 %v6350_v1, %v4498_v46  ;;  %10653 = vst [vmem:[#allocation9_spill] sm:$0xff] %v9471_v18  ;;  %4876 = vmatprep.subr.bf16.mxu1 %v7160_v36 }
 0xdf0   : > { %10652 = vst [vmem:[#allocation7_spill] sm:$0xff] %v9467_v15  ;;  %4554 = vadd.xlane.f32.xlu0 %v9464_v57  ;;  %4552 = vadd.xlane.f32.xlu1 %v9467_v15 }
 0xdf1   : > { %4877 = vmatpush1.bf16.msra.mxu1 %v7158_v21 }
 0xdf4   : > { %4556 = vadd.xlane.f32.xlu1 %v9471_v18 }
 0xe10   : > { %v4527_v17 = vpop.xlane.xlu0 %4526 }
 0xe11   : > { %v4558_v4 = vmul.f32 0.0078125, %v4527_v17 }
 0xe13   : > { %v9481_v39 = vsub.f32 %v9412_v29, %v4558_v4 }
 0xe14   : > { %v4531_v24 = vpop.xlane.xlu0 %4530  ;;  %v4529_v1 = vpop.xlane.xlu1 %4528 }
 0xe15   : > { %v4560_v11 = vmul.f32 0.0078125, %v4531_v24  ;;  %v4559_v53 = vmul.f32 0.0078125, %v4529_v1  ;;  %v4590_v32 = vmul.f32 %v9481_v39, %v9481_v39 }
 0xe17   : > { %v9486_v52 = vsub.f32 %v9416_v12, %v4560_v11  ;;  %v9489_v35 = vsub.f32 %v9419_v30, %v4559_v53  ;;  %4606 = vadd.xlane.f32.xlu0 %v4590_v32 }
 0xe18   : > { %v4533_v2 = vpop.xlane.xlu0 %4532 }
 0xe19   : > { %v4561_v19 = vmul.f32 0.0078125, %v4533_v2  ;;  %v4592_v9 = vmul.f32 %v9486_v52, %v9486_v52  ;;  %v4591_v10 = vmul.f32 %v9489_v35, %v9489_v35 }
 0xe1b   : > { %v9496_v58 = vsub.f32 %v9423_v50, %v4561_v19  ;;  %4610 = vadd.xlane.f32.xlu0 %v4592_v9  ;;  %4608 = vadd.xlane.f32.xlu1 %v4591_v10 }
 0xe1d   : > { %v4593_v3 = vmul.f32 %v9496_v58, %v9496_v58 }
 0xe1f   : > { %4612 = vadd.xlane.f32.xlu1 %v4593_v3 }
 0xe2c   : > { %v4535_v42 = vpop.xlane.xlu0 %4534 }
 0xe2d   : > { %v4562_v33 = vmul.f32 0.0078125, %v4535_v42 }
 0xe2f   : > { %v9525_v54 = vsub.f32 %v9428_v63, %v4562_v33 }
 0xe30   : > { %v4539_v26 = vpop.xlane.xlu0 %4538  ;;  %v4537_v41 = vpop.xlane.xlu1 %4536 }
 0xe31   : > { %v4564_v49 = vmul.f32 0.0078125, %v4539_v26  ;;  %v4563_v56 = vmul.f32 0.0078125, %v4537_v41  ;;  %v4594_v37 = vmul.f32 %v9525_v54, %v9525_v54 }
 0xe33   : > { %v9536_v6 = vsub.f32 %v9432_v13, %v4564_v49  ;;  %v9539_v25 = vsub.f32 %v9435_v60, %v4563_v56  ;;  %4614 = vadd.xlane.f32.xlu0 %v4594_v37 }
 0xe34   : > { %v4541_v61 = vpop.xlane.xlu1 %4540 }
 0xe35   : > { %v4565_v34 = vmul.f32 0.0078125, %v4541_v61  ;;  %v4596_v59 = vmul.f32 %v9536_v6, %v9536_v6  ;;  %v4595_v22 = vmul.f32 %v9539_v25, %v9539_v25 }
 0xe37   : > { %v9552_v46 = vsub.f32 %v9439_v55, %v4565_v34  ;;  %4618 = vadd.xlane.f32.xlu0 %v4596_v59  ;;  %4616 = vadd.xlane.f32.xlu1 %v4595_v22 }
 0xe39   : > { %v4597_v45 = vmul.f32 %v9552_v46, %v9552_v46 }
 0xe3b   : > { %4620 = vadd.xlane.f32.xlu1 %v4597_v45 }
 0xe5e   : > { %v4543_v43 = vpop.xlane.xlu0 %4542 }
 0xe5f   : > { %v4566_v17 = vmul.f32 0.0078125, %v4543_v43 }
 0xe61   : > { %v9563_v4 = vsub.f32 %v9444_v48, %v4566_v17 }
 0xe62   : > { %v4547_v24 = vpop.xlane.xlu0 %4546  ;;  %v4545_v1 = vpop.xlane.xlu1 %4544 }
 0xe63   : > { %v4568_v11 = vmul.f32 0.0078125, %v4547_v24  ;;  %v4567_v53 = vmul.f32 0.0078125, %v4545_v1  ;;  %v4598_v32 = vmul.f32 %v9563_v4, %v9563_v4 }
 0xe65   : > { %v9568_v2 = vsub.f32 %v9448_v16, %v4568_v11  ;;  %v9571_v19 = vsub.f32 %v9451_v62, %v4567_v53  ;;  %4622 = vadd.xlane.f32.xlu0 %v4598_v32 }
 0xe66   : > { %v4549_v9 = vpop.xlane.xlu1 %4548 }
 0xe67   : > { %v4569_v10 = vmul.f32 0.0078125, %v4549_v9  ;;  %v4600_v3 = vmul.f32 %v9568_v2, %v9568_v2  ;;  %v4599_v23 = vmul.f32 %v9571_v19, %v9571_v19  ;;  %v9606_v9 = vld [vmem:[%s10543_s7] ss:$0 sm:$0xff] }
 0xe69   : > { %v9578_v5 = vsub.f32 %v9455_v47, %v4569_v10  ;;  %4626 = vadd.xlane.f32.xlu0 %v4600_v3  ;;  %4624 = vadd.xlane.f32.xlu1 %v4599_v23 }
 0xe6b   : > { %v4601_v28 = vmul.f32 %v9578_v5, %v9578_v5 }
 0xe6d   : > { %4628 = vadd.xlane.f32.xlu1 %v4601_v28 }
 0xe75   : > { %v4551_v7 = vpop.xlane.xlu0 %4550 }
 0xe76   : > { %v4570_v8 = vmul.f32 0.0078125, %v4551_v7  ;;  %v9613_v7 = vld [vmem:[%s10544_s8] ss:$0 sm:$0xff] }
 0xe78   : > { %v9583_v42 = vsub.f32 %v9460_v44, %v4570_v8 }
 0xe79   : > { %v4555_v20 = vpop.xlane.xlu0 %4554  ;;  %v4553_v33 = vpop.xlane.xlu1 %4552 }
 0xe7a   : > { %v4572_v40 = vmul.f32 0.0078125, %v4555_v20  ;;  %v4571_v0 = vmul.f32 0.0078125, %v4553_v33  ;;  %v4602_v31 = vmul.f32 %v9583_v42, %v9583_v42 }
 0xe7c   : > { %v9588_v26 = vsub.f32 %v9464_v57, %v4572_v40  ;;  %v9591_v41 = vsub.f32 %v9467_v15, %v4571_v0  ;;  %4630 = vadd.xlane.f32.xlu0 %v4602_v31 }
 0xe7d   : > { %v4557_v49 = vpop.xlane.xlu1 %4556 }
 0xe7e   : > { %v4573_v56 = vmul.f32 0.0078125, %v4557_v49  ;;  %v4604_v37 = vmul.f32 %v9588_v26, %v9588_v26  ;;  %v4603_v51 = vmul.f32 %v9591_v41, %v9591_v41 }
 0xe80   : > { %v9598_v61 = vsub.f32 %v9471_v18, %v4573_v56  ;;  %4634 = vadd.xlane.f32.xlu0 %v4604_v37  ;;  %4632 = vadd.xlane.f32.xlu1 %v4603_v51 }
 0xe82   : > { %v4605_v27 = vmul.f32 %v9598_v61, %v9598_v61 }
 0xe84   : > { %4636 = vadd.xlane.f32.xlu1 %v4605_v27 }
 0xea0   : > { %v4607_v34 = vpop.xlane.xlu0 %4606 }
 0xea1   : > { %v4638_v59 = vmul.f32 0.0078125, %v4607_v34 }
 0xea3   : > { %v4654_v22 = vadd.f32 1e-06, %v4638_v59 }
 0xea4   : > { %v4611_v38 = vpop.xlane.xlu0 %4610  ;;  %v4609_v45 = vpop.xlane.xlu1 %4608 }
 0xea5   : > { %7465 = vrsqrt.f32 %v4654_v22  ;;  %v4640_v36 = vmul.f32 0.0078125, %v4611_v38  ;;  %v4639_v21 = vmul.f32 0.0078125, %v4609_v45 }
 0xea7   : > { %v4655_v43 = vadd.f32 1e-06, %v4639_v21  ;;  %v4656_v17 = vadd.f32 1e-06, %v4640_v36 }
 0xea8   : > { %v4613_v24 = vpop.xlane.xlu1 %4612 }
 0xea9   : > { %v4641_v1 = vmul.f32 0.0078125, %v4613_v24  ;;  %7467 = vrsqrt.f32 %v4655_v43 }
 0xeaa   : > { %7469 = vrsqrt.f32 %v4656_v17 }
 0xeab   : > { %v4657_v11 = vadd.f32 1e-06, %v4641_v1 }
 0xead   : > { %7471 = vrsqrt.f32 %v4657_v11 }
 0xeb2   : > { %v7466_v53 = vpop.eup %7465 }
 0xeb3   : > { %v4686_v32 = vmul.f32 %v7466_v53, %v9481_v39 }
 0xeb5   : > { %v4708_v23 = vmul.f32 %v9606_v9, %v4686_v32 }
 0xeb6   : > { %v7468_v10 = vpop.eup %7467 }
 0xeb7   : > { %v4687_v3 = vmul.f32 %v7468_v10, %v9489_v35  ;;  %v7470_v28 = vpop.eup %7469  ;;  %v4730_v40 = vadd.f32 %v9613_v7, %v4708_v23 }
 0xeb8   : > { %v4688_v35 = vmul.f32 %v7470_v28, %v9486_v52 }
 0xeb9   : > { %v4709_v20 = vmul.f32 %v9606_v9, %v4687_v3 }
 0xeba   : > { %v7472_v8 = vpop.eup %7471  ;;  %v4710_v34 = vmul.f32 %v9606_v9, %v4688_v35 }
 0xebb   : > { %v4689_v39 = vmul.f32 %v7472_v8, %v9496_v58  ;;  %v4731_v0 = vadd.f32 %v9613_v7, %v4709_v20 }
 0xebc   : > { %v4615_v33 = vpop.xlane.xlu0 %4614  ;;  %v4732_v36 = vadd.f32 %v9613_v7, %v4710_v34 }
 0xebd   : > { %v4642_v31 = vmul.f32 0.0078125, %v4615_v33  ;;  %v4746_v49 = vpack.c.bf16 %v4731_v0, %v4730_v40  ;;  %v4711_v56 = vmul.f32 %v9606_v9, %v4689_v39 }
 0xebf   : > { %v4658_v37 = vadd.f32 1e-06, %v4642_v31  ;;  %4895 = vmatmul.mubr.bf16.vlgmr.msra.gmra.mxu1 %v4746_v49  ;;  %v4733_v22 = vadd.f32 %v9613_v7, %v4711_v56 }
 0xec0   : > { %v4619_v51 = vpop.xlane.xlu0 %4618  ;;  %v4617_v27 = vpop.xlane.xlu1 %4616  ;;  %4904 = vmatprep.mubr.bf16.mxu1 %v10618_v14 }
 0xec1   : > { %7473 = vrsqrt.f32 %v4658_v37  ;;  %v4644_v59 = vmul.f32 0.0078125, %v4619_v51  ;;  %v4643_v58 = vmul.f32 0.0078125, %v4617_v27  ;;  %v4747_v43 = vpack.c.bf16 %v4733_v22, %v4732_v36 }
 0xec3   : > { %v4659_v38 = vadd.f32 1e-06, %v4643_v58  ;;  %v4660_v45 = vadd.f32 1e-06, %v4644_v59 }
 0xec4   : > { %v4621_v52 = vpop.xlane.xlu1 %4620 }
 0xec5   : > { %v4645_v21 = vmul.f32 0.0078125, %v4621_v52  ;;  %7475 = vrsqrt.f32 %v4659_v38 }
 0xec6   : > { %7477 = vrsqrt.f32 %v4660_v45 }
 0xec7   : > { %v4661_v17 = vadd.f32 1e-06, %v4645_v21  ;;  %4905 = vmatmul.mubr.bf16.gmra.mxu1 %v4747_v43 }
 0xec8   : > { %4914 = vmatprep.mubr.bf16.mxu1 %v10618_v14 }
 0xec9   : > { %7479 = vrsqrt.f32 %v4661_v17 }
 0xece   : > { %v7474_v24 = vpop.eup %7473 }
 0xecf   : > { %v4690_v1 = vmul.f32 %v7474_v24, %v9525_v54 }
 0xed1   : > { %v4712_v32 = vmul.f32 %v9606_v9, %v4690_v1 }
 0xed2   : > { %v7476_v11 = vpop.eup %7475 }
 0xed3   : > { %v4691_v53 = vmul.f32 %v7476_v11, %v9539_v25  ;;  %v7478_v10 = vpop.eup %7477  ;;  %v4734_v8 = vadd.f32 %v9613_v7, %v4712_v32 }
 0xed4   : > { %v4692_v39 = vmul.f32 %v7478_v10, %v9536_v6 }
 0xed5   : > { %v4713_v23 = vmul.f32 %v9606_v9, %v4691_v53 }
 0xed6   : > { %v7480_v3 = vpop.eup %7479  ;;  %v4714_v25 = vmul.f32 %v9606_v9, %v4692_v39 }
 0xed7   : > { %v4693_v28 = vmul.f32 %v7480_v3, %v9552_v46  ;;  %v4735_v20 = vadd.f32 %v9613_v7, %v4713_v23 }
 0xed8   : > { %v4736_v0 = vadd.f32 %v9613_v7, %v4714_v25 }
 0xed9   : > { %v4748_v33 = vpack.c.bf16 %v4735_v20, %v4734_v8  ;;  %v4715_v54 = vmul.f32 %v9606_v9, %v4693_v28 }
 0xedb   : > { %4915 = vmatmul.mubr.bf16.gmra.mxu1 %v4748_v33  ;;  %v4737_v40 = vadd.f32 %v9613_v7, %v4715_v54 }
 0xedc   : > { %4924 = vmatprep.mubr.bf16.mxu1 %v10618_v14 }
 0xedd   : > { %v4749_v35 = vpack.c.bf16 %v4737_v40, %v4736_v0 }
 0xee3   : > { %4925 = vmatmul.mubr.bf16.gmra.mxu1 %v4749_v35 }
 0xee4   : > { %4934 = vmatprep.mubr.bf16.mxu1 %v10618_v14 }
 0xeee   : > { %v4623_v46 = vpop.xlane.xlu0 %4622 }
 0xeef   : > { %v4646_v31 = vmul.f32 0.0078125, %v4623_v46 }
 0xef1   : > { %v4662_v49 = vadd.f32 1e-06, %v4646_v31 }
 0xef2   : > { %v4627_v6 = vpop.xlane.xlu0 %4626  ;;  %v4625_v56 = vpop.xlane.xlu1 %4624 }
 0xef3   : > { %7481 = vrsqrt.f32 %v4662_v49  ;;  %v4648_v37 = vmul.f32 0.0078125, %v4627_v6  ;;  %v4647_v51 = vmul.f32 0.0078125, %v4625_v56 }
 0xef5   : > { %v4663_v27 = vadd.f32 1e-06, %v4647_v51  ;;  %v4664_v34 = vadd.f32 1e-06, %v4648_v37 }
 0xef6   : > { %v4629_v59 = vpop.xlane.xlu1 %4628 }
 0xef7   : > { %v4649_v58 = vmul.f32 0.0078125, %v4629_v59  ;;  %7483 = vrsqrt.f32 %v4663_v27 }
 0xef8   : > { %7485 = vrsqrt.f32 %v4664_v34 }
 0xef9   : > { %v4665_v22 = vadd.f32 1e-06, %v4649_v58 }
 0xefb   : > { %7487 = vrsqrt.f32 %v4665_v22 }
 0xf00   : > { %v7482_v38 = vpop.eup %7481 }
 0xf01   : > { %v4694_v45 = vmul.f32 %v7482_v38, %v9563_v4 }
 0xf03   : > { %v4716_v43 = vmul.f32 %v9606_v9, %v4694_v45 }
 0xf04   : > { %v7484_v52 = vpop.eup %7483 }
 0xf05   : > { %v4631_v36 = vpop.xlane.xlu0 %4630  ;;  %v4695_v21 = vmul.f32 %v7484_v52, %v9571_v19  ;;  %v7486_v17 = vpop.eup %7485  ;;  %v4738_v23 = vadd.f32 %v9613_v7, %v4716_v43  ;;  %v7166_v43 = vld [vmem:[%s10547_s11 + $0x28] sm:$0xff]  }
 0xf06   : > { %v4650_v24 = vmul.f32 0.0078125, %v4631_v36  ;;  %v4696_v28 = vmul.f32 %v7486_v17, %v9568_v2  ;;  %v7167_v17 = vld [vmem:[%s10547_s11 + $0x60] sm:$0xff]  }
 0xf07   : > { %v4717_v11 = vmul.f32 %v9606_v9, %v4695_v21 }
 0xf08   : > { %v7488_v1 = vpop.eup %7487  ;;  %v4666_v53 = vadd.f32 1e-06, %v4650_v24  ;;  %v7168_v24 = vld [vmem:[%s10547_s11 + $0x20] sm:$0xff]  }
 0xf09   : > { %v4697_v32 = vmul.f32 %v7488_v1, %v9578_v5  ;;  %v4635_v10 = vpop.xlane.xlu0 %4634  ;;  %v4633_v3 = vpop.xlane.xlu1 %4632  ;;  %v4739_v4 = vadd.f32 %v9613_v7, %v4717_v11  ;;  %v4718_v5 = vmul.f32 %v9606_v9, %v4696_v28  ;;  %v7169_v1 = vld [vmem:[%s10547_s11 + $0x58] sm:$0xff]   ;;  %v4770_v28 = vld [vmem:[%s10546_s10] sm:$0x3] }
 0xf0a   : > { %7489 = vrsqrt.f32 %v4666_v53  ;;  %v4652_v19 = vmul.f32 0.0078125, %v4635_v10  ;;  %v4651_v8 = vmul.f32 0.0078125, %v4633_v3  ;;  %v7170_v11 = vld [vmem:[%s10547_s11 + $0x18] sm:$0xff]   ;;  %v7171_v53 = vld [vmem:[%s10547_s11 + $0x50] sm:$0xff]   ;;  %v7173_v10 = vld [vmem:[%s10547_s11 + $0x48] sm:$0xff]  }
 0xf0b   : > { %v4750_v20 = vpack.c.bf16 %v4739_v4, %v4738_v23  ;;  %v4719_v39 = vmul.f32 %v9606_v9, %v4697_v32  ;;  %v4740_v2 = vadd.f32 %v9613_v7, %v4718_v5  ;;  %v7172_v32 = vld [vmem:[%s10547_s11 + $0x10] sm:$0xff]   ;;  %v7174_v3 = vld [vmem:[%s10547_s11 + $0x8] sm:$0xff]   ;;  %v7175_v23 = vld [vmem:[%s10547_s11 + $0x40] sm:$0xff]  }
 0xf0c   : > { %v4667_v33 = vadd.f32 1e-06, %v4651_v8  ;;  %v4668_v54 = vadd.f32 1e-06, %v4652_v19  ;;  %v7176_v4 = vld [vmem:[%s10547_s11] sm:$0xff]  }
 0xf0d   : > { %4935 = vmatmul.mubr.bf16.gmra.mxu1 %v4750_v20  ;;  %v4637_v25 = vpop.xlane.xlu1 %4636  ;;  %v4741_v0 = vadd.f32 %v9613_v7, %v4719_v39  ;;  %v10654_v19 = vld [vmem:[#allocation19_spill] sm:$0xff] }
 0xf0e   : > { %v4653_v40 = vmul.f32 0.0078125, %v4637_v25  ;;  %4944 = vmatprep.mubr.bf16.mxu1 %v10618_v14  ;;  %7491 = vrsqrt.f32 %v4667_v33  ;;  %v10655_v8 = vsub.s32 0, %v10654_v19  ;;  %v10656_v39 = vsub.s32 1, %v10654_v19 }
 0xf0f   : > { %7493 = vrsqrt.f32 %v4668_v54  ;;  %v4751_v46 = vpack.c.bf16 %v4741_v0, %v4740_v2 }
 0xf10   : > { %v4669_v35 = vadd.f32 1e-06, %v4653_v40  ;;  %v9720_v20 = vrot.slane %v4770_v28, %v10655_v8  ;;  %v9724_v33 = vrot.slane %v4770_v28, %v10656_v39 }
 0xf12   : > { %7495 = vrsqrt.f32 %v4669_v35 }
 0xf15   : > { %4945 = vmatmul.mubr.bf16.gmra.mxu1 %v4751_v46 }
 0xf16   : > { %4954 = vmatprep.mubr.bf16.mxu1 %v10618_v14 }
 0xf17   : > { %v7490_v31 = vpop.eup %7489 }
 0xf18   : > { %v4698_v49 = vmul.f32 %v7490_v31, %v9583_v42 }
 0xf1a   : > { %v4720_v37 = vmul.f32 %v9606_v9, %v4698_v49 }
 0xf1b   : > { %v7492_v6 = vpop.eup %7491 }
 0xf1c   : > { %v4699_v56 = vmul.f32 %v7492_v6, %v9591_v41  ;;  %v7494_v51 = vpop.eup %7493  ;;  %v4742_v58 = vadd.f32 %v9613_v7, %v4720_v37 }
 0xf1d   : > { %v4700_v38 = vmul.f32 %v7494_v51, %v9588_v26  ;;  %v7162_v26 = vld [vmem:[%s10547_s11 + $0x38] sm:$0xff]  }
 0xf1e   : > { %v4721_v34 = vmul.f32 %v9606_v9, %v4699_v56 }
 0xf1f   : > { %v7496_v27 = vpop.eup %7495  ;;  %v4722_v41 = vmul.f32 %v9606_v9, %v4700_v38 }
 0xf20   : > { %v4701_v59 = vmul.f32 %v7496_v27, %v9598_v61  ;;  %v4743_v22 = vadd.f32 %v9613_v7, %v4721_v34  ;;  %v7161_v61 = vld [vmem:[%s10547_s11 + $0x78] sm:$0xff]  }
 0xf21   : > { %v4744_v36 = vadd.f32 %v9613_v7, %v4722_v41  ;;  %6668 = vmatprep.subr.bf16.mxu0 %v7161_v61 }
 0xf22   : > { %v4752_v45 = vpack.c.bf16 %v4743_v22, %v4742_v58  ;;  %v4723_v42 = vmul.f32 %v9606_v9, %v4701_v59  ;;  %6669 = vmatpush3.bf16.msra.mxu0 %v7162_v26  ;;  %v7164_v9 = vld [vmem:[%s10547_s11 + $0x30] sm:$0xff]  }
 0xf24   : > { %4955 = vmatmul.mubr.bf16.gmra.mxu1 %v4752_v45  ;;  %v4745_v52 = vadd.f32 %v9613_v7, %v4723_v42  ;;  %v7165_v7 = vld [vmem:[%s10547_s11 + $0x68] sm:$0xff]  }
 0xf25   : > { %4964 = vmatprep.mubr.bf16.mxu1 %v10618_v14  ;;  %v7163_v14 = vld [vmem:[%s10547_s11 + $0x70] sm:$0xff]  }
 0xf26   : > { %v4753_v21 = vpack.c.bf16 %v4745_v52, %v4744_v36  ;;  %6670 = vmatprep.subr.bf16.mxu0 %v7163_v14 }
 0xf27   : > { %6671 = vmatpush3.bf16.msra.mxu0 %v7164_v9 }
 0xf28   : > { %6672 = vmatprep.subr.bf16.mxu0 %v7165_v7 }
 0xf2b   : > { %6673 = vmatpush3.bf16.msra.mxu0 %v7166_v43 }
 0xf2c   : > { %4965 = vmatmul.mubr.bf16.gmra.mxu1 %v4753_v21  ;;  %6674 = vmatprep.subr.bf16.mxu0 %v7167_v17 }
 0xf2f   : > { %6675 = vmatpush3.bf16.msra.mxu0 %v7168_v24 }
 0xf30   : > { %6676 = vmatprep.subr.bf16.mxu0 %v7169_v1 }
 0xf33   : > { %6677 = vmatpush3.bf16.msra.mxu0 %v7170_v11 }
 0xf34   : > { %6678 = vmatprep.subr.bf16.mxu0 %v7171_v53 }
 0xf37   : > { %6679 = vmatpush3.bf16.msra.mxu0 %v7172_v32 }
 0xf38   : > { %6680 = vmatprep.subr.bf16.mxu0 %v7173_v10 }
 0xf3b   : > { %6681 = vmatpush3.bf16.msra.mxu0 %v7174_v3 }
 0xf3c   : > { %6682 = vmatprep.subr.bf16.mxu0 %v7175_v23 }
 0xf3f   : > { %6683 = vmatpush3.bf16.msra.mxu0 %v7176_v4 }
 0xf7f   : > { %v4896_v54 = vpop.f32.mrf.mxu1 }
 0xf80   : > { %v9727_v25 = vadd.f32 %v4896_v54, %v9720_v20 }
 0xf81   : > { %v4898_v5 = vpop.f32.mrf.mxu1 }
 0xf82   : > { %v9730_v40 = vmul.f32 0.70710677, %v9727_v25  ;;  %v9733_v0 = vadd.f32 %v4898_v5, %v9724_v33 }
 0xf83   : > { %v4900_v35 = vpop.f32.mrf.mxu1 }
 0xf84   : > { %v5039_v2 = vand.u32 2147483647, %v9730_v40  ;;  %v9737_v46 = vmul.f32 0.70710677, %v9733_v0  ;;  %v9740_v31 = vadd.f32 %v4900_v35, %v9720_v20  ;;  %vm5679_vm5 = vcmp.ge.f32.partialorder %v9730_v40, 0.0 }
 0xf85   : > { %v4902_v49 = vpop.f32.mrf.mxu1 }
 0xf86   : > { %v5071_v6 = vmul.f32 0.3275911, %v5039_v2  ;;  %v5040_v56 = vand.u32 2147483647, %v9737_v46  ;;  %v9744_v37 = vmul.f32 0.70710677, %v9740_v31  ;;  %v9747_v51 = vadd.f32 %v4902_v49, %v9724_v33 }
 0xf87   : > { %v4906_v27 = vpop.f32.mrf.mxu1  ;;  %v5487_v53 = vsub.f32 0.0, %v5039_v2  ;;  %vm5680_vm6 = vcmp.ge.f32.partialorder %v9737_v46, 0.0 }
 0xf88   : > { %v5103_v34 = vadd.f32 1.0, %v5071_v6  ;;  %v5072_v59 = vmul.f32 0.3275911, %v5040_v56  ;;  %v5041_v58 = vand.u32 2147483647, %v9744_v37  ;;  %v9755_v36 = vadd.f32 %v4906_v27, %v9720_v20 }
 0xf89   : > { %v9751_v22 = vmul.f32 0.70710677, %v9747_v51  ;;  %v4908_v38 = vpop.f32.mrf.mxu1  ;;  %v5488_v28 = vsub.f32 0.0, %v5040_v56  ;;  %v5519_v39 = vmul.f32 %v5487_v53, %v5039_v2  ;;  %vm5681_vm7 = vcmp.ge.f32.partialorder %v9744_v37, 0.0 }
 0xf8a   : > { %7497 = vrcp.f32 %v5103_v34  ;;  %v5104_v45 = vadd.f32 1.0, %v5072_v59  ;;  %v5073_v42 = vmul.f32 0.3275911, %v5041_v58  ;;  %v9758_v21 = vadd.f32 %v4908_v38, %v9724_v33 }
 0xf8b   : > { %v5042_v41 = vand.u32 2147483647, %v9751_v22  ;;  %v4910_v52 = vpop.f32.mrf.mxu1  ;;  %v9761_v14 = vmul.f32 0.70710677, %v9755_v36  ;;  %v5489_v54 = vsub.f32 0.0, %v5041_v58  ;;  %v5520_v38 = vmul.f32 %v5488_v28, %v5040_v56 }
 0xf8c   : > { %7499 = vrcp.f32 %v5104_v45  ;;  %v5105_v61 = vadd.f32 1.0, %v5073_v42  ;;  %v9767_v17 = vmul.f32 0.70710677, %v9758_v21  ;;  %v9770_v24 = vadd.f32 %v4910_v52, %v9720_v20 }
 0xf8d   : > { %v5074_v26 = vmul.f32 0.3275911, %v5042_v41  ;;  %v4912_v7 = vpop.f32.mrf.mxu1  ;;  %v9764_v43 = vand.u32 2147483647, %v9761_v14  ;;  %v5551_v42 = vmul.f32 1.442695, %v5519_v39  ;;  %v5521_v52 = vmul.f32 %v5489_v54, %v5041_v58 }
 0xf8e   : > { %7501 = vrcp.f32 %v5105_v61  ;;  %v9774_v11 = vadd.f32 %v4912_v7, %v9724_v33  ;;  %v9777_v32 = vand.u32 2147483647, %v9767_v17  ;;  %v9780_v10 = vmul.f32 0.70710677, %v9770_v24 }
 0xf8f   : > { %v5106_v9 = vadd.f32 1.0, %v5074_v26  ;;  %v5075_v1 = vmul.f32 0.3275911, %v9764_v43  ;;  %v5490_v7 = vsub.f32 0.0, %v5042_v41  ;;  %v5553_v28 = vmul.f32 1.442695, %v5520_v38 }
 0xf90   : > { %v5076_v23 = vmul.f32 0.3275911, %v9777_v32  ;;  %v9784_v4 = vand.u32 2147483647, %v9780_v10  ;;  %v9787_v19 = vmul.f32 0.70710677, %v9774_v11 }
 0xf91   : > { %7503 = vrcp.f32 %v5106_v9  ;;  %v5107_v3 = vadd.f32 1.0, %v5075_v1  ;;  %vm5682_vm8 = vcmp.ge.f32.partialorder %v9751_v22, 0.0  ;;  %vm5683_vm9 = vcmp.ge.f32.partialorder %v9761_v14, 0.0 }
 0xf92   : > { %v5108_v5 = vadd.f32 1.0, %v5076_v23  ;;  %v5077_v35 = vmul.f32 0.3275911, %v9784_v4  ;;  %v9794_v6 = vand.u32 2147483647, %v9787_v19  ;;  %vm5684_vm10 = vcmp.ge.f32.partialorder %v9767_v17, 0.0 }
 0xf93   : > { %7505 = vrcp.f32 %v5107_v3  ;;  %vm5686_vm11 = vcmp.ge.f32.partialorder %v9787_v19, 0.0  ;;  %vm5685_vm12 = vcmp.ge.f32.partialorder %v9780_v10, 0.0 }
 0xf94   : > { %7507 = vrcp.f32 %v5108_v5  ;;  %v5109_v27 = vadd.f32 1.0, %v5077_v35  ;;  %v5078_v45 = vmul.f32 0.3275911, %v9794_v6  ;;  %v5555_v35 = vmul.f32 1.442695, %v5521_v52 }
 0xf96   : > { %7509 = vrcp.f32 %v5109_v27  ;;  %v5110_v1 = vadd.f32 1.0, %v5078_v45  ;;  %v5522_v27 = vmul.f32 %v5490_v7, %v5042_v41 }
 0xf97   : > { %v9789_v8 = vpop.eup %7497 }
 0xf98   : > { %v5199_v49 = vmul.f32 1.0614054, %v9789_v8  ;;  %7511 = vrcp.f32 %v5110_v1 }
 0xf99   : > { %v9796_v34 = vpop.eup %7499  ;;  %7513 = vpow2.f32 %v5551_v42 }
 0xf9a   : > { %v5231_v59 = vadd.f32 -1.4531521, %v5199_v49  ;;  %v5200_v2 = vmul.f32 1.0614054, %v9796_v34  ;;  %7515 = vpow2.f32 %v5553_v28 }
 0xf9b   : > { %v4916_v61 = vpop.f32.mrf.mxu1  ;;  %v9800_v26 = vpop.eup %7501  ;;  %7517 = vpow2.f32 %v5555_v35 }
 0xf9c   : > { %v5263_v9 = vmul.f32 %v9789_v8, %v5231_v59  ;;  %v5232_v53 = vadd.f32 -1.4531521, %v5200_v2  ;;  %v5201_v3 = vmul.f32 1.0614054, %v9800_v26  ;;  %v9805_v23 = vadd.f32 %v4916_v61, %v9720_v20 }
 0xf9d   : > { %v4918_v18 = vpop.f32.mrf.mxu1 }
 0xf9e   : > { %v5295_v56 = vadd.f32 1.4214138, %v5263_v9  ;;  %v9807_v39 = vpop.eup %7503  ;;  %v5264_v58 = vmul.f32 %v9796_v34, %v5232_v53  ;;  %v5233_v54 = vadd.f32 -1.4531521, %v5201_v3  ;;  %v9811_v5 = vmul.f32 0.70710677, %v9805_v23 }
 0xf9f   : > { %v5202_v49 = vmul.f32 1.0614054, %v9807_v39  ;;  %v5491_v9 = vsub.f32 0.0, %v9764_v43  ;;  %v5492_v53 = vsub.f32 0.0, %v9777_v32  ;;  %v5557_v3 = vmul.f32 1.442695, %v5522_v27 }
 0xfa0   : > { %v5327_v59 = vmul.f32 %v9789_v8, %v5295_v56  ;;  %v5296_v45 = vadd.f32 1.4214138, %v5264_v58  ;;  %v5265_v2 = vmul.f32 %v9800_v26, %v5233_v54  ;;  %v9817_v38 = vand.u32 2147483647, %v9811_v5  ;;  %v9820_v1 = vpop.eup %7505 }
 0xfa1   : > { %v5234_v61 = vadd.f32 -1.4531521, %v5202_v49  ;;  %v5203_v56 = vmul.f32 1.0614054, %v9820_v1  ;;  %v5494_v54 = vsub.f32 0.0, %v9794_v6  ;;  %v9829_v57 = vpop.eup %7507  ;;  %v5523_v44 = vmul.f32 %v5491_v9, %v9764_v43 }
 0xfa2   : > { %v5328_v42 = vmul.f32 %v9796_v34, %v5296_v45  ;;  %v5297_v52 = vadd.f32 1.4214138, %v5265_v2  ;;  %v5079_v41 = vmul.f32 0.3275911, %v9817_v38  ;;  %v5359_v58 = vadd.f32 -0.28449672, %v5327_v59 }
 0xfa3   : > { %v5266_v7 = vmul.f32 %v9807_v39, %v5234_v61  ;;  %v5235_v15 = vadd.f32 -1.4531521, %v5203_v56  ;;  %v5204_v61 = vmul.f32 1.0614054, %v9829_v57  ;;  %v5524_v27 = vmul.f32 %v5492_v53, %v9777_v32 }
 0xfa4   : > { %v5329_v28 = vmul.f32 %v9800_v26, %v5297_v52  ;;  %v5111_v49 = vadd.f32 1.0, %v5079_v41  ;;  %v5360_v45 = vadd.f32 -0.28449672, %v5328_v42  ;;  %v5493_v59 = vsub.f32 0.0, %v9784_v4  ;;  %v9840_v42 = vpop.eup %7509 }
 0xfa5   : > { %v5298_v2 = vadd.f32 1.4214138, %v5266_v7  ;;  %v5267_v47 = vmul.f32 %v9820_v1, %v5235_v15  ;;  %v9838_v41 = vadd.f32 %v4918_v18, %v9724_v33  ;;  %v5391_v7 = vmul.f32 %v9789_v8, %v5359_v58  ;;  %v9847_v15 = vpop.eup %7511 }
 0xfa6   : > { %v5361_v35 = vadd.f32 -0.28449672, %v5329_v28  ;;  %7519 = vrcp.f32 %v5111_v49  ;;  %v5236_v9 = vadd.f32 -1.4531521, %v5204_v61  ;;  %v5526_v56 = vmul.f32 %v5494_v54, %v9794_v6  ;;  %v7514_v6 = vpop.eup %7513 }
 0xfa7   : > { %v5330_v52 = vmul.f32 %v9807_v39, %v5298_v2  ;;  %v5392_v32 = vmul.f32 %v9796_v34, %v5360_v45  ;;  %v5299_v28 = vadd.f32 1.4214138, %v5267_v47  ;;  %v5205_v2 = vmul.f32 1.0614054, %v9840_v42 }
 0xfa8   : > { %v5393_v43 = vmul.f32 %v9800_v26, %v5361_v35  ;;  %7521 = vpow2.f32 %v5557_v3  ;;  %v5559_v18 = vmul.f32 1.442695, %v5523_v44  ;;  %v5268_v16 = vmul.f32 %v9829_v57, %v5236_v9  ;;  %v7516_v9 = vpop.eup %7515 }
 0xfa9   : > { %v5362_v53 = vadd.f32 -0.28449672, %v5330_v52  ;;  %v5331_v58 = vmul.f32 %v9820_v1, %v5299_v28  ;;  %v5561_v62 = vmul.f32 1.442695, %v5524_v27  ;;  %v5237_v35 = vadd.f32 -1.4531521, %v5205_v2 }
 0xfaa   : > { %v5425_v49 = vadd.f32 0.2548296, %v5393_v43  ;;  %v9852_v61 = vmul.f32 0.70710677, %v9838_v41  ;;  %v5300_v54 = vadd.f32 1.4214138, %v5268_v16  ;;  %v5525_v47 = vmul.f32 %v5493_v59, %v9784_v4  ;;  %v7518_v59 = vpop.eup %7517 }
 0xfab   : > { %v5206_v45 = vmul.f32 1.0614054, %v9847_v15  ;;  %v5565_v52 = vmul.f32 1.442695, %v5526_v56  ;;  %v5423_v48 = vadd.f32 0.2548296, %v5391_v7  ;;  %v5394_v44 = vmul.f32 %v9807_v39, %v5362_v53 }
 0xfac   : > { %v5424_v43 = vadd.f32 0.2548296, %v5392_v32  ;;  %v5269_v3 = vmul.f32 %v9840_v42, %v5237_v35  ;;  %v5457_v27 = vmul.f32 %v9800_v26, %v5425_v49  ;;  %v5363_v28 = vadd.f32 -0.28449672, %v5331_v58 }
 0xfad   : > { %v5332_v2 = vmul.f32 %v9829_v57, %v5300_v54  ;;  %v5238_v55 = vadd.f32 -1.4531521, %v5206_v45  ;;  %7523 = vpow2.f32 %v5559_v18  ;;  %v9861_v4 = vand.u32 2147483647, %v9852_v61 }
 0xfae   : > { %v5301_v16 = vadd.f32 1.4214138, %v5269_v3  ;;  %7525 = vpow2.f32 %v5561_v62  ;;  %v5563_v7 = vmul.f32 1.442695, %v5525_v47  ;;  %v5455_v32 = vmul.f32 %v9789_v8, %v5423_v48 }
 0xfaf   : > { %v5364_v56 = vadd.f32 -0.28449672, %v5332_v2  ;;  %v5456_v53 = vmul.f32 %v9796_v34, %v5424_v43  ;;  %v5270_v26 = vmul.f32 %v9847_v15, %v5238_v55  ;;  %v5617_v49 = vmul.f32 %v7518_v59, %v5457_v27  ;;  %v4920_v27 = vpop.f32.mrf.mxu1 }
 0xfb0   : > { %v5333_v35 = vmul.f32 %v9840_v42, %v5301_v16  ;;  %v5426_v58 = vadd.f32 0.2548296, %v5394_v44  ;;  %v5395_v18 = vmul.f32 %v9820_v1, %v5363_v28  ;;  %7527 = vpow2.f32 %v5565_v52 }
 0xfb1   : > { %v5396_v54 = vmul.f32 %v9829_v57, %v5364_v56  ;;  %v5080_v45 = vmul.f32 0.3275911, %v9861_v4  ;;  %v5302_v47 = vadd.f32 1.4214138, %v5270_v26  ;;  %v9873_v48 = vmul.f32 0.5, %v9727_v25 }
 0xfb2   : > { %v5365_v62 = vadd.f32 -0.28449672, %v5333_v35  ;;  %v5615_v8 = vmul.f32 %v7514_v6, %v5455_v32  ;;  %v5616_v34 = vmul.f32 %v7516_v9, %v5456_v53  ;;  %7529 = vpow2.f32 %v5563_v7 }
 0xfb3   : > { %v9870_v3 = vpop.eup %7519  ;;  %v5649_v55 = vsub.f32 1.0, %v5617_v49  ;;  %v5458_v43 = vmul.f32 %v9807_v39, %v5426_v58  ;;  %v5427_v44 = vadd.f32 0.2548296, %v5395_v18  ;;  %v5334_v52 = vmul.f32 %v9847_v15, %v5302_v47  ;;  %v4922_v58 = vpop.f32.mrf.mxu1 }
 0xfb4   : > { %v9878_v2 = vmul.f32 0.5, %v9733_v0  ;;  %v5428_v16 = vadd.f32 0.2548296, %v5396_v54  ;;  %v5207_v59 = vmul.f32 1.0614054, %v9870_v3  ;;  %v5112_v56 = vadd.f32 1.0, %v5080_v45 }
 0xfb5   : > { %v7522_v28 = vpop.eup %7521  ;;  %v9884_v25 = vmul.f32 0.5, %v9740_v31  ;;  %v5397_v39 = vmul.f32 %v9840_v42, %v5365_v62  ;;  %v5366_v6 = vadd.f32 -0.28449672, %v5334_v52  ;;  %v5495_v9 = vsub.f32 0.0, %v9817_v38 }
 0xfb6   : > { %v5647_v7 = vsub.f32 1.0, %v5615_v8  ;;  %v5648_v32 = vsub.f32 1.0, %v5616_v34  ;;  %7531 = vrcp.f32 %v5112_v56  ;;  %v9889_v0 = vadd.f32 %v4920_v27, %v9720_v20 }
 0xfb7   : > { %v5713_v53 = vsub.f32 0.0, %v5649_v55  ;;  %v5618_v35 = vmul.f32 %v7522_v28, %v5458_v43  ;;  %v5459_v26 = vmul.f32 %v9820_v1, %v5427_v44  ;;  %v5398_v49 = vmul.f32 %v9847_v15, %v5366_v6 }
 0xfb8   : > { %v9895_v31 = vmul.f32 0.5, %v9747_v51  ;;  %v5460_v18 = vmul.f32 %v9829_v57, %v5428_v16  ;;  %v5239_v54 = vadd.f32 -1.4531521, %v5207_v59  ;;  %v9899_v62 = vmul.f32 0.5, %v9755_v36 }
 0xfb9   : > { %v5429_v47 = vadd.f32 0.2548296, %v5397_v39  ;;  %v5430_v8 = vadd.f32 0.2548296, %v5398_v49  ;;  %v5527_v34 = vmul.f32 %v5495_v9, %v9817_v38  ;;  %v5711_v43 = vsub.f32 0.0, %v5647_v7  ;;  %v4926_v39 = vpop.f32.mrf.mxu1 }
 0xfba   : > { %v7524_v45 = vpop.eup %7523  ;;  %v5712_v44 = vsub.f32 0.0, %v5648_v32  ;;  %v9904_v37 = vmul.f32 0.70710677, %v9889_v0  ;;  %v9907_v51 = vadd.f32 %v4922_v58, %v9724_v33  ;;  %v5745_v57 = vsel %vm5681_vm7, %v5649_v55, %v5713_v53 }
 0xfbb   : > { %v7526_v1 = vpop.eup %7525  ;;  %v5650_v52 = vsub.f32 1.0, %v5618_v35  ;;  %v5619_v27 = vmul.f32 %v7524_v45, %v5459_v26  ;;  %v5462_v36 = vmul.f32 %v9847_v15, %v5430_v8  ;;  %v9911_v16 = vmul.f32 0.5, %v9758_v21 }
 0xfbc   : > { %v5620_v38 = vmul.f32 %v7526_v1, %v5460_v18  ;;  %v9914_v59 = vmul.f32 0.5, %v9774_v11  ;;  %v5271_v56 = vmul.f32 %v9870_v3, %v5239_v54  ;;  %v5461_v6 = vmul.f32 %v9840_v42, %v5429_v47 }
 0xfbd   : > { %v7528_v28 = vpop.eup %7527  ;;  %v5567_v49 = vmul.f32 1.442695, %v5527_v34  ;;  %v9919_v55 = vand.u32 2147483647, %v9904_v37  ;;  %v5743_v15 = vsel %vm5679_vm5, %v5647_v7, %v5711_v43  ;;  %v5744_v21 = vsel %vm5680_vm6, %v5648_v32, %v5712_v44  ;;  %v4928_v7 = vpop.f32.mrf.mxu1 }
 0xfbe   : > { %v5622_v9 = vmul.f32 %v7528_v28, %v5462_v36  ;;  %v5777_v53 = vadd.f32 1.0, %v5745_v57  ;;  %v9927_v11 = vmul.f32 0.70710677, %v9907_v51  ;;  %v5714_v26 = vsub.f32 0.0, %v5650_v52 }
 0xfbf   : > { %v7530_v35 = vpop.eup %7529  ;;  %v5651_v42 = vsub.f32 1.0, %v5619_v27  ;;  %v5081_v18 = vmul.f32 0.3275911, %v9919_v55  ;;  %v5652_v54 = vsub.f32 1.0, %v5620_v38  ;;  %v5303_v40 = vadd.f32 1.4214138, %v5271_v56 }
 0xfc0   : > { %v5654_v58 = vsub.f32 1.0, %v5622_v9  ;;  %v9933_v46 = vand.u32 2147483647, %v9927_v11  ;;  %v5775_v32 = vadd.f32 1.0, %v5743_v15  ;;  %v5621_v45 = vmul.f32 %v7530_v35, %v5461_v6 }
 0xfc1   : > { %v5113_v47 = vadd.f32 1.0, %v5081_v18  ;;  %v9936_v8 = vadd.f32 %v4926_v39, %v9720_v20  ;;  %v5776_v34 = vadd.f32 1.0, %v5744_v21  ;;  %v9939_v1 = vmul.f32 %v5777_v53, %v9884_v25  ;;  %v4930_v39 = vpop.f32.mrf.mxu1 }
 0xfc2   : > { %7533 = vpow2.f32 %v5567_v49  ;;  %v5082_v43 = vmul.f32 0.3275911, %v9933_v46  ;;  %v5746_v57 = vsel %vm5682_vm8, %v5650_v52, %v5714_v26  ;;  %v5715_v27 = vsub.f32 0.0, %v5651_v42 }
 0xfc3   : > { %v9942_v44 = vpop.eup %7531  ;;  %v5718_v36 = vsub.f32 0.0, %v5654_v58  ;;  %7535 = vrcp.f32 %v5113_v47  ;;  %v5716_v28 = vsub.f32 0.0, %v5652_v54  ;;  %v5335_v38 = vmul.f32 %v9870_v3, %v5303_v40 }
 0xfc4   : > { %v5208_v56 = vmul.f32 1.0614054, %v9942_v44  ;;  %v5114_v25 = vadd.f32 1.0, %v5082_v43  ;;  %v5807_v6 = vmul.f32 %v5775_v32, %v9873_v48  ;;  %v5653_v9 = vsub.f32 1.0, %v5621_v45  ;;  %v4932_v32 = vpop.f32.mrf.mxu1 }
 0xfc5   : > { %v9951_v49 = vmul.f32 0.70710677, %v9936_v8  ;;  %v9954_v22 = vadd.f32 %v4928_v7, %v9724_v33  ;;  %v5808_v52 = vmul.f32 %v5776_v34, %v9878_v2  ;;  %v5778_v15 = vadd.f32 1.0, %v5746_v57 }
 0xfc6   : > { %v5240_v21 = vadd.f32 -1.4531521, %v5208_v56  ;;  %7537 = vrcp.f32 %v5114_v25  ;;  %v5839_v53 = vpack.c.bf16 %v9939_v1, %v5807_v6  ;;  %v5747_v35 = vsel %vm5683_vm9, %v5651_v42, %v5715_v27 }
 0xfc7   : > { %v5750_v48 = vsel %vm5686_vm11, %v5654_v58, %v5718_v36  ;;  %v9963_v26 = vand.u32 2147483647, %v9951_v49  ;;  %v5748_v18 = vsel %vm5684_vm10, %v5652_v54, %v5716_v28  ;;  %v5367_v40 = vadd.f32 -0.28449672, %v5335_v38 }
 0xfc8   : > { %v9968_v2 = vmul.f32 0.70710677, %v9954_v22  ;;  %v9971_v7 = vadd.f32 %v4930_v39, %v9720_v20  ;;  %v5717_v45 = vsub.f32 0.0, %v5653_v9  ;;  %v5272_v14 = vmul.f32 %v9942_v44, %v5240_v21 }
 0xfc9   : > { %v5497_v19 = vsub.f32 0.0, %v9919_v55  ;;  %v5083_v42 = vmul.f32 0.3275911, %v9963_v26  ;;  %v5810_v58 = vmul.f32 %v5778_v15, %v9895_v31  ;;  %v5782_v47 = vadd.f32 1.0, %v5750_v48 }
 0xfca   : > { %v5496_v17 = vsub.f32 0.0, %v9861_v4  ;;  %v9979_v54 = vand.u32 2147483647, %v9968_v2  ;;  %v5780_v34 = vadd.f32 1.0, %v5748_v18  ;;  %v5498_v1 = vsub.f32 0.0, %v9933_v46 }
 0xfcb   : > { %v5115_v43 = vadd.f32 1.0, %v5083_v42  ;;  %v9983_v57 = vadd.f32 %v4932_v32, %v9724_v33  ;;  %v5779_v27 = vadd.f32 1.0, %v5747_v35  ;;  %v5399_v36 = vmul.f32 %v9870_v3, %v5367_v40 }
 0xfcc   : > { %v5084_v28 = vmul.f32 0.3275911, %v9979_v54  ;;  %v9988_v31 = vmul.f32 0.70710677, %v9971_v7  ;;  %v5749_v38 = vsel %vm5685_vm12, %v5653_v9, %v5717_v45  ;;  %v5304_v56 = vadd.f32 1.4214138, %v5272_v14 }
 0xfcd   : > { %v5529_v25 = vmul.f32 %v5497_v19, %v9919_v55  ;;  %7539 = vrcp.f32 %v5115_v43  ;;  %v5814_v39 = vmul.f32 %v5782_v47, %v9914_v59  ;;  %v5528_v6 = vmul.f32 %v5496_v17, %v9861_v4  ;;  %v4936_v40 = vpop.f32.mrf.mxu1 }
 0xfce   : > { %v5116_v15 = vadd.f32 1.0, %v5084_v28  ;;  %v9996_v21 = vand.u32 2147483647, %v9988_v31  ;;  %v5812_v48 = vmul.f32 %v5780_v34, %v9911_v16  ;;  %v5530_v18 = vmul.f32 %v5498_v1, %v9933_v46 }
 0xfcf   : > { %v7534_v35 = vpop.eup %7533  ;;  %v10001_v10 = vmul.f32 0.70710677, %v9983_v57  ;;  %v5840_v9 = vpack.c.bf16 %v5810_v58, %v5808_v52  ;;  %v5781_v32 = vadd.f32 1.0, %v5749_v38  ;;  %v5431_v59 = vadd.f32 0.2548296, %v5399_v36  ;;  %v4938_v36 = vpop.f32.mrf.mxu1 }
 0xfd0   : > { %v10003_v55 = vpop.eup %7535  ;;  %7541 = vrcp.f32 %v5116_v15  ;;  %v5085_v4 = vmul.f32 0.3275911, %v9996_v21  ;;  %v5336_v45 = vmul.f32 %v9942_v44, %v5304_v56  ;;  %v5571_v19 = vmul.f32 1.442695, %v5529_v25 }
 0xfd1   : > { %v5209_v14 = vmul.f32 1.0614054, %v10003_v55  ;;  %v10009_v16 = vand.u32 2147483647, %v10001_v10  ;;  %6022 = vmatprep.mubr.bf16.mxu0 %v5840_v9  ;;  %v4981_v46 = vmul.f32 0.5, %v9770_v24  ;;  %v5842_v58 = vpack.c.bf16 %v5814_v39, %v5812_v48 }
 0xfd2   : > { %v5569_v52 = vmul.f32 1.442695, %v5528_v6  ;;  %v5117_v42 = vadd.f32 1.0, %v5085_v4  ;;  %6023 = vmatmul.mubr.bf16.vlgmr.msra.gmra.mxu0 %v5839_v53  ;;  %v5811_v17 = vmul.f32 %v5779_v27, %v9899_v62  ;;  %v5573_v1 = vmul.f32 1.442695, %v5530_v18 }
 0xfd3   : > { %v10012_v47 = vpop.eup %7537  ;;  %v5241_v34 = vadd.f32 -1.4531521, %v5209_v14  ;;  %v5086_v43 = vmul.f32 0.3275911, %v10009_v16  ;;  %v5813_v28 = vmul.f32 %v5781_v32, %v4981_v46  ;;  %v5463_v38 = vmul.f32 %v9870_v3, %v5431_v59  ;;  %6030 = vmatprep.mubr.bf16.mxu0 %v5842_v58 }
 0xfd4   : > { %v5210_v56 = vmul.f32 1.0614054, %v10012_v47  ;;  %7543 = vrcp.f32 %v5117_v42  ;;  %v5368_v24 = vadd.f32 -0.28449672, %v5336_v45  ;;  %v10020_v62 = vadd.f32 %v4936_v40, %v9720_v20 }
 0xfd5   : > { %v5273_v53 = vmul.f32 %v10003_v55, %v5241_v34  ;;  %7545 = vpow2.f32 %v5571_v19  ;;  %v5118_v25 = vadd.f32 1.0, %v5086_v43  ;;  %v10023_v27 = vadd.f32 %v4938_v36, %v9724_v33 }
 0xfd6   : > { %7547 = vpow2.f32 %v5569_v52  ;;  %v5242_v39 = vadd.f32 -1.4531521, %v5210_v56  ;;  %v10026_v6 = vmul.f32 0.5, %v9805_v23  ;;  %v10029_v3 = vmul.f32 0.5, %v9838_v41 }
 0xfd7   : > { %v5305_v15 = vadd.f32 1.4214138, %v5273_v53  ;;  %7549 = vpow2.f32 %v5573_v1  ;;  %v10031_v48 = vmul.f32 %v7534_v35, %v5463_v38  ;;  %v5841_v9 = vpack.c.bf16 %v5813_v28, %v5811_v17 }
 0xfd8   : > { %v5274_v18 = vmul.f32 %v10012_v47, %v5242_v39  ;;  %7551 = vrcp.f32 %v5118_v25  ;;  %v5400_v40 = vmul.f32 %v9942_v44, %v5368_v24  ;;  %v10036_v32 = vmul.f32 0.5, %v9889_v0 }
 0xfd9   : > { %v5337_v59 = vmul.f32 %v10003_v55, %v5305_v15  ;;  %v10040_v23 = vmul.f32 0.70710677, %v10020_v62  ;;  %v5499_v35 = vsub.f32 0.0, %v9963_v26  ;;  %v5500_v45 = vsub.f32 0.0, %v9979_v54 }
 0xfda   : > { %v10042_v41 = vpop.eup %7539  ;;  %v5306_v4 = vadd.f32 1.4214138, %v5274_v18  ;;  %6031 = vmatmul.mubr.bf16.gmra.mxu0 %v5841_v9  ;;  %v10047_v14 = vmul.f32 0.70710677, %v10023_v27  ;;  %v5501_v58 = vsub.f32 0.0, %v9996_v21  ;;  %v5502_v15 = vsub.f32 0.0, %v10009_v16 }
 0xfdb   : > { %v5369_v19 = vadd.f32 -0.28449672, %v5337_v59  ;;  %v5211_v0 = vmul.f32 1.0614054, %v10042_v41  ;;  %v10051_v46 = vand.u32 2147483647, %v10040_v23  ;;  %v5531_v56 = vmul.f32 %v5499_v35, %v9963_v26 }
 0xfdc   : > { %v5338_v42 = vmul.f32 %v10012_v47, %v5306_v4  ;;  %v10057_v17 = vand.u32 2147483647, %v10047_v14  ;;  %v5432_v1 = vadd.f32 0.2548296, %v5400_v40  ;;  %v5532_v53 = vmul.f32 %v5500_v45, %v9979_v54 }
 0xfdd   : > { %v10059_v34 = vpop.eup %7541  ;;  %v5401_v43 = vmul.f32 %v10003_v55, %v5369_v19  ;;  %v5243_v36 = vadd.f32 -1.4531521, %v5211_v0  ;;  %v5087_v28 = vmul.f32 0.3275911, %v10051_v46  ;;  %v5533_v59 = vmul.f32 %v5501_v58, %v9996_v21  ;;  %v4940_v19 = vpop.f32.mrf.mxu1 }
 0xfde   : > { %v5370_v38 = vadd.f32 -0.28449672, %v5338_v42  ;;  %v5212_v24 = vmul.f32 1.0614054, %v10059_v34  ;;  %v5088_v4 = vmul.f32 0.3275911, %v10057_v17  ;;  %v5464_v26 = vmul.f32 %v9942_v44, %v5432_v1 }
 0xfdf   : > { %v5433_v25 = vadd.f32 0.2548296, %v5401_v43  ;;  %v5275_v39 = vmul.f32 %v10042_v41, %v5243_v36  ;;  %v5119_v18 = vadd.f32 1.0, %v5087_v28  ;;  %v5575_v43 = vmul.f32 1.442695, %v5531_v56 }
 0xfe0   : > { %v5402_v9 = vmul.f32 %v10012_v47, %v5370_v38  ;;  %v5244_v40 = vadd.f32 -1.4531521, %v5212_v24  ;;  %vm5687_vm13 = vcmp.ge.f32.partialorder %v9811_v5, 0.0  ;;  %v5534_v58 = vmul.f32 %v5502_v15, %v10009_v16 }
 0xfe1   : > { %v10071_v0 = vpop.eup %7543  ;;  %v5465_v54 = vmul.f32 %v10003_v55, %v5433_v25  ;;  %v5307_v35 = vadd.f32 1.4214138, %v5275_v39  ;;  %7553 = vrcp.f32 %v5119_v18  ;;  %v5120_v24 = vadd.f32 1.0, %v5088_v4 }
 0xfe2   : > { %v7546_v45 = vpop.eup %7545  ;;  %v5434_v42 = vadd.f32 0.2548296, %v5402_v9  ;;  %v5276_v36 = vmul.f32 %v10059_v34, %v5244_v40  ;;  %v5213_v28 = vmul.f32 1.0614054, %v10071_v0  ;;  %v10080_v44 = vadd.f32 %v4940_v19, %v9720_v20 }
 0xfe3   : > { %v7548_v38 = vpop.eup %7547  ;;  %v5625_v21 = vmul.f32 %v7546_v45, %v5465_v54  ;;  %v5339_v25 = vmul.f32 %v10042_v41, %v5307_v35  ;;  %v5577_v40 = vmul.f32 1.442695, %v5532_v53  ;;  %v5579_v52 = vmul.f32 1.442695, %v5533_v59 }
 0xfe4   : > { %v7550_v55 = vpop.eup %7549  ;;  %v5466_v1 = vmul.f32 %v10012_v47, %v5434_v42  ;;  %v5308_v56 = vadd.f32 1.4214138, %v5276_v36  ;;  %v5245_v39 = vadd.f32 -1.4531521, %v5213_v28  ;;  %v5624_v9 = vmul.f32 %v7548_v38, %v5464_v26 }
 0xfe5   : > { %v10084_v18 = vpop.eup %7551  ;;  %7555 = vrcp.f32 %v5120_v24  ;;  %v10657_v19 = vsub.f32 1.0, %v10031_v48  ;;  %v5657_v45 = vsub.f32 1.0, %v5625_v21  ;;  %vm5689_vm14 = vcmp.ge.f32.partialorder %v9904_v37, 0.0 }
 0xfe6   : > { %v5626_v54 = vmul.f32 %v7550_v55, %v5466_v1  ;;  %v5340_v16 = vmul.f32 %v10059_v34, %v5308_v56  ;;  %v5277_v15 = vmul.f32 %v10071_v0, %v5245_v39  ;;  %v5214_v4 = vmul.f32 1.0614054, %v10084_v18  ;;  %v4942_v1 = vpop.f32.mrf.mxu1 }
 0xfe7   : > { %v5719_v47 = vsub.f32 0.0, %v10657_v19  ;;  %v5581_v35 = vmul.f32 1.442695, %v5534_v58  ;;  %v10093_v42 = vmul.f32 0.70710677, %v10080_v44  ;;  %7557 = vpow2.f32 %v5575_v43 }
 0xfe8   : > { %v5371_v53 = vadd.f32 -0.28449672, %v5339_v25  ;;  %v5372_v59 = vadd.f32 -0.28449672, %v5340_v16  ;;  %v5309_v26 = vadd.f32 1.4214138, %v5277_v15  ;;  %7559 = vpow2.f32 %v5579_v52 }
 0xfe9   : > { %vm5688_vm15 = vcmp.ge.f32.partialorder %v9852_v61, 0.0  ;;  %v5658_v36 = vsub.f32 1.0, %v5626_v54  ;;  %v5246_v28 = vadd.f32 -1.4531521, %v5214_v4  ;;  %v10097_v38 = vand.u32 2147483647, %v10093_v42 }
 0xfea   : > { %v5656_v24 = vsub.f32 1.0, %v5624_v9  ;;  %v10100_v21 = vmul.f32 0.5, %v9907_v51  ;;  %7561 = vpow2.f32 %v5577_v40  ;;  %v5341_v58 = vmul.f32 %v10071_v0, %v5309_v26 }
 0xfeb   : > { %vm5690_vm0 = vcmp.ge.f32.partialorder %v9927_v11, 0.0  ;;  %v5278_v43 = vmul.f32 %v10084_v18, %v5246_v28  ;;  %7563 = vpow2.f32 %v5581_v35  ;;  %v5089_v55 = vmul.f32 0.3275911, %v10097_v38 }
 0xfec   : > { %v10658_v52 = vmov %v10657_v19  ;;  %v5721_v56 = vsub.f32 0.0, %v5657_v45  ;;  %v5404_v51 = vmul.f32 %v10059_v34, %v5372_v59  ;;  %v5373_v39 = vadd.f32 -0.28449672, %v5341_v58 }
 0xfed   : > { %v5751_v25 = vsel %vm5687_vm13, %v10658_v52, %v5719_v47  ;;  %v5722_v9 = vsub.f32 0.0, %v5658_v36  ;;  %v5403_v40 = vmul.f32 %v10042_v41, %v5371_v53  ;;  %v5310_v54 = vadd.f32 1.4214138, %v5278_v43 }
 0xfee   : > { %v5121_v16 = vadd.f32 1.0, %v5089_v55  ;;  %v10112_v15 = vpop.eup %7553  ;;  %v5720_v4 = vsub.f32 0.0, %v5656_v24  ;;  %v5405_v19 = vmul.f32 %v10071_v0, %v5373_v39  ;;  %v5503_v35 = vsub.f32 0.0, %v10051_v46 }
 0xfef   : > { %v10117_v48 = vadd.f32 %v4942_v1, %v9724_v33  ;;  %v5783_v5 = vadd.f32 1.0, %v5751_v25  ;;  %v10120_v47 = vmul.f32 0.5, %v9936_v8  ;;  %v5342_v59 = vmul.f32 %v10084_v18, %v5310_v54 }
 0xff0   : > { %v5215_v53 = vmul.f32 1.0614054, %v10112_v15  ;;  %v5753_v26 = vsel %vm5689_vm14, %v5657_v45, %v5721_v56  ;;  %v5436_v28 = vadd.f32 0.2548296, %v5404_v51  ;;  %v5437_v58 = vadd.f32 0.2548296, %v5405_v19 }
 0xff1   : > { %7565 = vrcp.f32 %v5121_v16  ;;  %v5754_v43 = vsel %vm5690_vm0, %v5658_v36, %v5722_v9  ;;  %v5435_v55 = vadd.f32 0.2548296, %v5403_v40  ;;  %v5374_v1 = vadd.f32 -0.28449672, %v5342_v59 }
 0xff2   : > { %v5247_v52 = vadd.f32 -1.4531521, %v5215_v53  ;;  %v10128_v25 = vpop.eup %7555  ;;  %v5752_v8 = vsel %vm5688_vm15, %v5656_v24, %v5720_v4  ;;  %v5535_v39 = vmul.f32 %v5503_v35, %v10051_v46  ;;  %v5504_v54 = vsub.f32 0.0, %v10057_v17 }
 0xff3   : > { %v10135_v37 = vmul.f32 0.70710677, %v10117_v48  ;;  %v5469_v45 = vmul.f32 %v10071_v0, %v5437_v58  ;;  %v5406_v11 = vmul.f32 %v10084_v18, %v5374_v1  ;;  %v5216_v56 = vmul.f32 1.0614054, %v10128_v25  ;;  %v4946_v0 = vpop.f32.mrf.mxu1 }
 0xff4   : > { %v5279_v36 = vmul.f32 %v10112_v15, %v5247_v52  ;;  %v5785_v51 = vadd.f32 1.0, %v5753_v26  ;;  %v5786_v9 = vadd.f32 1.0, %v5754_v43  ;;  %v5468_v61 = vmul.f32 %v10059_v34, %v5436_v28  ;;  %v7558_v46 = vpop.eup %7557 }
 0xff5   : > { %v10143_v24 = vand.u32 2147483647, %v10135_v37  ;;  %v5467_v40 = vmul.f32 %v10042_v41, %v5435_v55  ;;  %v5438_v16 = vadd.f32 0.2548296, %v5406_v11  ;;  %v5248_v19 = vadd.f32 -1.4531521, %v5216_v56  ;;  %v7560_v35 = vpop.eup %7559 }
 0xff6   : > { %v5311_v4 = vadd.f32 1.4214138, %v5279_v36  ;;  %v5784_v59 = vadd.f32 1.0, %v5752_v8  ;;  %v5583_v53 = vmul.f32 1.442695, %v5535_v39  ;;  %v5536_v58 = vmul.f32 %v5504_v54, %v10057_v17 }
 0xff7   : > { %v5090_v26 = vmul.f32 0.3275911, %v10143_v24  ;;  %v7562_v43 = vpop.eup %7561  ;;  %v5629_v1 = vmul.f32 %v7560_v35, %v5469_v45  ;;  %v5470_v34 = vmul.f32 %v10084_v18, %v5438_v16  ;;  %v5280_v52 = vmul.f32 %v10128_v25, %v5248_v19 }
 0xff8   : > { %v5343_v28 = vmul.f32 %v10112_v15, %v5311_v4  ;;  %v7564_v41 = vpop.eup %7563  ;;  %v5818_v55 = vmul.f32 %v5786_v9, %v10100_v21  ;;  %v5628_v11 = vmul.f32 %v7562_v43, %v5468_v61  ;;  %v10153_v8 = vadd.f32 %v4946_v0, %v9720_v20  ;;  %v4948_v4 = vpop.f32.mrf.mxu1 }
 0xff9   : > { %v5122_v36 = vadd.f32 1.0, %v5090_v26  ;;  %v5817_v17 = vmul.f32 %v5785_v51, %v10036_v32  ;;  %v5627_v39 = vmul.f32 %v7558_v46, %v5467_v40  ;;  %v5630_v54 = vmul.f32 %v7564_v41, %v5470_v34 }
 0xffa   : > { %v5375_v56 = vadd.f32 -0.28449672, %v5343_v28  ;;  %v5815_v45 = vmul.f32 %v5783_v5, %v10026_v6  ;;  %v5816_v18 = vmul.f32 %v5784_v59, %v10029_v3  ;;  %v10159_v16 = vmul.f32 0.5, %v9954_v22 }
 0xffb   : > { %7567 = vrcp.f32 %v5122_v36  ;;  %v5661_v21 = vsub.f32 1.0, %v5629_v1  ;;  %v5662_v9 = vsub.f32 1.0, %v5630_v54  ;;  %v5312_v61 = vadd.f32 1.4214138, %v5280_v52 }
 0xffc   : > { %7569 = vpow2.f32 %v5583_v53  ;;  %vm5691_vm1 = vcmp.ge.f32.partialorder %v9951_v49, 0.0  ;;  %v5660_v19 = vsub.f32 1.0, %v5628_v11  ;;  %v5585_v32 = vmul.f32 1.442695, %v5536_v58 }
 0xffd   : > { %v10163_v51 = vmul.f32 0.70710677, %v10153_v8  ;;  %v5844_v46 = vpack.c.bf16 %v5818_v55, %v5816_v18  ;;  %v5843_v3 = vpack.c.bf16 %v5817_v17, %v5815_v45  ;;  %v5659_v5 = vsub.f32 1.0, %v5627_v39 }
 0xffe   : > { %v10165_v6 = vpop.eup %7565  ;;  %v5407_v22 = vmul.f32 %v10112_v15, %v5375_v56  ;;  %v10169_v40 = vadd.f32 %v4948_v4, %v9724_v33  ;;  %vm5692_vm2 = vcmp.ge.f32.partialorder %v9968_v2, 0.0  ;;  %v5726_v0 = vsub.f32 0.0, %v5662_v9 }
 0xfff   : > { %v5217_v35 = vmul.f32 1.0614054, %v10165_v6  ;;  %v10174_v59 = vand.u32 2147483647, %v10163_v51  ;;  %6038 = vmatprep.mubr.bf16.mxu0 %v5844_v46  ;;  %v4989_v53 = vmul.f32 0.5, %v9971_v7  ;;  %v5725_v58 = vsub.f32 0.0, %v5661_v21  ;;  %v4950_v7 = vpop.f32.mrf.mxu1 }
0x1000   : > { %v4990_v26 = vmul.f32 0.5, %v9983_v57  ;;  %v5344_v43 = vmul.f32 %v10128_v25, %v5312_v61  ;;  %6039 = vmatmul.mubr.bf16.gmra.mxu0 %v5843_v3  ;;  %v5724_v1 = vsub.f32 0.0, %v5660_v19  ;;  %vm5693_vm3 = vcmp.ge.f32.partialorder %v9988_v31, 0.0 }
0x1001   : > { %v5249_v34 = vadd.f32 -1.4531521, %v5217_v35  ;;  %v5091_v28 = vmul.f32 0.3275911, %v10174_v59  ;;  %v5723_v52 = vsub.f32 0.0, %v5659_v5  ;;  %vm5694_vm4 = vcmp.ge.f32.partialorder %v10001_v10, 0.0 }
0x1002   : > { %v5439_v41 = vadd.f32 0.2548296, %v5407_v22  ;;  %v10183_v55 = vmul.f32 0.70710677, %v10169_v40  ;;  %v5758_v11 = vsel %vm5694_vm4, %v5662_v9, %v5726_v0  ;;  %7571 = vpow2.f32 %v5585_v32  ;;  %v4952_v22 = vpop.f32.mrf.mxu1 }
0x1003   : > { %v5281_v57 = vmul.f32 %v10165_v6, %v5249_v34  ;;  %v5123_v36 = vadd.f32 1.0, %v5091_v28  ;;  %v5757_v17 = vsel %vm5693_vm3, %v5661_v21, %v5725_v58  ;;  %v5376_v39 = vadd.f32 -0.28449672, %v5344_v43 }
0x1004   : > { %v5505_v31 = vsub.f32 0.0, %v10097_v38  ;;  %v10188_v54 = vand.u32 2147483647, %v10183_v55  ;;  %v5756_v10 = vsel %vm5692_vm2, %v5660_v19, %v5724_v1  ;;  %v10193_v56 = vmul.f32 0.5, %v10020_v62 }
0x1005   : > { %7573 = vrcp.f32 %v5123_v36  ;;  %v10196_v45 = vadd.f32 %v4950_v7, %v9720_v20  ;;  %v5755_v18 = vsel %vm5691_vm1, %v5659_v5, %v5723_v52  ;;  %v5790_v4 = vadd.f32 1.0, %v5758_v11  ;;  %v4956_v7 = vpop.f32.mrf.mxu1 }
0x1006   : > { %v5471_v21 = vmul.f32 %v10112_v15, %v5439_v41  ;;  %v5092_v9 = vmul.f32 0.3275911, %v10188_v54  ;;  %v5789_v61 = vadd.f32 1.0, %v5757_v17  ;;  %v10203_v32 = vmul.f32 0.5, %v10023_v27 }
0x1007   : > { %v5313_v2 = vadd.f32 1.4214138, %v5281_v57  ;;  %v10206_v62 = vmul.f32 0.70710677, %v10196_v45  ;;  %v5788_v46 = vadd.f32 1.0, %v5756_v10  ;;  %v5408_v3 = vmul.f32 %v10128_v25, %v5376_v39 }
0x1008   : > { %v10208_v19 = vpop.eup %7567  ;;  %v5537_v49 = vmul.f32 %v5505_v31, %v10097_v38  ;;  %v5124_v5 = vadd.f32 1.0, %v5092_v9  ;;  %v5787_v0 = vadd.f32 1.0, %v5755_v18  ;;  %v10213_v35 = vmul.f32 0.5, %v10080_v44 }
0x1009   : > { %v7570_v15 = vpop.eup %7569  ;;  %v5218_v27 = vmul.f32 1.0614054, %v10208_v19  ;;  %v5506_v58 = vsub.f32 0.0, %v10143_v24  ;;  %v5822_v43 = vmul.f32 %v5790_v4, %v4990_v26  ;;  %v10218_v34 = vand.u32 2147483647, %v10206_v62 }
0x100a   : > { %v5631_v1 = vmul.f32 %v7570_v15, %v5471_v21  ;;  %7575 = vrcp.f32 %v5124_v5  ;;  %v5821_v28 = vmul.f32 %v5789_v61, %v4989_v53  ;;  %v5345_v38 = vmul.f32 %v10165_v6, %v5313_v2  ;;  %v4958_v2 = vpop.f32.mrf.mxu1 }
0x100b   : > { %v5250_v52 = vadd.f32 -1.4531521, %v5218_v27  ;;  %v10222_v41 = vadd.f32 %v4952_v22, %v9724_v33  ;;  %v5820_v44 = vmul.f32 %v5788_v46, %v10159_v16  ;;  %v5440_v11 = vadd.f32 0.2548296, %v5408_v3 }
0x100c   : > { %v5587_v57 = vmul.f32 1.442695, %v5537_v49  ;;  %v5093_v36 = vmul.f32 0.3275911, %v10218_v34  ;;  %v5819_v26 = vmul.f32 %v5787_v0, %v10120_v47  ;;  %v5538_v39 = vmul.f32 %v5506_v58, %v10143_v24 }
0x100d   : > { %v5282_v17 = vmul.f32 %v10208_v19, %v5250_v52  ;;  %v5507_v53 = vsub.f32 0.0, %v10174_v59  ;;  %v5663_v31 = vsub.f32 1.0, %v5631_v1  ;;  %v10231_v18 = vmul.f32 0.70710677, %v10222_v41 }
0x100e   : > { %v5125_v10 = vadd.f32 1.0, %v5093_v36  ;;  %v5846_v4 = vpack.c.bf16 %v5822_v43, %v5820_v44  ;;  %v5845_v21 = vpack.c.bf16 %v5821_v28, %v5819_v26  ;;  %v5377_v16 = vadd.f32 -0.28449672, %v5345_v38 }
0x100f   : > { %v5314_v9 = vadd.f32 1.4214138, %v5282_v17  ;;  %v10234_v61 = vadd.f32 %v4956_v7, %v9720_v20  ;;  %v7572_v47 = vpop.eup %7571  ;;  %vm5695_vm5 = vcmp.ge.f32.partialorder %v10040_v23, 0.0  ;;  %v5472_v24 = vmul.f32 %v10128_v25, %v5440_v11 }
0x1010   : > { %7577 = vrcp.f32 %v5125_v10  ;;  %v5062_v46 = vand.u32 2147483647, %v10231_v18  ;;  %6046 = vmatprep.mubr.bf16.mxu0 %v5846_v4  ;;  %v5589_v49 = vmul.f32 1.442695, %v5538_v39  ;;  %v5727_v15 = vsub.f32 0.0, %v5663_v31 }
0x1011   : > { %7579 = vpow2.f32 %v5587_v57  ;;  %v5346_v3 = vmul.f32 %v10208_v19, %v5314_v9  ;;  %6047 = vmatmul.mubr.bf16.gmra.mxu0 %v5845_v21  ;;  %v10241_v5 = vmul.f32 0.70710677, %v10234_v61  ;;  %v5539_v0 = vmul.f32 %v5507_v53, %v10174_v59 }
0x1012   : > { %v10243_v22 = vpop.eup %7573  ;;  %v5094_v27 = vmul.f32 0.3275911, %v5062_v46  ;;  %v10247_v25 = vadd.f32 %v4958_v2, %v9724_v33  ;;  %v5409_v58 = vmul.f32 %v10165_v6, %v5377_v16  ;;  %v10251_v43 = vmul.f32 0.5, %v10117_v48 }
0x1013   : > { %v10254_v1 = vmul.f32 0.5, %v10153_v8  ;;  %v5219_v28 = vmul.f32 1.0614054, %v10243_v22  ;;  %v5632_v38 = vmul.f32 %v7572_v47, %v5472_v24  ;;  %v5508_v52 = vsub.f32 0.0, %v10188_v54  ;;  %v4960_v24 = vpop.f32.mrf.mxu1 }
0x1014   : > { %v5126_v7 = vadd.f32 1.0, %v5094_v27  ;;  %v10259_v59 = vand.u32 2147483647, %v10241_v5  ;;  %v5378_v44 = vadd.f32 -0.28449672, %v5346_v3  ;;  %7581 = vpow2.f32 %v5589_v49 }
0x1015   : > { %v5251_v11 = vadd.f32 -1.4531521, %v5219_v28  ;;  %v10262_v57 = vmul.f32 0.70710677, %v10247_v25  ;;  %v5759_v48 = vsel %vm5695_vm5, %v5663_v31, %v5727_v15  ;;  %v5591_v8 = vmul.f32 1.442695, %v5539_v0 }
0x1016   : > { %7583 = vrcp.f32 %v5126_v7  ;;  %v5095_v36 = vmul.f32 0.3275911, %v10259_v59  ;;  %v5441_v17 = vadd.f32 0.2548296, %v5409_v58  ;;  %v5509_v53 = vsub.f32 0.0, %v10218_v34 }
0x1017   : > { %v10267_v26 = vpop.eup %7575  ;;  %v5283_v39 = vmul.f32 %v10243_v22, %v5251_v11  ;;  %v10272_v10 = vand.u32 2147483647, %v10262_v57  ;;  %v5664_v4 = vsub.f32 1.0, %v5632_v38  ;;  %vm5696_vm6 = vcmp.ge.f32.partialorder %v10047_v14, 0.0 }
0x1018   : > { %v5220_v23 = vmul.f32 1.0614054, %v10267_v26  ;;  %v5540_v31 = vmul.f32 %v5508_v52, %v10188_v54  ;;  %v5127_v21 = vadd.f32 1.0, %v5095_v36  ;;  %v5410_v16 = vmul.f32 %v10208_v19, %v5378_v44 }
0x1019   : > { %v5315_v9 = vadd.f32 1.4214138, %v5283_v39  ;;  %v5510_v2 = vsub.f32 0.0, %v5062_v46  ;;  %v5096_v47 = vmul.f32 0.3275911, %v10272_v10  ;;  %v5791_v3 = vadd.f32 1.0, %v5759_v48 }
0x101a   : > { %v10280_v49 = vmul.f32 0.5, %v10169_v40  ;;  %v5252_v15 = vadd.f32 -1.4531521, %v5220_v23  ;;  %7585 = vrcp.f32 %v5127_v21  ;;  %v5473_v0 = vmul.f32 %v10165_v6, %v5441_v17  ;;  %v4962_v6 = vpop.f32.mrf.mxu1 }
0x101b   : > { %v5347_v27 = vmul.f32 %v10243_v22, %v5315_v9  ;;  %v5541_v54 = vmul.f32 %v5509_v53, %v10218_v34  ;;  %v5128_v58 = vadd.f32 1.0, %v5096_v47  ;;  %v5728_v28 = vsub.f32 0.0, %v5664_v4 }
0x101c   : > { %7587 = vpow2.f32 %v5591_v8  ;;  %v5284_v38 = vmul.f32 %v10267_v26, %v5252_v15  ;;  %v10287_v52 = vmul.f32 0.5, %v10196_v45  ;;  %v5442_v40 = vadd.f32 0.2548296, %v5410_v16 }
0x101d   : > { %v10289_v7 = vpop.eup %7577  ;;  %v5593_v44 = vmul.f32 1.442695, %v5540_v31  ;;  %v5542_v11 = vmul.f32 %v5510_v2, %v5062_v46  ;;  %v10292_v48 = vadd.f32 %v4960_v24, %v9720_v20  ;;  %v5379_v17 = vadd.f32 -0.28449672, %v5347_v27 }
0x101e   : > { %v7580_v36 = vpop.eup %7579  ;;  %v5316_v34 = vadd.f32 1.4214138, %v5284_v38  ;;  %v5221_v39 = vmul.f32 1.0614054, %v10289_v7  ;;  %7589 = vrcp.f32 %v5128_v58  ;;  %v10296_v8 = vmul.f32 %v5791_v3, %v10193_v56 }
0x101f   : > { %v10298_v45 = vmul.f32 %v7580_v36, %v5473_v0  ;;  %v5595_v53 = vmul.f32 1.442695, %v5541_v54  ;;  %v10301_v23 = vmul.f32 0.70710677, %v10292_v48  ;;  %v5511_v21 = vsub.f32 0.0, %v10259_v59 }
0x1020   : > { %v5348_v46 = vmul.f32 %v10267_v26, %v5316_v34  ;;  %v5253_v31 = vadd.f32 -1.4531521, %v5221_v39  ;;  %v10306_v16 = vadd.f32 %v4962_v6, %v9724_v33  ;;  %v5760_v9 = vsel %vm5696_vm6, %v5664_v4, %v5728_v28 }
0x1021   : > { %v5474_v56 = vmul.f32 %v10208_v19, %v5442_v40  ;;  %7591 = vpow2.f32 %v5593_v44  ;;  %v10312_v2 = vand.u32 2147483647, %v10301_v23  ;;  %v7582_v47 = vpop.eup %7581  ;;  %v5411_v24 = vmul.f32 %v10243_v22, %v5379_v17 }
0x1022   : > { %v5380_v3 = vadd.f32 -0.28449672, %v5348_v46  ;;  %v5285_v15 = vmul.f32 %v10289_v7, %v5253_v31  ;;  %v5597_v0 = vmul.f32 1.442695, %v5542_v11  ;;  %v5665_v54 = vsub.f32 1.0, %v10298_v45 }
0x1023   : > { %v10316_v27 = vpop.eup %7583  ;;  %7593 = vpow2.f32 %v5595_v53  ;;  %v5097_v14 = vmul.f32 0.3275911, %v10312_v2  ;;  %v10321_v19 = vmul.f32 0.70710677, %v10306_v16  ;;  %vm5697_vm7 = vcmp.ge.f32.partialorder %v10093_v42, 0.0 }
0x1024   : > { %v5412_v4 = vmul.f32 %v10267_v26, %v5380_v3  ;;  %v5317_v58 = vadd.f32 1.4214138, %v5285_v15  ;;  %v5222_v28 = vmul.f32 1.0614054, %v10316_v27  ;;  %v5543_v38 = vmul.f32 %v5511_v21, %v10259_v59 }
0x1025   : > { %v5634_v40 = vmul.f32 %v7582_v47, %v5474_v56  ;;  %v5512_v44 = vsub.f32 0.0, %v10272_v10  ;;  %v5129_v11 = vadd.f32 1.0, %v5097_v14  ;;  %v10329_v6 = vand.u32 2147483647, %v10321_v19  ;;  %v4966_v47 = vpop.f32.mrf.mxu1 }
0x1026   : > { %v5443_v36 = vadd.f32 0.2548296, %v5411_v24  ;;  %v5349_v17 = vmul.f32 %v10289_v7, %v5317_v58  ;;  %v5254_v34 = vadd.f32 -1.4531521, %v5222_v28  ;;  %7595 = vpow2.f32 %v5597_v0 }
0x1027   : > { %v10332_v39 = vpop.eup %7585  ;;  %v5792_v45 = vadd.f32 1.0, %v5760_v9  ;;  %v5729_v53 = vsub.f32 0.0, %v5665_v54  ;;  %7597 = vrcp.f32 %v5129_v11  ;;  %v5098_v46 = vmul.f32 0.3275911, %v10329_v6 }
0x1028   : > { %v5444_v59 = vadd.f32 0.2548296, %v5412_v4  ;;  %v5381_v31 = vadd.f32 -0.28449672, %v5349_v17  ;;  %v5286_v21 = vmul.f32 %v10316_v27, %v5254_v34  ;;  %v5223_v56 = vmul.f32 1.0614054, %v10332_v39 }
0x1029   : > { %v7588_v3 = vpop.eup %7587  ;;  %v5666_v24 = vsub.f32 1.0, %v5634_v40  ;;  %vm5698_vm8 = vcmp.ge.f32.partialorder %v10135_v37, 0.0  ;;  %v5599_v15 = vmul.f32 1.442695, %v5543_v38  ;;  %v5544_v0 = vmul.f32 %v5512_v44, %v10272_v10 }
0x102a   : > { %v5130_v14 = vadd.f32 1.0, %v5098_v46  ;;  %v5475_v9 = vmul.f32 %v10243_v22, %v5443_v36  ;;  %v5413_v58 = vmul.f32 %v10289_v7, %v5381_v31  ;;  %v5318_v28 = vadd.f32 1.4214138, %v5286_v21 }
0x102b   : > { %v5255_v4 = vadd.f32 -1.4531521, %v5223_v56  ;;  %v10341_v11 = vpop.eup %7589  ;;  %v10344_v17 = vmul.f32 %v5792_v45, %v10203_v32  ;;  %v10347_v34 = vmul.f32 0.5, %v10222_v41  ;;  %v10350_v38 = vadd.f32 %v4966_v47, %v9720_v20  ;;  %v4968_v45 = vpop.f32.mrf.mxu1 }
0x102c   : > { %7599 = vrcp.f32 %v5130_v14  ;;  %v5476_v10 = vmul.f32 %v10267_v26, %v5444_v59  ;;  %v5445_v40 = vadd.f32 0.2548296, %v5413_v58  ;;  %v5350_v22 = vmul.f32 %v10316_v27, %v5318_v28 }
0x102d   : > { %v5513_v44 = vsub.f32 0.0, %v10312_v2  ;;  %v5761_v36 = vsel %vm5697_vm7, %v5665_v54, %v5729_v53  ;;  %v5287_v32 = vmul.f32 %v10332_v39, %v5255_v4  ;;  %7601 = vpow2.f32 %v5599_v15 }
0x102e   : > { %v5224_v41 = vmul.f32 1.0614054, %v10341_v11  ;;  %v7592_v46 = vpop.eup %7591  ;;  %v5730_v31 = vsub.f32 0.0, %v5666_v24  ;;  %v10359_v21 = vmul.f32 %v7588_v3, %v5475_v9  ;;  %v5382_v56 = vadd.f32 -0.28449672, %v5350_v22 }
0x102f   : > { %v5601_v26 = vmul.f32 1.442695, %v5544_v0  ;;  %v5477_v59 = vmul.f32 %v10289_v7, %v5445_v40  ;;  %v5319_v47 = vadd.f32 1.4214138, %v5287_v32  ;;  %v10363_v58 = vmul.f32 0.70710677, %v10350_v38 }
0x1030   : > { %v5256_v14 = vadd.f32 -1.4531521, %v5224_v41  ;;  %v7594_v42 = vpop.eup %7593  ;;  %v5636_v54 = vmul.f32 %v7592_v46, %v5476_v10  ;;  %v5414_v53 = vmul.f32 %v10316_v27, %v5382_v56  ;;  %v5545_v15 = vmul.f32 %v5513_v44, %v10312_v2 }
0x1031   : > { %v10368_v28 = vadd.f32 %v4968_v45, %v9724_v33  ;;  %v5351_v3 = vmul.f32 %v10332_v39, %v5319_v47  ;;  %v5514_v7 = vsub.f32 0.0, %v10329_v6  ;;  %v10374_v9 = vand.u32 2147483647, %v10363_v58 }
0x1032   : > { %v5288_v0 = vmul.f32 %v10341_v11, %v5256_v14  ;;  %v5762_v4 = vsel %vm5698_vm8, %v5666_v24, %v5730_v31  ;;  %v5667_v10 = vsub.f32 1.0, %v10359_v21  ;;  %v5446_v40 = vadd.f32 0.2548296, %v5414_v53 }
0x1033   : > { %7603 = vpow2.f32 %v5601_v26  ;;  %v7596_v2 = vpop.eup %7595  ;;  %vm5700_vm9 = vcmp.ge.f32.partialorder %v10183_v55, 0.0  ;;  %v5637_v22 = vmul.f32 %v7594_v42, %v5477_v59  ;;  %vm5702_vm10 = vcmp.ge.f32.partialorder %v10231_v18, 0.0 }
0x1034   : > { %v5383_v44 = vadd.f32 -0.28449672, %v5351_v3  ;;  %v5320_v32 = vadd.f32 1.4214138, %v5288_v0  ;;  %v5099_v41 = vmul.f32 0.3275911, %v10374_v9  ;;  %v10382_v45 = vpop.eup %7597  ;;  %v5478_v37 = vmul.f32 %v10316_v27, %v5446_v40 }
0x1035   : > { %v5668_v46 = vsub.f32 1.0, %v5636_v54  ;;  %v5603_v24 = vmul.f32 1.442695, %v5545_v15  ;;  %v10386_v31 = vmul.f32 0.70710677, %v10368_v28  ;;  %vm5699_vm11 = vcmp.ge.f32.partialorder %v10163_v51, 0.0 }
0x1036   : > { %v5352_v21 = vmul.f32 %v10341_v11, %v5320_v32  ;;  %v5225_v56 = vmul.f32 1.0614054, %v10382_v45  ;;  %v5546_v26 = vmul.f32 %v5514_v7, %v10329_v6  ;;  %v5131_v59 = vadd.f32 1.0, %v5099_v41 }
0x1037   : > { %v5793_v47 = vadd.f32 1.0, %v5761_v36  ;;  %vm5701_vm12 = vcmp.ge.f32.partialorder %v10206_v62, 0.0  ;;  %v5638_v14 = vmul.f32 %v7596_v2, %v5478_v37  ;;  %v5415_v42 = vmul.f32 %v10332_v39, %v5383_v44  ;;  %v4970_v44 = vpop.f32.mrf.mxu1 }
0x1038   : > { %v10395_v27 = vand.u32 2147483647, %v10386_v31  ;;  %v5794_v54 = vadd.f32 1.0, %v5762_v4  ;;  %v5669_v53 = vsub.f32 1.0, %v5637_v22  ;;  %v5384_v15 = vadd.f32 -0.28449672, %v5352_v21 }
0x1039   : > { %7605 = vrcp.f32 %v5131_v59  ;;  %v10397_v3 = vpop.eup %7599  ;;  %v5731_v0 = vsub.f32 0.0, %v5667_v10  ;;  %v5732_v40 = vsub.f32 0.0, %v5668_v46  ;;  %v5670_v32 = vsub.f32 1.0, %v5638_v14  ;;  %v4972_v50 = vpop.f32.mrf.mxu1 }
0x103a   : > { %v5257_v6 = vadd.f32 -1.4531521, %v5225_v56  ;;  %v5416_v36 = vmul.f32 %v10341_v11, %v5384_v15  ;;  %7607 = vpow2.f32 %v5603_v24  ;;  %v5226_v7 = vmul.f32 1.0614054, %v10397_v3  ;;  %v7602_v41 = vpop.eup %7601 }
0x103b   : > { %v5605_v2 = vmul.f32 1.442695, %v5546_v26  ;;  %v5734_v37 = vsub.f32 0.0, %v5670_v32  ;;  %v5447_v13 = vadd.f32 0.2548296, %v5415_v42  ;;  %v5825_v21 = vmul.f32 %v5793_v47, %v10213_v35 }
0x103c   : > { %v5289_v4 = vmul.f32 %v10382_v45, %v5257_v6  ;;  %v5100_v22 = vmul.f32 0.3275911, %v10395_v27  ;;  %v5733_v59 = vsub.f32 0.0, %v5669_v53  ;;  %v5448_v60 = vadd.f32 0.2548296, %v5416_v36 }
0x103d   : > { %v5258_v14 = vadd.f32 -1.4531521, %v5226_v7  ;;  %v5764_v56 = vsel %vm5700_vm9, %v5668_v46, %v5732_v40  ;;  %v5766_v24 = vsel %vm5702_vm10, %v5670_v32, %v5734_v37  ;;  %v5826_v63 = vmul.f32 %v5794_v54, %v10251_v43 }
0x103e   : > { %v5321_v26 = vadd.f32 1.4214138, %v5289_v4  ;;  %v5132_v15 = vadd.f32 1.0, %v5100_v22  ;;  %v5480_v42 = vmul.f32 %v10341_v11, %v5448_v60  ;;  %7609 = vpow2.f32 %v5605_v2 }
0x103f   : > { %v5290_v6 = vmul.f32 %v10397_v3, %v5258_v14  ;;  %v5763_v35 = vsel %vm5699_vm11, %v5667_v10, %v5731_v0  ;;  %v5479_v47 = vmul.f32 %v10332_v39, %v5447_v13  ;;  %v5796_v46 = vadd.f32 1.0, %v5764_v56 }
0x1040   : > { %v5353_v55 = vmul.f32 %v10382_v45, %v5321_v26  ;;  %7611 = vrcp.f32 %v5132_v15  ;;  %v7604_v18 = vpop.eup %7603  ;;  %v5765_v40 = vsel %vm5701_vm12, %v5669_v53, %v5733_v59  ;;  %v5798_v43 = vadd.f32 1.0, %v5766_v24 }
0x1041   : > { %v5322_v54 = vadd.f32 1.4214138, %v5290_v6  ;;  %v5847_v60 = vpack.c.bf16 %v5825_v21, %v10296_v8  ;;  %v10419_v32 = vadd.f32 %v4970_v44, %v9720_v20  ;;  %v10422_v51 = vadd.f32 %v4972_v50, %v9724_v33 }
0x1042   : > { %v5385_v11 = vadd.f32 -0.28449672, %v5353_v55  ;;  %v5795_v13 = vadd.f32 1.0, %v5763_v35  ;;  %v5640_v39 = vmul.f32 %v7604_v18, %v5480_v42  ;;  %v5848_v0 = vpack.c.bf16 %v5826_v63, %v10344_v17 }
0x1043   : > { %v5354_v10 = vmul.f32 %v10397_v3, %v5322_v54  ;;  %v5797_v36 = vadd.f32 1.0, %v5765_v40  ;;  %v5639_v62 = vmul.f32 %v7602_v41, %v5479_v47  ;;  %v10428_v7 = vmul.f32 0.70710677, %v10419_v32 }
0x1044   : > { %v5417_v53 = vmul.f32 %v10382_v45, %v5385_v11  ;;  %v5828_v8 = vmul.f32 %v5796_v46, %v10280_v49  ;;  %v5830_v20 = vmul.f32 %v5798_v43, %v10347_v34  ;;  %v10433_v50 = vmul.f32 0.70710677, %v10422_v51  ;;  %6054 = vmatprep.mubr.bf16.mxu0 %v5848_v0 }
0x1045   : > { %v5386_v2 = vadd.f32 -0.28449672, %v5354_v10  ;;  %v5515_v63 = vsub.f32 0.0, %v10374_v9  ;;  %v5516_v17 = vsub.f32 0.0, %v10395_v27  ;;  %v10440_v41 = vand.u32 2147483647, %v10428_v7  ;;  %6055 = vmatmul.mubr.bf16.gmra.mxu0 %v5847_v60 }
0x1046   : > { %v10435_v33 = vpop.eup %7605  ;;  %v5449_v44 = vadd.f32 0.2548296, %v5417_v53  ;;  %vm5703_vm13 = vcmp.ge.f32.partialorder %v10241_v5, 0.0  ;;  %v5672_v49 = vsub.f32 1.0, %v5640_v39  ;;  %v10446_v4 = vand.u32 2147483647, %v10433_v50 }
0x1047   : > { %v5418_v34 = vmul.f32 %v10397_v3, %v5386_v2  ;;  %v5227_v37 = vmul.f32 1.0614054, %v10435_v33  ;;  %v7608_v22 = vpop.eup %7607  ;;  %v5829_v21 = vmul.f32 %v5797_v36, %v10287_v52  ;;  %v5671_v59 = vsub.f32 1.0, %v5639_v62 }
0x1048   : > { %v5481_v14 = vmul.f32 %v10382_v45, %v5449_v44  ;;  %v5101_v56 = vmul.f32 0.3275911, %v10440_v41  ;;  %v5102_v15 = vmul.f32 0.3275911, %v10446_v4  ;;  %v5850_v42 = vpack.c.bf16 %v5830_v20, %v5828_v8 }
0x1049   : > { %v5450_v24 = vadd.f32 0.2548296, %v5418_v34  ;;  %v5259_v26 = vadd.f32 -1.4531521, %v5227_v37  ;;  %v5827_v6 = vmul.f32 %v5795_v13, %v10254_v1  ;;  %v5547_v47 = vmul.f32 %v5515_v63, %v10374_v9 }
0x104a   : > { %v5641_v35 = vmul.f32 %v7608_v22, %v5481_v14  ;;  %v5133_v55 = vadd.f32 1.0, %v5101_v56  ;;  %v5736_v18 = vsub.f32 0.0, %v5672_v49  ;;  %v5134_v40 = vadd.f32 1.0, %v5102_v15  ;;  %6062 = vmatprep.mubr.bf16.mxu0 %v5850_v42 }
0x104b   : > { %v5482_v46 = vmul.f32 %v10397_v3, %v5450_v24  ;;  %v5291_v52 = vmul.f32 %v10435_v33, %v5259_v26  ;;  %v7610_v45 = vpop.eup %7609  ;;  %v5849_v43 = vpack.c.bf16 %v5829_v21, %v5827_v6  ;;  %v5735_v54 = vsub.f32 0.0, %v5671_v59 }
0x104c   : > { %v5673_v60 = vsub.f32 1.0, %v5641_v35  ;;  %7613 = vrcp.f32 %v5133_v55  ;;  %v5548_v1 = vmul.f32 %v5516_v17, %v10395_v27  ;;  %v5000_v9 = vmul.f32 0.5, %v10247_v25 }
0x104d   : > { %v7612_v11 = vpop.eup %7611  ;;  %v5642_v39 = vmul.f32 %v7610_v45, %v5482_v46  ;;  %v5323_v10 = vadd.f32 1.4214138, %v5291_v52  ;;  %7615 = vrcp.f32 %v5134_v40  ;;  %vm5704_vm14 = vcmp.ge.f32.partialorder %v10262_v57, 0.0  ;;  %6063 = vmatmul.mubr.bf16.gmra.mxu0 %v5849_v43 }
0x104e   : > { %v5737_v3 = vsub.f32 0.0, %v5673_v60  ;;  %v5228_v13 = vmul.f32 1.0614054, %v7612_v11  ;;  %v5768_v0 = vsel %vm5704_vm14, %v5672_v49, %v5736_v18  ;;  %vm5705_vm15 = vcmp.ge.f32.partialorder %v10301_v23, 0.0 }
0x104f   : > { %v5674_v36 = vsub.f32 1.0, %v5642_v39  ;;  %v5607_v62 = vmul.f32 1.442695, %v5547_v47  ;;  %v5767_v53 = vsel %vm5703_vm13, %v5671_v59, %v5735_v54  ;;  %v5355_v20 = vmul.f32 %v10435_v33, %v5323_v10 }
0x1050   : > { %v5769_v8 = vsel %vm5705_vm15, %v5673_v60, %v5737_v3  ;;  %v5260_v27 = vadd.f32 -1.4531521, %v5228_v13  ;;  %v5001_v2 = vmul.f32 0.5, %v10292_v48  ;;  %v5609_v57 = vmul.f32 1.442695, %v5548_v1 }
0x1051   : > { %v5801_v25 = vadd.f32 1.0, %v5769_v8  ;;  %v5738_v44 = vsub.f32 0.0, %v5674_v36  ;;  %v5800_v63 = vadd.f32 1.0, %v5768_v0  ;;  %vm5706_vm0 = vcmp.ge.f32.partialorder %v10321_v19, 0.0 }
0x1052   : > { %v5292_v17 = vmul.f32 %v7612_v11, %v5260_v27  ;;  %v5517_v23 = vsub.f32 0.0, %v10440_v41  ;;  %v5799_v49 = vadd.f32 1.0, %v5767_v53  ;;  %v5002_v34 = vmul.f32 0.5, %v10306_v16 }
0x1053   : > { %v5770_v5 = vsel %vm5706_vm0, %v5674_v36, %v5738_v44  ;;  %v5518_v37 = vsub.f32 0.0, %v10446_v4  ;;  %v5387_v21 = vadd.f32 -0.28449672, %v5355_v20  ;;  %7617 = vpow2.f32 %v5607_v62 }
0x1054   : > { %v5802_v22 = vadd.f32 1.0, %v5770_v5  ;;  %v5324_v59 = vadd.f32 1.4214138, %v5292_v17  ;;  %v4999_v48 = vmul.f32 0.5, %v10234_v61  ;;  %v5833_v14 = vmul.f32 %v5801_v25, %v5001_v2 }
0x1055   : > { %7619 = vpow2.f32 %v5609_v57  ;;  %v5832_v56 = vmul.f32 %v5800_v63, %v5000_v9  ;;  %v5549_v26 = vmul.f32 %v5517_v23, %v10440_v41  ;;  %v5550_v42 = vmul.f32 %v5518_v37, %v10446_v4 }
0x1056   : > { %v5834_v24 = vmul.f32 %v5802_v22, %v5002_v34  ;;  %v5356_v19 = vmul.f32 %v7612_v11, %v5324_v59  ;;  %v5831_v15 = vmul.f32 %v5799_v49, %v4999_v48  ;;  %v5419_v16 = vmul.f32 %v10435_v33, %v5387_v21 }
0x1057   : > { %v5611_v61 = vmul.f32 1.442695, %v5549_v26  ;;  %v5613_v45 = vmul.f32 1.442695, %v5550_v42  ;;  %vm5708_vm1 = vcmp.ge.f32.partialorder %v10386_v31, 0.0  ;;  %vm5707_vm2 = vcmp.ge.f32.partialorder %v10363_v58, 0.0 }
0x1058   : > { %v5388_v6 = vadd.f32 -0.28449672, %v5356_v19  ;;  %v5852_v35 = vpack.c.bf16 %v5834_v24, %v5832_v56  ;;  %v5851_v55 = vpack.c.bf16 %v5833_v14, %v5831_v15  ;;  %v5451_v43 = vadd.f32 0.2548296, %v5419_v16 }
0x1059   : > { %v7614_v47 = vpop.eup %7613  ;;  %7621 = vpow2.f32 %v5611_v61  ;;  %vm5709_vm3 = vcmp.ge.f32.partialorder %v10428_v7, 0.0  ;;  %vm5710_vm4 = vcmp.ge.f32.partialorder %v10433_v50, 0.0  ;;  %v5005_v42 = vmul.f32 0.5, %v10419_v32 }
0x105a   : > { %v7616_v18 = vpop.eup %7615  ;;  %v5420_v46 = vmul.f32 %v7612_v11, %v5388_v6  ;;  %v5229_v52 = vmul.f32 1.0614054, %v7614_v47  ;;  %6070 = vmatprep.mubr.bf16.mxu0 %v5852_v35  ;;  %7623 = vpow2.f32 %v5613_v45  ;;  %v5483_v1 = vmul.f32 %v10435_v33, %v5451_v43 }
0x105b   : > { %v5230_v40 = vmul.f32 1.0614054, %v7616_v18  ;;  %6071 = vmatmul.mubr.bf16.gmra.mxu0 %v5851_v55  ;;  %v5004_v31 = vmul.f32 0.5, %v10368_v28  ;;  %v5006_v58 = vmul.f32 0.5, %v10422_v51  ;;  %v10484_v28 = vld [vmem:[%s10548_s12] ss:$0 sm:$0xff] }
0x105c   : > { %v5452_v54 = vadd.f32 0.2548296, %v5420_v46  ;;  %v5261_v41 = vadd.f32 -1.4531521, %v5229_v52 }
0x105d   : > { %v5262_v60 = vadd.f32 -1.4531521, %v5230_v40 }
0x105e   : > { %v5293_v39 = vmul.f32 %v7614_v47, %v5261_v41  ;;  %v5484_v4 = vmul.f32 %v7612_v11, %v5452_v54 }
0x105f   : > { %v5294_v10 = vmul.f32 %v7616_v18, %v5262_v60 }
0x1060   : > { %v5325_v9 = vadd.f32 1.4214138, %v5293_v39  ;;  %v7618_v3 = vpop.eup %7617 }
0x1061   : > { %v5326_v13 = vadd.f32 1.4214138, %v5294_v10  ;;  %v5643_v8 = vmul.f32 %v7618_v3, %v5483_v1 }
0x1062   : > { %v7620_v0 = vpop.eup %7619  ;;  %v5357_v36 = vmul.f32 %v7614_v47, %v5325_v9 }
0x1063   : > { %v5644_v62 = vmul.f32 %v7620_v0, %v5484_v4  ;;  %v5358_v53 = vmul.f32 %v7616_v18, %v5326_v13  ;;  %v5675_v57 = vsub.f32 1.0, %v5643_v8 }
0x1064   : > { %v5389_v20 = vadd.f32 -0.28449672, %v5357_v36  ;;  %v10659_v36 = vld [vmem:[#allocation22_spill] sm:$0xff] }
0x1065   : > { %v5390_v27 = vadd.f32 -0.28449672, %v5358_v53  ;;  %v5676_v25 = vsub.f32 1.0, %v5644_v62  ;;  %v5739_v5 = vsub.f32 0.0, %v5675_v57 }
0x1066   : > { %v5421_v2 = vmul.f32 %v7614_v47, %v5389_v20  ;;  %v7622_v23 = vpop.eup %7621 }
0x1067   : > { %v5422_v44 = vmul.f32 %v7616_v18, %v5390_v27  ;;  %v5740_v49 = vsub.f32 0.0, %v5676_v25  ;;  %v7624_v34 = vpop.eup %7623  ;;  %v5771_v14 = vsel %vm5707_vm2, %v5675_v57, %v5739_v5 }
0x1068   : > { %v5453_v63 = vadd.f32 0.2548296, %v5421_v2  ;;  %v5803_v15 = vadd.f32 1.0, %v5771_v14  ;;  %v10662_v14 = vld [vmem:[#allocation21_spill] sm:$0xff] }
0x1069   : > { %v5454_v11 = vadd.f32 0.2548296, %v5422_v44  ;;  %v5772_v59 = vsel %vm5708_vm1, %v5676_v25, %v5740_v49 }
0x106a   : > { %v5485_v17 = vmul.f32 %v7614_v47, %v5453_v63  ;;  %v5804_v19 = vadd.f32 1.0, %v5772_v59  ;;  %v5003_v47 = vmul.f32 0.5, %v10350_v38 }
0x106b   : > { %v5486_v33 = vmul.f32 %v7616_v18, %v5454_v11  ;;  %v10660_v11 = vld [vmem:[#allocation20_spill] sm:$0xff] }
0x106c   : > { %v5645_v37 = vmul.f32 %v7622_v23, %v5485_v17  ;;  %v5836_v18 = vmul.f32 %v5804_v19, %v5004_v31  ;;  %v5835_v46 = vmul.f32 %v5803_v15, %v5003_v47  ;;  %v10661_v23 = vld [vmem:[#allocation24_spill] sm:$0xff] }
0x106d   : > { %v5646_v22 = vmul.f32 %v7624_v34, %v5486_v33 }
0x106e   : > { %v5677_v21 = vsub.f32 1.0, %v5645_v37 }
0x106f   : > { %v5678_v48 = vsub.f32 1.0, %v5646_v22 }
0x1070   : > { %v5741_v56 = vsub.f32 0.0, %v5677_v21 }
0x1071   : > { %v5742_v24 = vsub.f32 0.0, %v5678_v48 }
0x1072   : > { %v5773_v26 = vsel %vm5709_vm3, %v5677_v21, %v5741_v56 }
0x1073   : > { %v5805_v16 = vadd.f32 1.0, %v5773_v26  ;;  %v5774_v6 = vsel %vm5710_vm4, %v5678_v48, %v5742_v24  ;;  %v10663_v24 = vld [vmem:[#allocation23_spill] sm:$0xff] }
0x1074   : > { %v5806_v35 = vadd.f32 1.0, %v5774_v6 }
0x1075   : > { %v5837_v55 = vmul.f32 %v5805_v16, %v5005_v42 }
0x1076   : > { %v5838_v7 = vmul.f32 %v5806_v35, %v5006_v58 }
0x1077   : > { %v5853_v61 = vpack.c.bf16 %v5837_v55, %v5835_v46 }
0x1078   : > { %v5854_v52 = vpack.c.bf16 %v5838_v7, %v5836_v18  ;;  %v10664_v7 = vld [vmem:[#allocation26_spill] sm:$0xff] }
0x107a   : > { %6078 = vmatprep.mubr.bf16.mxu0 %v5854_v52  ;;  %v10665_v52 = vld [vmem:[#allocation3_spill] sm:$0xff] }
0x107b   : > { %6079 = vmatmul.mubr.bf16.gmra.mxu0 %v5853_v61 }
0x1092   : > { %v6684_v50 = vpop.f32.mrf.mxu0 }
0x1094   : > { %v6685_v32 = vpop.f32.mrf.mxu0 }
0x1095   : > { %v6686_v40 = vadd.f32 %v6685_v32, %v6684_v50 }
0x1096   : > { %v6687_v51 = vpop.f32.mrf.mxu0 }
0x1097   : > { %v6025_v38 = vadd.f32 %v6686_v40, %v10484_v28 }
0x1098   : > { %v6688_v45 = vpop.f32.mrf.mxu0 }
0x1099   : > { %v6689_v43 = vadd.f32 %v6688_v45, %v6687_v51  ;;  %v6087_v39 = vadd.f32 %v6025_v38, %v9412_v29 }
0x109a   : > { %v6690_v54 = vpop.f32.mrf.mxu0 }
0x109b   : > { %v6028_v41 = vadd.f32 %v6689_v43, %v10484_v28 }
0x109c   : > { %v6691_v60 = vpop.f32.mrf.mxu0 }
0x109d   : > { %v6088_v4 = vadd.f32 %v6028_v41, %v9419_v30  ;;  %v6692_v10 = vadd.f32 %v6691_v60, %v6690_v54  ;;  %v10666_v54 = vld [vmem:[#allocation25_spill] sm:$0xff]  ;;  %v10667_v60 = vld [vmem:[#allocation4_spill] sm:$0xff] }
0x109e   : > { %v6693_v1 = vpop.f32.mrf.mxu0 }
0x109f   : > { %v6457_v9 = vpack.c.bf16 %v6088_v4, %v6087_v39  ;;  %v6033_v13 = vadd.f32 %v6692_v10, %v10484_v28 }
0x10a0   : > { %v6694_v3 = vpop.f32.mrf.mxu0 }
0x10a1   : > { %6458 = vst [vmem:[%s10495_s24] sm:$0xff] %v6457_v9   ;;  %v6695_v0 = vadd.f32 %v6694_v3, %v6693_v1  ;;  %v6089_v30 = vadd.f32 %v6033_v13, %v9416_v12 }
0x10a3   : > { %v6036_v29 = vadd.f32 %v6695_v0, %v10484_v28 }
0x10a5   : > { %v6090_v62 = vadd.f32 %v6036_v29, %v10659_v36  ;;  %v10668_v36 = vld [vmem:[#allocation5_spill] sm:$0xff] }
0x10a7   : > { %v6462_v53 = vpack.c.bf16 %v6090_v62, %v6089_v30 }
0x10a9   : > { %6501 = vst [vmem:[%s10495_s24 + $0x8] sm:$0xff] %v6462_v53   ;;  %v10669_v53 = vld [vmem:[#allocation7_spill] sm:$0xff] }
0x10c0   : > { %v6696_v8 = vpop.f32.mrf.mxu0 }
0x10c2   : > { %v6697_v20 = vpop.f32.mrf.mxu0 }
0x10c3   : > { %v6698_v27 = vadd.f32 %v6697_v20, %v6696_v8 }
0x10c4   : > { %v6699_v2 = vpop.f32.mrf.mxu0 }
0x10c5   : > { %v6041_v44 = vadd.f32 %v6698_v27, %v10484_v28 }
0x10c6   : > { %v6700_v25 = vpop.f32.mrf.mxu0 }
0x10c7   : > { %v6701_v57 = vadd.f32 %v6700_v25, %v6699_v2  ;;  %v6091_v17 = vadd.f32 %v6041_v44, %v10660_v11 }
0x10c9   : > { %v6044_v63 = vadd.f32 %v6701_v57, %v10484_v28 }
0x10cb   : > { %v6092_v49 = vadd.f32 %v6044_v63, %v10661_v23  ;;  %v10670_v23 = vld [vmem:[#allocation6_spill] sm:$0xff] }
0x10cd   : > { %v6467_v12 = vpack.c.bf16 %v6092_v49, %v6091_v17 }
0x10cf   : > { %6502 = vst [vmem:[%s10495_s24 + $0x10] sm:$0xff] %v6467_v12   ;;  %v10671_v12 = vld [vmem:[#allocation9_spill] sm:$0xff] }
0x10d1   : > { %v6702_v33 = vpop.f32.mrf.mxu0 }
0x10d3   : > { %v6703_v34 = vpop.f32.mrf.mxu0 }
0x10d4   : > { %v6704_v5 = vadd.f32 %v6703_v34, %v6702_v33 }
0x10d5   : > { %v6705_v37 = vpop.f32.mrf.mxu0 }
0x10d6   : > { %v6049_v21 = vadd.f32 %v6704_v5, %v10484_v28 }
0x10d7   : > { %v6706_v22 = vpop.f32.mrf.mxu0 }
0x10d8   : > { %v6707_v59 = vadd.f32 %v6706_v22, %v6705_v37  ;;  %v6093_v56 = vadd.f32 %v6049_v21, %v10662_v14 }
0x10da   : > { %v6052_v48 = vadd.f32 %v6707_v59, %v10484_v28 }
0x10dc   : > { %v6094_v19 = vadd.f32 %v6052_v48, %v10663_v24 }
0x10de   : > { %v6472_v26 = vpack.c.bf16 %v6094_v19, %v6093_v56 }
0x10e0   : > { %6503 = vst [vmem:[%s10495_s24 + $0x18] sm:$0xff] %v6472_v26  }
0x1105   : > { %v6708_v15 = vpop.f32.mrf.mxu0 }
0x1107   : > { %v6709_v42 = vpop.f32.mrf.mxu0 }
0x1108   : > { %v6710_v16 = vadd.f32 %v6709_v42, %v6708_v15 }
0x1109   : > { %v6711_v6 = vpop.f32.mrf.mxu0 }
0x110a   : > { %v6057_v58 = vadd.f32 %v6710_v16, %v10484_v28 }
0x110b   : > { %v6712_v31 = vpop.f32.mrf.mxu0 }
0x110c   : > { %v6713_v35 = vadd.f32 %v6712_v31, %v6711_v6  ;;  %v6095_v46 = vadd.f32 %v6057_v58, %v10664_v7 }
0x110d   : > { %v6714_v47 = vpop.f32.mrf.mxu0 }
0x110e   : > { %v6060_v55 = vadd.f32 %v6713_v35, %v10484_v28 }
0x110f   : > { %v6715_v18 = vpop.f32.mrf.mxu0 }
0x1110   : > { %v6096_v61 = vadd.f32 %v6060_v55, %v10665_v52  ;;  %v6716_v50 = vadd.f32 %v6715_v18, %v6714_v47 }
0x1111   : > { %v6717_v32 = vpop.f32.mrf.mxu0 }
0x1112   : > { %v6477_v40 = vpack.c.bf16 %v6096_v61, %v6095_v46  ;;  %v6065_v45 = vadd.f32 %v6716_v50, %v10484_v28 }
0x1113   : > { %v6718_v51 = vpop.f32.mrf.mxu0 }
0x1114   : > { %6504 = vst [vmem:[%s10495_s24 + $0x20] sm:$0xff] %v6477_v40   ;;  %v6719_v38 = vadd.f32 %v6718_v51, %v6717_v32  ;;  %v6097_v41 = vadd.f32 %v6065_v45, %v10666_v54 }
0x1116   : > { %v6068_v43 = vadd.f32 %v6719_v38, %v10484_v28 }
0x1118   : > { %v6098_v39 = vadd.f32 %v6068_v43, %v10667_v60 }
0x111a   : > { %v6482_v4 = vpack.c.bf16 %v6098_v39, %v6097_v41 }
0x111b   : > { %v6720_v10 = vpop.f32.mrf.mxu0 }
0x111c   : > { %6505 = vst [vmem:[%s10495_s24 + $0x28] sm:$0xff] %v6482_v4  }
0x111d   : > { %v6721_v1 = vpop.f32.mrf.mxu0 }
0x111e   : > { %v6722_v9 = vadd.f32 %v6721_v1, %v6720_v10 }
0x111f   : > { %v6723_v3 = vpop.f32.mrf.mxu0 }
0x1120   : > { %v6073_v0 = vadd.f32 %v6722_v9, %v10484_v28 }
0x1121   : > { %v6724_v13 = vpop.f32.mrf.mxu0 }
0x1122   : > { %v6725_v29 = vadd.f32 %v6724_v13, %v6723_v3  ;;  %v6099_v62 = vadd.f32 %v6073_v0, %v10668_v36 }
0x1124   : > { %v6076_v30 = vadd.f32 %v6725_v29, %v10484_v28 }
0x1126   : > { %v6100_v8 = vadd.f32 %v6076_v30, %v10669_v53 }
0x1128   : > { %v6487_v20 = vpack.c.bf16 %v6100_v8, %v6099_v62 }
0x112a   : > { %6506 = vst [vmem:[%s10495_s24 + $0x30] sm:$0xff] %v6487_v20  }
0x113b   : > { %v6726_v27 = vpop.f32.mrf.mxu0 }
0x113d   : > { %v6727_v2 = vpop.f32.mrf.mxu0 }
0x113e   : > { %v6728_v25 = vadd.f32 %v6727_v2, %v6726_v27 }
0x113f   : > { %v6729_v44 = vpop.f32.mrf.mxu0 }
0x1140   : > { %v6081_v63 = vadd.f32 %v6728_v25, %v10484_v28 }
0x1141   : > { %v6730_v57 = vpop.f32.mrf.mxu0 }
0x1142   : > { %v6731_v11 = vadd.f32 %v6730_v57, %v6729_v44  ;;  %v6101_v49 = vadd.f32 %v6081_v63, %v10670_v23 }
0x1144   : > { %v6084_v17 = vadd.f32 %v6731_v11, %v10484_v28 }
0x1146   : > { %v6102_v33 = vadd.f32 %v6084_v17, %v10671_v12 }
0x1148   : > { %v6492_v34 = vpack.c.bf16 %v6102_v33, %v6101_v49 }
0x114a   : > { %6507 = vst [vmem:[%s10495_s24 + $0x38] sm:$0xff] %v6492_v34  }
0x114b PF: > { %s23_s25 = sadd.s32 1, %s7631_s25  }
0x114c   : > { %p20_p4 = scmp.ge.s32.totalorder %s23_s25, 4  }
0x114e   :  { %22 = sbr.rel (!%p20_p4) target bundleno = 1 (0x1), region = 102 }

</bundles_post_ra>
